<compile_context>
chip_gen: v6e
topology: v6e:2x2x1
jax: 0.10.0
libtpu: 0.0.40
codegen_flags: <defaults>
</compile_context>

<pallas_src>
import functools

import jax
import jax.numpy as jnp
from jax.experimental import pallas as pl
from jax.experimental.pallas import tpu as pltpu

BN_EPS = 1e-5
_VMEM_LIMIT = 48 * 1024 * 1024  # fits v7x's 64 MiB physical VMEM with headroom


def _round_up(x, m):
    return ((x + m - 1) // m) * m


# ----------------------------------------------------------------------------
# Kernel 1: ConvTranspose2d(k=2, s=2) as a per-image matmul (lane-padded output)
# ----------------------------------------------------------------------------
def _upsample_kernel(x_ref, w_ref, b_ref, o_ref, *, h):
    # x_ref: (1, H, W, Cin) bf16 ; w_ref: (Cin, NUP) bf16 ; b_ref: (1, NUP) f32
    # o_ref: (1, H, W, NUP)  columns ordered (dy, dx, co) then zero padding.
    w = w_ref[...]
    b = b_ref[...]
    for i in range(h):                                   # static unroll, 2-D dots only
        row = x_ref[0, i]                                # (W, Cin)
        y = jnp.dot(row, w, preferred_element_type=jnp.float32) + b
        o_ref[0, i] = y.astype(o_ref.dtype)


def upsample_matmul(x1_bf16, w_up, b_up):
    n, h, w, cin = x1_bf16.shape
    nup = w_up.shape[1]
    kernel = functools.partial(_upsample_kernel, h=h)
    return pl.pallas_call(
        kernel,
        grid=(n,),
        in_specs=[
            pl.BlockSpec((1, h, w, cin), lambda bi: (bi, 0, 0, 0)),
            pl.BlockSpec((cin, nup), lambda bi: (0, 0)),
            pl.BlockSpec((1, nup), lambda bi: (0, 0)),
        ],
        out_specs=pl.BlockSpec((1, h, w, nup), lambda bi: (bi, 0, 0, 0)),
        out_shape=jax.ShapeDtypeStruct((n, h, w, nup), jnp.bfloat16),
        compiler_params=pltpu.CompilerParams(
            dimension_semantics=("parallel",),
            vmem_limit_bytes=_VMEM_LIMIT,
        ),
    )(x1_bf16, w_up, b_up)


# ----------------------------------------------------------------------------
# Kernel 2: 9x9 conv (shifted matmuls) + per-image BN partial statistics
# ----------------------------------------------------------------------------
def _conv_stats_kernel(x_ref, w_ref, y_ref, s_ref, ss_ref, acc_ref,
                       *, kh, kw, ho, wo, cin):
    # x_ref : (1, Hp, Wp, Cin)        bf16   (resident across jc, ky)
    # w_ref : (1, kw*Cin, TC_N)       bf16   (one ky-slice of the HWIO weight)
    # y_ref : (1, Ho, Wo, TC_N)       f32    conv output (pre-BN)
    # s_ref / ss_ref : (1, 1, TC_N)   f32    per-image sum / sum-of-squares
    # acc_ref: (Ho, Wo, TC_N)         f32    VMEM accumulator
    ky = pl.program_id(2)

    @pl.when(ky == 0)
    def _():
        acc_ref[...] = jnp.zeros_like(acc_ref)

    # One (Cin, TC_N) weight tap per kx (static, aligned slices).
    w_taps = [w_ref[0, kx * cin:(kx + 1) * cin, :] for kx in range(kw)]

    # Per output row: accumulate 9 shifted (Wo, Cin) @ (Cin, TC_N) MXU matmuls.
    for i in range(ho):
        partial = jnp.dot(x_ref[0, i + ky, 0:wo, :], w_taps[0],
                          preferred_element_type=jnp.float32)
        for kx in range(1, kw):
            partial = partial + jnp.dot(x_ref[0, i + ky, kx:kx + wo, :], w_taps[kx],
                                        preferred_element_type=jnp.float32)
        acc_ref[i] += partial

    @pl.when(ky == kh - 1)
    def _():
        acc = acc_ref[...]
        y_ref[0] = acc
        s_ref[0] = jnp.sum(jnp.sum(acc, axis=0), axis=0, keepdims=True)
        ss_ref[0] = jnp.sum(jnp.sum(acc * acc, axis=0), axis=0, keepdims=True)


def _conv_stats_call(xp, w_mat, *, kh, kw, ho, wo, cin, cout_pad, tc_n):
    n, hp, wp, _ = xp.shape
    n_ct = cout_pad // tc_n
    kernel = functools.partial(_conv_stats_kernel, kh=kh, kw=kw, ho=ho, wo=wo, cin=cin)
    flops = 2 * n * ho * wo * kh * kw * cin * cout_pad
    bytes_accessed = int(xp.size * 2 + w_mat.size * 2
                         + n * ho * wo * cout_pad * 4 + 2 * n * cout_pad * 4)
    return pl.pallas_call(
        kernel,
        grid=(n, n_ct, kh),
        in_specs=[
            pl.BlockSpec((1, hp, wp, cin), lambda bi, jc, ky: (bi, 0, 0, 0)),
            pl.BlockSpec((1, kw * cin, tc_n), lambda bi, jc, ky: (ky, 0, jc)),
        ],
        out_specs=(
            pl.BlockSpec((1, ho, wo, tc_n), lambda bi, jc, ky: (bi, 0, 0, jc)),
            pl.BlockSpec((1, 1, tc_n), lambda bi, jc, ky: (bi, 0, jc)),
            pl.BlockSpec((1, 1, tc_n), lambda bi, jc, ky: (bi, 0, jc)),
        ),
        out_shape=(
            jax.ShapeDtypeStruct((n, ho, wo, cout_pad), jnp.float32),
            jax.ShapeDtypeStruct((n, 1, cout_pad), jnp.float32),
            jax.ShapeDtypeStruct((n, 1, cout_pad), jnp.float32),
        ),
        scratch_shapes=[pltpu.VMEM((ho, wo, tc_n), jnp.float32)],
        compiler_params=pltpu.CompilerParams(
            dimension_semantics=("parallel", "parallel", "arbitrary"),
            vmem_limit_bytes=_VMEM_LIMIT,
        ),
        cost_estimate=pl.CostEstimate(flops=flops, transcendentals=0,
                                      bytes_accessed=bytes_accessed),
    )(xp, w_mat)


# ----------------------------------------------------------------------------
# Kernel 3: BatchNorm (global batch stats from partials) + ReLU, tiled over (N, Cout)
# ----------------------------------------------------------------------------
def _bn_relu_kernel(y_ref, s_ref, ss_ref, g_ref, b_ref, o_ref, *, count, eps):
    s = jnp.sum(s_ref[...], axis=0)            # (1, TC_N) global sum over batch
    ss = jnp.sum(ss_ref[...], axis=0)
    inv_cnt = 1.0 / count
    mean = s * inv_cnt
    var = jnp.maximum(ss * inv_cnt - mean * mean, 0.0)   # biased variance
    scale = jax.lax.rsqrt(var + eps) * g_ref[...]
    shift = b_ref[...] - mean * scale
    scale4 = scale.reshape(1, 1, 1, scale.shape[-1])
    shift4 = shift.reshape(1, 1, 1, shift.shape[-1])
    o_ref[...] = jnp.maximum(y_ref[...] * scale4 + shift4, 0.0).astype(o_ref.dtype)


def _bn_relu_call(y, s, ss, g, b, *, tc_n, out_dtype):
    n, ho, wo, cout_pad = y.shape
    n_ct = cout_pad // tc_n
    count = float(n * ho * wo)
    kernel = functools.partial(_bn_relu_kernel, count=count, eps=BN_EPS)
    return pl.pallas_call(
        kernel,
        grid=(n, n_ct),
        in_specs=[
            pl.BlockSpec((1, ho, wo, tc_n), lambda bi, jc: (bi, 0, 0, jc)),
            pl.BlockSpec((n, 1, tc_n), lambda bi, jc: (0, 0, jc)),
            pl.BlockSpec((n, 1, tc_n), lambda bi, jc: (0, 0, jc)),
            pl.BlockSpec((1, tc_n), lambda bi, jc: (0, jc)),
            pl.BlockSpec((1, tc_n), lambda bi, jc: (0, jc)),
        ],
        out_specs=pl.BlockSpec((1, ho, wo, tc_n), lambda bi, jc: (bi, 0, 0, jc)),
        out_shape=jax.ShapeDtypeStruct((n, ho, wo, cout_pad), out_dtype),
        compiler_params=pltpu.CompilerParams(
            dimension_semantics=("parallel", "parallel"),
            vmem_limit_bytes=_VMEM_LIMIT,
        ),
    )(y, s, ss, g, b)


# ----------------------------------------------------------------------------
# Conv2d(k=9, pad=1, bias=False) -> BN(batch stats) -> ReLU  (two Pallas passes)
# ----------------------------------------------------------------------------
def conv_bn_relu(x_nhwc, w_hwio, gamma, beta, *, out_dtype):
    n, h_in, w_in, cin = x_nhwc.shape
    kh, kw, wcin, cout = w_hwio.shape
    xp = jnp.pad(x_nhwc, ((0, 0), (1, 1), (1, 1), (0, 0))).astype(jnp.bfloat16)
    hp, wp = h_in + 2, w_in + 2
    ho, wo = hp - kh + 1, wp - kw + 1

    cout_pad = _round_up(cout, 128)          # lane-dense output channels
    wq = w_hwio
    if wcin < cin:                           # caller may carry lane-padded (zero) channels
        wq = jnp.pad(wq, ((0, 0), (0, 0), (0, cin - wcin), (0, 0)))
    wq = jnp.pad(wq, ((0, 0), (0, 0), (0, 0), (0, cout_pad - cout)))
    w_mat = wq.reshape(kh, kw * cin, cout_pad).astype(jnp.bfloat16)   # rows = (kx, ci)
    g = jnp.pad(gamma, (0, cout_pad - cout)).reshape(1, cout_pad).astype(jnp.float32)
    b = jnp.pad(beta, (0, cout_pad - cout)).reshape(1, cout_pad).astype(jnp.float32)

    tc_n = 256 if cout_pad % 256 == 0 else 128   # 256-wide N tiles on v6e/v7x, 128 otherwise

    y, s, ss = _conv_stats_call(xp, w_mat, kh=kh, kw=kw, ho=ho, wo=wo,
                                cin=cin, cout_pad=cout_pad, tc_n=tc_n)
    return _bn_relu_call(y, s, ss, g, b, tc_n=tc_n, out_dtype=out_dtype)


# ----------------------------------------------------------------------------
# Up.forward (bilinear=False path)
# ----------------------------------------------------------------------------
def up_forward(x1_nchw, x2_nchw, params):
    x1 = jnp.transpose(x1_nchw, (0, 2, 3, 1)).astype(jnp.float32)   # NHWC
    x2 = jnp.transpose(x2_nchw, (0, 2, 3, 1)).astype(jnp.float32)   # NHWC

    n, h, w, cin = x1.shape
    cmid = cin // 2

    # --- ConvTranspose2d(cin, cin//2, k=2, s=2) ---
    nup = _round_up(4 * cmid, 128)
    w_up = jnp.transpose(params["up_w"], (0, 2, 3, 1)).reshape(cin, 4 * cmid)  # (dy,dx,co)
    w_up = jnp.pad(w_up, ((0, 0), (0, nup - 4 * cmid))).astype(jnp.bfloat16)
    b_up = jnp.pad(jnp.tile(params["up_b"], 4), (0, nup - 4 * cmid))
    b_up = b_up.reshape(1, nup).astype(jnp.float32)
    y_up = upsample_matmul(x1.astype(jnp.bfloat16), w_up, b_up)      # (n,h,w,nup) bf16

    # interleave (dy, dx) planes -> (n, 2h, 2w, cmid)   (tiny XLA glue)
    y4 = y_up[..., :4 * cmid].reshape(n, h, w, 2, 2, cmid)
    x1_up = jnp.transpose(y4, (0, 1, 3, 2, 4, 5)).reshape(n, 2 * h, 2 * w, cmid)

    # --- F.pad to match skip, then channel concat [x2, x1_up] ---
    dy = x2.shape[1] - x1_up.shape[1]
    dx = x2.shape[2] - x1_up.shape[2]
    x1_up = jnp.pad(x1_up, ((0, 0), (dy // 2, dy - dy // 2),
                            (dx // 2, dx - dx // 2), (0, 0)))
    x_cat = jnp.concatenate([x2.astype(jnp.bfloat16), x1_up], axis=-1)   # (n,H2,W2,cin)

    # --- DoubleConv: (Conv2d k=9 pad=1, no bias -> BN -> ReLU) x 2 ---
    y1 = conv_bn_relu(x_cat, params["conv1_w"], params["bn1_gamma"], params["bn1_beta"],
                      out_dtype=jnp.bfloat16)                            # lane-padded channels
    y2 = conv_bn_relu(y1, params["conv2_w"], params["bn2_gamma"], params["bn2_beta"],
                      out_dtype=jnp.float32)

    cout = params["conv2_w"].shape[-1]
    return jnp.transpose(y2[..., :cout], (0, 3, 1, 2))                   # back to NCHW


def init_params(key, in_channels, out_channels):
    """Deterministic parameter init matching Up(in_channels, out_channels, bilinear=False)."""
    cmid_up = in_channels // 2
    mid = out_channels
    k1, k2, k3, k4 = jax.random.split(key, 4)
    return {
        # ConvTranspose2d(in, in//2, k=2, s=2): weight (Cin, Cout, 2, 2), bias (Cout,)
        "up_w": 0.1 * jax.random.normal(k1, (in_channels, cmid_up, 2, 2), jnp.float32),
        "up_b": 0.1 * jax.random.normal(k2, (cmid_up,), jnp.float32),
        # Conv2d(in, mid, k=9, pad=1, bias=False): HWIO
        "conv1_w": 0.05 * jax.random.normal(k3, (9, 9, in_channels, mid), jnp.float32),
        "bn1_gamma": jnp.ones((mid,), jnp.float32),
        "bn1_beta": jnp.zeros((mid,), jnp.float32),
        # Conv2d(mid, out, k=9, pad=1, bias=False): HWIO
        "conv2_w": 0.05 * jax.random.normal(k4, (9, 9, mid, out_channels), jnp.float32),
        "bn2_gamma": jnp.ones((out_channels,), jnp.float32),
        "bn2_beta": jnp.zeros((out_channels,), jnp.float32),
    }


if __name__ == "__main__":
    N = 2
    in_channels = 8
    out_channels = 4
    H = W = 8  # decoder feature map; skip connection is 2H x 2W

    key = jax.random.PRNGKey(0)
    kx1, kx2, kp = jax.random.split(key, 3)
    x1 = jax.random.normal(kx1, (N, in_channels, H, W), jnp.float32)                 # NCHW
    x2 = jax.random.normal(kx2, (N, in_channels // 2, 2 * H, 2 * W), jnp.float32)    # NCHW
    params = init_params(kp, in_channels, out_channels)

    fwd = jax.jit(functools.partial(up_forward, params=params))
    out = jax.block_until_ready(fwd(x1, x2))

    # Conv2d(k=9, pad=1) shrinks spatial dims by 6 per conv: 16 -> 10 -> 4.
    assert out.shape == (N, out_channels, 2 * H - 12, 2 * W - 12), out.shape
    assert bool(jnp.all(jnp.isfinite(out)))
    print("KERNEL_OK")
</pallas_src>

<mosaic_0001>
module attributes {stable_mosaic.version = 11 : i64} {
  func.func @_upsample_kernel(%arg0: i32, %arg1: memref<1x8x8x8xbf16, #tpu.memory_space<vmem>>, %arg2: memref<8x128xbf16, #tpu.memory_space<vmem>>, %arg3: memref<1x128xf32, #tpu.memory_space<vmem>>, %arg4: memref<1x8x8x128xbf16, #tpu.memory_space<vmem>>) attributes {dimension_semantics = [#tpu.dimension_semantics<parallel>], iteration_bounds = array<i64: 2>, scalar_prefetch = 0 : i64, scratch_operands = 0 : i64, tpu.core_type = #tpu.core_type<tc>, window_params = [{transform_indices = @transform_0, window_bounds = array<i64: 1, 8, 8, 8>}, {pipeline_mode = #tpu.pipeline_mode<synchronous>, transform_indices = @transform_1, window_bounds = array<i64: 8, 128>}, {pipeline_mode = #tpu.pipeline_mode<synchronous>, transform_indices = @transform_2, window_bounds = array<i64: 1, 128>}, {transform_indices = @transform_3, window_bounds = array<i64: 1, 8, 8, 128>}]} {
    %c0 = arith.constant 0 : index
    %c0_0 = arith.constant 0 : index
    %0 = vector.load %arg2[%c0, %c0_0] : memref<8x128xbf16, #tpu.memory_space<vmem>>, vector<8x128xbf16>
    %c0_1 = arith.constant 0 : index
    %c0_2 = arith.constant 0 : index
    %1 = vector.load %arg3[%c0_1, %c0_2] : memref<1x128xf32, #tpu.memory_space<vmem>>, vector<1x128xf32>
    %c0_3 = arith.constant 0 : index
    %c0_4 = arith.constant 0 : index
    %c0_5 = arith.constant 0 : index
    %c0_6 = arith.constant 0 : index
    %2 = vector.load %arg1[%c0_3, %c0_4, %c0_5, %c0_6] : memref<1x8x8x8xbf16, #tpu.memory_space<vmem>>, vector<1x1x8x8xbf16>
    %3 = vector.shape_cast %2 : vector<1x1x8x8xbf16> to vector<8x8xbf16>
    %cst = arith.constant dense<0.000000e+00> : vector<8x128xf32>
    %4 = tpu.matmul %3, %0, %cst {dimension_numbers = #tpu.dot_dimension_numbers<[1], [0], [0], [1], [0, 0, 1, 1], [], []>} : vector<8x8xbf16>, vector<8x128xbf16>, vector<8x128xf32> -> vector<8x128xf32>
    %5 = vector.broadcast %1 : vector<1x128xf32> to vector<8x128xf32>
    %6 = arith.addf %4, %5 : vector<8x128xf32>
    %7 = arith.truncf %6 : vector<8x128xf32> to vector<8x128xbf16>
    %c0_7 = arith.constant 0 : index
    %c0_8 = arith.constant 0 : index
    %c0_9 = arith.constant 0 : index
    %c0_10 = arith.constant 0 : index
    %8 = vector.load %arg4[%c0_7, %c0_8, %c0_9, %c0_10] : memref<1x8x8x128xbf16, #tpu.memory_space<vmem>>, vector<1x1x8x128xbf16>
    %9 = vector.shape_cast %8 : vector<1x1x8x128xbf16> to vector<8x128xbf16>
    %10 = vector.shape_cast %7 : vector<8x128xbf16> to vector<1x1x8x128xbf16>
    tpu.vector_store %arg4[%c0_7, %c0_8, %c0_9, %c0_10], %10 {strides = array<i32>} : memref<1x8x8x128xbf16, #tpu.memory_space<vmem>>, vector<1x1x8x128xbf16>,
    %c0_11 = arith.constant 0 : index
    %c1 = arith.constant 1 : index
    %c0_12 = arith.constant 0 : index
    %c0_13 = arith.constant 0 : index
    %11 = vector.load %arg1[%c0_11, %c1, %c0_12, %c0_13] : memref<1x8x8x8xbf16, #tpu.memory_space<vmem>>, vector<1x1x8x8xbf16>
    %12 = vector.shape_cast %11 : vector<1x1x8x8xbf16> to vector<8x8xbf16>
    %cst_14 = arith.constant dense<0.000000e+00> : vector<8x128xf32>
    %13 = tpu.matmul %12, %0, %cst_14 {dimension_numbers = #tpu.dot_dimension_numbers<[1], [0], [0], [1], [0, 0, 1, 1], [], []>} : vector<8x8xbf16>, vector<8x128xbf16>, vector<8x128xf32> -> vector<8x128xf32>
    %14 = vector.broadcast %1 : vector<1x128xf32> to vector<8x128xf32>
    %15 = arith.addf %13, %14 : vector<8x128xf32>
    %16 = arith.truncf %15 : vector<8x128xf32> to vector<8x128xbf16>
    %c0_15 = arith.constant 0 : index
    %c1_16 = arith.constant 1 : index
    %c0_17 = arith.constant 0 : index
    %c0_18 = arith.constant 0 : index
    %17 = vector.load %arg4[%c0_15, %c1_16, %c0_17, %c0_18] : memref<1x8x8x128xbf16, #tpu.memory_space<vmem>>, vector<1x1x8x128xbf16>
    %18 = vector.shape_cast %17 : vector<1x1x8x128xbf16> to vector<8x128xbf16>
    %19 = vector.shape_cast %16 : vector<8x128xbf16> to vector<1x1x8x128xbf16>
    tpu.vector_store %arg4[%c0_15, %c1_16, %c0_17, %c0_18], %19 {strides = array<i32>} : memref<1x8x8x128xbf16, #tpu.memory_space<vmem>>, vector<1x1x8x128xbf16>,
    %c0_19 = arith.constant 0 : index
    %c2 = arith.constant 2 : index
    %c0_20 = arith.constant 0 : index
    %c0_21 = arith.constant 0 : index
    %20 = vector.load %arg1[%c0_19, %c2, %c0_20, %c0_21] : memref<1x8x8x8xbf16, #tpu.memory_space<vmem>>, vector<1x1x8x8xbf16>
    %21 = vector.shape_cast %20 : vector<1x1x8x8xbf16> to vector<8x8xbf16>
    %cst_22 = arith.constant dense<0.000000e+00> : vector<8x128xf32>
    %22 = tpu.matmul %21, %0, %cst_22 {dimension_numbers = #tpu.dot_dimension_numbers<[1], [0], [0], [1], [0, 0, 1, 1], [], []>} : vector<8x8xbf16>, vector<8x128xbf16>, vector<8x128xf32> -> vector<8x128xf32>
    %23 = vector.broadcast %1 : vector<1x128xf32> to vector<8x128xf32>
    %24 = arith.addf %22, %23 : vector<8x128xf32>
    %25 = arith.truncf %24 : vector<8x128xf32> to vector<8x128xbf16>
    %c0_23 = arith.constant 0 : index
    %c2_24 = arith.constant 2 : index
    %c0_25 = arith.constant 0 : index
    %c0_26 = arith.constant 0 : index
    %26 = vector.load %arg4[%c0_23, %c2_24, %c0_25, %c0_26] : memref<1x8x8x128xbf16, #tpu.memory_space<vmem>>, vector<1x1x8x128xbf16>
    %27 = vector.shape_cast %26 : vector<1x1x8x128xbf16> to vector<8x128xbf16>
    %28 = vector.shape_cast %25 : vector<8x128xbf16> to vector<1x1x8x128xbf16>
    tpu.vector_store %arg4[%c0_23, %c2_24, %c0_25, %c0_26], %28 {strides = array<i32>} : memref<1x8x8x128xbf16, #tpu.memory_space<vmem>>, vector<1x1x8x128xbf16>,
    %c0_27 = arith.constant 0 : index
    %c3 = arith.constant 3 : index
    %c0_28 = arith.constant 0 : index
    %c0_29 = arith.constant 0 : index
    %29 = vector.load %arg1[%c0_27, %c3, %c0_28, %c0_29] : memref<1x8x8x8xbf16, #tpu.memory_space<vmem>>, vector<1x1x8x8xbf16>
    %30 = vector.shape_cast %29 : vector<1x1x8x8xbf16> to vector<8x8xbf16>
    %cst_30 = arith.constant dense<0.000000e+00> : vector<8x128xf32>
    %31 = tpu.matmul %30, %0, %cst_30 {dimension_numbers = #tpu.dot_dimension_numbers<[1], [0], [0], [1], [0, 0, 1, 1], [], []>} : vector<8x8xbf16>, vector<8x128xbf16>, vector<8x128xf32> -> vector<8x128xf32>
    %32 = vector.broadcast %1 : vector<1x128xf32> to vector<8x128xf32>
    %33 = arith.addf %31, %32 : vector<8x128xf32>
    %34 = arith.truncf %33 : vector<8x128xf32> to vector<8x128xbf16>
    %c0_31 = arith.constant 0 : index
    %c3_32 = arith.constant 3 : index
    %c0_33 = arith.constant 0 : index
    %c0_34 = arith.constant 0 : index
    %35 = vector.load %arg4[%c0_31, %c3_32, %c0_33, %c0_34] : memref<1x8x8x128xbf16, #tpu.memory_space<vmem>>, vector<1x1x8x128xbf16>
    %36 = vector.shape_cast %35 : vector<1x1x8x128xbf16> to vector<8x128xbf16>
    %37 = vector.shape_cast %34 : vector<8x128xbf16> to vector<1x1x8x128xbf16>
    tpu.vector_store %arg4[%c0_31, %c3_32, %c0_33, %c0_34], %37 {strides = array<i32>} : memref<1x8x8x128xbf16, #tpu.memory_space<vmem>>, vector<1x1x8x128xbf16>,
    %c0_35 = arith.constant 0 : index
    %c4 = arith.constant 4 : index
    %c0_36 = arith.constant 0 : index
    %c0_37 = arith.constant 0 : index
    %38 = vector.load %arg1[%c0_35, %c4, %c0_36, %c0_37] : memref<1x8x8x8xbf16, #tpu.memory_space<vmem>>, vector<1x1x8x8xbf16>
    %39 = vector.shape_cast %38 : vector<1x1x8x8xbf16> to vector<8x8xbf16>
    %cst_38 = arith.constant dense<0.000000e+00> : vector<8x128xf32>
    %40 = tpu.matmul %39, %0, %cst_38 {dimension_numbers = #tpu.dot_dimension_numbers<[1], [0], [0], [1], [0, 0, 1, 1], [], []>} : vector<8x8xbf16>, vector<8x128xbf16>, vector<8x128xf32> -> vector<8x128xf32>
    %41 = vector.broadcast %1 : vector<1x128xf32> to vector<8x128xf32>
    %42 = arith.addf %40, %41 : vector<8x128xf32>
    %43 = arith.truncf %42 : vector<8x128xf32> to vector<8x128xbf16>
    %c0_39 = arith.constant 0 : index
    %c4_40 = arith.constant 4 : index
    %c0_41 = arith.constant 0 : index
    %c0_42 = arith.constant 0 : index
    %44 = vector.load %arg4[%c0_39, %c4_40, %c0_41, %c0_42] : memref<1x8x8x128xbf16, #tpu.memory_space<vmem>>, vector<1x1x8x128xbf16>
    %45 = vector.shape_cast %44 : vector<1x1x8x128xbf16> to vector<8x128xbf16>
    %46 = vector.shape_cast %43 : vector<8x128xbf16> to vector<1x1x8x128xbf16>
    tpu.vector_store %arg4[%c0_39, %c4_40, %c0_41, %c0_42], %46 {strides = array<i32>} : memref<1x8x8x128xbf16, #tpu.memory_space<vmem>>, vector<1x1x8x128xbf16>,
    %c0_43 = arith.constant 0 : index
    %c5 = arith.constant 5 : index
    %c0_44 = arith.constant 0 : index
    %c0_45 = arith.constant 0 : index
    %47 = vector.load %arg1[%c0_43, %c5, %c0_44, %c0_45] : memref<1x8x8x8xbf16, #tpu.memory_space<vmem>>, vector<1x1x8x8xbf16>
    %48 = vector.shape_cast %47 : vector<1x1x8x8xbf16> to vector<8x8xbf16>
    %cst_46 = arith.constant dense<0.000000e+00> : vector<8x128xf32>
    %49 = tpu.matmul %48, %0, %cst_46 {dimension_numbers = #tpu.dot_dimension_numbers<[1], [0], [0], [1], [0, 0, 1, 1], [], []>} : vector<8x8xbf16>, vector<8x128xbf16>, vector<8x128xf32> -> vector<8x128xf32>
    %50 = vector.broadcast %1 : vector<1x128xf32> to vector<8x128xf32>
    %51 = arith.addf %49, %50 : vector<8x128xf32>
    %52 = arith.truncf %51 : vector<8x128xf32> to vector<8x128xbf16>
    %c0_47 = arith.constant 0 : index
    %c5_48 = arith.constant 5 : index
    %c0_49 = arith.constant 0 : index
    %c0_50 = arith.constant 0 : index
    %53 = vector.load %arg4[%c0_47, %c5_48, %c0_49, %c0_50] : memref<1x8x8x128xbf16, #tpu.memory_space<vmem>>, vector<1x1x8x128xbf16>
    %54 = vector.shape_cast %53 : vector<1x1x8x128xbf16> to vector<8x128xbf16>
    %55 = vector.shape_cast %52 : vector<8x128xbf16> to vector<1x1x8x128xbf16>
    tpu.vector_store %arg4[%c0_47, %c5_48, %c0_49, %c0_50], %55 {strides = array<i32>} : memref<1x8x8x128xbf16, #tpu.memory_space<vmem>>, vector<1x1x8x128xbf16>,
    %c0_51 = arith.constant 0 : index
    %c6 = arith.constant 6 : index
    %c0_52 = arith.constant 0 : index
    %c0_53 = arith.constant 0 : index
    %56 = vector.load %arg1[%c0_51, %c6, %c0_52, %c0_53] : memref<1x8x8x8xbf16, #tpu.memory_space<vmem>>, vector<1x1x8x8xbf16>
    %57 = vector.shape_cast %56 : vector<1x1x8x8xbf16> to vector<8x8xbf16>
    %cst_54 = arith.constant dense<0.000000e+00> : vector<8x128xf32>
    %58 = tpu.matmul %57, %0, %cst_54 {dimension_numbers = #tpu.dot_dimension_numbers<[1], [0], [0], [1], [0, 0, 1, 1], [], []>} : vector<8x8xbf16>, vector<8x128xbf16>, vector<8x128xf32> -> vector<8x128xf32>
    %59 = vector.broadcast %1 : vector<1x128xf32> to vector<8x128xf32>
    %60 = arith.addf %58, %59 : vector<8x128xf32>
    %61 = arith.truncf %60 : vector<8x128xf32> to vector<8x128xbf16>
    %c0_55 = arith.constant 0 : index
    %c6_56 = arith.constant 6 : index
    %c0_57 = arith.constant 0 : index
    %c0_58 = arith.constant 0 : index
    %62 = vector.load %arg4[%c0_55, %c6_56, %c0_57, %c0_58] : memref<1x8x8x128xbf16, #tpu.memory_space<vmem>>, vector<1x1x8x128xbf16>
    %63 = vector.shape_cast %62 : vector<1x1x8x128xbf16> to vector<8x128xbf16>
    %64 = vector.shape_cast %61 : vector<8x128xbf16> to vector<1x1x8x128xbf16>
    tpu.vector_store %arg4[%c0_55, %c6_56, %c0_57, %c0_58], %64 {strides = array<i32>} : memref<1x8x8x128xbf16, #tpu.memory_space<vmem>>, vector<1x1x8x128xbf16>,
    %c0_59 = arith.constant 0 : index
    %c7 = arith.constant 7 : index
    %c0_60 = arith.constant 0 : index
    %c0_61 = arith.constant 0 : index
    %65 = vector.load %arg1[%c0_59, %c7, %c0_60, %c0_61] : memref<1x8x8x8xbf16, #tpu.memory_space<vmem>>, vector<1x1x8x8xbf16>
    %66 = vector.shape_cast %65 : vector<1x1x8x8xbf16> to vector<8x8xbf16>
    %cst_62 = arith.constant dense<0.000000e+00> : vector<8x128xf32>
    %67 = tpu.matmul %66, %0, %cst_62 {dimension_numbers = #tpu.dot_dimension_numbers<[1], [0], [0], [1], [0, 0, 1, 1], [], []>} : vector<8x8xbf16>, vector<8x128xbf16>, vector<8x128xf32> -> vector<8x128xf32>
    %68 = vector.broadcast %1 : vector<1x128xf32> to vector<8x128xf32>
    %69 = arith.addf %67, %68 : vector<8x128xf32>
    %70 = arith.truncf %69 : vector<8x128xf32> to vector<8x128xbf16>
    %c0_63 = arith.constant 0 : index
    %c7_64 = arith.constant 7 : index
    %c0_65 = arith.constant 0 : index
    %c0_66 = arith.constant 0 : index
    %71 = vector.load %arg4[%c0_63, %c7_64, %c0_65, %c0_66] : memref<1x8x8x128xbf16, #tpu.memory_space<vmem>>, vector<1x1x8x128xbf16>
    %72 = vector.shape_cast %71 : vector<1x1x8x128xbf16> to vector<8x128xbf16>
    %73 = vector.shape_cast %70 : vector<8x128xbf16> to vector<1x1x8x128xbf16>
    tpu.vector_store %arg4[%c0_63, %c7_64, %c0_65, %c0_66], %73 {strides = array<i32>} : memref<1x8x8x128xbf16, #tpu.memory_space<vmem>>, vector<1x1x8x128xbf16>,
    return
  }
  func.func @transform_0(%arg0: i32) -> (i32, i32, i32, i32) {
    %c0_i32 = arith.constant 0 : i32
    %c0_i32_0 = arith.constant 0 : i32
    %c0_i32_1 = arith.constant 0 : i32
    %c0_i32_2 = arith.constant 0 : i32
    return %arg0, %c0_i32, %c0_i32_0, %c0_i32_1 : i32, i32, i32, i32
  }
  func.func @transform_1(%arg0: i32) -> (i32, i32) {
    %c0_i32 = arith.constant 0 : i32
    %c0_i32_0 = arith.constant 0 : i32
    %c0_i32_1 = arith.constant 0 : i32
    return %c0_i32, %c0_i32_0 : i32, i32
  }
  func.func @transform_2(%arg0: i32) -> (i32, i32) {
    %c0_i32 = arith.constant 0 : i32
    %c0_i32_0 = arith.constant 0 : i32
    %c0_i32_1 = arith.constant 0 : i32
    return %c0_i32, %c0_i32_0 : i32, i32
  }
  func.func @transform_3(%arg0: i32) -> (i32, i32, i32, i32) {
    %c0_i32 = arith.constant 0 : i32
    %c0_i32_0 = arith.constant 0 : i32
    %c0_i32_1 = arith.constant 0 : i32
    %c0_i32_2 = arith.constant 0 : i32
    return %arg0, %c0_i32, %c0_i32_0, %c0_i32_1 : i32, i32, i32, i32
  }
}

module attributes {stable_mosaic.version = 11 : i64} {
  func.func @_bn_relu_kernel(%arg0: i32, %arg1: i32, %arg2: memref<1x10x10x128xf32, #tpu.memory_space<vmem>>, %arg3: memref<2x1x128xf32, #tpu.memory_space<vmem>>, %arg4: memref<2x1x128xf32, #tpu.memory_space<vmem>>, %arg5: memref<1x128xf32, #tpu.memory_space<vmem>>, %arg6: memref<1x128xf32, #tpu.memory_space<vmem>>, %arg7: memref<1x10x10x128xbf16, #tpu.memory_space<vmem>>) attributes {dimension_semantics = [#tpu.dimension_semantics<parallel>, #tpu.dimension_semantics<parallel>], iteration_bounds = array<i64: 2, 1>, scalar_prefetch = 0 : i64, scratch_operands = 0 : i64, tpu.core_type = #tpu.core_type<tc>, window_params = [{transform_indices = @transform_0, window_bounds = array<i64: 1, 10, 10, 128>}, {transform_indices = @transform_1, window_bounds = array<i64: 2, 1, 128>}, {transform_indices = @transform_2, window_bounds = array<i64: 2, 1, 128>}, {transform_indices = @transform_3, window_bounds = array<i64: 1, 128>}, {transform_indices = @transform_4, window_bounds = array<i64: 1, 128>}, {transform_indices = @transform_5, window_bounds = array<i64: 1, 10, 10, 128>}]} {
    %c0 = arith.constant 0 : index
    %c0_0 = arith.constant 0 : index
    %c0_1 = arith.constant 0 : index
    %0 = vector.load %arg3[%c0, %c0_0, %c0_1] : memref<2x1x128xf32, #tpu.memory_space<vmem>>, vector<2x1x128xf32>
    %cst = arith.constant dense<0.000000e+00> : vector<1x128xf32>
    %1 = vector.multi_reduction <add>, %0, %cst [0] : vector<2x1x128xf32> to vector<1x128xf32>
    %c0_2 = arith.constant 0 : index
    %c0_3 = arith.constant 0 : index
    %c0_4 = arith.constant 0 : index
    %2 = vector.load %arg4[%c0_2, %c0_3, %c0_4] : memref<2x1x128xf32, #tpu.memory_space<vmem>>, vector<2x1x128xf32>
    %cst_5 = arith.constant dense<0.000000e+00> : vector<1x128xf32>
    %3 = vector.multi_reduction <add>, %2, %cst_5 [0] : vector<2x1x128xf32> to vector<1x128xf32>
    %cst_6 = arith.constant 5.000000e-03 : f32
    %4 = vector.broadcast %cst_6 : f32 to vector<1x128xf32>
    %5 = arith.mulf %1, %4 : vector<1x128xf32>
    %cst_7 = arith.constant 5.000000e-03 : f32
    %6 = vector.broadcast %cst_7 : f32 to vector<1x128xf32>
    %7 = arith.mulf %3, %6 : vector<1x128xf32>
    %8 = arith.mulf %5, %5 : vector<1x128xf32>
    %9 = arith.subf %7, %8 : vector<1x128xf32>
    %cst_8 = arith.constant 0.000000e+00 : f32
    %10 = vector.broadcast %cst_8 : f32 to vector<1x128xf32>
    %11 = arith.maximumf %9, %10 : vector<1x128xf32>
    %cst_9 = arith.constant 9.99999974E-6 : f32
    %12 = vector.broadcast %cst_9 : f32 to vector<1x128xf32>
    %13 = arith.addf %11, %12 : vector<1x128xf32>
    %14 = math.rsqrt %13 : vector<1x128xf32>
    %c0_10 = arith.constant 0 : index
    %c0_11 = arith.constant 0 : index
    %15 = vector.load %arg5[%c0_10, %c0_11] : memref<1x128xf32, #tpu.memory_space<vmem>>, vector<1x128xf32>
    %16 = arith.mulf %14, %15 : vector<1x128xf32>
    %c0_12 = arith.constant 0 : index
    %c0_13 = arith.constant 0 : index
    %17 = vector.load %arg6[%c0_12, %c0_13] : memref<1x128xf32, #tpu.memory_space<vmem>>, vector<1x128xf32>
    %18 = arith.mulf %5, %16 : vector<1x128xf32>
    %19 = arith.subf %17, %18 : vector<1x128xf32>
    %20 = vector.shape_cast %16 : vector<1x128xf32> to vector<1x1x1x128xf32>
    %21 = vector.shape_cast %19 : vector<1x128xf32> to vector<1x1x1x128xf32>
    %c0_14 = arith.constant 0 : index
    %c0_15 = arith.constant 0 : index
    %c0_16 = arith.constant 0 : index
    %c0_17 = arith.constant 0 : index
    %22 = vector.load %arg2[%c0_14, %c0_15, %c0_16, %c0_17] : memref<1x10x10x128xf32, #tpu.memory_space<vmem>>, vector<1x10x10x128xf32>
    %23 = vector.broadcast %20 : vector<1x1x1x128xf32> to vector<1x10x10x128xf32>
    %24 = arith.mulf %22, %23 : vector<1x10x10x128xf32>
    %25 = vector.broadcast %21 : vector<1x1x1x128xf32> to vector<1x10x10x128xf32>
    %26 = arith.addf %24, %25 : vector<1x10x10x128xf32>
    %cst_18 = arith.constant 0.000000e+00 : f32
    %27 = vector.broadcast %cst_18 : f32 to vector<1x10x10x128xf32>
    %28 = arith.maximumf %26, %27 : vector<1x10x10x128xf32>
    %29 = arith.truncf %28 : vector<1x10x10x128xf32> to vector<1x10x10x128xbf16>
    %c0_19 = arith.constant 0 : index
    %c0_20 = arith.constant 0 : index
    %c0_21 = arith.constant 0 : index
    %c0_22 = arith.constant 0 : index
    %30 = vector.load %arg7[%c0_19, %c0_20, %c0_21, %c0_22] : memref<1x10x10x128xbf16, #tpu.memory_space<vmem>>, vector<1x10x10x128xbf16>
    tpu.vector_store %arg7[%c0_19, %c0_20, %c0_21, %c0_22], %29 {strides = array<i32>} : memref<1x10x10x128xbf16, #tpu.memory_space<vmem>>, vector<1x10x10x128xbf16>,
    return
  }
  func.func @transform_0(%arg0: i32, %arg1: i32) -> (i32, i32, i32, i32) {
    %c0_i32 = arith.constant 0 : i32
    %c0_i32_0 = arith.constant 0 : i32
    %c0_i32_1 = arith.constant 0 : i32
    return %arg0, %c0_i32, %c0_i32_0, %arg1 : i32, i32, i32, i32
  }
  func.func @transform_1(%arg0: i32, %arg1: i32) -> (i32, i32, i32) {
    %c0_i32 = arith.constant 0 : i32
    %c0_i32_0 = arith.constant 0 : i32
    %c0_i32_1 = arith.constant 0 : i32
    return %c0_i32, %c0_i32_0, %arg1 : i32, i32, i32
  }
  func.func @transform_2(%arg0: i32, %arg1: i32) -> (i32, i32, i32) {
    %c0_i32 = arith.constant 0 : i32
    %c0_i32_0 = arith.constant 0 : i32
    %c0_i32_1 = arith.constant 0 : i32
    return %c0_i32, %c0_i32_0, %arg1 : i32, i32, i32
  }
  func.func @transform_3(%arg0: i32, %arg1: i32) -> (i32, i32) {
    %c0_i32 = arith.constant 0 : i32
    %c0_i32_0 = arith.constant 0 : i32
    return %c0_i32, %arg1 : i32, i32
  }
  func.func @transform_4(%arg0: i32, %arg1: i32) -> (i32, i32) {
    %c0_i32 = arith.constant 0 : i32
    %c0_i32_0 = arith.constant 0 : i32
    return %c0_i32, %arg1 : i32, i32
  }
  func.func @transform_5(%arg0: i32, %arg1: i32) -> (i32, i32, i32, i32) {
    %c0_i32 = arith.constant 0 : i32
    %c0_i32_0 = arith.constant 0 : i32
    %c0_i32_1 = arith.constant 0 : i32
    return %arg0, %c0_i32, %c0_i32_0, %arg1 : i32, i32, i32, i32
  }
}

module attributes {stable_mosaic.version = 11 : i64} {
  func.func @_conv_stats_kernel(%arg0: i32, %arg1: i32, %arg2: i32, %arg3: memref<1x18x18x8xbf16, #tpu.memory_space<vmem>>, %arg4: memref<1x72x128xbf16, #tpu.memory_space<vmem>>, %arg5: memref<1x10x10x128xf32, #tpu.memory_space<vmem>>, %arg6: memref<1x1x128xf32, #tpu.memory_space<vmem>>, %arg7: memref<1x1x128xf32, #tpu.memory_space<vmem>>, %arg8: memref<10x10x128xf32, #tpu.memory_space<vmem>>) attributes {dimension_semantics = [#tpu.dimension_semantics<parallel>, #tpu.dimension_semantics<parallel>, #tpu.dimension_semantics<arbitrary>], iteration_bounds = array<i64: 2, 1, 9>, scalar_prefetch = 0 : i64, scratch_operands = 1 : i64, tpu.core_type = #tpu.core_type<tc>, window_params = [{transform_indices = @transform_0, window_bounds = array<i64: 1, 18, 18, 8>}, {transform_indices = @transform_1, window_bounds = array<i64: 1, 72, 128>}, {transform_indices = @transform_2, window_bounds = array<i64: 1, 10, 10, 128>}, {transform_indices = @transform_3, window_bounds = array<i64: 1, 1, 128>}, {transform_indices = @transform_4, window_bounds = array<i64: 1, 1, 128>}]} {
    %c0_i32 = arith.constant 0 : i32
    %0 = arith.cmpi eq, %arg2, %c0_i32 : i32
    %1 = arith.extui %0 : i1 to i32
    %c0_i32_0 = arith.constant 0 : i32
    %2 = arith.cmpi ne, %1, %c0_i32_0 : i32
    scf.if %2 {
      %cst_513 = arith.constant 0.000000e+00 : f32
      %614 = vector.broadcast %cst_513 : f32 to vector<10x10x128xf32>
      %c0_514 = arith.constant 0 : index
      %c0_515 = arith.constant 0 : index
      %c0_516 = arith.constant 0 : index
      %615 = vector.load %arg8[%c0_514, %c0_515, %c0_516] : memref<10x10x128xf32, #tpu.memory_space<vmem>>, vector<10x10x128xf32>
      tpu.vector_store %arg8[%c0_514, %c0_515, %c0_516], %614 {strides = array<i32>} : memref<10x10x128xf32, #tpu.memory_space<vmem>>, vector<10x10x128xf32>,
    } else {
    }
    %c0 = arith.constant 0 : index
    %c0_1 = arith.constant 0 : index
    %c0_2 = arith.constant 0 : index
    %3 = vector.load %arg4[%c0, %c0_1, %c0_2] : memref<1x72x128xbf16, #tpu.memory_space<vmem>>, vector<1x8x128xbf16>
    %4 = vector.shape_cast %3 : vector<1x8x128xbf16> to vector<8x128xbf16>
    %c0_3 = arith.constant 0 : index
    %c8 = arith.constant 8 : index
    %c0_4 = arith.constant 0 : index
    %5 = vector.load %arg4[%c0_3, %c8, %c0_4] : memref<1x72x128xbf16, #tpu.memory_space<vmem>>, vector<1x8x128xbf16>
    %6 = vector.shape_cast %5 : vector<1x8x128xbf16> to vector<8x128xbf16>
    %c0_5 = arith.constant 0 : index
    %c16 = arith.constant 16 : index
    %c0_6 = arith.constant 0 : index
    %7 = vector.load %arg4[%c0_5, %c16, %c0_6] : memref<1x72x128xbf16, #tpu.memory_space<vmem>>, vector<1x8x128xbf16>
    %8 = vector.shape_cast %7 : vector<1x8x128xbf16> to vector<8x128xbf16>
    %c0_7 = arith.constant 0 : index
    %c24 = arith.constant 24 : index
    %c0_8 = arith.constant 0 : index
    %9 = vector.load %arg4[%c0_7, %c24, %c0_8] : memref<1x72x128xbf16, #tpu.memory_space<vmem>>, vector<1x8x128xbf16>
    %10 = vector.shape_cast %9 : vector<1x8x128xbf16> to vector<8x128xbf16>
    %c0_9 = arith.constant 0 : index
    %c32 = arith.constant 32 : index
    %c0_10 = arith.constant 0 : index
    %11 = vector.load %arg4[%c0_9, %c32, %c0_10] : memref<1x72x128xbf16, #tpu.memory_space<vmem>>, vector<1x8x128xbf16>
    %12 = vector.shape_cast %11 : vector<1x8x128xbf16> to vector<8x128xbf16>
    %c0_11 = arith.constant 0 : index
    %c40 = arith.constant 40 : index
    %c0_12 = arith.constant 0 : index
    %13 = vector.load %arg4[%c0_11, %c40, %c0_12] : memref<1x72x128xbf16, #tpu.memory_space<vmem>>, vector<1x8x128xbf16>
    %14 = vector.shape_cast %13 : vector<1x8x128xbf16> to vector<8x128xbf16>
    %c0_13 = arith.constant 0 : index
    %c48 = arith.constant 48 : index
    %c0_14 = arith.constant 0 : index
    %15 = vector.load %arg4[%c0_13, %c48, %c0_14] : memref<1x72x128xbf16, #tpu.memory_space<vmem>>, vector<1x8x128xbf16>
    %16 = vector.shape_cast %15 : vector<1x8x128xbf16> to vector<8x128xbf16>
    %c0_15 = arith.constant 0 : index
    %c56 = arith.constant 56 : index
    %c0_16 = arith.constant 0 : index
    %17 = vector.load %arg4[%c0_15, %c56, %c0_16] : memref<1x72x128xbf16, #tpu.memory_space<vmem>>, vector<1x8x128xbf16>
    %18 = vector.shape_cast %17 : vector<1x8x128xbf16> to vector<8x128xbf16>
    %c0_17 = arith.constant 0 : index
    %c64 = arith.constant 64 : index
    %c0_18 = arith.constant 0 : index
    %19 = vector.load %arg4[%c0_17, %c64, %c0_18] : memref<1x72x128xbf16, #tpu.memory_space<vmem>>, vector<1x8x128xbf16>
    %20 = vector.shape_cast %19 : vector<1x8x128xbf16> to vector<8x128xbf16>
    %c0_i32_19 = arith.constant 0 : i32
    %21 = arith.addi %c0_i32_19, %arg2 : i32
    %c0_20 = arith.constant 0 : index
    %22 = arith.index_cast %21 : i32 to index
    %c0_21 = arith.constant 0 : index
    %c0_22 = arith.constant 0 : index
    %23 = vector.load %arg3[%c0_20, %22, %c0_21, %c0_22] : memref<1x18x18x8xbf16, #tpu.memory_space<vmem>>, vector<1x1x10x8xbf16>
    %24 = vector.shape_cast %23 : vector<1x1x10x8xbf16> to vector<10x8xbf16>
    %cst = arith.constant dense<0.000000e+00> : vector<10x128xf32>
    %25 = tpu.matmul %24, %4, %cst {dimension_numbers = #tpu.dot_dimension_numbers<[1], [0], [0], [1], [0, 0, 1, 1], [], []>} : vector<10x8xbf16>, vector<8x128xbf16>, vector<10x128xf32> -> vector<10x128xf32>
    %c0_i32_23 = arith.constant 0 : i32
    %26 = arith.addi %c0_i32_23, %arg2 : i32
    %c0_24 = arith.constant 0 : index
    %27 = arith.index_cast %26 : i32 to index
    %c1 = arith.constant 1 : index
    %c0_25 = arith.constant 0 : index
    %28 = vector.load %arg3[%c0_24, %27, %c1, %c0_25] : memref<1x18x18x8xbf16, #tpu.memory_space<vmem>>, vector<1x1x10x8xbf16>
    %29 = vector.shape_cast %28 : vector<1x1x10x8xbf16> to vector<10x8xbf16>
    %cst_26 = arith.constant dense<0.000000e+00> : vector<10x128xf32>
    %30 = tpu.matmul %29, %6, %cst_26 {dimension_numbers = #tpu.dot_dimension_numbers<[1], [0], [0], [1], [0, 0, 1, 1], [], []>} : vector<10x8xbf16>, vector<8x128xbf16>, vector<10x128xf32> -> vector<10x128xf32>
    %31 = arith.addf %25, %30 : vector<10x128xf32>
    %c0_i32_27 = arith.constant 0 : i32
    %32 = arith.addi %c0_i32_27, %arg2 : i32
    %c0_28 = arith.constant 0 : index
    %33 = arith.index_cast %32 : i32 to index
    %c2 = arith.constant 2 : index
    %c0_29 = arith.constant 0 : index
    %34 = vector.load %arg3[%c0_28, %33, %c2, %c0_29] : memref<1x18x18x8xbf16, #tpu.memory_space<vmem>>, vector<1x1x10x8xbf16>
    %35 = vector.shape_cast %34 : vector<1x1x10x8xbf16> to vector<10x8xbf16>
    %cst_30 = arith.constant dense<0.000000e+00> : vector<10x128xf32>
    %36 = tpu.matmul %35, %8, %cst_30 {dimension_numbers = #tpu.dot_dimension_numbers<[1], [0], [0], [1], [0, 0, 1, 1], [], []>} : vector<10x8xbf16>, vector<8x128xbf16>, vector<10x128xf32> -> vector<10x128xf32>
    %37 = arith.addf %31, %36 : vector<10x128xf32>
    %c0_i32_31 = arith.constant 0 : i32
    %38 = arith.addi %c0_i32_31, %arg2 : i32
    %c0_32 = arith.constant 0 : index
    %39 = arith.index_cast %38 : i32 to index
    %c3 = arith.constant 3 : index
    %c0_33 = arith.constant 0 : index
    %40 = vector.load %arg3[%c0_32, %39, %c3, %c0_33] : memref<1x18x18x8xbf16, #tpu.memory_space<vmem>>, vector<1x1x10x8xbf16>
    %41 = vector.shape_cast %40 : vector<1x1x10x8xbf16> to vector<10x8xbf16>
    %cst_34 = arith.constant dense<0.000000e+00> : vector<10x128xf32>
    %42 = tpu.matmul %41, %10, %cst_34 {dimension_numbers = #tpu.dot_dimension_numbers<[1], [0], [0], [1], [0, 0, 1, 1], [], []>} : vector<10x8xbf16>, vector<8x128xbf16>, vector<10x128xf32> -> vector<10x128xf32>
    %43 = arith.addf %37, %42 : vector<10x128xf32>
    %c0_i32_35 = arith.constant 0 : i32
    %44 = arith.addi %c0_i32_35, %arg2 : i32
    %c0_36 = arith.constant 0 : index
    %45 = arith.index_cast %44 : i32 to index
    %c4 = arith.constant 4 : index
    %c0_37 = arith.constant 0 : index
    %46 = vector.load %arg3[%c0_36, %45, %c4, %c0_37] : memref<1x18x18x8xbf16, #tpu.memory_space<vmem>>, vector<1x1x10x8xbf16>
    %47 = vector.shape_cast %46 : vector<1x1x10x8xbf16> to vector<10x8xbf16>
    %cst_38 = arith.constant dense<0.000000e+00> : vector<10x128xf32>
    %48 = tpu.matmul %47, %12, %cst_38 {dimension_numbers = #tpu.dot_dimension_numbers<[1], [0], [0], [1], [0, 0, 1, 1], [], []>} : vector<10x8xbf16>, vector<8x128xbf16>, vector<10x128xf32> -> vector<10x128xf32>
    %49 = arith.addf %43, %48 : vector<10x128xf32>
    %c0_i32_39 = arith.constant 0 : i32
    %50 = arith.addi %c0_i32_39, %arg2 : i32
    %c0_40 = arith.constant 0 : index
    %51 = arith.index_cast %50 : i32 to index
    %c5 = arith.constant 5 : index
    %c0_41 = arith.constant 0 : index
    %52 = vector.load %arg3[%c0_40, %51, %c5, %c0_41] : memref<1x18x18x8xbf16, #tpu.memory_space<vmem>>, vector<1x1x10x8xbf16>
    %53 = vector.shape_cast %52 : vector<1x1x10x8xbf16> to vector<10x8xbf16>
    %cst_42 = arith.constant dense<0.000000e+00> : vector<10x128xf32>
    %54 = tpu.matmul %53, %14, %cst_42 {dimension_numbers = #tpu.dot_dimension_numbers<[1], [0], [0], [1], [0, 0, 1, 1], [], []>} : vector<10x8xbf16>, vector<8x128xbf16>, vector<10x128xf32> -> vector<10x128xf32>
    %55 = arith.addf %49, %54 : vector<10x128xf32>
    %c0_i32_43 = arith.constant 0 : i32
    %56 = arith.addi %c0_i32_43, %arg2 : i32
    %c0_44 = arith.constant 0 : index
    %57 = arith.index_cast %56 : i32 to index
    %c6 = arith.constant 6 : index
    %c0_45 = arith.constant 0 : index
    %58 = vector.load %arg3[%c0_44, %57, %c6, %c0_45] : memref<1x18x18x8xbf16, #tpu.memory_space<vmem>>, vector<1x1x10x8xbf16>
    %59 = vector.shape_cast %58 : vector<1x1x10x8xbf16> to vector<10x8xbf16>
    %cst_46 = arith.constant dense<0.000000e+00> : vector<10x128xf32>
    %60 = tpu.matmul %59, %16, %cst_46 {dimension_numbers = #tpu.dot_dimension_numbers<[1], [0], [0], [1], [0, 0, 1, 1], [], []>} : vector<10x8xbf16>, vector<8x128xbf16>, vector<10x128xf32> -> vector<10x128xf32>
    %61 = arith.addf %55, %60 : vector<10x128xf32>
    %c0_i32_47 = arith.constant 0 : i32
    %62 = arith.addi %c0_i32_47, %arg2 : i32
    %c0_48 = arith.constant 0 : index
    %63 = arith.index_cast %62 : i32 to index
    %c7 = arith.constant 7 : index
    %c0_49 = arith.constant 0 : index
    %64 = vector.load %arg3[%c0_48, %63, %c7, %c0_49] : memref<1x18x18x8xbf16, #tpu.memory_space<vmem>>, vector<1x1x10x8xbf16>
    %65 = vector.shape_cast %64 : vector<1x1x10x8xbf16> to vector<10x8xbf16>
    %cst_50 = arith.constant dense<0.000000e+00> : vector<10x128xf32>
    %66 = tpu.matmul %65, %18, %cst_50 {dimension_numbers = #tpu.dot_dimension_numbers<[1], [0], [0], [1], [0, 0, 1, 1], [], []>} : vector<10x8xbf16>, vector<8x128xbf16>, vector<10x128xf32> -> vector<10x128xf32>
    %67 = arith.addf %61, %66 : vector<10x128xf32>
    %c0_i32_51 = arith.constant 0 : i32
    %68 = arith.addi %c0_i32_51, %arg2 : i32
    %c0_52 = arith.constant 0 : index
    %69 = arith.index_cast %68 : i32 to index
    %c8_53 = arith.constant 8 : index
    %c0_54 = arith.constant 0 : index
    %70 = vector.load %arg3[%c0_52, %69, %c8_53, %c0_54] : memref<1x18x18x8xbf16, #tpu.memory_space<vmem>>, vector<1x1x10x8xbf16>
    %71 = vector.shape_cast %70 : vector<1x1x10x8xbf16> to vector<10x8xbf16>
    %cst_55 = arith.constant dense<0.000000e+00> : vector<10x128xf32>
    %72 = tpu.matmul %71, %20, %cst_55 {dimension_numbers = #tpu.dot_dimension_numbers<[1], [0], [0], [1], [0, 0, 1, 1], [], []>} : vector<10x8xbf16>, vector<8x128xbf16>, vector<10x128xf32> -> vector<10x128xf32>
    %73 = arith.addf %67, %72 : vector<10x128xf32>
    %c0_56 = arith.constant 0 : index
    %c0_57 = arith.constant 0 : index
    %c0_58 = arith.constant 0 : index
    %74 = vector.load %arg8[%c0_56, %c0_57, %c0_58] : memref<10x10x128xf32, #tpu.memory_space<vmem>>, vector<1x10x128xf32>
    %75 = vector.shape_cast %74 : vector<1x10x128xf32> to vector<10x128xf32>
    %76 = arith.addf %75, %73 : vector<10x128xf32>
    %c0_59 = arith.constant 0 : index
    %c0_60 = arith.constant 0 : index
    %c0_61 = arith.constant 0 : index
    %77 = vector.load %arg8[%c0_59, %c0_60, %c0_61] : memref<10x10x128xf32, #tpu.memory_space<vmem>>, vector<1x10x128xf32>
    %78 = vector.shape_cast %77 : vector<1x10x128xf32> to vector<10x128xf32>
    %79 = vector.shape_cast %76 : vector<10x128xf32> to vector<1x10x128xf32>
    tpu.vector_store %arg8[%c0_59, %c0_60, %c0_61], %79 {strides = array<i32>} : memref<10x10x128xf32, #tpu.memory_space<vmem>>, vector<1x10x128xf32>,
    %c1_i32 = arith.constant 1 : i32
    %80 = arith.addi %c1_i32, %arg2 : i32
    %c0_62 = arith.constant 0 : index
    %81 = arith.index_cast %80 : i32 to index
    %c0_63 = arith.constant 0 : index
    %c0_64 = arith.constant 0 : index
    %82 = vector.load %arg3[%c0_62, %81, %c0_63, %c0_64] : memref<1x18x18x8xbf16, #tpu.memory_space<vmem>>, vector<1x1x10x8xbf16>
    %83 = vector.shape_cast %82 : vector<1x1x10x8xbf16> to vector<10x8xbf16>
    %cst_65 = arith.constant dense<0.000000e+00> : vector<10x128xf32>
    %84 = tpu.matmul %83, %4, %cst_65 {dimension_numbers = #tpu.dot_dimension_numbers<[1], [0], [0], [1], [0, 0, 1, 1], [], []>} : vector<10x8xbf16>, vector<8x128xbf16>, vector<10x128xf32> -> vector<10x128xf32>
    %c1_i32_66 = arith.constant 1 : i32
    %85 = arith.addi %c1_i32_66, %arg2 : i32
    %c0_67 = arith.constant 0 : index
    %86 = arith.index_cast %85 : i32 to index
    %c1_68 = arith.constant 1 : index
    %c0_69 = arith.constant 0 : index
    %87 = vector.load %arg3[%c0_67, %86, %c1_68, %c0_69] : memref<1x18x18x8xbf16, #tpu.memory_space<vmem>>, vector<1x1x10x8xbf16>
    %88 = vector.shape_cast %87 : vector<1x1x10x8xbf16> to vector<10x8xbf16>
    %cst_70 = arith.constant dense<0.000000e+00> : vector<10x128xf32>
    %89 = tpu.matmul %88, %6, %cst_70 {dimension_numbers = #tpu.dot_dimension_numbers<[1], [0], [0], [1], [0, 0, 1, 1], [], []>} : vector<10x8xbf16>, vector<8x128xbf16>, vector<10x128xf32> -> vector<10x128xf32>
    %90 = arith.addf %84, %89 : vector<10x128xf32>
    %c1_i32_71 = arith.constant 1 : i32
    %91 = arith.addi %c1_i32_71, %arg2 : i32
    %c0_72 = arith.constant 0 : index
    %92 = arith.index_cast %91 : i32 to index
    %c2_73 = arith.constant 2 : index
    %c0_74 = arith.constant 0 : index
    %93 = vector.load %arg3[%c0_72, %92, %c2_73, %c0_74] : memref<1x18x18x8xbf16, #tpu.memory_space<vmem>>, vector<1x1x10x8xbf16>
    %94 = vector.shape_cast %93 : vector<1x1x10x8xbf16> to vector<10x8xbf16>
    %cst_75 = arith.constant dense<0.000000e+00> : vector<10x128xf32>
    %95 = tpu.matmul %94, %8, %cst_75 {dimension_numbers = #tpu.dot_dimension_numbers<[1], [0], [0], [1], [0, 0, 1, 1], [], []>} : vector<10x8xbf16>, vector<8x128xbf16>, vector<10x128xf32> -> vector<10x128xf32>
    %96 = arith.addf %90, %95 : vector<10x128xf32>
    %c1_i32_76 = arith.constant 1 : i32
    %97 = arith.addi %c1_i32_76, %arg2 : i32
    %c0_77 = arith.constant 0 : index
    %98 = arith.index_cast %97 : i32 to index
    %c3_78 = arith.constant 3 : index
    %c0_79 = arith.constant 0 : index
    %99 = vector.load %arg3[%c0_77, %98, %c3_78, %c0_79] : memref<1x18x18x8xbf16, #tpu.memory_space<vmem>>, vector<1x1x10x8xbf16>
    %100 = vector.shape_cast %99 : vector<1x1x10x8xbf16> to vector<10x8xbf16>
    %cst_80 = arith.constant dense<0.000000e+00> : vector<10x128xf32>
    %101 = tpu.matmul %100, %10, %cst_80 {dimension_numbers = #tpu.dot_dimension_numbers<[1], [0], [0], [1], [0, 0, 1, 1], [], []>} : vector<10x8xbf16>, vector<8x128xbf16>, vector<10x128xf32> -> vector<10x128xf32>
    %102 = arith.addf %96, %101 : vector<10x128xf32>
    %c1_i32_81 = arith.constant 1 : i32
    %103 = arith.addi %c1_i32_81, %arg2 : i32
    %c0_82 = arith.constant 0 : index
    %104 = arith.index_cast %103 : i32 to index
    %c4_83 = arith.constant 4 : index
    %c0_84 = arith.constant 0 : index
    %105 = vector.load %arg3[%c0_82, %104, %c4_83, %c0_84] : memref<1x18x18x8xbf16, #tpu.memory_space<vmem>>, vector<1x1x10x8xbf16>
    %106 = vector.shape_cast %105 : vector<1x1x10x8xbf16> to vector<10x8xbf16>
    %cst_85 = arith.constant dense<0.000000e+00> : vector<10x128xf32>
    %107 = tpu.matmul %106, %12, %cst_85 {dimension_numbers = #tpu.dot_dimension_numbers<[1], [0], [0], [1], [0, 0, 1, 1], [], []>} : vector<10x8xbf16>, vector<8x128xbf16>, vector<10x128xf32> -> vector<10x128xf32>
    %108 = arith.addf %102, %107 : vector<10x128xf32>
    %c1_i32_86 = arith.constant 1 : i32
    %109 = arith.addi %c1_i32_86, %arg2 : i32
    %c0_87 = arith.constant 0 : index
    %110 = arith.index_cast %109 : i32 to index
    %c5_88 = arith.constant 5 : index
    %c0_89 = arith.constant 0 : index
    %111 = vector.load %arg3[%c0_87, %110, %c5_88, %c0_89] : memref<1x18x18x8xbf16, #tpu.memory_space<vmem>>, vector<1x1x10x8xbf16>
    %112 = vector.shape_cast %111 : vector<1x1x10x8xbf16> to vector<10x8xbf16>
    %cst_90 = arith.constant dense<0.000000e+00> : vector<10x128xf32>
    %113 = tpu.matmul %112, %14, %cst_90 {dimension_numbers = #tpu.dot_dimension_numbers<[1], [0], [0], [1], [0, 0, 1, 1], [], []>} : vector<10x8xbf16>, vector<8x128xbf16>, vector<10x128xf32> -> vector<10x128xf32>
    %114 = arith.addf %108, %113 : vector<10x128xf32>
    %c1_i32_91 = arith.constant 1 : i32
    %115 = arith.addi %c1_i32_91, %arg2 : i32
    %c0_92 = arith.constant 0 : index
    %116 = arith.index_cast %115 : i32 to index
    %c6_93 = arith.constant 6 : index
    %c0_94 = arith.constant 0 : index
    %117 = vector.load %arg3[%c0_92, %116, %c6_93, %c0_94] : memref<1x18x18x8xbf16, #tpu.memory_space<vmem>>, vector<1x1x10x8xbf16>
    %118 = vector.shape_cast %117 : vector<1x1x10x8xbf16> to vector<10x8xbf16>
    %cst_95 = arith.constant dense<0.000000e+00> : vector<10x128xf32>
    %119 = tpu.matmul %118, %16, %cst_95 {dimension_numbers = #tpu.dot_dimension_numbers<[1], [0], [0], [1], [0, 0, 1, 1], [], []>} : vector<10x8xbf16>, vector<8x128xbf16>, vector<10x128xf32> -> vector<10x128xf32>
    %120 = arith.addf %114, %119 : vector<10x128xf32>
    %c1_i32_96 = arith.constant 1 : i32
    %121 = arith.addi %c1_i32_96, %arg2 : i32
    %c0_97 = arith.constant 0 : index
    %122 = arith.index_cast %121 : i32 to index
    %c7_98 = arith.constant 7 : index
    %c0_99 = arith.constant 0 : index
    %123 = vector.load %arg3[%c0_97, %122, %c7_98, %c0_99] : memref<1x18x18x8xbf16, #tpu.memory_space<vmem>>, vector<1x1x10x8xbf16>
    %124 = vector.shape_cast %123 : vector<1x1x10x8xbf16> to vector<10x8xbf16>
    %cst_100 = arith.constant dense<0.000000e+00> : vector<10x128xf32>
    %125 = tpu.matmul %124, %18, %cst_100 {dimension_numbers = #tpu.dot_dimension_numbers<[1], [0], [0], [1], [0, 0, 1, 1], [], []>} : vector<10x8xbf16>, vector<8x128xbf16>, vector<10x128xf32> -> vector<10x128xf32>
    %126 = arith.addf %120, %125 : vector<10x128xf32>
    %c1_i32_101 = arith.constant 1 : i32
    %127 = arith.addi %c1_i32_101, %arg2 : i32
    %c0_102 = arith.constant 0 : index
    %128 = arith.index_cast %127 : i32 to index
    %c8_103 = arith.constant 8 : index
    %c0_104 = arith.constant 0 : index
    %129 = vector.load %arg3[%c0_102, %128, %c8_103, %c0_104] : memref<1x18x18x8xbf16, #tpu.memory_space<vmem>>, vector<1x1x10x8xbf16>
    %130 = vector.shape_cast %129 : vector<1x1x10x8xbf16> to vector<10x8xbf16>
    %cst_105 = arith.constant dense<0.000000e+00> : vector<10x128xf32>
    %131 = tpu.matmul %130, %20, %cst_105 {dimension_numbers = #tpu.dot_dimension_numbers<[1], [0], [0], [1], [0, 0, 1, 1], [], []>} : vector<10x8xbf16>, vector<8x128xbf16>, vector<10x128xf32> -> vector<10x128xf32>
    %132 = arith.addf %126, %131 : vector<10x128xf32>
    %c1_106 = arith.constant 1 : index
    %c0_107 = arith.constant 0 : index
    %c0_108 = arith.constant 0 : index
    %133 = vector.load %arg8[%c1_106, %c0_107, %c0_108] : memref<10x10x128xf32, #tpu.memory_space<vmem>>, vector<1x10x128xf32>
    %134 = vector.shape_cast %133 : vector<1x10x128xf32> to vector<10x128xf32>
    %135 = arith.addf %134, %132 : vector<10x128xf32>
    %c1_109 = arith.constant 1 : index
    %c0_110 = arith.constant 0 : index
    %c0_111 = arith.constant 0 : index
    %136 = vector.load %arg8[%c1_109, %c0_110, %c0_111] : memref<10x10x128xf32, #tpu.memory_space<vmem>>, vector<1x10x128xf32>
    %137 = vector.shape_cast %136 : vector<1x10x128xf32> to vector<10x128xf32>
    %138 = vector.shape_cast %135 : vector<10x128xf32> to vector<1x10x128xf32>
    tpu.vector_store %arg8[%c1_109, %c0_110, %c0_111], %138 {strides = array<i32>} : memref<10x10x128xf32, #tpu.memory_space<vmem>>, vector<1x10x128xf32>,
    %c2_i32 = arith.constant 2 : i32
    %139 = arith.addi %c2_i32, %arg2 : i32
    %c0_112 = arith.constant 0 : index
    %140 = arith.index_cast %139 : i32 to index
    %c0_113 = arith.constant 0 : index
    %c0_114 = arith.constant 0 : index
    %141 = vector.load %arg3[%c0_112, %140, %c0_113, %c0_114] : memref<1x18x18x8xbf16, #tpu.memory_space<vmem>>, vector<1x1x10x8xbf16>
    %142 = vector.shape_cast %141 : vector<1x1x10x8xbf16> to vector<10x8xbf16>
    %cst_115 = arith.constant dense<0.000000e+00> : vector<10x128xf32>
    %143 = tpu.matmul %142, %4, %cst_115 {dimension_numbers = #tpu.dot_dimension_numbers<[1], [0], [0], [1], [0, 0, 1, 1], [], []>} : vector<10x8xbf16>, vector<8x128xbf16>, vector<10x128xf32> -> vector<10x128xf32>
    %c2_i32_116 = arith.constant 2 : i32
    %144 = arith.addi %c2_i32_116, %arg2 : i32
    %c0_117 = arith.constant 0 : index
    %145 = arith.index_cast %144 : i32 to index
    %c1_118 = arith.constant 1 : index
    %c0_119 = arith.constant 0 : index
    %146 = vector.load %arg3[%c0_117, %145, %c1_118, %c0_119] : memref<1x18x18x8xbf16, #tpu.memory_space<vmem>>, vector<1x1x10x8xbf16>
    %147 = vector.shape_cast %146 : vector<1x1x10x8xbf16> to vector<10x8xbf16>
    %cst_120 = arith.constant dense<0.000000e+00> : vector<10x128xf32>
    %148 = tpu.matmul %147, %6, %cst_120 {dimension_numbers = #tpu.dot_dimension_numbers<[1], [0], [0], [1], [0, 0, 1, 1], [], []>} : vector<10x8xbf16>, vector<8x128xbf16>, vector<10x128xf32> -> vector<10x128xf32>
    %149 = arith.addf %143, %148 : vector<10x128xf32>
    %c2_i32_121 = arith.constant 2 : i32
    %150 = arith.addi %c2_i32_121, %arg2 : i32
    %c0_122 = arith.constant 0 : index
    %151 = arith.index_cast %150 : i32 to index
    %c2_123 = arith.constant 2 : index
    %c0_124 = arith.constant 0 : index
    %152 = vector.load %arg3[%c0_122, %151, %c2_123, %c0_124] : memref<1x18x18x8xbf16, #tpu.memory_space<vmem>>, vector<1x1x10x8xbf16>
    %153 = vector.shape_cast %152 : vector<1x1x10x8xbf16> to vector<10x8xbf16>
    %cst_125 = arith.constant dense<0.000000e+00> : vector<10x128xf32>
    %154 = tpu.matmul %153, %8, %cst_125 {dimension_numbers = #tpu.dot_dimension_numbers<[1], [0], [0], [1], [0, 0, 1, 1], [], []>} : vector<10x8xbf16>, vector<8x128xbf16>, vector<10x128xf32> -> vector<10x128xf32>
    %155 = arith.addf %149, %154 : vector<10x128xf32>
    %c2_i32_126 = arith.constant 2 : i32
    %156 = arith.addi %c2_i32_126, %arg2 : i32
    %c0_127 = arith.constant 0 : index
    %157 = arith.index_cast %156 : i32 to index
    %c3_128 = arith.constant 3 : index
    %c0_129 = arith.constant 0 : index
    %158 = vector.load %arg3[%c0_127, %157, %c3_128, %c0_129] : memref<1x18x18x8xbf16, #tpu.memory_space<vmem>>, vector<1x1x10x8xbf16>
    %159 = vector.shape_cast %158 : vector<1x1x10x8xbf16> to vector<10x8xbf16>
    %cst_130 = arith.constant dense<0.000000e+00> : vector<10x128xf32>
    %160 = tpu.matmul %159, %10, %cst_130 {dimension_numbers = #tpu.dot_dimension_numbers<[1], [0], [0], [1], [0, 0, 1, 1], [], []>} : vector<10x8xbf16>, vector<8x128xbf16>, vector<10x128xf32> -> vector<10x128xf32>
    %161 = arith.addf %155, %160 : vector<10x128xf32>
    %c2_i32_131 = arith.constant 2 : i32
    %162 = arith.addi %c2_i32_131, %arg2 : i32
    %c0_132 = arith.constant 0 : index
    %163 = arith.index_cast %162 : i32 to index
    %c4_133 = arith.constant 4 : index
    %c0_134 = arith.constant 0 : index
    %164 = vector.load %arg3[%c0_132, %163, %c4_133, %c0_134] : memref<1x18x18x8xbf16, #tpu.memory_space<vmem>>, vector<1x1x10x8xbf16>
    %165 = vector.shape_cast %164 : vector<1x1x10x8xbf16> to vector<10x8xbf16>
    %cst_135 = arith.constant dense<0.000000e+00> : vector<10x128xf32>
    %166 = tpu.matmul %165, %12, %cst_135 {dimension_numbers = #tpu.dot_dimension_numbers<[1], [0], [0], [1], [0, 0, 1, 1], [], []>} : vector<10x8xbf16>, vector<8x128xbf16>, vector<10x128xf32> -> vector<10x128xf32>
    %167 = arith.addf %161, %166 : vector<10x128xf32>
    %c2_i32_136 = arith.constant 2 : i32
    %168 = arith.addi %c2_i32_136, %arg2 : i32
    %c0_137 = arith.constant 0 : index
    %169 = arith.index_cast %168 : i32 to index
    %c5_138 = arith.constant 5 : index
    %c0_139 = arith.constant 0 : index
    %170 = vector.load %arg3[%c0_137, %169, %c5_138, %c0_139] : memref<1x18x18x8xbf16, #tpu.memory_space<vmem>>, vector<1x1x10x8xbf16>
    %171 = vector.shape_cast %170 : vector<1x1x10x8xbf16> to vector<10x8xbf16>
    %cst_140 = arith.constant dense<0.000000e+00> : vector<10x128xf32>
    %172 = tpu.matmul %171, %14, %cst_140 {dimension_numbers = #tpu.dot_dimension_numbers<[1], [0], [0], [1], [0, 0, 1, 1], [], []>} : vector<10x8xbf16>, vector<8x128xbf16>, vector<10x128xf32> -> vector<10x128xf32>
    %173 = arith.addf %167, %172 : vector<10x128xf32>
    %c2_i32_141 = arith.constant 2 : i32
    %174 = arith.addi %c2_i32_141, %arg2 : i32
    %c0_142 = arith.constant 0 : index
    %175 = arith.index_cast %174 : i32 to index
    %c6_143 = arith.constant 6 : index
    %c0_144 = arith.constant 0 : index
    %176 = vector.load %arg3[%c0_142, %175, %c6_143, %c0_144] : memref<1x18x18x8xbf16, #tpu.memory_space<vmem>>, vector<1x1x10x8xbf16>
    %177 = vector.shape_cast %176 : vector<1x1x10x8xbf16> to vector<10x8xbf16>
    %cst_145 = arith.constant dense<0.000000e+00> : vector<10x128xf32>
    %178 = tpu.matmul %177, %16, %cst_145 {dimension_numbers = #tpu.dot_dimension_numbers<[1], [0], [0], [1], [0, 0, 1, 1], [], []>} : vector<10x8xbf16>, vector<8x128xbf16>, vector<10x128xf32> -> vector<10x128xf32>
    %179 = arith.addf %173, %178 : vector<10x128xf32>
    %c2_i32_146 = arith.constant 2 : i32
    %180 = arith.addi %c2_i32_146, %arg2 : i32
    %c0_147 = arith.constant 0 : index
    %181 = arith.index_cast %180 : i32 to index
    %c7_148 = arith.constant 7 : index
    %c0_149 = arith.constant 0 : index
    %182 = vector.load %arg3[%c0_147, %181, %c7_148, %c0_149] : memref<1x18x18x8xbf16, #tpu.memory_space<vmem>>, vector<1x1x10x8xbf16>
    %183 = vector.shape_cast %182 : vector<1x1x10x8xbf16> to vector<10x8xbf16>
    %cst_150 = arith.constant dense<0.000000e+00> : vector<10x128xf32>
    %184 = tpu.matmul %183, %18, %cst_150 {dimension_numbers = #tpu.dot_dimension_numbers<[1], [0], [0], [1], [0, 0, 1, 1], [], []>} : vector<10x8xbf16>, vector<8x128xbf16>, vector<10x128xf32> -> vector<10x128xf32>
    %185 = arith.addf %179, %184 : vector<10x128xf32>
    %c2_i32_151 = arith.constant 2 : i32
    %186 = arith.addi %c2_i32_151, %arg2 : i32
    %c0_152 = arith.constant 0 : index
    %187 = arith.index_cast %186 : i32 to index
    %c8_153 = arith.constant 8 : index
    %c0_154 = arith.constant 0 : index
    %188 = vector.load %arg3[%c0_152, %187, %c8_153, %c0_154] : memref<1x18x18x8xbf16, #tpu.memory_space<vmem>>, vector<1x1x10x8xbf16>
    %189 = vector.shape_cast %188 : vector<1x1x10x8xbf16> to vector<10x8xbf16>
    %cst_155 = arith.constant dense<0.000000e+00> : vector<10x128xf32>
    %190 = tpu.matmul %189, %20, %cst_155 {dimension_numbers = #tpu.dot_dimension_numbers<[1], [0], [0], [1], [0, 0, 1, 1], [], []>} : vector<10x8xbf16>, vector<8x128xbf16>, vector<10x128xf32> -> vector<10x128xf32>
    %191 = arith.addf %185, %190 : vector<10x128xf32>
    %c2_156 = arith.constant 2 : index
    %c0_157 = arith.constant 0 : index
    %c0_158 = arith.constant 0 : index
    %192 = vector.load %arg8[%c2_156, %c0_157, %c0_158] : memref<10x10x128xf32, #tpu.memory_space<vmem>>, vector<1x10x128xf32>
    %193 = vector.shape_cast %192 : vector<1x10x128xf32> to vector<10x128xf32>
    %194 = arith.addf %193, %191 : vector<10x128xf32>
    %c2_159 = arith.constant 2 : index
    %c0_160 = arith.constant 0 : index
    %c0_161 = arith.constant 0 : index
    %195 = vector.load %arg8[%c2_159, %c0_160, %c0_161] : memref<10x10x128xf32, #tpu.memory_space<vmem>>, vector<1x10x128xf32>
    %196 = vector.shape_cast %195 : vector<1x10x128xf32> to vector<10x128xf32>
    %197 = vector.shape_cast %194 : vector<10x128xf32> to vector<1x10x128xf32>
    tpu.vector_store %arg8[%c2_159, %c0_160, %c0_161], %197 {strides = array<i32>} : memref<10x10x128xf32, #tpu.memory_space<vmem>>, vector<1x10x128xf32>,
    %c3_i32 = arith.constant 3 : i32
    %198 = arith.addi %c3_i32, %arg2 : i32
    %c0_162 = arith.constant 0 : index
    %199 = arith.index_cast %198 : i32 to index
    %c0_163 = arith.constant 0 : index
    %c0_164 = arith.constant 0 : index
    %200 = vector.load %arg3[%c0_162, %199, %c0_163, %c0_164] : memref<1x18x18x8xbf16, #tpu.memory_space<vmem>>, vector<1x1x10x8xbf16>
    %201 = vector.shape_cast %200 : vector<1x1x10x8xbf16> to vector<10x8xbf16>
    %cst_165 = arith.constant dense<0.000000e+00> : vector<10x128xf32>
    %202 = tpu.matmul %201, %4, %cst_165 {dimension_numbers = #tpu.dot_dimension_numbers<[1], [0], [0], [1], [0, 0, 1, 1], [], []>} : vector<10x8xbf16>, vector<8x128xbf16>, vector<10x128xf32> -> vector<10x128xf32>
    %c3_i32_166 = arith.constant 3 : i32
    %203 = arith.addi %c3_i32_166, %arg2 : i32
    %c0_167 = arith.constant 0 : index
    %204 = arith.index_cast %203 : i32 to index
    %c1_168 = arith.constant 1 : index
    %c0_169 = arith.constant 0 : index
    %205 = vector.load %arg3[%c0_167, %204, %c1_168, %c0_169] : memref<1x18x18x8xbf16, #tpu.memory_space<vmem>>, vector<1x1x10x8xbf16>
    %206 = vector.shape_cast %205 : vector<1x1x10x8xbf16> to vector<10x8xbf16>
    %cst_170 = arith.constant dense<0.000000e+00> : vector<10x128xf32>
    %207 = tpu.matmul %206, %6, %cst_170 {dimension_numbers = #tpu.dot_dimension_numbers<[1], [0], [0], [1], [0, 0, 1, 1], [], []>} : vector<10x8xbf16>, vector<8x128xbf16>, vector<10x128xf32> -> vector<10x128xf32>
    %208 = arith.addf %202, %207 : vector<10x128xf32>
    %c3_i32_171 = arith.constant 3 : i32
    %209 = arith.addi %c3_i32_171, %arg2 : i32
    %c0_172 = arith.constant 0 : index
    %210 = arith.index_cast %209 : i32 to index
    %c2_173 = arith.constant 2 : index
    %c0_174 = arith.constant 0 : index
    %211 = vector.load %arg3[%c0_172, %210, %c2_173, %c0_174] : memref<1x18x18x8xbf16, #tpu.memory_space<vmem>>, vector<1x1x10x8xbf16>
    %212 = vector.shape_cast %211 : vector<1x1x10x8xbf16> to vector<10x8xbf16>
    %cst_175 = arith.constant dense<0.000000e+00> : vector<10x128xf32>
    %213 = tpu.matmul %212, %8, %cst_175 {dimension_numbers = #tpu.dot_dimension_numbers<[1], [0], [0], [1], [0, 0, 1, 1], [], []>} : vector<10x8xbf16>, vector<8x128xbf16>, vector<10x128xf32> -> vector<10x128xf32>
    %214 = arith.addf %208, %213 : vector<10x128xf32>
    %c3_i32_176 = arith.constant 3 : i32
    %215 = arith.addi %c3_i32_176, %arg2 : i32
    %c0_177 = arith.constant 0 : index
    %216 = arith.index_cast %215 : i32 to index
    %c3_178 = arith.constant 3 : index
    %c0_179 = arith.constant 0 : index
    %217 = vector.load %arg3[%c0_177, %216, %c3_178, %c0_179] : memref<1x18x18x8xbf16, #tpu.memory_space<vmem>>, vector<1x1x10x8xbf16>
    %218 = vector.shape_cast %217 : vector<1x1x10x8xbf16> to vector<10x8xbf16>
    %cst_180 = arith.constant dense<0.000000e+00> : vector<10x128xf32>
    %219 = tpu.matmul %218, %10, %cst_180 {dimension_numbers = #tpu.dot_dimension_numbers<[1], [0], [0], [1], [0, 0, 1, 1], [], []>} : vector<10x8xbf16>, vector<8x128xbf16>, vector<10x128xf32> -> vector<10x128xf32>
    %220 = arith.addf %214, %219 : vector<10x128xf32>
    %c3_i32_181 = arith.constant 3 : i32
    %221 = arith.addi %c3_i32_181, %arg2 : i32
    %c0_182 = arith.constant 0 : index
    %222 = arith.index_cast %221 : i32 to index
    %c4_183 = arith.constant 4 : index
    %c0_184 = arith.constant 0 : index
    %223 = vector.load %arg3[%c0_182, %222, %c4_183, %c0_184] : memref<1x18x18x8xbf16, #tpu.memory_space<vmem>>, vector<1x1x10x8xbf16>
    %224 = vector.shape_cast %223 : vector<1x1x10x8xbf16> to vector<10x8xbf16>
    %cst_185 = arith.constant dense<0.000000e+00> : vector<10x128xf32>
    %225 = tpu.matmul %224, %12, %cst_185 {dimension_numbers = #tpu.dot_dimension_numbers<[1], [0], [0], [1], [0, 0, 1, 1], [], []>} : vector<10x8xbf16>, vector<8x128xbf16>, vector<10x128xf32> -> vector<10x128xf32>
    %226 = arith.addf %220, %225 : vector<10x128xf32>
    %c3_i32_186 = arith.constant 3 : i32
    %227 = arith.addi %c3_i32_186, %arg2 : i32
    %c0_187 = arith.constant 0 : index
    %228 = arith.index_cast %227 : i32 to index
    %c5_188 = arith.constant 5 : index
    %c0_189 = arith.constant 0 : index
    %229 = vector.load %arg3[%c0_187, %228, %c5_188, %c0_189] : memref<1x18x18x8xbf16, #tpu.memory_space<vmem>>, vector<1x1x10x8xbf16>
    %230 = vector.shape_cast %229 : vector<1x1x10x8xbf16> to vector<10x8xbf16>
    %cst_190 = arith.constant dense<0.000000e+00> : vector<10x128xf32>
    %231 = tpu.matmul %230, %14, %cst_190 {dimension_numbers = #tpu.dot_dimension_numbers<[1], [0], [0], [1], [0, 0, 1, 1], [], []>} : vector<10x8xbf16>, vector<8x128xbf16>, vector<10x128xf32> -> vector<10x128xf32>
    %232 = arith.addf %226, %231 : vector<10x128xf32>
    %c3_i32_191 = arith.constant 3 : i32
    %233 = arith.addi %c3_i32_191, %arg2 : i32
    %c0_192 = arith.constant 0 : index
    %234 = arith.index_cast %233 : i32 to index
    %c6_193 = arith.constant 6 : index
    %c0_194 = arith.constant 0 : index
    %235 = vector.load %arg3[%c0_192, %234, %c6_193, %c0_194] : memref<1x18x18x8xbf16, #tpu.memory_space<vmem>>, vector<1x1x10x8xbf16>
    %236 = vector.shape_cast %235 : vector<1x1x10x8xbf16> to vector<10x8xbf16>
    %cst_195 = arith.constant dense<0.000000e+00> : vector<10x128xf32>
    %237 = tpu.matmul %236, %16, %cst_195 {dimension_numbers = #tpu.dot_dimension_numbers<[1], [0], [0], [1], [0, 0, 1, 1], [], []>} : vector<10x8xbf16>, vector<8x128xbf16>, vector<10x128xf32> -> vector<10x128xf32>
    %238 = arith.addf %232, %237 : vector<10x128xf32>
    %c3_i32_196 = arith.constant 3 : i32
    %239 = arith.addi %c3_i32_196, %arg2 : i32
    %c0_197 = arith.constant 0 : index
    %240 = arith.index_cast %239 : i32 to index
    %c7_198 = arith.constant 7 : index
    %c0_199 = arith.constant 0 : index
    %241 = vector.load %arg3[%c0_197, %240, %c7_198, %c0_199] : memref<1x18x18x8xbf16, #tpu.memory_space<vmem>>, vector<1x1x10x8xbf16>
    %242 = vector.shape_cast %241 : vector<1x1x10x8xbf16> to vector<10x8xbf16>
    %cst_200 = arith.constant dense<0.000000e+00> : vector<10x128xf32>
    %243 = tpu.matmul %242, %18, %cst_200 {dimension_numbers = #tpu.dot_dimension_numbers<[1], [0], [0], [1], [0, 0, 1, 1], [], []>} : vector<10x8xbf16>, vector<8x128xbf16>, vector<10x128xf32> -> vector<10x128xf32>
    %244 = arith.addf %238, %243 : vector<10x128xf32>
    %c3_i32_201 = arith.constant 3 : i32
    %245 = arith.addi %c3_i32_201, %arg2 : i32
    %c0_202 = arith.constant 0 : index
    %246 = arith.index_cast %245 : i32 to index
    %c8_203 = arith.constant 8 : index
    %c0_204 = arith.constant 0 : index
    %247 = vector.load %arg3[%c0_202, %246, %c8_203, %c0_204] : memref<1x18x18x8xbf16, #tpu.memory_space<vmem>>, vector<1x1x10x8xbf16>
    %248 = vector.shape_cast %247 : vector<1x1x10x8xbf16> to vector<10x8xbf16>
    %cst_205 = arith.constant dense<0.000000e+00> : vector<10x128xf32>
    %249 = tpu.matmul %248, %20, %cst_205 {dimension_numbers = #tpu.dot_dimension_numbers<[1], [0], [0], [1], [0, 0, 1, 1], [], []>} : vector<10x8xbf16>, vector<8x128xbf16>, vector<10x128xf32> -> vector<10x128xf32>
    %250 = arith.addf %244, %249 : vector<10x128xf32>
    %c3_206 = arith.constant 3 : index
    %c0_207 = arith.constant 0 : index
    %c0_208 = arith.constant 0 : index
    %251 = vector.load %arg8[%c3_206, %c0_207, %c0_208] : memref<10x10x128xf32, #tpu.memory_space<vmem>>, vector<1x10x128xf32>
    %252 = vector.shape_cast %251 : vector<1x10x128xf32> to vector<10x128xf32>
    %253 = arith.addf %252, %250 : vector<10x128xf32>
    %c3_209 = arith.constant 3 : index
    %c0_210 = arith.constant 0 : index
    %c0_211 = arith.constant 0 : index
    %254 = vector.load %arg8[%c3_209, %c0_210, %c0_211] : memref<10x10x128xf32, #tpu.memory_space<vmem>>, vector<1x10x128xf32>
    %255 = vector.shape_cast %254 : vector<1x10x128xf32> to vector<10x128xf32>
    %256 = vector.shape_cast %253 : vector<10x128xf32> to vector<1x10x128xf32>
    tpu.vector_store %arg8[%c3_209, %c0_210, %c0_211], %256 {strides = array<i32>} : memref<10x10x128xf32, #tpu.memory_space<vmem>>, vector<1x10x128xf32>,
    %c4_i32 = arith.constant 4 : i32
    %257 = arith.addi %c4_i32, %arg2 : i32
    %c0_212 = arith.constant 0 : index
    %258 = arith.index_cast %257 : i32 to index
    %c0_213 = arith.constant 0 : index
    %c0_214 = arith.constant 0 : index
    %259 = vector.load %arg3[%c0_212, %258, %c0_213, %c0_214] : memref<1x18x18x8xbf16, #tpu.memory_space<vmem>>, vector<1x1x10x8xbf16>
    %260 = vector.shape_cast %259 : vector<1x1x10x8xbf16> to vector<10x8xbf16>
    %cst_215 = arith.constant dense<0.000000e+00> : vector<10x128xf32>
    %261 = tpu.matmul %260, %4, %cst_215 {dimension_numbers = #tpu.dot_dimension_numbers<[1], [0], [0], [1], [0, 0, 1, 1], [], []>} : vector<10x8xbf16>, vector<8x128xbf16>, vector<10x128xf32> -> vector<10x128xf32>
    %c4_i32_216 = arith.constant 4 : i32
    %262 = arith.addi %c4_i32_216, %arg2 : i32
    %c0_217 = arith.constant 0 : index
    %263 = arith.index_cast %262 : i32 to index
    %c1_218 = arith.constant 1 : index
    %c0_219 = arith.constant 0 : index
    %264 = vector.load %arg3[%c0_217, %263, %c1_218, %c0_219] : memref<1x18x18x8xbf16, #tpu.memory_space<vmem>>, vector<1x1x10x8xbf16>
    %265 = vector.shape_cast %264 : vector<1x1x10x8xbf16> to vector<10x8xbf16>
    %cst_220 = arith.constant dense<0.000000e+00> : vector<10x128xf32>
    %266 = tpu.matmul %265, %6, %cst_220 {dimension_numbers = #tpu.dot_dimension_numbers<[1], [0], [0], [1], [0, 0, 1, 1], [], []>} : vector<10x8xbf16>, vector<8x128xbf16>, vector<10x128xf32> -> vector<10x128xf32>
    %267 = arith.addf %261, %266 : vector<10x128xf32>
    %c4_i32_221 = arith.constant 4 : i32
    %268 = arith.addi %c4_i32_221, %arg2 : i32
    %c0_222 = arith.constant 0 : index
    %269 = arith.index_cast %268 : i32 to index
    %c2_223 = arith.constant 2 : index
    %c0_224 = arith.constant 0 : index
    %270 = vector.load %arg3[%c0_222, %269, %c2_223, %c0_224] : memref<1x18x18x8xbf16, #tpu.memory_space<vmem>>, vector<1x1x10x8xbf16>
    %271 = vector.shape_cast %270 : vector<1x1x10x8xbf16> to vector<10x8xbf16>
    %cst_225 = arith.constant dense<0.000000e+00> : vector<10x128xf32>
    %272 = tpu.matmul %271, %8, %cst_225 {dimension_numbers = #tpu.dot_dimension_numbers<[1], [0], [0], [1], [0, 0, 1, 1], [], []>} : vector<10x8xbf16>, vector<8x128xbf16>, vector<10x128xf32> -> vector<10x128xf32>
    %273 = arith.addf %267, %272 : vector<10x128xf32>
    %c4_i32_226 = arith.constant 4 : i32
    %274 = arith.addi %c4_i32_226, %arg2 : i32
    %c0_227 = arith.constant 0 : index
    %275 = arith.index_cast %274 : i32 to index
    %c3_228 = arith.constant 3 : index
    %c0_229 = arith.constant 0 : index
    %276 = vector.load %arg3[%c0_227, %275, %c3_228, %c0_229] : memref<1x18x18x8xbf16, #tpu.memory_space<vmem>>, vector<1x1x10x8xbf16>
    %277 = vector.shape_cast %276 : vector<1x1x10x8xbf16> to vector<10x8xbf16>
    %cst_230 = arith.constant dense<0.000000e+00> : vector<10x128xf32>
    %278 = tpu.matmul %277, %10, %cst_230 {dimension_numbers = #tpu.dot_dimension_numbers<[1], [0], [0], [1], [0, 0, 1, 1], [], []>} : vector<10x8xbf16>, vector<8x128xbf16>, vector<10x128xf32> -> vector<10x128xf32>
    %279 = arith.addf %273, %278 : vector<10x128xf32>
    %c4_i32_231 = arith.constant 4 : i32
    %280 = arith.addi %c4_i32_231, %arg2 : i32
    %c0_232 = arith.constant 0 : index
    %281 = arith.index_cast %280 : i32 to index
    %c4_233 = arith.constant 4 : index
    %c0_234 = arith.constant 0 : index
    %282 = vector.load %arg3[%c0_232, %281, %c4_233, %c0_234] : memref<1x18x18x8xbf16, #tpu.memory_space<vmem>>, vector<1x1x10x8xbf16>
    %283 = vector.shape_cast %282 : vector<1x1x10x8xbf16> to vector<10x8xbf16>
    %cst_235 = arith.constant dense<0.000000e+00> : vector<10x128xf32>
    %284 = tpu.matmul %283, %12, %cst_235 {dimension_numbers = #tpu.dot_dimension_numbers<[1], [0], [0], [1], [0, 0, 1, 1], [], []>} : vector<10x8xbf16>, vector<8x128xbf16>, vector<10x128xf32> -> vector<10x128xf32>
    %285 = arith.addf %279, %284 : vector<10x128xf32>
    %c4_i32_236 = arith.constant 4 : i32
    %286 = arith.addi %c4_i32_236, %arg2 : i32
    %c0_237 = arith.constant 0 : index
    %287 = arith.index_cast %286 : i32 to index
    %c5_238 = arith.constant 5 : index
    %c0_239 = arith.constant 0 : index
    %288 = vector.load %arg3[%c0_237, %287, %c5_238, %c0_239] : memref<1x18x18x8xbf16, #tpu.memory_space<vmem>>, vector<1x1x10x8xbf16>
    %289 = vector.shape_cast %288 : vector<1x1x10x8xbf16> to vector<10x8xbf16>
    %cst_240 = arith.constant dense<0.000000e+00> : vector<10x128xf32>
    %290 = tpu.matmul %289, %14, %cst_240 {dimension_numbers = #tpu.dot_dimension_numbers<[1], [0], [0], [1], [0, 0, 1, 1], [], []>} : vector<10x8xbf16>, vector<8x128xbf16>, vector<10x128xf32> -> vector<10x128xf32>
    %291 = arith.addf %285, %290 : vector<10x128xf32>
    %c4_i32_241 = arith.constant 4 : i32
    %292 = arith.addi %c4_i32_241, %arg2 : i32
    %c0_242 = arith.constant 0 : index
    %293 = arith.index_cast %292 : i32 to index
    %c6_243 = arith.constant 6 : index
    %c0_244 = arith.constant 0 : index
    %294 = vector.load %arg3[%c0_242, %293, %c6_243, %c0_244] : memref<1x18x18x8xbf16, #tpu.memory_space<vmem>>, vector<1x1x10x8xbf16>
    %295 = vector.shape_cast %294 : vector<1x1x10x8xbf16> to vector<10x8xbf16>
    %cst_245 = arith.constant dense<0.000000e+00> : vector<10x128xf32>
    %296 = tpu.matmul %295, %16, %cst_245 {dimension_numbers = #tpu.dot_dimension_numbers<[1], [0], [0], [1], [0, 0, 1, 1], [], []>} : vector<10x8xbf16>, vector<8x128xbf16>, vector<10x128xf32> -> vector<10x128xf32>
    %297 = arith.addf %291, %296 : vector<10x128xf32>
    %c4_i32_246 = arith.constant 4 : i32
    %298 = arith.addi %c4_i32_246, %arg2 : i32
    %c0_247 = arith.constant 0 : index
    %299 = arith.index_cast %298 : i32 to index
    %c7_248 = arith.constant 7 : index
    %c0_249 = arith.constant 0 : index
    %300 = vector.load %arg3[%c0_247, %299, %c7_248, %c0_249] : memref<1x18x18x8xbf16, #tpu.memory_space<vmem>>, vector<1x1x10x8xbf16>
    %301 = vector.shape_cast %300 : vector<1x1x10x8xbf16> to vector<10x8xbf16>
    %cst_250 = arith.constant dense<0.000000e+00> : vector<10x128xf32>
    %302 = tpu.matmul %301, %18, %cst_250 {dimension_numbers = #tpu.dot_dimension_numbers<[1], [0], [0], [1], [0, 0, 1, 1], [], []>} : vector<10x8xbf16>, vector<8x128xbf16>, vector<10x128xf32> -> vector<10x128xf32>
    %303 = arith.addf %297, %302 : vector<10x128xf32>
    %c4_i32_251 = arith.constant 4 : i32
    %304 = arith.addi %c4_i32_251, %arg2 : i32
    %c0_252 = arith.constant 0 : index
    %305 = arith.index_cast %304 : i32 to index
    %c8_253 = arith.constant 8 : index
    %c0_254 = arith.constant 0 : index
    %306 = vector.load %arg3[%c0_252, %305, %c8_253, %c0_254] : memref<1x18x18x8xbf16, #tpu.memory_space<vmem>>, vector<1x1x10x8xbf16>
    %307 = vector.shape_cast %306 : vector<1x1x10x8xbf16> to vector<10x8xbf16>
    %cst_255 = arith.constant dense<0.000000e+00> : vector<10x128xf32>
    %308 = tpu.matmul %307, %20, %cst_255 {dimension_numbers = #tpu.dot_dimension_numbers<[1], [0], [0], [1], [0, 0, 1, 1], [], []>} : vector<10x8xbf16>, vector<8x128xbf16>, vector<10x128xf32> -> vector<10x128xf32>
    %309 = arith.addf %303, %308 : vector<10x128xf32>
    %c4_256 = arith.constant 4 : index
    %c0_257 = arith.constant 0 : index
    %c0_258 = arith.constant 0 : index
    %310 = vector.load %arg8[%c4_256, %c0_257, %c0_258] : memref<10x10x128xf32, #tpu.memory_space<vmem>>, vector<1x10x128xf32>
    %311 = vector.shape_cast %310 : vector<1x10x128xf32> to vector<10x128xf32>
    %312 = arith.addf %311, %309 : vector<10x128xf32>
    %c4_259 = arith.constant 4 : index
    %c0_260 = arith.constant 0 : index
    %c0_261 = arith.constant 0 : index
    %313 = vector.load %arg8[%c4_259, %c0_260, %c0_261] : memref<10x10x128xf32, #tpu.memory_space<vmem>>, vector<1x10x128xf32>
    %314 = vector.shape_cast %313 : vector<1x10x128xf32> to vector<10x128xf32>
    %315 = vector.shape_cast %312 : vector<10x128xf32> to vector<1x10x128xf32>
    tpu.vector_store %arg8[%c4_259, %c0_260, %c0_261], %315 {strides = array<i32>} : memref<10x10x128xf32, #tpu.memory_space<vmem>>, vector<1x10x128xf32>,
    %c5_i32 = arith.constant 5 : i32
    %316 = arith.addi %c5_i32, %arg2 : i32
    %c0_262 = arith.constant 0 : index
    %317 = arith.index_cast %316 : i32 to index
    %c0_263 = arith.constant 0 : index
    %c0_264 = arith.constant 0 : index
    %318 = vector.load %arg3[%c0_262, %317, %c0_263, %c0_264] : memref<1x18x18x8xbf16, #tpu.memory_space<vmem>>, vector<1x1x10x8xbf16>
    %319 = vector.shape_cast %318 : vector<1x1x10x8xbf16> to vector<10x8xbf16>
    %cst_265 = arith.constant dense<0.000000e+00> : vector<10x128xf32>
    %320 = tpu.matmul %319, %4, %cst_265 {dimension_numbers = #tpu.dot_dimension_numbers<[1], [0], [0], [1], [0, 0, 1, 1], [], []>} : vector<10x8xbf16>, vector<8x128xbf16>, vector<10x128xf32> -> vector<10x128xf32>
    %c5_i32_266 = arith.constant 5 : i32
    %321 = arith.addi %c5_i32_266, %arg2 : i32
    %c0_267 = arith.constant 0 : index
    %322 = arith.index_cast %321 : i32 to index
    %c1_268 = arith.constant 1 : index
    %c0_269 = arith.constant 0 : index
    %323 = vector.load %arg3[%c0_267, %322, %c1_268, %c0_269] : memref<1x18x18x8xbf16, #tpu.memory_space<vmem>>, vector<1x1x10x8xbf16>
    %324 = vector.shape_cast %323 : vector<1x1x10x8xbf16> to vector<10x8xbf16>
    %cst_270 = arith.constant dense<0.000000e+00> : vector<10x128xf32>
    %325 = tpu.matmul %324, %6, %cst_270 {dimension_numbers = #tpu.dot_dimension_numbers<[1], [0], [0], [1], [0, 0, 1, 1], [], []>} : vector<10x8xbf16>, vector<8x128xbf16>, vector<10x128xf32> -> vector<10x128xf32>
    %326 = arith.addf %320, %325 : vector<10x128xf32>
    %c5_i32_271 = arith.constant 5 : i32
    %327 = arith.addi %c5_i32_271, %arg2 : i32
    %c0_272 = arith.constant 0 : index
    %328 = arith.index_cast %327 : i32 to index
    %c2_273 = arith.constant 2 : index
    %c0_274 = arith.constant 0 : index
    %329 = vector.load %arg3[%c0_272, %328, %c2_273, %c0_274] : memref<1x18x18x8xbf16, #tpu.memory_space<vmem>>, vector<1x1x10x8xbf16>
    %330 = vector.shape_cast %329 : vector<1x1x10x8xbf16> to vector<10x8xbf16>
    %cst_275 = arith.constant dense<0.000000e+00> : vector<10x128xf32>
    %331 = tpu.matmul %330, %8, %cst_275 {dimension_numbers = #tpu.dot_dimension_numbers<[1], [0], [0], [1], [0, 0, 1, 1], [], []>} : vector<10x8xbf16>, vector<8x128xbf16>, vector<10x128xf32> -> vector<10x128xf32>
    %332 = arith.addf %326, %331 : vector<10x128xf32>
    %c5_i32_276 = arith.constant 5 : i32
    %333 = arith.addi %c5_i32_276, %arg2 : i32
    %c0_277 = arith.constant 0 : index
    %334 = arith.index_cast %333 : i32 to index
    %c3_278 = arith.constant 3 : index
    %c0_279 = arith.constant 0 : index
    %335 = vector.load %arg3[%c0_277, %334, %c3_278, %c0_279] : memref<1x18x18x8xbf16, #tpu.memory_space<vmem>>, vector<1x1x10x8xbf16>
    %336 = vector.shape_cast %335 : vector<1x1x10x8xbf16> to vector<10x8xbf16>
    %cst_280 = arith.constant dense<0.000000e+00> : vector<10x128xf32>
    %337 = tpu.matmul %336, %10, %cst_280 {dimension_numbers = #tpu.dot_dimension_numbers<[1], [0], [0], [1], [0, 0, 1, 1], [], []>} : vector<10x8xbf16>, vector<8x128xbf16>, vector<10x128xf32> -> vector<10x128xf32>
    %338 = arith.addf %332, %337 : vector<10x128xf32>
    %c5_i32_281 = arith.constant 5 : i32
    %339 = arith.addi %c5_i32_281, %arg2 : i32
    %c0_282 = arith.constant 0 : index
    %340 = arith.index_cast %339 : i32 to index
    %c4_283 = arith.constant 4 : index
    %c0_284 = arith.constant 0 : index
    %341 = vector.load %arg3[%c0_282, %340, %c4_283, %c0_284] : memref<1x18x18x8xbf16, #tpu.memory_space<vmem>>, vector<1x1x10x8xbf16>
    %342 = vector.shape_cast %341 : vector<1x1x10x8xbf16> to vector<10x8xbf16>
    %cst_285 = arith.constant dense<0.000000e+00> : vector<10x128xf32>
    %343 = tpu.matmul %342, %12, %cst_285 {dimension_numbers = #tpu.dot_dimension_numbers<[1], [0], [0], [1], [0, 0, 1, 1], [], []>} : vector<10x8xbf16>, vector<8x128xbf16>, vector<10x128xf32> -> vector<10x128xf32>
    %344 = arith.addf %338, %343 : vector<10x128xf32>
    %c5_i32_286 = arith.constant 5 : i32
    %345 = arith.addi %c5_i32_286, %arg2 : i32
    %c0_287 = arith.constant 0 : index
    %346 = arith.index_cast %345 : i32 to index
    %c5_288 = arith.constant 5 : index
    %c0_289 = arith.constant 0 : index
    %347 = vector.load %arg3[%c0_287, %346, %c5_288, %c0_289] : memref<1x18x18x8xbf16, #tpu.memory_space<vmem>>, vector<1x1x10x8xbf16>
    %348 = vector.shape_cast %347 : vector<1x1x10x8xbf16> to vector<10x8xbf16>
    %cst_290 = arith.constant dense<0.000000e+00> : vector<10x128xf32>
    %349 = tpu.matmul %348, %14, %cst_290 {dimension_numbers = #tpu.dot_dimension_numbers<[1], [0], [0], [1], [0, 0, 1, 1], [], []>} : vector<10x8xbf16>, vector<8x128xbf16>, vector<10x128xf32> -> vector<10x128xf32>
    %350 = arith.addf %344, %349 : vector<10x128xf32>
    %c5_i32_291 = arith.constant 5 : i32
    %351 = arith.addi %c5_i32_291, %arg2 : i32
    %c0_292 = arith.constant 0 : index
    %352 = arith.index_cast %351 : i32 to index
    %c6_293 = arith.constant 6 : index
    %c0_294 = arith.constant 0 : index
    %353 = vector.load %arg3[%c0_292, %352, %c6_293, %c0_294] : memref<1x18x18x8xbf16, #tpu.memory_space<vmem>>, vector<1x1x10x8xbf16>
    %354 = vector.shape_cast %353 : vector<1x1x10x8xbf16> to vector<10x8xbf16>
    %cst_295 = arith.constant dense<0.000000e+00> : vector<10x128xf32>
    %355 = tpu.matmul %354, %16, %cst_295 {dimension_numbers = #tpu.dot_dimension_numbers<[1], [0], [0], [1], [0, 0, 1, 1], [], []>} : vector<10x8xbf16>, vector<8x128xbf16>, vector<10x128xf32> -> vector<10x128xf32>
    %356 = arith.addf %350, %355 : vector<10x128xf32>
    %c5_i32_296 = arith.constant 5 : i32
    %357 = arith.addi %c5_i32_296, %arg2 : i32
    %c0_297 = arith.constant 0 : index
    %358 = arith.index_cast %357 : i32 to index
    %c7_298 = arith.constant 7 : index
    %c0_299 = arith.constant 0 : index
    %359 = vector.load %arg3[%c0_297, %358, %c7_298, %c0_299] : memref<1x18x18x8xbf16, #tpu.memory_space<vmem>>, vector<1x1x10x8xbf16>
    %360 = vector.shape_cast %359 : vector<1x1x10x8xbf16> to vector<10x8xbf16>
    %cst_300 = arith.constant dense<0.000000e+00> : vector<10x128xf32>
    %361 = tpu.matmul %360, %18, %cst_300 {dimension_numbers = #tpu.dot_dimension_numbers<[1], [0], [0], [1], [0, 0, 1, 1], [], []>} : vector<10x8xbf16>, vector<8x128xbf16>, vector<10x128xf32> -> vector<10x128xf32>
    %362 = arith.addf %356, %361 : vector<10x128xf32>
    %c5_i32_301 = arith.constant 5 : i32
    %363 = arith.addi %c5_i32_301, %arg2 : i32
    %c0_302 = arith.constant 0 : index
    %364 = arith.index_cast %363 : i32 to index
    %c8_303 = arith.constant 8 : index
    %c0_304 = arith.constant 0 : index
    %365 = vector.load %arg3[%c0_302, %364, %c8_303, %c0_304] : memref<1x18x18x8xbf16, #tpu.memory_space<vmem>>, vector<1x1x10x8xbf16>
    %366 = vector.shape_cast %365 : vector<1x1x10x8xbf16> to vector<10x8xbf16>
    %cst_305 = arith.constant dense<0.000000e+00> : vector<10x128xf32>
    %367 = tpu.matmul %366, %20, %cst_305 {dimension_numbers = #tpu.dot_dimension_numbers<[1], [0], [0], [1], [0, 0, 1, 1], [], []>} : vector<10x8xbf16>, vector<8x128xbf16>, vector<10x128xf32> -> vector<10x128xf32>
    %368 = arith.addf %362, %367 : vector<10x128xf32>
    %c5_306 = arith.constant 5 : index
    %c0_307 = arith.constant 0 : index
    %c0_308 = arith.constant 0 : index
    %369 = vector.load %arg8[%c5_306, %c0_307, %c0_308] : memref<10x10x128xf32, #tpu.memory_space<vmem>>, vector<1x10x128xf32>
    %370 = vector.shape_cast %369 : vector<1x10x128xf32> to vector<10x128xf32>
    %371 = arith.addf %370, %368 : vector<10x128xf32>
    %c5_309 = arith.constant 5 : index
    %c0_310 = arith.constant 0 : index
    %c0_311 = arith.constant 0 : index
    %372 = vector.load %arg8[%c5_309, %c0_310, %c0_311] : memref<10x10x128xf32, #tpu.memory_space<vmem>>, vector<1x10x128xf32>
    %373 = vector.shape_cast %372 : vector<1x10x128xf32> to vector<10x128xf32>
    %374 = vector.shape_cast %371 : vector<10x128xf32> to vector<1x10x128xf32>
    tpu.vector_store %arg8[%c5_309, %c0_310, %c0_311], %374 {strides = array<i32>} : memref<10x10x128xf32, #tpu.memory_space<vmem>>, vector<1x10x128xf32>,
    %c6_i32 = arith.constant 6 : i32
    %375 = arith.addi %c6_i32, %arg2 : i32
    %c0_312 = arith.constant 0 : index
    %376 = arith.index_cast %375 : i32 to index
    %c0_313 = arith.constant 0 : index
    %c0_314 = arith.constant 0 : index
    %377 = vector.load %arg3[%c0_312, %376, %c0_313, %c0_314] : memref<1x18x18x8xbf16, #tpu.memory_space<vmem>>, vector<1x1x10x8xbf16>
    %378 = vector.shape_cast %377 : vector<1x1x10x8xbf16> to vector<10x8xbf16>
    %cst_315 = arith.constant dense<0.000000e+00> : vector<10x128xf32>
    %379 = tpu.matmul %378, %4, %cst_315 {dimension_numbers = #tpu.dot_dimension_numbers<[1], [0], [0], [1], [0, 0, 1, 1], [], []>} : vector<10x8xbf16>, vector<8x128xbf16>, vector<10x128xf32> -> vector<10x128xf32>
    %c6_i32_316 = arith.constant 6 : i32
    %380 = arith.addi %c6_i32_316, %arg2 : i32
    %c0_317 = arith.constant 0 : index
    %381 = arith.index_cast %380 : i32 to index
    %c1_318 = arith.constant 1 : index
    %c0_319 = arith.constant 0 : index
    %382 = vector.load %arg3[%c0_317, %381, %c1_318, %c0_319] : memref<1x18x18x8xbf16, #tpu.memory_space<vmem>>, vector<1x1x10x8xbf16>
    %383 = vector.shape_cast %382 : vector<1x1x10x8xbf16> to vector<10x8xbf16>
    %cst_320 = arith.constant dense<0.000000e+00> : vector<10x128xf32>
    %384 = tpu.matmul %383, %6, %cst_320 {dimension_numbers = #tpu.dot_dimension_numbers<[1], [0], [0], [1], [0, 0, 1, 1], [], []>} : vector<10x8xbf16>, vector<8x128xbf16>, vector<10x128xf32> -> vector<10x128xf32>
    %385 = arith.addf %379, %384 : vector<10x128xf32>
    %c6_i32_321 = arith.constant 6 : i32
    %386 = arith.addi %c6_i32_321, %arg2 : i32
    %c0_322 = arith.constant 0 : index
    %387 = arith.index_cast %386 : i32 to index
    %c2_323 = arith.constant 2 : index
    %c0_324 = arith.constant 0 : index
    %388 = vector.load %arg3[%c0_322, %387, %c2_323, %c0_324] : memref<1x18x18x8xbf16, #tpu.memory_space<vmem>>, vector<1x1x10x8xbf16>
    %389 = vector.shape_cast %388 : vector<1x1x10x8xbf16> to vector<10x8xbf16>
    %cst_325 = arith.constant dense<0.000000e+00> : vector<10x128xf32>
    %390 = tpu.matmul %389, %8, %cst_325 {dimension_numbers = #tpu.dot_dimension_numbers<[1], [0], [0], [1], [0, 0, 1, 1], [], []>} : vector<10x8xbf16>, vector<8x128xbf16>, vector<10x128xf32> -> vector<10x128xf32>
    %391 = arith.addf %385, %390 : vector<10x128xf32>
    %c6_i32_326 = arith.constant 6 : i32
    %392 = arith.addi %c6_i32_326, %arg2 : i32
    %c0_327 = arith.constant 0 : index
    %393 = arith.index_cast %392 : i32 to index
    %c3_328 = arith.constant 3 : index
    %c0_329 = arith.constant 0 : index
    %394 = vector.load %arg3[%c0_327, %393, %c3_328, %c0_329] : memref<1x18x18x8xbf16, #tpu.memory_space<vmem>>, vector<1x1x10x8xbf16>
    %395 = vector.shape_cast %394 : vector<1x1x10x8xbf16> to vector<10x8xbf16>
    %cst_330 = arith.constant dense<0.000000e+00> : vector<10x128xf32>
    %396 = tpu.matmul %395, %10, %cst_330 {dimension_numbers = #tpu.dot_dimension_numbers<[1], [0], [0], [1], [0, 0, 1, 1], [], []>} : vector<10x8xbf16>, vector<8x128xbf16>, vector<10x128xf32> -> vector<10x128xf32>
    %397 = arith.addf %391, %396 : vector<10x128xf32>
    %c6_i32_331 = arith.constant 6 : i32
    %398 = arith.addi %c6_i32_331, %arg2 : i32
    %c0_332 = arith.constant 0 : index
    %399 = arith.index_cast %398 : i32 to index
    %c4_333 = arith.constant 4 : index
    %c0_334 = arith.constant 0 : index
    %400 = vector.load %arg3[%c0_332, %399, %c4_333, %c0_334] : memref<1x18x18x8xbf16, #tpu.memory_space<vmem>>, vector<1x1x10x8xbf16>
    %401 = vector.shape_cast %400 : vector<1x1x10x8xbf16> to vector<10x8xbf16>
    %cst_335 = arith.constant dense<0.000000e+00> : vector<10x128xf32>
    %402 = tpu.matmul %401, %12, %cst_335 {dimension_numbers = #tpu.dot_dimension_numbers<[1], [0], [0], [1], [0, 0, 1, 1], [], []>} : vector<10x8xbf16>, vector<8x128xbf16>, vector<10x128xf32> -> vector<10x128xf32>
    %403 = arith.addf %397, %402 : vector<10x128xf32>
    %c6_i32_336 = arith.constant 6 : i32
    %404 = arith.addi %c6_i32_336, %arg2 : i32
    %c0_337 = arith.constant 0 : index
    %405 = arith.index_cast %404 : i32 to index
    %c5_338 = arith.constant 5 : index
    %c0_339 = arith.constant 0 : index
    %406 = vector.load %arg3[%c0_337, %405, %c5_338, %c0_339] : memref<1x18x18x8xbf16, #tpu.memory_space<vmem>>, vector<1x1x10x8xbf16>
    %407 = vector.shape_cast %406 : vector<1x1x10x8xbf16> to vector<10x8xbf16>
    %cst_340 = arith.constant dense<0.000000e+00> : vector<10x128xf32>
    %408 = tpu.matmul %407, %14, %cst_340 {dimension_numbers = #tpu.dot_dimension_numbers<[1], [0], [0], [1], [0, 0, 1, 1], [], []>} : vector<10x8xbf16>, vector<8x128xbf16>, vector<10x128xf32> -> vector<10x128xf32>
    %409 = arith.addf %403, %408 : vector<10x128xf32>
    %c6_i32_341 = arith.constant 6 : i32
    %410 = arith.addi %c6_i32_341, %arg2 : i32
    %c0_342 = arith.constant 0 : index
    %411 = arith.index_cast %410 : i32 to index
    %c6_343 = arith.constant 6 : index
    %c0_344 = arith.constant 0 : index
    %412 = vector.load %arg3[%c0_342, %411, %c6_343, %c0_344] : memref<1x18x18x8xbf16, #tpu.memory_space<vmem>>, vector<1x1x10x8xbf16>
    %413 = vector.shape_cast %412 : vector<1x1x10x8xbf16> to vector<10x8xbf16>
    %cst_345 = arith.constant dense<0.000000e+00> : vector<10x128xf32>
    %414 = tpu.matmul %413, %16, %cst_345 {dimension_numbers = #tpu.dot_dimension_numbers<[1], [0], [0], [1], [0, 0, 1, 1], [], []>} : vector<10x8xbf16>, vector<8x128xbf16>, vector<10x128xf32> -> vector<10x128xf32>
    %415 = arith.addf %409, %414 : vector<10x128xf32>
    %c6_i32_346 = arith.constant 6 : i32
    %416 = arith.addi %c6_i32_346, %arg2 : i32
    %c0_347 = arith.constant 0 : index
    %417 = arith.index_cast %416 : i32 to index
    %c7_348 = arith.constant 7 : index
    %c0_349 = arith.constant 0 : index
    %418 = vector.load %arg3[%c0_347, %417, %c7_348, %c0_349] : memref<1x18x18x8xbf16, #tpu.memory_space<vmem>>, vector<1x1x10x8xbf16>
    %419 = vector.shape_cast %418 : vector<1x1x10x8xbf16> to vector<10x8xbf16>
    %cst_350 = arith.constant dense<0.000000e+00> : vector<10x128xf32>
    %420 = tpu.matmul %419, %18, %cst_350 {dimension_numbers = #tpu.dot_dimension_numbers<[1], [0], [0], [1], [0, 0, 1, 1], [], []>} : vector<10x8xbf16>, vector<8x128xbf16>, vector<10x128xf32> -> vector<10x128xf32>
    %421 = arith.addf %415, %420 : vector<10x128xf32>
    %c6_i32_351 = arith.constant 6 : i32
    %422 = arith.addi %c6_i32_351, %arg2 : i32
    %c0_352 = arith.constant 0 : index
    %423 = arith.index_cast %422 : i32 to index
    %c8_353 = arith.constant 8 : index
    %c0_354 = arith.constant 0 : index
    %424 = vector.load %arg3[%c0_352, %423, %c8_353, %c0_354] : memref<1x18x18x8xbf16, #tpu.memory_space<vmem>>, vector<1x1x10x8xbf16>
    %425 = vector.shape_cast %424 : vector<1x1x10x8xbf16> to vector<10x8xbf16>
    %cst_355 = arith.constant dense<0.000000e+00> : vector<10x128xf32>
    %426 = tpu.matmul %425, %20, %cst_355 {dimension_numbers = #tpu.dot_dimension_numbers<[1], [0], [0], [1], [0, 0, 1, 1], [], []>} : vector<10x8xbf16>, vector<8x128xbf16>, vector<10x128xf32> -> vector<10x128xf32>
    %427 = arith.addf %421, %426 : vector<10x128xf32>
    %c6_356 = arith.constant 6 : index
    %c0_357 = arith.constant 0 : index
    %c0_358 = arith.constant 0 : index
    %428 = vector.load %arg8[%c6_356, %c0_357, %c0_358] : memref<10x10x128xf32, #tpu.memory_space<vmem>>, vector<1x10x128xf32>
    %429 = vector.shape_cast %428 : vector<1x10x128xf32> to vector<10x128xf32>
    %430 = arith.addf %429, %427 : vector<10x128xf32>
    %c6_359 = arith.constant 6 : index
    %c0_360 = arith.constant 0 : index
    %c0_361 = arith.constant 0 : index
    %431 = vector.load %arg8[%c6_359, %c0_360, %c0_361] : memref<10x10x128xf32, #tpu.memory_space<vmem>>, vector<1x10x128xf32>
    %432 = vector.shape_cast %431 : vector<1x10x128xf32> to vector<10x128xf32>
    %433 = vector.shape_cast %430 : vector<10x128xf32> to vector<1x10x128xf32>
    tpu.vector_store %arg8[%c6_359, %c0_360, %c0_361], %433 {strides = array<i32>} : memref<10x10x128xf32, #tpu.memory_space<vmem>>, vector<1x10x128xf32>,
    %c7_i32 = arith.constant 7 : i32
    %434 = arith.addi %c7_i32, %arg2 : i32
    %c0_362 = arith.constant 0 : index
    %435 = arith.index_cast %434 : i32 to index
    %c0_363 = arith.constant 0 : index
    %c0_364 = arith.constant 0 : index
    %436 = vector.load %arg3[%c0_362, %435, %c0_363, %c0_364] : memref<1x18x18x8xbf16, #tpu.memory_space<vmem>>, vector<1x1x10x8xbf16>
    %437 = vector.shape_cast %436 : vector<1x1x10x8xbf16> to vector<10x8xbf16>
    %cst_365 = arith.constant dense<0.000000e+00> : vector<10x128xf32>
    %438 = tpu.matmul %437, %4, %cst_365 {dimension_numbers = #tpu.dot_dimension_numbers<[1], [0], [0], [1], [0, 0, 1, 1], [], []>} : vector<10x8xbf16>, vector<8x128xbf16>, vector<10x128xf32> -> vector<10x128xf32>
    %c7_i32_366 = arith.constant 7 : i32
    %439 = arith.addi %c7_i32_366, %arg2 : i32
    %c0_367 = arith.constant 0 : index
    %440 = arith.index_cast %439 : i32 to index
    %c1_368 = arith.constant 1 : index
    %c0_369 = arith.constant 0 : index
    %441 = vector.load %arg3[%c0_367, %440, %c1_368, %c0_369] : memref<1x18x18x8xbf16, #tpu.memory_space<vmem>>, vector<1x1x10x8xbf16>
    %442 = vector.shape_cast %441 : vector<1x1x10x8xbf16> to vector<10x8xbf16>
    %cst_370 = arith.constant dense<0.000000e+00> : vector<10x128xf32>
    %443 = tpu.matmul %442, %6, %cst_370 {dimension_numbers = #tpu.dot_dimension_numbers<[1], [0], [0], [1], [0, 0, 1, 1], [], []>} : vector<10x8xbf16>, vector<8x128xbf16>, vector<10x128xf32> -> vector<10x128xf32>
    %444 = arith.addf %438, %443 : vector<10x128xf32>
    %c7_i32_371 = arith.constant 7 : i32
    %445 = arith.addi %c7_i32_371, %arg2 : i32
    %c0_372 = arith.constant 0 : index
    %446 = arith.index_cast %445 : i32 to index
    %c2_373 = arith.constant 2 : index
    %c0_374 = arith.constant 0 : index
    %447 = vector.load %arg3[%c0_372, %446, %c2_373, %c0_374] : memref<1x18x18x8xbf16, #tpu.memory_space<vmem>>, vector<1x1x10x8xbf16>
    %448 = vector.shape_cast %447 : vector<1x1x10x8xbf16> to vector<10x8xbf16>
    %cst_375 = arith.constant dense<0.000000e+00> : vector<10x128xf32>
    %449 = tpu.matmul %448, %8, %cst_375 {dimension_numbers = #tpu.dot_dimension_numbers<[1], [0], [0], [1], [0, 0, 1, 1], [], []>} : vector<10x8xbf16>, vector<8x128xbf16>, vector<10x128xf32> -> vector<10x128xf32>
    %450 = arith.addf %444, %449 : vector<10x128xf32>
    %c7_i32_376 = arith.constant 7 : i32
    %451 = arith.addi %c7_i32_376, %arg2 : i32
    %c0_377 = arith.constant 0 : index
    %452 = arith.index_cast %451 : i32 to index
    %c3_378 = arith.constant 3 : index
    %c0_379 = arith.constant 0 : index
    %453 = vector.load %arg3[%c0_377, %452, %c3_378, %c0_379] : memref<1x18x18x8xbf16, #tpu.memory_space<vmem>>, vector<1x1x10x8xbf16>
    %454 = vector.shape_cast %453 : vector<1x1x10x8xbf16> to vector<10x8xbf16>
    %cst_380 = arith.constant dense<0.000000e+00> : vector<10x128xf32>
    %455 = tpu.matmul %454, %10, %cst_380 {dimension_numbers = #tpu.dot_dimension_numbers<[1], [0], [0], [1], [0, 0, 1, 1], [], []>} : vector<10x8xbf16>, vector<8x128xbf16>, vector<10x128xf32> -> vector<10x128xf32>
    %456 = arith.addf %450, %455 : vector<10x128xf32>
    %c7_i32_381 = arith.constant 7 : i32
    %457 = arith.addi %c7_i32_381, %arg2 : i32
    %c0_382 = arith.constant 0 : index
    %458 = arith.index_cast %457 : i32 to index
    %c4_383 = arith.constant 4 : index
    %c0_384 = arith.constant 0 : index
    %459 = vector.load %arg3[%c0_382, %458, %c4_383, %c0_384] : memref<1x18x18x8xbf16, #tpu.memory_space<vmem>>, vector<1x1x10x8xbf16>
    %460 = vector.shape_cast %459 : vector<1x1x10x8xbf16> to vector<10x8xbf16>
    %cst_385 = arith.constant dense<0.000000e+00> : vector<10x128xf32>
    %461 = tpu.matmul %460, %12, %cst_385 {dimension_numbers = #tpu.dot_dimension_numbers<[1], [0], [0], [1], [0, 0, 1, 1], [], []>} : vector<10x8xbf16>, vector<8x128xbf16>, vector<10x128xf32> -> vector<10x128xf32>
    %462 = arith.addf %456, %461 : vector<10x128xf32>
    %c7_i32_386 = arith.constant 7 : i32
    %463 = arith.addi %c7_i32_386, %arg2 : i32
    %c0_387 = arith.constant 0 : index
    %464 = arith.index_cast %463 : i32 to index
    %c5_388 = arith.constant 5 : index
    %c0_389 = arith.constant 0 : index
    %465 = vector.load %arg3[%c0_387, %464, %c5_388, %c0_389] : memref<1x18x18x8xbf16, #tpu.memory_space<vmem>>, vector<1x1x10x8xbf16>
    %466 = vector.shape_cast %465 : vector<1x1x10x8xbf16> to vector<10x8xbf16>
    %cst_390 = arith.constant dense<0.000000e+00> : vector<10x128xf32>
    %467 = tpu.matmul %466, %14, %cst_390 {dimension_numbers = #tpu.dot_dimension_numbers<[1], [0], [0], [1], [0, 0, 1, 1], [], []>} : vector<10x8xbf16>, vector<8x128xbf16>, vector<10x128xf32> -> vector<10x128xf32>
    %468 = arith.addf %462, %467 : vector<10x128xf32>
    %c7_i32_391 = arith.constant 7 : i32
    %469 = arith.addi %c7_i32_391, %arg2 : i32
    %c0_392 = arith.constant 0 : index
    %470 = arith.index_cast %469 : i32 to index
    %c6_393 = arith.constant 6 : index
    %c0_394 = arith.constant 0 : index
    %471 = vector.load %arg3[%c0_392, %470, %c6_393, %c0_394] : memref<1x18x18x8xbf16, #tpu.memory_space<vmem>>, vector<1x1x10x8xbf16>
    %472 = vector.shape_cast %471 : vector<1x1x10x8xbf16> to vector<10x8xbf16>
    %cst_395 = arith.constant dense<0.000000e+00> : vector<10x128xf32>
    %473 = tpu.matmul %472, %16, %cst_395 {dimension_numbers = #tpu.dot_dimension_numbers<[1], [0], [0], [1], [0, 0, 1, 1], [], []>} : vector<10x8xbf16>, vector<8x128xbf16>, vector<10x128xf32> -> vector<10x128xf32>
    %474 = arith.addf %468, %473 : vector<10x128xf32>
    %c7_i32_396 = arith.constant 7 : i32
    %475 = arith.addi %c7_i32_396, %arg2 : i32
    %c0_397 = arith.constant 0 : index
    %476 = arith.index_cast %475 : i32 to index
    %c7_398 = arith.constant 7 : index
    %c0_399 = arith.constant 0 : index
    %477 = vector.load %arg3[%c0_397, %476, %c7_398, %c0_399] : memref<1x18x18x8xbf16, #tpu.memory_space<vmem>>, vector<1x1x10x8xbf16>
    %478 = vector.shape_cast %477 : vector<1x1x10x8xbf16> to vector<10x8xbf16>
    %cst_400 = arith.constant dense<0.000000e+00> : vector<10x128xf32>
    %479 = tpu.matmul %478, %18, %cst_400 {dimension_numbers = #tpu.dot_dimension_numbers<[1], [0], [0], [1], [0, 0, 1, 1], [], []>} : vector<10x8xbf16>, vector<8x128xbf16>, vector<10x128xf32> -> vector<10x128xf32>
    %480 = arith.addf %474, %479 : vector<10x128xf32>
    %c7_i32_401 = arith.constant 7 : i32
    %481 = arith.addi %c7_i32_401, %arg2 : i32
    %c0_402 = arith.constant 0 : index
    %482 = arith.index_cast %481 : i32 to index
    %c8_403 = arith.constant 8 : index
    %c0_404 = arith.constant 0 : index
    %483 = vector.load %arg3[%c0_402, %482, %c8_403, %c0_404] : memref<1x18x18x8xbf16, #tpu.memory_space<vmem>>, vector<1x1x10x8xbf16>
    %484 = vector.shape_cast %483 : vector<1x1x10x8xbf16> to vector<10x8xbf16>
    %cst_405 = arith.constant dense<0.000000e+00> : vector<10x128xf32>
    %485 = tpu.matmul %484, %20, %cst_405 {dimension_numbers = #tpu.dot_dimension_numbers<[1], [0], [0], [1], [0, 0, 1, 1], [], []>} : vector<10x8xbf16>, vector<8x128xbf16>, vector<10x128xf32> -> vector<10x128xf32>
    %486 = arith.addf %480, %485 : vector<10x128xf32>
    %c7_406 = arith.constant 7 : index
    %c0_407 = arith.constant 0 : index
    %c0_408 = arith.constant 0 : index
    %487 = vector.load %arg8[%c7_406, %c0_407, %c0_408] : memref<10x10x128xf32, #tpu.memory_space<vmem>>, vector<1x10x128xf32>
    %488 = vector.shape_cast %487 : vector<1x10x128xf32> to vector<10x128xf32>
    %489 = arith.addf %488, %486 : vector<10x128xf32>
    %c7_409 = arith.constant 7 : index
    %c0_410 = arith.constant 0 : index
    %c0_411 = arith.constant 0 : index
    %490 = vector.load %arg8[%c7_409, %c0_410, %c0_411] : memref<10x10x128xf32, #tpu.memory_space<vmem>>, vector<1x10x128xf32>
    %491 = vector.shape_cast %490 : vector<1x10x128xf32> to vector<10x128xf32>
    %492 = vector.shape_cast %489 : vector<10x128xf32> to vector<1x10x128xf32>
    tpu.vector_store %arg8[%c7_409, %c0_410, %c0_411], %492 {strides = array<i32>} : memref<10x10x128xf32, #tpu.memory_space<vmem>>, vector<1x10x128xf32>,
    %c8_i32 = arith.constant 8 : i32
    %493 = arith.addi %c8_i32, %arg2 : i32
    %c0_412 = arith.constant 0 : index
    %494 = arith.index_cast %493 : i32 to index
    %c0_413 = arith.constant 0 : index
    %c0_414 = arith.constant 0 : index
    %495 = vector.load %arg3[%c0_412, %494, %c0_413, %c0_414] : memref<1x18x18x8xbf16, #tpu.memory_space<vmem>>, vector<1x1x10x8xbf16>
    %496 = vector.shape_cast %495 : vector<1x1x10x8xbf16> to vector<10x8xbf16>
    %cst_415 = arith.constant dense<0.000000e+00> : vector<10x128xf32>
    %497 = tpu.matmul %496, %4, %cst_415 {dimension_numbers = #tpu.dot_dimension_numbers<[1], [0], [0], [1], [0, 0, 1, 1], [], []>} : vector<10x8xbf16>, vector<8x128xbf16>, vector<10x128xf32> -> vector<10x128xf32>
    %c8_i32_416 = arith.constant 8 : i32
    %498 = arith.addi %c8_i32_416, %arg2 : i32
    %c0_417 = arith.constant 0 : index
    %499 = arith.index_cast %498 : i32 to index
    %c1_418 = arith.constant 1 : index
    %c0_419 = arith.constant 0 : index
    %500 = vector.load %arg3[%c0_417, %499, %c1_418, %c0_419] : memref<1x18x18x8xbf16, #tpu.memory_space<vmem>>, vector<1x1x10x8xbf16>
    %501 = vector.shape_cast %500 : vector<1x1x10x8xbf16> to vector<10x8xbf16>
    %cst_420 = arith.constant dense<0.000000e+00> : vector<10x128xf32>
    %502 = tpu.matmul %501, %6, %cst_420 {dimension_numbers = #tpu.dot_dimension_numbers<[1], [0], [0], [1], [0, 0, 1, 1], [], []>} : vector<10x8xbf16>, vector<8x128xbf16>, vector<10x128xf32> -> vector<10x128xf32>
    %503 = arith.addf %497, %502 : vector<10x128xf32>
    %c8_i32_421 = arith.constant 8 : i32
    %504 = arith.addi %c8_i32_421, %arg2 : i32
    %c0_422 = arith.constant 0 : index
    %505 = arith.index_cast %504 : i32 to index
    %c2_423 = arith.constant 2 : index
    %c0_424 = arith.constant 0 : index
    %506 = vector.load %arg3[%c0_422, %505, %c2_423, %c0_424] : memref<1x18x18x8xbf16, #tpu.memory_space<vmem>>, vector<1x1x10x8xbf16>
    %507 = vector.shape_cast %506 : vector<1x1x10x8xbf16> to vector<10x8xbf16>
    %cst_425 = arith.constant dense<0.000000e+00> : vector<10x128xf32>
    %508 = tpu.matmul %507, %8, %cst_425 {dimension_numbers = #tpu.dot_dimension_numbers<[1], [0], [0], [1], [0, 0, 1, 1], [], []>} : vector<10x8xbf16>, vector<8x128xbf16>, vector<10x128xf32> -> vector<10x128xf32>
    %509 = arith.addf %503, %508 : vector<10x128xf32>
    %c8_i32_426 = arith.constant 8 : i32
    %510 = arith.addi %c8_i32_426, %arg2 : i32
    %c0_427 = arith.constant 0 : index
    %511 = arith.index_cast %510 : i32 to index
    %c3_428 = arith.constant 3 : index
    %c0_429 = arith.constant 0 : index
    %512 = vector.load %arg3[%c0_427, %511, %c3_428, %c0_429] : memref<1x18x18x8xbf16, #tpu.memory_space<vmem>>, vector<1x1x10x8xbf16>
    %513 = vector.shape_cast %512 : vector<1x1x10x8xbf16> to vector<10x8xbf16>
    %cst_430 = arith.constant dense<0.000000e+00> : vector<10x128xf32>
    %514 = tpu.matmul %513, %10, %cst_430 {dimension_numbers = #tpu.dot_dimension_numbers<[1], [0], [0], [1], [0, 0, 1, 1], [], []>} : vector<10x8xbf16>, vector<8x128xbf16>, vector<10x128xf32> -> vector<10x128xf32>
    %515 = arith.addf %509, %514 : vector<10x128xf32>
    %c8_i32_431 = arith.constant 8 : i32
    %516 = arith.addi %c8_i32_431, %arg2 : i32
    %c0_432 = arith.constant 0 : index
    %517 = arith.index_cast %516 : i32 to index
    %c4_433 = arith.constant 4 : index
    %c0_434 = arith.constant 0 : index
    %518 = vector.load %arg3[%c0_432, %517, %c4_433, %c0_434] : memref<1x18x18x8xbf16, #tpu.memory_space<vmem>>, vector<1x1x10x8xbf16>
    %519 = vector.shape_cast %518 : vector<1x1x10x8xbf16> to vector<10x8xbf16>
    %cst_435 = arith.constant dense<0.000000e+00> : vector<10x128xf32>
    %520 = tpu.matmul %519, %12, %cst_435 {dimension_numbers = #tpu.dot_dimension_numbers<[1], [0], [0], [1], [0, 0, 1, 1], [], []>} : vector<10x8xbf16>, vector<8x128xbf16>, vector<10x128xf32> -> vector<10x128xf32>
    %521 = arith.addf %515, %520 : vector<10x128xf32>
    %c8_i32_436 = arith.constant 8 : i32
    %522 = arith.addi %c8_i32_436, %arg2 : i32
    %c0_437 = arith.constant 0 : index
    %523 = arith.index_cast %522 : i32 to index
    %c5_438 = arith.constant 5 : index
    %c0_439 = arith.constant 0 : index
    %524 = vector.load %arg3[%c0_437, %523, %c5_438, %c0_439] : memref<1x18x18x8xbf16, #tpu.memory_space<vmem>>, vector<1x1x10x8xbf16>
    %525 = vector.shape_cast %524 : vector<1x1x10x8xbf16> to vector<10x8xbf16>
    %cst_440 = arith.constant dense<0.000000e+00> : vector<10x128xf32>
    %526 = tpu.matmul %525, %14, %cst_440 {dimension_numbers = #tpu.dot_dimension_numbers<[1], [0], [0], [1], [0, 0, 1, 1], [], []>} : vector<10x8xbf16>, vector<8x128xbf16>, vector<10x128xf32> -> vector<10x128xf32>
    %527 = arith.addf %521, %526 : vector<10x128xf32>
    %c8_i32_441 = arith.constant 8 : i32
    %528 = arith.addi %c8_i32_441, %arg2 : i32
    %c0_442 = arith.constant 0 : index
    %529 = arith.index_cast %528 : i32 to index
    %c6_443 = arith.constant 6 : index
    %c0_444 = arith.constant 0 : index
    %530 = vector.load %arg3[%c0_442, %529, %c6_443, %c0_444] : memref<1x18x18x8xbf16, #tpu.memory_space<vmem>>, vector<1x1x10x8xbf16>
    %531 = vector.shape_cast %530 : vector<1x1x10x8xbf16> to vector<10x8xbf16>
    %cst_445 = arith.constant dense<0.000000e+00> : vector<10x128xf32>
    %532 = tpu.matmul %531, %16, %cst_445 {dimension_numbers = #tpu.dot_dimension_numbers<[1], [0], [0], [1], [0, 0, 1, 1], [], []>} : vector<10x8xbf16>, vector<8x128xbf16>, vector<10x128xf32> -> vector<10x128xf32>
    %533 = arith.addf %527, %532 : vector<10x128xf32>
    %c8_i32_446 = arith.constant 8 : i32
    %534 = arith.addi %c8_i32_446, %arg2 : i32
    %c0_447 = arith.constant 0 : index
    %535 = arith.index_cast %534 : i32 to index
    %c7_448 = arith.constant 7 : index
    %c0_449 = arith.constant 0 : index
    %536 = vector.load %arg3[%c0_447, %535, %c7_448, %c0_449] : memref<1x18x18x8xbf16, #tpu.memory_space<vmem>>, vector<1x1x10x8xbf16>
    %537 = vector.shape_cast %536 : vector<1x1x10x8xbf16> to vector<10x8xbf16>
    %cst_450 = arith.constant dense<0.000000e+00> : vector<10x128xf32>
    %538 = tpu.matmul %537, %18, %cst_450 {dimension_numbers = #tpu.dot_dimension_numbers<[1], [0], [0], [1], [0, 0, 1, 1], [], []>} : vector<10x8xbf16>, vector<8x128xbf16>, vector<10x128xf32> -> vector<10x128xf32>
    %539 = arith.addf %533, %538 : vector<10x128xf32>
    %c8_i32_451 = arith.constant 8 : i32
    %540 = arith.addi %c8_i32_451, %arg2 : i32
    %c0_452 = arith.constant 0 : index
    %541 = arith.index_cast %540 : i32 to index
    %c8_453 = arith.constant 8 : index
    %c0_454 = arith.constant 0 : index
    %542 = vector.load %arg3[%c0_452, %541, %c8_453, %c0_454] : memref<1x18x18x8xbf16, #tpu.memory_space<vmem>>, vector<1x1x10x8xbf16>
    %543 = vector.shape_cast %542 : vector<1x1x10x8xbf16> to vector<10x8xbf16>
    %cst_455 = arith.constant dense<0.000000e+00> : vector<10x128xf32>
    %544 = tpu.matmul %543, %20, %cst_455 {dimension_numbers = #tpu.dot_dimension_numbers<[1], [0], [0], [1], [0, 0, 1, 1], [], []>} : vector<10x8xbf16>, vector<8x128xbf16>, vector<10x128xf32> -> vector<10x128xf32>
    %545 = arith.addf %539, %544 : vector<10x128xf32>
    %c8_456 = arith.constant 8 : index
    %c0_457 = arith.constant 0 : index
    %c0_458 = arith.constant 0 : index
    %546 = vector.load %arg8[%c8_456, %c0_457, %c0_458] : memref<10x10x128xf32, #tpu.memory_space<vmem>>, vector<1x10x128xf32>
    %547 = vector.shape_cast %546 : vector<1x10x128xf32> to vector<10x128xf32>
    %548 = arith.addf %547, %545 : vector<10x128xf32>
    %c8_459 = arith.constant 8 : index
    %c0_460 = arith.constant 0 : index
    %c0_461 = arith.constant 0 : index
    %549 = vector.load %arg8[%c8_459, %c0_460, %c0_461] : memref<10x10x128xf32, #tpu.memory_space<vmem>>, vector<1x10x128xf32>
    %550 = vector.shape_cast %549 : vector<1x10x128xf32> to vector<10x128xf32>
    %551 = vector.shape_cast %548 : vector<10x128xf32> to vector<1x10x128xf32>
    tpu.vector_store %arg8[%c8_459, %c0_460, %c0_461], %551 {strides = array<i32>} : memref<10x10x128xf32, #tpu.memory_space<vmem>>, vector<1x10x128xf32>,
    %c9_i32 = arith.constant 9 : i32
    %552 = arith.addi %c9_i32, %arg2 : i32
    %c0_462 = arith.constant 0 : index
    %553 = arith.index_cast %552 : i32 to index
    %c0_463 = arith.constant 0 : index
    %c0_464 = arith.constant 0 : index
    %554 = vector.load %arg3[%c0_462, %553, %c0_463, %c0_464] : memref<1x18x18x8xbf16, #tpu.memory_space<vmem>>, vector<1x1x10x8xbf16>
    %555 = vector.shape_cast %554 : vector<1x1x10x8xbf16> to vector<10x8xbf16>
    %cst_465 = arith.constant dense<0.000000e+00> : vector<10x128xf32>
    %556 = tpu.matmul %555, %4, %cst_465 {dimension_numbers = #tpu.dot_dimension_numbers<[1], [0], [0], [1], [0, 0, 1, 1], [], []>} : vector<10x8xbf16>, vector<8x128xbf16>, vector<10x128xf32> -> vector<10x128xf32>
    %c9_i32_466 = arith.constant 9 : i32
    %557 = arith.addi %c9_i32_466, %arg2 : i32
    %c0_467 = arith.constant 0 : index
    %558 = arith.index_cast %557 : i32 to index
    %c1_468 = arith.constant 1 : index
    %c0_469 = arith.constant 0 : index
    %559 = vector.load %arg3[%c0_467, %558, %c1_468, %c0_469] : memref<1x18x18x8xbf16, #tpu.memory_space<vmem>>, vector<1x1x10x8xbf16>
    %560 = vector.shape_cast %559 : vector<1x1x10x8xbf16> to vector<10x8xbf16>
    %cst_470 = arith.constant dense<0.000000e+00> : vector<10x128xf32>
    %561 = tpu.matmul %560, %6, %cst_470 {dimension_numbers = #tpu.dot_dimension_numbers<[1], [0], [0], [1], [0, 0, 1, 1], [], []>} : vector<10x8xbf16>, vector<8x128xbf16>, vector<10x128xf32> -> vector<10x128xf32>
    %562 = arith.addf %556, %561 : vector<10x128xf32>
    %c9_i32_471 = arith.constant 9 : i32
    %563 = arith.addi %c9_i32_471, %arg2 : i32
    %c0_472 = arith.constant 0 : index
    %564 = arith.index_cast %563 : i32 to index
    %c2_473 = arith.constant 2 : index
    %c0_474 = arith.constant 0 : index
    %565 = vector.load %arg3[%c0_472, %564, %c2_473, %c0_474] : memref<1x18x18x8xbf16, #tpu.memory_space<vmem>>, vector<1x1x10x8xbf16>
    %566 = vector.shape_cast %565 : vector<1x1x10x8xbf16> to vector<10x8xbf16>
    %cst_475 = arith.constant dense<0.000000e+00> : vector<10x128xf32>
    %567 = tpu.matmul %566, %8, %cst_475 {dimension_numbers = #tpu.dot_dimension_numbers<[1], [0], [0], [1], [0, 0, 1, 1], [], []>} : vector<10x8xbf16>, vector<8x128xbf16>, vector<10x128xf32> -> vector<10x128xf32>
    %568 = arith.addf %562, %567 : vector<10x128xf32>
    %c9_i32_476 = arith.constant 9 : i32
    %569 = arith.addi %c9_i32_476, %arg2 : i32
    %c0_477 = arith.constant 0 : index
    %570 = arith.index_cast %569 : i32 to index
    %c3_478 = arith.constant 3 : index
    %c0_479 = arith.constant 0 : index
    %571 = vector.load %arg3[%c0_477, %570, %c3_478, %c0_479] : memref<1x18x18x8xbf16, #tpu.memory_space<vmem>>, vector<1x1x10x8xbf16>
    %572 = vector.shape_cast %571 : vector<1x1x10x8xbf16> to vector<10x8xbf16>
    %cst_480 = arith.constant dense<0.000000e+00> : vector<10x128xf32>
    %573 = tpu.matmul %572, %10, %cst_480 {dimension_numbers = #tpu.dot_dimension_numbers<[1], [0], [0], [1], [0, 0, 1, 1], [], []>} : vector<10x8xbf16>, vector<8x128xbf16>, vector<10x128xf32> -> vector<10x128xf32>
    %574 = arith.addf %568, %573 : vector<10x128xf32>
    %c9_i32_481 = arith.constant 9 : i32
    %575 = arith.addi %c9_i32_481, %arg2 : i32
    %c0_482 = arith.constant 0 : index
    %576 = arith.index_cast %575 : i32 to index
    %c4_483 = arith.constant 4 : index
    %c0_484 = arith.constant 0 : index
    %577 = vector.load %arg3[%c0_482, %576, %c4_483, %c0_484] : memref<1x18x18x8xbf16, #tpu.memory_space<vmem>>, vector<1x1x10x8xbf16>
    %578 = vector.shape_cast %577 : vector<1x1x10x8xbf16> to vector<10x8xbf16>
    %cst_485 = arith.constant dense<0.000000e+00> : vector<10x128xf32>
    %579 = tpu.matmul %578, %12, %cst_485 {dimension_numbers = #tpu.dot_dimension_numbers<[1], [0], [0], [1], [0, 0, 1, 1], [], []>} : vector<10x8xbf16>, vector<8x128xbf16>, vector<10x128xf32> -> vector<10x128xf32>
    %580 = arith.addf %574, %579 : vector<10x128xf32>
    %c9_i32_486 = arith.constant 9 : i32
    %581 = arith.addi %c9_i32_486, %arg2 : i32
    %c0_487 = arith.constant 0 : index
    %582 = arith.index_cast %581 : i32 to index
    %c5_488 = arith.constant 5 : index
    %c0_489 = arith.constant 0 : index
    %583 = vector.load %arg3[%c0_487, %582, %c5_488, %c0_489] : memref<1x18x18x8xbf16, #tpu.memory_space<vmem>>, vector<1x1x10x8xbf16>
    %584 = vector.shape_cast %583 : vector<1x1x10x8xbf16> to vector<10x8xbf16>
    %cst_490 = arith.constant dense<0.000000e+00> : vector<10x128xf32>
    %585 = tpu.matmul %584, %14, %cst_490 {dimension_numbers = #tpu.dot_dimension_numbers<[1], [0], [0], [1], [0, 0, 1, 1], [], []>} : vector<10x8xbf16>, vector<8x128xbf16>, vector<10x128xf32> -> vector<10x128xf32>
    %586 = arith.addf %580, %585 : vector<10x128xf32>
    %c9_i32_491 = arith.constant 9 : i32
    %587 = arith.addi %c9_i32_491, %arg2 : i32
    %c0_492 = arith.constant 0 : index
    %588 = arith.index_cast %587 : i32 to index
    %c6_493 = arith.constant 6 : index
    %c0_494 = arith.constant 0 : index
    %589 = vector.load %arg3[%c0_492, %588, %c6_493, %c0_494] : memref<1x18x18x8xbf16, #tpu.memory_space<vmem>>, vector<1x1x10x8xbf16>
    %590 = vector.shape_cast %589 : vector<1x1x10x8xbf16> to vector<10x8xbf16>
    %cst_495 = arith.constant dense<0.000000e+00> : vector<10x128xf32>
    %591 = tpu.matmul %590, %16, %cst_495 {dimension_numbers = #tpu.dot_dimension_numbers<[1], [0], [0], [1], [0, 0, 1, 1], [], []>} : vector<10x8xbf16>, vector<8x128xbf16>, vector<10x128xf32> -> vector<10x128xf32>
    %592 = arith.addf %586, %591 : vector<10x128xf32>
    %c9_i32_496 = arith.constant 9 : i32
    %593 = arith.addi %c9_i32_496, %arg2 : i32
    %c0_497 = arith.constant 0 : index
    %594 = arith.index_cast %593 : i32 to index
    %c7_498 = arith.constant 7 : index
    %c0_499 = arith.constant 0 : index
    %595 = vector.load %arg3[%c0_497, %594, %c7_498, %c0_499] : memref<1x18x18x8xbf16, #tpu.memory_space<vmem>>, vector<1x1x10x8xbf16>
    %596 = vector.shape_cast %595 : vector<1x1x10x8xbf16> to vector<10x8xbf16>
    %cst_500 = arith.constant dense<0.000000e+00> : vector<10x128xf32>
    %597 = tpu.matmul %596, %18, %cst_500 {dimension_numbers = #tpu.dot_dimension_numbers<[1], [0], [0], [1], [0, 0, 1, 1], [], []>} : vector<10x8xbf16>, vector<8x128xbf16>, vector<10x128xf32> -> vector<10x128xf32>
    %598 = arith.addf %592, %597 : vector<10x128xf32>
    %c9_i32_501 = arith.constant 9 : i32
    %599 = arith.addi %c9_i32_501, %arg2 : i32
    %c0_502 = arith.constant 0 : index
    %600 = arith.index_cast %599 : i32 to index
    %c8_503 = arith.constant 8 : index
    %c0_504 = arith.constant 0 : index
    %601 = vector.load %arg3[%c0_502, %600, %c8_503, %c0_504] : memref<1x18x18x8xbf16, #tpu.memory_space<vmem>>, vector<1x1x10x8xbf16>
    %602 = vector.shape_cast %601 : vector<1x1x10x8xbf16> to vector<10x8xbf16>
    %cst_505 = arith.constant dense<0.000000e+00> : vector<10x128xf32>
    %603 = tpu.matmul %602, %20, %cst_505 {dimension_numbers = #tpu.dot_dimension_numbers<[1], [0], [0], [1], [0, 0, 1, 1], [], []>} : vector<10x8xbf16>, vector<8x128xbf16>, vector<10x128xf32> -> vector<10x128xf32>
    %604 = arith.addf %598, %603 : vector<10x128xf32>
    %c9 = arith.constant 9 : index
    %c0_506 = arith.constant 0 : index
    %c0_507 = arith.constant 0 : index
    %605 = vector.load %arg8[%c9, %c0_506, %c0_507] : memref<10x10x128xf32, #tpu.memory_space<vmem>>, vector<1x10x128xf32>
    %606 = vector.shape_cast %605 : vector<1x10x128xf32> to vector<10x128xf32>
    %607 = arith.addf %606, %604 : vector<10x128xf32>
    %c9_508 = arith.constant 9 : index
    %c0_509 = arith.constant 0 : index
    %c0_510 = arith.constant 0 : index
    %608 = vector.load %arg8[%c9_508, %c0_509, %c0_510] : memref<10x10x128xf32, #tpu.memory_space<vmem>>, vector<1x10x128xf32>
    %609 = vector.shape_cast %608 : vector<1x10x128xf32> to vector<10x128xf32>
    %610 = vector.shape_cast %607 : vector<10x128xf32> to vector<1x10x128xf32>
    tpu.vector_store %arg8[%c9_508, %c0_509, %c0_510], %610 {strides = array<i32>} : memref<10x10x128xf32, #tpu.memory_space<vmem>>, vector<1x10x128xf32>,
    %c8_i32_511 = arith.constant 8 : i32
    %611 = arith.cmpi eq, %arg2, %c8_i32_511 : i32
    %612 = arith.extui %611 : i1 to i32
    %c0_i32_512 = arith.constant 0 : i32
    %613 = arith.cmpi ne, %612, %c0_i32_512 : i32
    scf.if %613 {
      %c0_513 = arith.constant 0 : index
      %c0_514 = arith.constant 0 : index
      %c0_515 = arith.constant 0 : index
      %614 = vector.load %arg8[%c0_513, %c0_514, %c0_515] : memref<10x10x128xf32, #tpu.memory_space<vmem>>, vector<10x10x128xf32>
      %c0_516 = arith.constant 0 : index
      %c0_517 = arith.constant 0 : index
      %c0_518 = arith.constant 0 : index
      %c0_519 = arith.constant 0 : index
      %615 = vector.load %arg5[%c0_516, %c0_517, %c0_518, %c0_519] : memref<1x10x10x128xf32, #tpu.memory_space<vmem>>, vector<1x10x10x128xf32>
      %616 = vector.shape_cast %615 : vector<1x10x10x128xf32> to vector<10x10x128xf32>
      %617 = vector.shape_cast %614 : vector<10x10x128xf32> to vector<1x10x10x128xf32>
      tpu.vector_store %arg5[%c0_516, %c0_517, %c0_518, %c0_519], %617 {strides = array<i32>} : memref<1x10x10x128xf32, #tpu.memory_space<vmem>>, vector<1x10x10x128xf32>,
      %cst_520 = arith.constant dense<0.000000e+00> : vector<10x128xf32>
      %618 = vector.multi_reduction <add>, %614, %cst_520 [0] : vector<10x10x128xf32> to vector<10x128xf32>
      %cst_521 = arith.constant dense<0.000000e+00> : vector<128xf32>
      %619 = vector.multi_reduction <add>, %618, %cst_521 [0] : vector<10x128xf32> to vector<128xf32>
      %620 = vector.shape_cast %619 : vector<128xf32> to vector<1x128xf32>
      %c0_522 = arith.constant 0 : index
      %c0_523 = arith.constant 0 : index
      %c0_524 = arith.constant 0 : index
      %621 = vector.load %arg6[%c0_522, %c0_523, %c0_524] : memref<1x1x128xf32, #tpu.memory_space<vmem>>, vector<1x1x128xf32>
      %622 = vector.shape_cast %621 : vector<1x1x128xf32> to vector<1x128xf32>
      %623 = vector.shape_cast %620 : vector<1x128xf32> to vector<1x1x128xf32>
      tpu.vector_store %arg6[%c0_522, %c0_523, %c0_524], %623 {strides = array<i32>} : memref<1x1x128xf32, #tpu.memory_space<vmem>>, vector<1x1x128xf32>,
      %624 = arith.mulf %614, %614 : vector<10x10x128xf32>
      %cst_525 = arith.constant dense<0.000000e+00> : vector<10x128xf32>
      %625 = vector.multi_reduction <add>, %624, %cst_525 [0] : vector<10x10x128xf32> to vector<10x128xf32>
      %cst_526 = arith.constant dense<0.000000e+00> : vector<128xf32>
      %626 = vector.multi_reduction <add>, %625, %cst_526 [0] : vector<10x128xf32> to vector<128xf32>
      %627 = vector.shape_cast %626 : vector<128xf32> to vector<1x128xf32>
      %c0_527 = arith.constant 0 : index
      %c0_528 = arith.constant 0 : index
      %c0_529 = arith.constant 0 : index
      %628 = vector.load %arg7[%c0_527, %c0_528, %c0_529] : memref<1x1x128xf32, #tpu.memory_space<vmem>>, vector<1x1x128xf32>
      %629 = vector.shape_cast %628 : vector<1x1x128xf32> to vector<1x128xf32>
      %630 = vector.shape_cast %627 : vector<1x128xf32> to vector<1x1x128xf32>
      tpu.vector_store %arg7[%c0_527, %c0_528, %c0_529], %630 {strides = array<i32>} : memref<1x1x128xf32, #tpu.memory_space<vmem>>, vector<1x1x128xf32>,
    } else {
    }
    return
  }
  func.func @transform_0(%arg0: i32, %arg1: i32, %arg2: i32) -> (i32, i32, i32, i32) {
    %c0_i32 = arith.constant 0 : i32
    %c0_i32_0 = arith.constant 0 : i32
    %c0_i32_1 = arith.constant 0 : i32
    %c0_i32_2 = arith.constant 0 : i32
    return %arg0, %c0_i32, %c0_i32_0, %c0_i32_1 : i32, i32, i32, i32
  }
  func.func @transform_1(%arg0: i32, %arg1: i32, %arg2: i32) -> (i32, i32, i32) {
    %c0_i32 = arith.constant 0 : i32
    %c0_i32_0 = arith.constant 0 : i32
    return %arg2, %c0_i32, %arg1 : i32, i32, i32
  }
  func.func @transform_2(%arg0: i32, %arg1: i32, %arg2: i32) -> (i32, i32, i32, i32) {
    %c0_i32 = arith.constant 0 : i32
    %c0_i32_0 = arith.constant 0 : i32
    %c0_i32_1 = arith.constant 0 : i32
    return %arg0, %c0_i32, %c0_i32_0, %arg1 : i32, i32, i32, i32
  }
  func.func @transform_3(%arg0: i32, %arg1: i32, %arg2: i32) -> (i32, i32, i32) {
    %c0_i32 = arith.constant 0 : i32
    %c0_i32_0 = arith.constant 0 : i32
    return %arg0, %c0_i32, %arg1 : i32, i32, i32
  }
  func.func @transform_4(%arg0: i32, %arg1: i32, %arg2: i32) -> (i32, i32, i32) {
    %c0_i32 = arith.constant 0 : i32
    %c0_i32_0 = arith.constant 0 : i32
    return %arg0, %c0_i32, %arg1 : i32, i32, i32
  }
}

module attributes {stable_mosaic.version = 11 : i64} {
  func.func @_conv_stats_kernel(%arg0: i32, %arg1: i32, %arg2: i32, %arg3: memref<1x12x12x128xbf16, #tpu.memory_space<vmem>>, %arg4: memref<1x1152x128xbf16, #tpu.memory_space<vmem>>, %arg5: memref<1x4x4x128xf32, #tpu.memory_space<vmem>>, %arg6: memref<1x1x128xf32, #tpu.memory_space<vmem>>, %arg7: memref<1x1x128xf32, #tpu.memory_space<vmem>>, %arg8: memref<4x4x128xf32, #tpu.memory_space<vmem>>) attributes {dimension_semantics = [#tpu.dimension_semantics<parallel>, #tpu.dimension_semantics<parallel>, #tpu.dimension_semantics<arbitrary>], iteration_bounds = array<i64: 2, 1, 9>, scalar_prefetch = 0 : i64, scratch_operands = 1 : i64, tpu.core_type = #tpu.core_type<tc>, window_params = [{transform_indices = @transform_0, window_bounds = array<i64: 1, 12, 12, 128>}, {transform_indices = @transform_1, window_bounds = array<i64: 1, 1152, 128>}, {transform_indices = @transform_2, window_bounds = array<i64: 1, 4, 4, 128>}, {transform_indices = @transform_3, window_bounds = array<i64: 1, 1, 128>}, {transform_indices = @transform_4, window_bounds = array<i64: 1, 1, 128>}]} {
    %c0_i32 = arith.constant 0 : i32
    %0 = arith.cmpi eq, %arg2, %c0_i32 : i32
    %1 = arith.extui %0 : i1 to i32
    %c0_i32_0 = arith.constant 0 : i32
    %2 = arith.cmpi ne, %1, %c0_i32_0 : i32
    scf.if %2 {
      %cst_212 = arith.constant 0.000000e+00 : f32
      %260 = vector.broadcast %cst_212 : f32 to vector<4x4x128xf32>
      %c0_213 = arith.constant 0 : index
      %c0_214 = arith.constant 0 : index
      %c0_215 = arith.constant 0 : index
      %261 = vector.load %arg8[%c0_213, %c0_214, %c0_215] : memref<4x4x128xf32, #tpu.memory_space<vmem>>, vector<4x4x128xf32>
      tpu.vector_store %arg8[%c0_213, %c0_214, %c0_215], %260 {strides = array<i32>} : memref<4x4x128xf32, #tpu.memory_space<vmem>>, vector<4x4x128xf32>,
    } else {
    }
    %c0 = arith.constant 0 : index
    %c0_1 = arith.constant 0 : index
    %c0_2 = arith.constant 0 : index
    %3 = vector.load %arg4[%c0, %c0_1, %c0_2] : memref<1x1152x128xbf16, #tpu.memory_space<vmem>>, vector<1x128x128xbf16>
    %4 = vector.shape_cast %3 : vector<1x128x128xbf16> to vector<128x128xbf16>
    %c0_3 = arith.constant 0 : index
    %c128 = arith.constant 128 : index
    %c0_4 = arith.constant 0 : index
    %5 = vector.load %arg4[%c0_3, %c128, %c0_4] : memref<1x1152x128xbf16, #tpu.memory_space<vmem>>, vector<1x128x128xbf16>
    %6 = vector.shape_cast %5 : vector<1x128x128xbf16> to vector<128x128xbf16>
    %c0_5 = arith.constant 0 : index
    %c256 = arith.constant 256 : index
    %c0_6 = arith.constant 0 : index
    %7 = vector.load %arg4[%c0_5, %c256, %c0_6] : memref<1x1152x128xbf16, #tpu.memory_space<vmem>>, vector<1x128x128xbf16>
    %8 = vector.shape_cast %7 : vector<1x128x128xbf16> to vector<128x128xbf16>
    %c0_7 = arith.constant 0 : index
    %c384 = arith.constant 384 : index
    %c0_8 = arith.constant 0 : index
    %9 = vector.load %arg4[%c0_7, %c384, %c0_8] : memref<1x1152x128xbf16, #tpu.memory_space<vmem>>, vector<1x128x128xbf16>
    %10 = vector.shape_cast %9 : vector<1x128x128xbf16> to vector<128x128xbf16>
    %c0_9 = arith.constant 0 : index
    %c512 = arith.constant 512 : index
    %c0_10 = arith.constant 0 : index
    %11 = vector.load %arg4[%c0_9, %c512, %c0_10] : memref<1x1152x128xbf16, #tpu.memory_space<vmem>>, vector<1x128x128xbf16>
    %12 = vector.shape_cast %11 : vector<1x128x128xbf16> to vector<128x128xbf16>
    %c0_11 = arith.constant 0 : index
    %c640 = arith.constant 640 : index
    %c0_12 = arith.constant 0 : index
    %13 = vector.load %arg4[%c0_11, %c640, %c0_12] : memref<1x1152x128xbf16, #tpu.memory_space<vmem>>, vector<1x128x128xbf16>
    %14 = vector.shape_cast %13 : vector<1x128x128xbf16> to vector<128x128xbf16>
    %c0_13 = arith.constant 0 : index
    %c768 = arith.constant 768 : index
    %c0_14 = arith.constant 0 : index
    %15 = vector.load %arg4[%c0_13, %c768, %c0_14] : memref<1x1152x128xbf16, #tpu.memory_space<vmem>>, vector<1x128x128xbf16>
    %16 = vector.shape_cast %15 : vector<1x128x128xbf16> to vector<128x128xbf16>
    %c0_15 = arith.constant 0 : index
    %c896 = arith.constant 896 : index
    %c0_16 = arith.constant 0 : index
    %17 = vector.load %arg4[%c0_15, %c896, %c0_16] : memref<1x1152x128xbf16, #tpu.memory_space<vmem>>, vector<1x128x128xbf16>
    %18 = vector.shape_cast %17 : vector<1x128x128xbf16> to vector<128x128xbf16>
    %c0_17 = arith.constant 0 : index
    %c1024 = arith.constant 1024 : index
    %c0_18 = arith.constant 0 : index
    %19 = vector.load %arg4[%c0_17, %c1024, %c0_18] : memref<1x1152x128xbf16, #tpu.memory_space<vmem>>, vector<1x128x128xbf16>
    %20 = vector.shape_cast %19 : vector<1x128x128xbf16> to vector<128x128xbf16>
    %c0_i32_19 = arith.constant 0 : i32
    %21 = arith.addi %c0_i32_19, %arg2 : i32
    %c0_20 = arith.constant 0 : index
    %22 = arith.index_cast %21 : i32 to index
    %c0_21 = arith.constant 0 : index
    %c0_22 = arith.constant 0 : index
    %23 = vector.load %arg3[%c0_20, %22, %c0_21, %c0_22] : memref<1x12x12x128xbf16, #tpu.memory_space<vmem>>, vector<1x1x4x128xbf16>
    %24 = vector.shape_cast %23 : vector<1x1x4x128xbf16> to vector<4x128xbf16>
    %cst = arith.constant dense<0.000000e+00> : vector<4x128xf32>
    %25 = tpu.matmul %24, %4, %cst {dimension_numbers = #tpu.dot_dimension_numbers<[1], [0], [0], [1], [0, 0, 1, 1], [], []>} : vector<4x128xbf16>, vector<128x128xbf16>, vector<4x128xf32> -> vector<4x128xf32>
    %c0_i32_23 = arith.constant 0 : i32
    %26 = arith.addi %c0_i32_23, %arg2 : i32
    %c0_24 = arith.constant 0 : index
    %27 = arith.index_cast %26 : i32 to index
    %c1 = arith.constant 1 : index
    %c0_25 = arith.constant 0 : index
    %28 = vector.load %arg3[%c0_24, %27, %c1, %c0_25] : memref<1x12x12x128xbf16, #tpu.memory_space<vmem>>, vector<1x1x4x128xbf16>
    %29 = vector.shape_cast %28 : vector<1x1x4x128xbf16> to vector<4x128xbf16>
    %cst_26 = arith.constant dense<0.000000e+00> : vector<4x128xf32>
    %30 = tpu.matmul %29, %6, %cst_26 {dimension_numbers = #tpu.dot_dimension_numbers<[1], [0], [0], [1], [0, 0, 1, 1], [], []>} : vector<4x128xbf16>, vector<128x128xbf16>, vector<4x128xf32> -> vector<4x128xf32>
    %31 = arith.addf %25, %30 : vector<4x128xf32>
    %c0_i32_27 = arith.constant 0 : i32
    %32 = arith.addi %c0_i32_27, %arg2 : i32
    %c0_28 = arith.constant 0 : index
    %33 = arith.index_cast %32 : i32 to index
    %c2 = arith.constant 2 : index
    %c0_29 = arith.constant 0 : index
    %34 = vector.load %arg3[%c0_28, %33, %c2, %c0_29] : memref<1x12x12x128xbf16, #tpu.memory_space<vmem>>, vector<1x1x4x128xbf16>
    %35 = vector.shape_cast %34 : vector<1x1x4x128xbf16> to vector<4x128xbf16>
    %cst_30 = arith.constant dense<0.000000e+00> : vector<4x128xf32>
    %36 = tpu.matmul %35, %8, %cst_30 {dimension_numbers = #tpu.dot_dimension_numbers<[1], [0], [0], [1], [0, 0, 1, 1], [], []>} : vector<4x128xbf16>, vector<128x128xbf16>, vector<4x128xf32> -> vector<4x128xf32>
    %37 = arith.addf %31, %36 : vector<4x128xf32>
    %c0_i32_31 = arith.constant 0 : i32
    %38 = arith.addi %c0_i32_31, %arg2 : i32
    %c0_32 = arith.constant 0 : index
    %39 = arith.index_cast %38 : i32 to index
    %c3 = arith.constant 3 : index
    %c0_33 = arith.constant 0 : index
    %40 = vector.load %arg3[%c0_32, %39, %c3, %c0_33] : memref<1x12x12x128xbf16, #tpu.memory_space<vmem>>, vector<1x1x4x128xbf16>
    %41 = vector.shape_cast %40 : vector<1x1x4x128xbf16> to vector<4x128xbf16>
    %cst_34 = arith.constant dense<0.000000e+00> : vector<4x128xf32>
    %42 = tpu.matmul %41, %10, %cst_34 {dimension_numbers = #tpu.dot_dimension_numbers<[1], [0], [0], [1], [0, 0, 1, 1], [], []>} : vector<4x128xbf16>, vector<128x128xbf16>, vector<4x128xf32> -> vector<4x128xf32>
    %43 = arith.addf %37, %42 : vector<4x128xf32>
    %c0_i32_35 = arith.constant 0 : i32
    %44 = arith.addi %c0_i32_35, %arg2 : i32
    %c0_36 = arith.constant 0 : index
    %45 = arith.index_cast %44 : i32 to index
    %c4 = arith.constant 4 : index
    %c0_37 = arith.constant 0 : index
    %46 = vector.load %arg3[%c0_36, %45, %c4, %c0_37] : memref<1x12x12x128xbf16, #tpu.memory_space<vmem>>, vector<1x1x4x128xbf16>
    %47 = vector.shape_cast %46 : vector<1x1x4x128xbf16> to vector<4x128xbf16>
    %cst_38 = arith.constant dense<0.000000e+00> : vector<4x128xf32>
    %48 = tpu.matmul %47, %12, %cst_38 {dimension_numbers = #tpu.dot_dimension_numbers<[1], [0], [0], [1], [0, 0, 1, 1], [], []>} : vector<4x128xbf16>, vector<128x128xbf16>, vector<4x128xf32> -> vector<4x128xf32>
    %49 = arith.addf %43, %48 : vector<4x128xf32>
    %c0_i32_39 = arith.constant 0 : i32
    %50 = arith.addi %c0_i32_39, %arg2 : i32
    %c0_40 = arith.constant 0 : index
    %51 = arith.index_cast %50 : i32 to index
    %c5 = arith.constant 5 : index
    %c0_41 = arith.constant 0 : index
    %52 = vector.load %arg3[%c0_40, %51, %c5, %c0_41] : memref<1x12x12x128xbf16, #tpu.memory_space<vmem>>, vector<1x1x4x128xbf16>
    %53 = vector.shape_cast %52 : vector<1x1x4x128xbf16> to vector<4x128xbf16>
    %cst_42 = arith.constant dense<0.000000e+00> : vector<4x128xf32>
    %54 = tpu.matmul %53, %14, %cst_42 {dimension_numbers = #tpu.dot_dimension_numbers<[1], [0], [0], [1], [0, 0, 1, 1], [], []>} : vector<4x128xbf16>, vector<128x128xbf16>, vector<4x128xf32> -> vector<4x128xf32>
    %55 = arith.addf %49, %54 : vector<4x128xf32>
    %c0_i32_43 = arith.constant 0 : i32
    %56 = arith.addi %c0_i32_43, %arg2 : i32
    %c0_44 = arith.constant 0 : index
    %57 = arith.index_cast %56 : i32 to index
    %c6 = arith.constant 6 : index
    %c0_45 = arith.constant 0 : index
    %58 = vector.load %arg3[%c0_44, %57, %c6, %c0_45] : memref<1x12x12x128xbf16, #tpu.memory_space<vmem>>, vector<1x1x4x128xbf16>
    %59 = vector.shape_cast %58 : vector<1x1x4x128xbf16> to vector<4x128xbf16>
    %cst_46 = arith.constant dense<0.000000e+00> : vector<4x128xf32>
    %60 = tpu.matmul %59, %16, %cst_46 {dimension_numbers = #tpu.dot_dimension_numbers<[1], [0], [0], [1], [0, 0, 1, 1], [], []>} : vector<4x128xbf16>, vector<128x128xbf16>, vector<4x128xf32> -> vector<4x128xf32>
    %61 = arith.addf %55, %60 : vector<4x128xf32>
    %c0_i32_47 = arith.constant 0 : i32
    %62 = arith.addi %c0_i32_47, %arg2 : i32
    %c0_48 = arith.constant 0 : index
    %63 = arith.index_cast %62 : i32 to index
    %c7 = arith.constant 7 : index
    %c0_49 = arith.constant 0 : index
    %64 = vector.load %arg3[%c0_48, %63, %c7, %c0_49] : memref<1x12x12x128xbf16, #tpu.memory_space<vmem>>, vector<1x1x4x128xbf16>
    %65 = vector.shape_cast %64 : vector<1x1x4x128xbf16> to vector<4x128xbf16>
    %cst_50 = arith.constant dense<0.000000e+00> : vector<4x128xf32>
    %66 = tpu.matmul %65, %18, %cst_50 {dimension_numbers = #tpu.dot_dimension_numbers<[1], [0], [0], [1], [0, 0, 1, 1], [], []>} : vector<4x128xbf16>, vector<128x128xbf16>, vector<4x128xf32> -> vector<4x128xf32>
    %67 = arith.addf %61, %66 : vector<4x128xf32>
    %c0_i32_51 = arith.constant 0 : i32
    %68 = arith.addi %c0_i32_51, %arg2 : i32
    %c0_52 = arith.constant 0 : index
    %69 = arith.index_cast %68 : i32 to index
    %c8 = arith.constant 8 : index
    %c0_53 = arith.constant 0 : index
    %70 = vector.load %arg3[%c0_52, %69, %c8, %c0_53] : memref<1x12x12x128xbf16, #tpu.memory_space<vmem>>, vector<1x1x4x128xbf16>
    %71 = vector.shape_cast %70 : vector<1x1x4x128xbf16> to vector<4x128xbf16>
    %cst_54 = arith.constant dense<0.000000e+00> : vector<4x128xf32>
    %72 = tpu.matmul %71, %20, %cst_54 {dimension_numbers = #tpu.dot_dimension_numbers<[1], [0], [0], [1], [0, 0, 1, 1], [], []>} : vector<4x128xbf16>, vector<128x128xbf16>, vector<4x128xf32> -> vector<4x128xf32>
    %73 = arith.addf %67, %72 : vector<4x128xf32>
    %c0_55 = arith.constant 0 : index
    %c0_56 = arith.constant 0 : index
    %c0_57 = arith.constant 0 : index
    %74 = vector.load %arg8[%c0_55, %c0_56, %c0_57] : memref<4x4x128xf32, #tpu.memory_space<vmem>>, vector<1x4x128xf32>
    %75 = vector.shape_cast %74 : vector<1x4x128xf32> to vector<4x128xf32>
    %76 = arith.addf %75, %73 : vector<4x128xf32>
    %c0_58 = arith.constant 0 : index
    %c0_59 = arith.constant 0 : index
    %c0_60 = arith.constant 0 : index
    %77 = vector.load %arg8[%c0_58, %c0_59, %c0_60] : memref<4x4x128xf32, #tpu.memory_space<vmem>>, vector<1x4x128xf32>
    %78 = vector.shape_cast %77 : vector<1x4x128xf32> to vector<4x128xf32>
    %79 = vector.shape_cast %76 : vector<4x128xf32> to vector<1x4x128xf32>
    tpu.vector_store %arg8[%c0_58, %c0_59, %c0_60], %79 {strides = array<i32>} : memref<4x4x128xf32, #tpu.memory_space<vmem>>, vector<1x4x128xf32>,
    %c1_i32 = arith.constant 1 : i32
    %80 = arith.addi %c1_i32, %arg2 : i32
    %c0_61 = arith.constant 0 : index
    %81 = arith.index_cast %80 : i32 to index
    %c0_62 = arith.constant 0 : index
    %c0_63 = arith.constant 0 : index
    %82 = vector.load %arg3[%c0_61, %81, %c0_62, %c0_63] : memref<1x12x12x128xbf16, #tpu.memory_space<vmem>>, vector<1x1x4x128xbf16>
    %83 = vector.shape_cast %82 : vector<1x1x4x128xbf16> to vector<4x128xbf16>
    %cst_64 = arith.constant dense<0.000000e+00> : vector<4x128xf32>
    %84 = tpu.matmul %83, %4, %cst_64 {dimension_numbers = #tpu.dot_dimension_numbers<[1], [0], [0], [1], [0, 0, 1, 1], [], []>} : vector<4x128xbf16>, vector<128x128xbf16>, vector<4x128xf32> -> vector<4x128xf32>
    %c1_i32_65 = arith.constant 1 : i32
    %85 = arith.addi %c1_i32_65, %arg2 : i32
    %c0_66 = arith.constant 0 : index
    %86 = arith.index_cast %85 : i32 to index
    %c1_67 = arith.constant 1 : index
    %c0_68 = arith.constant 0 : index
    %87 = vector.load %arg3[%c0_66, %86, %c1_67, %c0_68] : memref<1x12x12x128xbf16, #tpu.memory_space<vmem>>, vector<1x1x4x128xbf16>
    %88 = vector.shape_cast %87 : vector<1x1x4x128xbf16> to vector<4x128xbf16>
    %cst_69 = arith.constant dense<0.000000e+00> : vector<4x128xf32>
    %89 = tpu.matmul %88, %6, %cst_69 {dimension_numbers = #tpu.dot_dimension_numbers<[1], [0], [0], [1], [0, 0, 1, 1], [], []>} : vector<4x128xbf16>, vector<128x128xbf16>, vector<4x128xf32> -> vector<4x128xf32>
    %90 = arith.addf %84, %89 : vector<4x128xf32>
    %c1_i32_70 = arith.constant 1 : i32
    %91 = arith.addi %c1_i32_70, %arg2 : i32
    %c0_71 = arith.constant 0 : index
    %92 = arith.index_cast %91 : i32 to index
    %c2_72 = arith.constant 2 : index
    %c0_73 = arith.constant 0 : index
    %93 = vector.load %arg3[%c0_71, %92, %c2_72, %c0_73] : memref<1x12x12x128xbf16, #tpu.memory_space<vmem>>, vector<1x1x4x128xbf16>
    %94 = vector.shape_cast %93 : vector<1x1x4x128xbf16> to vector<4x128xbf16>
    %cst_74 = arith.constant dense<0.000000e+00> : vector<4x128xf32>
    %95 = tpu.matmul %94, %8, %cst_74 {dimension_numbers = #tpu.dot_dimension_numbers<[1], [0], [0], [1], [0, 0, 1, 1], [], []>} : vector<4x128xbf16>, vector<128x128xbf16>, vector<4x128xf32> -> vector<4x128xf32>
    %96 = arith.addf %90, %95 : vector<4x128xf32>
    %c1_i32_75 = arith.constant 1 : i32
    %97 = arith.addi %c1_i32_75, %arg2 : i32
    %c0_76 = arith.constant 0 : index
    %98 = arith.index_cast %97 : i32 to index
    %c3_77 = arith.constant 3 : index
    %c0_78 = arith.constant 0 : index
    %99 = vector.load %arg3[%c0_76, %98, %c3_77, %c0_78] : memref<1x12x12x128xbf16, #tpu.memory_space<vmem>>, vector<1x1x4x128xbf16>
    %100 = vector.shape_cast %99 : vector<1x1x4x128xbf16> to vector<4x128xbf16>
    %cst_79 = arith.constant dense<0.000000e+00> : vector<4x128xf32>
    %101 = tpu.matmul %100, %10, %cst_79 {dimension_numbers = #tpu.dot_dimension_numbers<[1], [0], [0], [1], [0, 0, 1, 1], [], []>} : vector<4x128xbf16>, vector<128x128xbf16>, vector<4x128xf32> -> vector<4x128xf32>
    %102 = arith.addf %96, %101 : vector<4x128xf32>
    %c1_i32_80 = arith.constant 1 : i32
    %103 = arith.addi %c1_i32_80, %arg2 : i32
    %c0_81 = arith.constant 0 : index
    %104 = arith.index_cast %103 : i32 to index
    %c4_82 = arith.constant 4 : index
    %c0_83 = arith.constant 0 : index
    %105 = vector.load %arg3[%c0_81, %104, %c4_82, %c0_83] : memref<1x12x12x128xbf16, #tpu.memory_space<vmem>>, vector<1x1x4x128xbf16>
    %106 = vector.shape_cast %105 : vector<1x1x4x128xbf16> to vector<4x128xbf16>
    %cst_84 = arith.constant dense<0.000000e+00> : vector<4x128xf32>
    %107 = tpu.matmul %106, %12, %cst_84 {dimension_numbers = #tpu.dot_dimension_numbers<[1], [0], [0], [1], [0, 0, 1, 1], [], []>} : vector<4x128xbf16>, vector<128x128xbf16>, vector<4x128xf32> -> vector<4x128xf32>
    %108 = arith.addf %102, %107 : vector<4x128xf32>
    %c1_i32_85 = arith.constant 1 : i32
    %109 = arith.addi %c1_i32_85, %arg2 : i32
    %c0_86 = arith.constant 0 : index
    %110 = arith.index_cast %109 : i32 to index
    %c5_87 = arith.constant 5 : index
    %c0_88 = arith.constant 0 : index
    %111 = vector.load %arg3[%c0_86, %110, %c5_87, %c0_88] : memref<1x12x12x128xbf16, #tpu.memory_space<vmem>>, vector<1x1x4x128xbf16>
    %112 = vector.shape_cast %111 : vector<1x1x4x128xbf16> to vector<4x128xbf16>
    %cst_89 = arith.constant dense<0.000000e+00> : vector<4x128xf32>
    %113 = tpu.matmul %112, %14, %cst_89 {dimension_numbers = #tpu.dot_dimension_numbers<[1], [0], [0], [1], [0, 0, 1, 1], [], []>} : vector<4x128xbf16>, vector<128x128xbf16>, vector<4x128xf32> -> vector<4x128xf32>
    %114 = arith.addf %108, %113 : vector<4x128xf32>
    %c1_i32_90 = arith.constant 1 : i32
    %115 = arith.addi %c1_i32_90, %arg2 : i32
    %c0_91 = arith.constant 0 : index
    %116 = arith.index_cast %115 : i32 to index
    %c6_92 = arith.constant 6 : index
    %c0_93 = arith.constant 0 : index
    %117 = vector.load %arg3[%c0_91, %116, %c6_92, %c0_93] : memref<1x12x12x128xbf16, #tpu.memory_space<vmem>>, vector<1x1x4x128xbf16>
    %118 = vector.shape_cast %117 : vector<1x1x4x128xbf16> to vector<4x128xbf16>
    %cst_94 = arith.constant dense<0.000000e+00> : vector<4x128xf32>
    %119 = tpu.matmul %118, %16, %cst_94 {dimension_numbers = #tpu.dot_dimension_numbers<[1], [0], [0], [1], [0, 0, 1, 1], [], []>} : vector<4x128xbf16>, vector<128x128xbf16>, vector<4x128xf32> -> vector<4x128xf32>
    %120 = arith.addf %114, %119 : vector<4x128xf32>
    %c1_i32_95 = arith.constant 1 : i32
    %121 = arith.addi %c1_i32_95, %arg2 : i32
    %c0_96 = arith.constant 0 : index
    %122 = arith.index_cast %121 : i32 to index
    %c7_97 = arith.constant 7 : index
    %c0_98 = arith.constant 0 : index
    %123 = vector.load %arg3[%c0_96, %122, %c7_97, %c0_98] : memref<1x12x12x128xbf16, #tpu.memory_space<vmem>>, vector<1x1x4x128xbf16>
    %124 = vector.shape_cast %123 : vector<1x1x4x128xbf16> to vector<4x128xbf16>
    %cst_99 = arith.constant dense<0.000000e+00> : vector<4x128xf32>
    %125 = tpu.matmul %124, %18, %cst_99 {dimension_numbers = #tpu.dot_dimension_numbers<[1], [0], [0], [1], [0, 0, 1, 1], [], []>} : vector<4x128xbf16>, vector<128x128xbf16>, vector<4x128xf32> -> vector<4x128xf32>
    %126 = arith.addf %120, %125 : vector<4x128xf32>
    %c1_i32_100 = arith.constant 1 : i32
    %127 = arith.addi %c1_i32_100, %arg2 : i32
    %c0_101 = arith.constant 0 : index
    %128 = arith.index_cast %127 : i32 to index
    %c8_102 = arith.constant 8 : index
    %c0_103 = arith.constant 0 : index
    %129 = vector.load %arg3[%c0_101, %128, %c8_102, %c0_103] : memref<1x12x12x128xbf16, #tpu.memory_space<vmem>>, vector<1x1x4x128xbf16>
    %130 = vector.shape_cast %129 : vector<1x1x4x128xbf16> to vector<4x128xbf16>
    %cst_104 = arith.constant dense<0.000000e+00> : vector<4x128xf32>
    %131 = tpu.matmul %130, %20, %cst_104 {dimension_numbers = #tpu.dot_dimension_numbers<[1], [0], [0], [1], [0, 0, 1, 1], [], []>} : vector<4x128xbf16>, vector<128x128xbf16>, vector<4x128xf32> -> vector<4x128xf32>
    %132 = arith.addf %126, %131 : vector<4x128xf32>
    %c1_105 = arith.constant 1 : index
    %c0_106 = arith.constant 0 : index
    %c0_107 = arith.constant 0 : index
    %133 = vector.load %arg8[%c1_105, %c0_106, %c0_107] : memref<4x4x128xf32, #tpu.memory_space<vmem>>, vector<1x4x128xf32>
    %134 = vector.shape_cast %133 : vector<1x4x128xf32> to vector<4x128xf32>
    %135 = arith.addf %134, %132 : vector<4x128xf32>
    %c1_108 = arith.constant 1 : index
    %c0_109 = arith.constant 0 : index
    %c0_110 = arith.constant 0 : index
    %136 = vector.load %arg8[%c1_108, %c0_109, %c0_110] : memref<4x4x128xf32, #tpu.memory_space<vmem>>, vector<1x4x128xf32>
    %137 = vector.shape_cast %136 : vector<1x4x128xf32> to vector<4x128xf32>
    %138 = vector.shape_cast %135 : vector<4x128xf32> to vector<1x4x128xf32>
    tpu.vector_store %arg8[%c1_108, %c0_109, %c0_110], %138 {strides = array<i32>} : memref<4x4x128xf32, #tpu.memory_space<vmem>>, vector<1x4x128xf32>,
    %c2_i32 = arith.constant 2 : i32
    %139 = arith.addi %c2_i32, %arg2 : i32
    %c0_111 = arith.constant 0 : index
    %140 = arith.index_cast %139 : i32 to index
    %c0_112 = arith.constant 0 : index
    %c0_113 = arith.constant 0 : index
    %141 = vector.load %arg3[%c0_111, %140, %c0_112, %c0_113] : memref<1x12x12x128xbf16, #tpu.memory_space<vmem>>, vector<1x1x4x128xbf16>
    %142 = vector.shape_cast %141 : vector<1x1x4x128xbf16> to vector<4x128xbf16>
    %cst_114 = arith.constant dense<0.000000e+00> : vector<4x128xf32>
    %143 = tpu.matmul %142, %4, %cst_114 {dimension_numbers = #tpu.dot_dimension_numbers<[1], [0], [0], [1], [0, 0, 1, 1], [], []>} : vector<4x128xbf16>, vector<128x128xbf16>, vector<4x128xf32> -> vector<4x128xf32>
    %c2_i32_115 = arith.constant 2 : i32
    %144 = arith.addi %c2_i32_115, %arg2 : i32
    %c0_116 = arith.constant 0 : index
    %145 = arith.index_cast %144 : i32 to index
    %c1_117 = arith.constant 1 : index
    %c0_118 = arith.constant 0 : index
    %146 = vector.load %arg3[%c0_116, %145, %c1_117, %c0_118] : memref<1x12x12x128xbf16, #tpu.memory_space<vmem>>, vector<1x1x4x128xbf16>
    %147 = vector.shape_cast %146 : vector<1x1x4x128xbf16> to vector<4x128xbf16>
    %cst_119 = arith.constant dense<0.000000e+00> : vector<4x128xf32>
    %148 = tpu.matmul %147, %6, %cst_119 {dimension_numbers = #tpu.dot_dimension_numbers<[1], [0], [0], [1], [0, 0, 1, 1], [], []>} : vector<4x128xbf16>, vector<128x128xbf16>, vector<4x128xf32> -> vector<4x128xf32>
    %149 = arith.addf %143, %148 : vector<4x128xf32>
    %c2_i32_120 = arith.constant 2 : i32
    %150 = arith.addi %c2_i32_120, %arg2 : i32
    %c0_121 = arith.constant 0 : index
    %151 = arith.index_cast %150 : i32 to index
    %c2_122 = arith.constant 2 : index
    %c0_123 = arith.constant 0 : index
    %152 = vector.load %arg3[%c0_121, %151, %c2_122, %c0_123] : memref<1x12x12x128xbf16, #tpu.memory_space<vmem>>, vector<1x1x4x128xbf16>
    %153 = vector.shape_cast %152 : vector<1x1x4x128xbf16> to vector<4x128xbf16>
    %cst_124 = arith.constant dense<0.000000e+00> : vector<4x128xf32>
    %154 = tpu.matmul %153, %8, %cst_124 {dimension_numbers = #tpu.dot_dimension_numbers<[1], [0], [0], [1], [0, 0, 1, 1], [], []>} : vector<4x128xbf16>, vector<128x128xbf16>, vector<4x128xf32> -> vector<4x128xf32>
    %155 = arith.addf %149, %154 : vector<4x128xf32>
    %c2_i32_125 = arith.constant 2 : i32
    %156 = arith.addi %c2_i32_125, %arg2 : i32
    %c0_126 = arith.constant 0 : index
    %157 = arith.index_cast %156 : i32 to index
    %c3_127 = arith.constant 3 : index
    %c0_128 = arith.constant 0 : index
    %158 = vector.load %arg3[%c0_126, %157, %c3_127, %c0_128] : memref<1x12x12x128xbf16, #tpu.memory_space<vmem>>, vector<1x1x4x128xbf16>
    %159 = vector.shape_cast %158 : vector<1x1x4x128xbf16> to vector<4x128xbf16>
    %cst_129 = arith.constant dense<0.000000e+00> : vector<4x128xf32>
    %160 = tpu.matmul %159, %10, %cst_129 {dimension_numbers = #tpu.dot_dimension_numbers<[1], [0], [0], [1], [0, 0, 1, 1], [], []>} : vector<4x128xbf16>, vector<128x128xbf16>, vector<4x128xf32> -> vector<4x128xf32>
    %161 = arith.addf %155, %160 : vector<4x128xf32>
    %c2_i32_130 = arith.constant 2 : i32
    %162 = arith.addi %c2_i32_130, %arg2 : i32
    %c0_131 = arith.constant 0 : index
    %163 = arith.index_cast %162 : i32 to index
    %c4_132 = arith.constant 4 : index
    %c0_133 = arith.constant 0 : index
    %164 = vector.load %arg3[%c0_131, %163, %c4_132, %c0_133] : memref<1x12x12x128xbf16, #tpu.memory_space<vmem>>, vector<1x1x4x128xbf16>
    %165 = vector.shape_cast %164 : vector<1x1x4x128xbf16> to vector<4x128xbf16>
    %cst_134 = arith.constant dense<0.000000e+00> : vector<4x128xf32>
    %166 = tpu.matmul %165, %12, %cst_134 {dimension_numbers = #tpu.dot_dimension_numbers<[1], [0], [0], [1], [0, 0, 1, 1], [], []>} : vector<4x128xbf16>, vector<128x128xbf16>, vector<4x128xf32> -> vector<4x128xf32>
    %167 = arith.addf %161, %166 : vector<4x128xf32>
    %c2_i32_135 = arith.constant 2 : i32
    %168 = arith.addi %c2_i32_135, %arg2 : i32
    %c0_136 = arith.constant 0 : index
    %169 = arith.index_cast %168 : i32 to index
    %c5_137 = arith.constant 5 : index
    %c0_138 = arith.constant 0 : index
    %170 = vector.load %arg3[%c0_136, %169, %c5_137, %c0_138] : memref<1x12x12x128xbf16, #tpu.memory_space<vmem>>, vector<1x1x4x128xbf16>
    %171 = vector.shape_cast %170 : vector<1x1x4x128xbf16> to vector<4x128xbf16>
    %cst_139 = arith.constant dense<0.000000e+00> : vector<4x128xf32>
    %172 = tpu.matmul %171, %14, %cst_139 {dimension_numbers = #tpu.dot_dimension_numbers<[1], [0], [0], [1], [0, 0, 1, 1], [], []>} : vector<4x128xbf16>, vector<128x128xbf16>, vector<4x128xf32> -> vector<4x128xf32>
    %173 = arith.addf %167, %172 : vector<4x128xf32>
    %c2_i32_140 = arith.constant 2 : i32
    %174 = arith.addi %c2_i32_140, %arg2 : i32
    %c0_141 = arith.constant 0 : index
    %175 = arith.index_cast %174 : i32 to index
    %c6_142 = arith.constant 6 : index
    %c0_143 = arith.constant 0 : index
    %176 = vector.load %arg3[%c0_141, %175, %c6_142, %c0_143] : memref<1x12x12x128xbf16, #tpu.memory_space<vmem>>, vector<1x1x4x128xbf16>
    %177 = vector.shape_cast %176 : vector<1x1x4x128xbf16> to vector<4x128xbf16>
    %cst_144 = arith.constant dense<0.000000e+00> : vector<4x128xf32>
    %178 = tpu.matmul %177, %16, %cst_144 {dimension_numbers = #tpu.dot_dimension_numbers<[1], [0], [0], [1], [0, 0, 1, 1], [], []>} : vector<4x128xbf16>, vector<128x128xbf16>, vector<4x128xf32> -> vector<4x128xf32>
    %179 = arith.addf %173, %178 : vector<4x128xf32>
    %c2_i32_145 = arith.constant 2 : i32
    %180 = arith.addi %c2_i32_145, %arg2 : i32
    %c0_146 = arith.constant 0 : index
    %181 = arith.index_cast %180 : i32 to index
    %c7_147 = arith.constant 7 : index
    %c0_148 = arith.constant 0 : index
    %182 = vector.load %arg3[%c0_146, %181, %c7_147, %c0_148] : memref<1x12x12x128xbf16, #tpu.memory_space<vmem>>, vector<1x1x4x128xbf16>
    %183 = vector.shape_cast %182 : vector<1x1x4x128xbf16> to vector<4x128xbf16>
    %cst_149 = arith.constant dense<0.000000e+00> : vector<4x128xf32>
    %184 = tpu.matmul %183, %18, %cst_149 {dimension_numbers = #tpu.dot_dimension_numbers<[1], [0], [0], [1], [0, 0, 1, 1], [], []>} : vector<4x128xbf16>, vector<128x128xbf16>, vector<4x128xf32> -> vector<4x128xf32>
    %185 = arith.addf %179, %184 : vector<4x128xf32>
    %c2_i32_150 = arith.constant 2 : i32
    %186 = arith.addi %c2_i32_150, %arg2 : i32
    %c0_151 = arith.constant 0 : index
    %187 = arith.index_cast %186 : i32 to index
    %c8_152 = arith.constant 8 : index
    %c0_153 = arith.constant 0 : index
    %188 = vector.load %arg3[%c0_151, %187, %c8_152, %c0_153] : memref<1x12x12x128xbf16, #tpu.memory_space<vmem>>, vector<1x1x4x128xbf16>
    %189 = vector.shape_cast %188 : vector<1x1x4x128xbf16> to vector<4x128xbf16>
    %cst_154 = arith.constant dense<0.000000e+00> : vector<4x128xf32>
    %190 = tpu.matmul %189, %20, %cst_154 {dimension_numbers = #tpu.dot_dimension_numbers<[1], [0], [0], [1], [0, 0, 1, 1], [], []>} : vector<4x128xbf16>, vector<128x128xbf16>, vector<4x128xf32> -> vector<4x128xf32>
    %191 = arith.addf %185, %190 : vector<4x128xf32>
    %c2_155 = arith.constant 2 : index
    %c0_156 = arith.constant 0 : index
    %c0_157 = arith.constant 0 : index
    %192 = vector.load %arg8[%c2_155, %c0_156, %c0_157] : memref<4x4x128xf32, #tpu.memory_space<vmem>>, vector<1x4x128xf32>
    %193 = vector.shape_cast %192 : vector<1x4x128xf32> to vector<4x128xf32>
    %194 = arith.addf %193, %191 : vector<4x128xf32>
    %c2_158 = arith.constant 2 : index
    %c0_159 = arith.constant 0 : index
    %c0_160 = arith.constant 0 : index
    %195 = vector.load %arg8[%c2_158, %c0_159, %c0_160] : memref<4x4x128xf32, #tpu.memory_space<vmem>>, vector<1x4x128xf32>
    %196 = vector.shape_cast %195 : vector<1x4x128xf32> to vector<4x128xf32>
    %197 = vector.shape_cast %194 : vector<4x128xf32> to vector<1x4x128xf32>
    tpu.vector_store %arg8[%c2_158, %c0_159, %c0_160], %197 {strides = array<i32>} : memref<4x4x128xf32, #tpu.memory_space<vmem>>, vector<1x4x128xf32>,
    %c3_i32 = arith.constant 3 : i32
    %198 = arith.addi %c3_i32, %arg2 : i32
    %c0_161 = arith.constant 0 : index
    %199 = arith.index_cast %198 : i32 to index
    %c0_162 = arith.constant 0 : index
    %c0_163 = arith.constant 0 : index
    %200 = vector.load %arg3[%c0_161, %199, %c0_162, %c0_163] : memref<1x12x12x128xbf16, #tpu.memory_space<vmem>>, vector<1x1x4x128xbf16>
    %201 = vector.shape_cast %200 : vector<1x1x4x128xbf16> to vector<4x128xbf16>
    %cst_164 = arith.constant dense<0.000000e+00> : vector<4x128xf32>
    %202 = tpu.matmul %201, %4, %cst_164 {dimension_numbers = #tpu.dot_dimension_numbers<[1], [0], [0], [1], [0, 0, 1, 1], [], []>} : vector<4x128xbf16>, vector<128x128xbf16>, vector<4x128xf32> -> vector<4x128xf32>
    %c3_i32_165 = arith.constant 3 : i32
    %203 = arith.addi %c3_i32_165, %arg2 : i32
    %c0_166 = arith.constant 0 : index
    %204 = arith.index_cast %203 : i32 to index
    %c1_167 = arith.constant 1 : index
    %c0_168 = arith.constant 0 : index
    %205 = vector.load %arg3[%c0_166, %204, %c1_167, %c0_168] : memref<1x12x12x128xbf16, #tpu.memory_space<vmem>>, vector<1x1x4x128xbf16>
    %206 = vector.shape_cast %205 : vector<1x1x4x128xbf16> to vector<4x128xbf16>
    %cst_169 = arith.constant dense<0.000000e+00> : vector<4x128xf32>
    %207 = tpu.matmul %206, %6, %cst_169 {dimension_numbers = #tpu.dot_dimension_numbers<[1], [0], [0], [1], [0, 0, 1, 1], [], []>} : vector<4x128xbf16>, vector<128x128xbf16>, vector<4x128xf32> -> vector<4x128xf32>
    %208 = arith.addf %202, %207 : vector<4x128xf32>
    %c3_i32_170 = arith.constant 3 : i32
    %209 = arith.addi %c3_i32_170, %arg2 : i32
    %c0_171 = arith.constant 0 : index
    %210 = arith.index_cast %209 : i32 to index
    %c2_172 = arith.constant 2 : index
    %c0_173 = arith.constant 0 : index
    %211 = vector.load %arg3[%c0_171, %210, %c2_172, %c0_173] : memref<1x12x12x128xbf16, #tpu.memory_space<vmem>>, vector<1x1x4x128xbf16>
    %212 = vector.shape_cast %211 : vector<1x1x4x128xbf16> to vector<4x128xbf16>
    %cst_174 = arith.constant dense<0.000000e+00> : vector<4x128xf32>
    %213 = tpu.matmul %212, %8, %cst_174 {dimension_numbers = #tpu.dot_dimension_numbers<[1], [0], [0], [1], [0, 0, 1, 1], [], []>} : vector<4x128xbf16>, vector<128x128xbf16>, vector<4x128xf32> -> vector<4x128xf32>
    %214 = arith.addf %208, %213 : vector<4x128xf32>
    %c3_i32_175 = arith.constant 3 : i32
    %215 = arith.addi %c3_i32_175, %arg2 : i32
    %c0_176 = arith.constant 0 : index
    %216 = arith.index_cast %215 : i32 to index
    %c3_177 = arith.constant 3 : index
    %c0_178 = arith.constant 0 : index
    %217 = vector.load %arg3[%c0_176, %216, %c3_177, %c0_178] : memref<1x12x12x128xbf16, #tpu.memory_space<vmem>>, vector<1x1x4x128xbf16>
    %218 = vector.shape_cast %217 : vector<1x1x4x128xbf16> to vector<4x128xbf16>
    %cst_179 = arith.constant dense<0.000000e+00> : vector<4x128xf32>
    %219 = tpu.matmul %218, %10, %cst_179 {dimension_numbers = #tpu.dot_dimension_numbers<[1], [0], [0], [1], [0, 0, 1, 1], [], []>} : vector<4x128xbf16>, vector<128x128xbf16>, vector<4x128xf32> -> vector<4x128xf32>
    %220 = arith.addf %214, %219 : vector<4x128xf32>
    %c3_i32_180 = arith.constant 3 : i32
    %221 = arith.addi %c3_i32_180, %arg2 : i32
    %c0_181 = arith.constant 0 : index
    %222 = arith.index_cast %221 : i32 to index
    %c4_182 = arith.constant 4 : index
    %c0_183 = arith.constant 0 : index
    %223 = vector.load %arg3[%c0_181, %222, %c4_182, %c0_183] : memref<1x12x12x128xbf16, #tpu.memory_space<vmem>>, vector<1x1x4x128xbf16>
    %224 = vector.shape_cast %223 : vector<1x1x4x128xbf16> to vector<4x128xbf16>
    %cst_184 = arith.constant dense<0.000000e+00> : vector<4x128xf32>
    %225 = tpu.matmul %224, %12, %cst_184 {dimension_numbers = #tpu.dot_dimension_numbers<[1], [0], [0], [1], [0, 0, 1, 1], [], []>} : vector<4x128xbf16>, vector<128x128xbf16>, vector<4x128xf32> -> vector<4x128xf32>
    %226 = arith.addf %220, %225 : vector<4x128xf32>
    %c3_i32_185 = arith.constant 3 : i32
    %227 = arith.addi %c3_i32_185, %arg2 : i32
    %c0_186 = arith.constant 0 : index
    %228 = arith.index_cast %227 : i32 to index
    %c5_187 = arith.constant 5 : index
    %c0_188 = arith.constant 0 : index
    %229 = vector.load %arg3[%c0_186, %228, %c5_187, %c0_188] : memref<1x12x12x128xbf16, #tpu.memory_space<vmem>>, vector<1x1x4x128xbf16>
    %230 = vector.shape_cast %229 : vector<1x1x4x128xbf16> to vector<4x128xbf16>
    %cst_189 = arith.constant dense<0.000000e+00> : vector<4x128xf32>
    %231 = tpu.matmul %230, %14, %cst_189 {dimension_numbers = #tpu.dot_dimension_numbers<[1], [0], [0], [1], [0, 0, 1, 1], [], []>} : vector<4x128xbf16>, vector<128x128xbf16>, vector<4x128xf32> -> vector<4x128xf32>
    %232 = arith.addf %226, %231 : vector<4x128xf32>
    %c3_i32_190 = arith.constant 3 : i32
    %233 = arith.addi %c3_i32_190, %arg2 : i32
    %c0_191 = arith.constant 0 : index
    %234 = arith.index_cast %233 : i32 to index
    %c6_192 = arith.constant 6 : index
    %c0_193 = arith.constant 0 : index
    %235 = vector.load %arg3[%c0_191, %234, %c6_192, %c0_193] : memref<1x12x12x128xbf16, #tpu.memory_space<vmem>>, vector<1x1x4x128xbf16>
    %236 = vector.shape_cast %235 : vector<1x1x4x128xbf16> to vector<4x128xbf16>
    %cst_194 = arith.constant dense<0.000000e+00> : vector<4x128xf32>
    %237 = tpu.matmul %236, %16, %cst_194 {dimension_numbers = #tpu.dot_dimension_numbers<[1], [0], [0], [1], [0, 0, 1, 1], [], []>} : vector<4x128xbf16>, vector<128x128xbf16>, vector<4x128xf32> -> vector<4x128xf32>
    %238 = arith.addf %232, %237 : vector<4x128xf32>
    %c3_i32_195 = arith.constant 3 : i32
    %239 = arith.addi %c3_i32_195, %arg2 : i32
    %c0_196 = arith.constant 0 : index
    %240 = arith.index_cast %239 : i32 to index
    %c7_197 = arith.constant 7 : index
    %c0_198 = arith.constant 0 : index
    %241 = vector.load %arg3[%c0_196, %240, %c7_197, %c0_198] : memref<1x12x12x128xbf16, #tpu.memory_space<vmem>>, vector<1x1x4x128xbf16>
    %242 = vector.shape_cast %241 : vector<1x1x4x128xbf16> to vector<4x128xbf16>
    %cst_199 = arith.constant dense<0.000000e+00> : vector<4x128xf32>
    %243 = tpu.matmul %242, %18, %cst_199 {dimension_numbers = #tpu.dot_dimension_numbers<[1], [0], [0], [1], [0, 0, 1, 1], [], []>} : vector<4x128xbf16>, vector<128x128xbf16>, vector<4x128xf32> -> vector<4x128xf32>
    %244 = arith.addf %238, %243 : vector<4x128xf32>
    %c3_i32_200 = arith.constant 3 : i32
    %245 = arith.addi %c3_i32_200, %arg2 : i32
    %c0_201 = arith.constant 0 : index
    %246 = arith.index_cast %245 : i32 to index
    %c8_202 = arith.constant 8 : index
    %c0_203 = arith.constant 0 : index
    %247 = vector.load %arg3[%c0_201, %246, %c8_202, %c0_203] : memref<1x12x12x128xbf16, #tpu.memory_space<vmem>>, vector<1x1x4x128xbf16>
    %248 = vector.shape_cast %247 : vector<1x1x4x128xbf16> to vector<4x128xbf16>
    %cst_204 = arith.constant dense<0.000000e+00> : vector<4x128xf32>
    %249 = tpu.matmul %248, %20, %cst_204 {dimension_numbers = #tpu.dot_dimension_numbers<[1], [0], [0], [1], [0, 0, 1, 1], [], []>} : vector<4x128xbf16>, vector<128x128xbf16>, vector<4x128xf32> -> vector<4x128xf32>
    %250 = arith.addf %244, %249 : vector<4x128xf32>
    %c3_205 = arith.constant 3 : index
    %c0_206 = arith.constant 0 : index
    %c0_207 = arith.constant 0 : index
    %251 = vector.load %arg8[%c3_205, %c0_206, %c0_207] : memref<4x4x128xf32, #tpu.memory_space<vmem>>, vector<1x4x128xf32>
    %252 = vector.shape_cast %251 : vector<1x4x128xf32> to vector<4x128xf32>
    %253 = arith.addf %252, %250 : vector<4x128xf32>
    %c3_208 = arith.constant 3 : index
    %c0_209 = arith.constant 0 : index
    %c0_210 = arith.constant 0 : index
    %254 = vector.load %arg8[%c3_208, %c0_209, %c0_210] : memref<4x4x128xf32, #tpu.memory_space<vmem>>, vector<1x4x128xf32>
    %255 = vector.shape_cast %254 : vector<1x4x128xf32> to vector<4x128xf32>
    %256 = vector.shape_cast %253 : vector<4x128xf32> to vector<1x4x128xf32>
    tpu.vector_store %arg8[%c3_208, %c0_209, %c0_210], %256 {strides = array<i32>} : memref<4x4x128xf32, #tpu.memory_space<vmem>>, vector<1x4x128xf32>,
    %c8_i32 = arith.constant 8 : i32
    %257 = arith.cmpi eq, %arg2, %c8_i32 : i32
    %258 = arith.extui %257 : i1 to i32
    %c0_i32_211 = arith.constant 0 : i32
    %259 = arith.cmpi ne, %258, %c0_i32_211 : i32
    scf.if %259 {
      %c0_212 = arith.constant 0 : index
      %c0_213 = arith.constant 0 : index
      %c0_214 = arith.constant 0 : index
      %260 = vector.load %arg8[%c0_212, %c0_213, %c0_214] : memref<4x4x128xf32, #tpu.memory_space<vmem>>, vector<4x4x128xf32>
      %c0_215 = arith.constant 0 : index
      %c0_216 = arith.constant 0 : index
      %c0_217 = arith.constant 0 : index
      %c0_218 = arith.constant 0 : index
      %261 = vector.load %arg5[%c0_215, %c0_216, %c0_217, %c0_218] : memref<1x4x4x128xf32, #tpu.memory_space<vmem>>, vector<1x4x4x128xf32>
      %262 = vector.shape_cast %261 : vector<1x4x4x128xf32> to vector<4x4x128xf32>
      %263 = vector.shape_cast %260 : vector<4x4x128xf32> to vector<1x4x4x128xf32>
      tpu.vector_store %arg5[%c0_215, %c0_216, %c0_217, %c0_218], %263 {strides = array<i32>} : memref<1x4x4x128xf32, #tpu.memory_space<vmem>>, vector<1x4x4x128xf32>,
      %cst_219 = arith.constant dense<0.000000e+00> : vector<4x128xf32>
      %264 = vector.multi_reduction <add>, %260, %cst_219 [0] : vector<4x4x128xf32> to vector<4x128xf32>
      %cst_220 = arith.constant dense<0.000000e+00> : vector<128xf32>
      %265 = vector.multi_reduction <add>, %264, %cst_220 [0] : vector<4x128xf32> to vector<128xf32>
      %266 = vector.shape_cast %265 : vector<128xf32> to vector<1x128xf32>
      %c0_221 = arith.constant 0 : index
      %c0_222 = arith.constant 0 : index
      %c0_223 = arith.constant 0 : index
      %267 = vector.load %arg6[%c0_221, %c0_222, %c0_223] : memref<1x1x128xf32, #tpu.memory_space<vmem>>, vector<1x1x128xf32>
      %268 = vector.shape_cast %267 : vector<1x1x128xf32> to vector<1x128xf32>
      %269 = vector.shape_cast %266 : vector<1x128xf32> to vector<1x1x128xf32>
      tpu.vector_store %arg6[%c0_221, %c0_222, %c0_223], %269 {strides = array<i32>} : memref<1x1x128xf32, #tpu.memory_space<vmem>>, vector<1x1x128xf32>,
      %270 = arith.mulf %260, %260 : vector<4x4x128xf32>
      %cst_224 = arith.constant dense<0.000000e+00> : vector<4x128xf32>
      %271 = vector.multi_reduction <add>, %270, %cst_224 [0] : vector<4x4x128xf32> to vector<4x128xf32>
      %cst_225 = arith.constant dense<0.000000e+00> : vector<128xf32>
      %272 = vector.multi_reduction <add>, %271, %cst_225 [0] : vector<4x128xf32> to vector<128xf32>
      %273 = vector.shape_cast %272 : vector<128xf32> to vector<1x128xf32>
      %c0_226 = arith.constant 0 : index
      %c0_227 = arith.constant 0 : index
      %c0_228 = arith.constant 0 : index
      %274 = vector.load %arg7[%c0_226, %c0_227, %c0_228] : memref<1x1x128xf32, #tpu.memory_space<vmem>>, vector<1x1x128xf32>
      %275 = vector.shape_cast %274 : vector<1x1x128xf32> to vector<1x128xf32>
      %276 = vector.shape_cast %273 : vector<1x128xf32> to vector<1x1x128xf32>
      tpu.vector_store %arg7[%c0_226, %c0_227, %c0_228], %276 {strides = array<i32>} : memref<1x1x128xf32, #tpu.memory_space<vmem>>, vector<1x1x128xf32>,
    } else {
    }
    return
  }
  func.func @transform_0(%arg0: i32, %arg1: i32, %arg2: i32) -> (i32, i32, i32, i32) {
    %c0_i32 = arith.constant 0 : i32
    %c0_i32_0 = arith.constant 0 : i32
    %c0_i32_1 = arith.constant 0 : i32
    %c0_i32_2 = arith.constant 0 : i32
    return %arg0, %c0_i32, %c0_i32_0, %c0_i32_1 : i32, i32, i32, i32
  }
  func.func @transform_1(%arg0: i32, %arg1: i32, %arg2: i32) -> (i32, i32, i32) {
    %c0_i32 = arith.constant 0 : i32
    %c0_i32_0 = arith.constant 0 : i32
    return %arg2, %c0_i32, %arg1 : i32, i32, i32
  }
  func.func @transform_2(%arg0: i32, %arg1: i32, %arg2: i32) -> (i32, i32, i32, i32) {
    %c0_i32 = arith.constant 0 : i32
    %c0_i32_0 = arith.constant 0 : i32
    %c0_i32_1 = arith.constant 0 : i32
    return %arg0, %c0_i32, %c0_i32_0, %arg1 : i32, i32, i32, i32
  }
  func.func @transform_3(%arg0: i32, %arg1: i32, %arg2: i32) -> (i32, i32, i32) {
    %c0_i32 = arith.constant 0 : i32
    %c0_i32_0 = arith.constant 0 : i32
    return %arg0, %c0_i32, %arg1 : i32, i32, i32
  }
  func.func @transform_4(%arg0: i32, %arg1: i32, %arg2: i32) -> (i32, i32, i32) {
    %c0_i32 = arith.constant 0 : i32
    %c0_i32_0 = arith.constant 0 : i32
    return %arg0, %c0_i32, %arg1 : i32, i32, i32
  }
}

module attributes {stable_mosaic.version = 11 : i64} {
  func.func @_bn_relu_kernel(%arg0: i32, %arg1: i32, %arg2: memref<1x4x4x128xf32, #tpu.memory_space<vmem>>, %arg3: memref<2x1x128xf32, #tpu.memory_space<vmem>>, %arg4: memref<2x1x128xf32, #tpu.memory_space<vmem>>, %arg5: memref<1x128xf32, #tpu.memory_space<vmem>>, %arg6: memref<1x128xf32, #tpu.memory_space<vmem>>, %arg7: memref<1x4x4x128xf32, #tpu.memory_space<vmem>>) attributes {dimension_semantics = [#tpu.dimension_semantics<parallel>, #tpu.dimension_semantics<parallel>], iteration_bounds = array<i64: 2, 1>, scalar_prefetch = 0 : i64, scratch_operands = 0 : i64, tpu.core_type = #tpu.core_type<tc>, window_params = [{transform_indices = @transform_0, window_bounds = array<i64: 1, 4, 4, 128>}, {transform_indices = @transform_1, window_bounds = array<i64: 2, 1, 128>}, {transform_indices = @transform_2, window_bounds = array<i64: 2, 1, 128>}, {transform_indices = @transform_3, window_bounds = array<i64: 1, 128>}, {transform_indices = @transform_4, window_bounds = array<i64: 1, 128>}, {transform_indices = @transform_5, window_bounds = array<i64: 1, 4, 4, 128>}]} {
    %c0 = arith.constant 0 : index
    %c0_0 = arith.constant 0 : index
    %c0_1 = arith.constant 0 : index
    %0 = vector.load %arg3[%c0, %c0_0, %c0_1] : memref<2x1x128xf32, #tpu.memory_space<vmem>>, vector<2x1x128xf32>
    %cst = arith.constant dense<0.000000e+00> : vector<1x128xf32>
    %1 = vector.multi_reduction <add>, %0, %cst [0] : vector<2x1x128xf32> to vector<1x128xf32>
    %c0_2 = arith.constant 0 : index
    %c0_3 = arith.constant 0 : index
    %c0_4 = arith.constant 0 : index
    %2 = vector.load %arg4[%c0_2, %c0_3, %c0_4] : memref<2x1x128xf32, #tpu.memory_space<vmem>>, vector<2x1x128xf32>
    %cst_5 = arith.constant dense<0.000000e+00> : vector<1x128xf32>
    %3 = vector.multi_reduction <add>, %2, %cst_5 [0] : vector<2x1x128xf32> to vector<1x128xf32>
    %cst_6 = arith.constant 3.125000e-02 : f32
    %4 = vector.broadcast %cst_6 : f32 to vector<1x128xf32>
    %5 = arith.mulf %1, %4 : vector<1x128xf32>
    %cst_7 = arith.constant 3.125000e-02 : f32
    %6 = vector.broadcast %cst_7 : f32 to vector<1x128xf32>
    %7 = arith.mulf %3, %6 : vector<1x128xf32>
    %8 = arith.mulf %5, %5 : vector<1x128xf32>
    %9 = arith.subf %7, %8 : vector<1x128xf32>
    %cst_8 = arith.constant 0.000000e+00 : f32
    %10 = vector.broadcast %cst_8 : f32 to vector<1x128xf32>
    %11 = arith.maximumf %9, %10 : vector<1x128xf32>
    %cst_9 = arith.constant 9.99999974E-6 : f32
    %12 = vector.broadcast %cst_9 : f32 to vector<1x128xf32>
    %13 = arith.addf %11, %12 : vector<1x128xf32>
    %14 = math.rsqrt %13 : vector<1x128xf32>
    %c0_10 = arith.constant 0 : index
    %c0_11 = arith.constant 0 : index
    %15 = vector.load %arg5[%c0_10, %c0_11] : memref<1x128xf32, #tpu.memory_space<vmem>>, vector<1x128xf32>
    %16 = arith.mulf %14, %15 : vector<1x128xf32>
    %c0_12 = arith.constant 0 : index
    %c0_13 = arith.constant 0 : index
    %17 = vector.load %arg6[%c0_12, %c0_13] : memref<1x128xf32, #tpu.memory_space<vmem>>, vector<1x128xf32>
    %18 = arith.mulf %5, %16 : vector<1x128xf32>
    %19 = arith.subf %17, %18 : vector<1x128xf32>
    %20 = vector.shape_cast %16 : vector<1x128xf32> to vector<1x1x1x128xf32>
    %21 = vector.shape_cast %19 : vector<1x128xf32> to vector<1x1x1x128xf32>
    %c0_14 = arith.constant 0 : index
    %c0_15 = arith.constant 0 : index
    %c0_16 = arith.constant 0 : index
    %c0_17 = arith.constant 0 : index
    %22 = vector.load %arg2[%c0_14, %c0_15, %c0_16, %c0_17] : memref<1x4x4x128xf32, #tpu.memory_space<vmem>>, vector<1x4x4x128xf32>
    %23 = vector.broadcast %20 : vector<1x1x1x128xf32> to vector<1x4x4x128xf32>
    %24 = arith.mulf %22, %23 : vector<1x4x4x128xf32>
    %25 = vector.broadcast %21 : vector<1x1x1x128xf32> to vector<1x4x4x128xf32>
    %26 = arith.addf %24, %25 : vector<1x4x4x128xf32>
    %cst_18 = arith.constant 0.000000e+00 : f32
    %27 = vector.broadcast %cst_18 : f32 to vector<1x4x4x128xf32>
    %28 = arith.maximumf %26, %27 : vector<1x4x4x128xf32>
    %c0_19 = arith.constant 0 : index
    %c0_20 = arith.constant 0 : index
    %c0_21 = arith.constant 0 : index
    %c0_22 = arith.constant 0 : index
    %29 = vector.load %arg7[%c0_19, %c0_20, %c0_21, %c0_22] : memref<1x4x4x128xf32, #tpu.memory_space<vmem>>, vector<1x4x4x128xf32>
    tpu.vector_store %arg7[%c0_19, %c0_20, %c0_21, %c0_22], %28 {strides = array<i32>} : memref<1x4x4x128xf32, #tpu.memory_space<vmem>>, vector<1x4x4x128xf32>,
    return
  }
  func.func @transform_0(%arg0: i32, %arg1: i32) -> (i32, i32, i32, i32) {
    %c0_i32 = arith.constant 0 : i32
    %c0_i32_0 = arith.constant 0 : i32
    %c0_i32_1 = arith.constant 0 : i32
    return %arg0, %c0_i32, %c0_i32_0, %arg1 : i32, i32, i32, i32
  }
  func.func @transform_1(%arg0: i32, %arg1: i32) -> (i32, i32, i32) {
    %c0_i32 = arith.constant 0 : i32
    %c0_i32_0 = arith.constant 0 : i32
    %c0_i32_1 = arith.constant 0 : i32
    return %c0_i32, %c0_i32_0, %arg1 : i32, i32, i32
  }
  func.func @transform_2(%arg0: i32, %arg1: i32) -> (i32, i32, i32) {
    %c0_i32 = arith.constant 0 : i32
    %c0_i32_0 = arith.constant 0 : i32
    %c0_i32_1 = arith.constant 0 : i32
    return %c0_i32, %c0_i32_0, %arg1 : i32, i32, i32
  }
  func.func @transform_3(%arg0: i32, %arg1: i32) -> (i32, i32) {
    %c0_i32 = arith.constant 0 : i32
    %c0_i32_0 = arith.constant 0 : i32
    return %c0_i32, %arg1 : i32, i32
  }
  func.func @transform_4(%arg0: i32, %arg1: i32) -> (i32, i32) {
    %c0_i32 = arith.constant 0 : i32
    %c0_i32_0 = arith.constant 0 : i32
    return %c0_i32, %arg1 : i32, i32
  }
  func.func @transform_5(%arg0: i32, %arg1: i32) -> (i32, i32, i32, i32) {
    %c0_i32 = arith.constant 0 : i32
    %c0_i32_0 = arith.constant 0 : i32
    %c0_i32_1 = arith.constant 0 : i32
    return %arg0, %c0_i32, %c0_i32_0, %arg1 : i32, i32, i32, i32
  }
}

</mosaic_0001>

<bundles_post_ra>
// kernel: tile.7
= control target key start
LH: loop header
LB: loop body
LE: loop exit
PB: predicated region body
PF: predicated region fallthrough
CT: control target
= control target key end

     0   :  { %vm8_vm0 = vcmask 31744   ;;  %s40_s8 = smov 4   ;;  %s41_s9 = smov 8   ;;  %vm14_vm1 = vcmask 130144   ;;  %vm20_vm2 = vcmask 97344   ;;  %vm26_vm3 = vcmask 64544   ;;  %s58_s0 = inlined_call_operand.vmem [shape: f32[4,4], index: 0, kind: input, shape index: {}]   ;;  %s59_s1 = inlined_call_operand.vmem [shape: f32[16], index: 1, kind: output, shape index: {}]  }
   0x1   :  { %v5_v0 = vld [vmem:[%s58_s0] sm:$0xf]  ;;  %s39_s0 = smov 12  }
   0x2   :  { %6 = vst [vmem:[#allocation1] sm:$0xf] %v5_v0 }
   0x9   :  { %v11_v1 = vld [vmem:[#allocation1 + $0x3] sm:$0x1]   ;;  %v23_v2 = vld [vmem:[#allocation1 + $0x1] sm:$0x1]   ;;  %v7_v3 = vld [vmem:[#allocation1] sm:$0x1]  }
   0xa   :  { %12 = vrot.lane.b32.xlu0 %v11_v1, %s39_s0  ;;  %24 = vrot.lane.b32.xlu1 %v23_v2, %s40_s8  ;;  %v17_v4 = vld [vmem:[#allocation1 + $0x2] sm:$0x1]   ;;  %9 = vst.msk [vmem:[#allocation0] sm:$0x1] %vm8_vm0, %v7_v3  }
   0xe   :  { %18 = vrot.lane.b32.xlu0 %v17_v4, %s41_s9 }
  0x7c   :  { %v13_v5 = vpop.permute.xlu0 %12   ;;  %v25_v6 = vpop.permute.xlu1 %24  }
  0x7d   :  { %15 = vst.msk [vmem:[#allocation0] sm:$0x1] %vm14_vm1, %v13_v5  }
  0x80   :  { %v19_v7 = vpop.permute.xlu0 %18  }
  0x81   :  { %21 = vst.msk [vmem:[#allocation0] sm:$0x1] %vm20_vm2, %v19_v7  }
  0x82   :  { %27 = vst.msk [vmem:[#allocation0] sm:$0x1] %vm26_vm3, %v25_v6  }
  0x89   :  { %v32_v8 = vld [vmem:[#allocation0] sm:$0x1] }
  0x8a   :  { %35 = vst [vmem:[%s59_s1] sm:$0x1] %v32_v8 }

// kernel: tile.6
= control target key start
LH: loop header
LB: loop body
LE: loop exit
PB: predicated region body
PF: predicated region fallthrough
CT: control target
= control target key end

     0   :  { %2 = vsyncpa [#allocation1], 0  ;;  %s42_s6 = smov [#allocation0]   ;;  %s59_s0 = inlined_call_operand.hbm [shape: f32[4], index: 0, kind: input, shape index: {}]   ;;  %s60_s1 = inlined_call_operand.vmem [shape: f32[4,4], index: 1, kind: output, shape index: {}]  }
   0x1   :  { %s9_s7 = sshll.u32 %s42_s6, 4  ;;  %s10_s7 = int_to_ptr.vmem [resolvable:$true] %s9_s7 }
   0x2   :  { %s28_s8 = scalar_lea.vmem %s10_s7, 16  ;;  %s32_s9 = scalar_lea.vmem %s10_s7, 32 }
   0x3   :  { %p29_p0 = scmp.ne.s32.totalorder %s10_s7, %s28_s8  ;;  %p33_p1 = scmp.lt.s32.totalorder %s10_s7, %s10_s7 }
   0x4   :  { %p34_p2 = scmp.lt.s32.totalorder %s32_s9, %s28_s8 }
   0x6   :  { %p35_p3 = por %p34_p2, %p33_p1 }
   0x8   :  { %p36_p4 = pnand %p35_p3, %p29_p0 }
   0xa   :  { %39 = shalt.err (!%p36_p4)
}
   0xb   :  { %12 = dma.hbm_to_vmem [thread:$0]  %s59_s0, 16, %s10_s7, [#allocation1]  }
   0xc   :  { %40 = dma.done.wait [#allocation1], 16  }
   0xd   :  { %41 = vsyncadd [#allocation1], 4294967280  ;;  %v16_v0 = vld [vmem:[#allocation0] ss:$0 sm:$0xff] }
   0xe   :  { %17 = vst [vmem:[%s60_s1] sm:$0xf] %v16_v0 }
   0xf   :  { %18 = vsyncpa [#allocation1], 1 }

// kernel: up_forward.5
= control target key start
LH: loop header
LB: loop body
LE: loop exit
PB: predicated region body
PF: predicated region fallthrough
CT: control target
= control target key end

     0   :  { %8 = vsyncpa [#allocation3], 0  ;;  %s831_s12 = smov 0   ;;  %s916_s0 = inlined_call_operand.vmem [shape: bf16[2,8,8,8], index: 0, kind: input, shape index: {}]   ;;  %s917_s1 = inlined_call_operand.hbm [shape: bf16[8,128], index: 1, kind: input, shape index: {}]   ;;  %s918_s2 = inlined_call_operand.vmem [shape: f32[1,128], index: 2, kind: input, shape index: {}]   ;;  %s919_s3 = inlined_call_operand.vmem [shape: bf16[2,8,8,128], index: 3, kind: output, shape index: {}]  }
   0x1 LB: > { %s837_s13 = sadd.s32 4294967295, %s806_s12   ;;  %p649_p0 = scmp.ge.s32.totalorder %s806_s12, 1  ;;  %s806_s12 = sphi %s831_s12, %s14_s12  }
   0x2   : > { %p113_p1 = scmp.lt.s32.totalorder %s806_s12, 3  ;;  %p757_p3 = scmp.eq.s32.totalorder %s837_s13, 0 }
   0x3   : > { %s808_s15 = smov [#allocation2]  }
   0x4   : > { %p841_p2 = pnand %p649_p0, %p113_p1  ;;  %s126_s16 = sshll.u32 %s808_s15, 4  ;;  %s127_s16 = int_to_ptr.vmem [resolvable:$true] %s126_s16 }
   0x5   : > { %s781_s17 = scalar_lea.vmem %s127_s16, 64  ;;  %p789_p10 = scmp.lt.s32.totalorder %s127_s16, %s127_s16 }
   0x6   : > { %p753_p4 = pneg %p841_p2  ;;  %p782_p7 = scmp.ne.s32.totalorder %s127_s16, %s781_s17 }
   0x7   : > { %p790_p11 = scmp.lt.s32.totalorder %s781_s17, %s781_s17 }
   0x8   : > { %p754_p5 = pnand %p757_p3, %p753_p4 }
   0x9   : > { %p791_p12 = por %p790_p11, %p789_p10 }
   0xa   : > { %p772_p6 = pneg %p754_p5 }
   0xc   : > { %p784_p8 = pnand %p782_p7, %p772_p6 }
   0xe   : > { %p785_p9 = pneg %p784_p8 }
  0x10   : > { %p792_p13 = pnand %p791_p12, %p785_p9 }
  0x12   : > { %795 = shalt.err (!%p792_p13)
}
  0x13   : > { %756 = dma.hbm_to_vmem [thread:$0]  (!%p754_p5), %s917_s1, 64, %s127_s16, [#allocation3]  }
  0x14   : > { %150 = sbr.rel (%p841_p2) target bundleno = 255 (0xff), region = 32 }
  0x19   : > { %801 = dma.done.wait (%p757_p3), [#allocation3], 64  }
  0x1a   : > { %803 = vsyncadd (%p757_p3), [#allocation3], 4294967232  ;;  %p174_p0 = scmp.lt.s32.totalorder %s837_s13, 1  ;;  %v809_v0 = vmov 0.0   ;;  %vm810_vm0 = vmmov 0   ;;  %vm198_vm1 = vcmask 1043456  }
  0x1b   : > { %701 = vmatprep.subr.bf16.mxu0 %v809_v0  ;;  %707 = vmatprep.subr.bf16.mxu1 %v809_v0  ;;  %v185_v1 = vld [vmem:[#allocation2] sm:$0xf]  ;;  %vm194_vm2 = vcmask 64512  }
  0x1c   : > { %703 = vmatprep.mubr.msk.bf16.mxu0 %vm810_vm0, %v809_v0  ;;  %709 = vmatprep.mubr.msk.bf16.mxu1 %vm810_vm0, %v809_v0  ;;  %s922_s13 = smov (!%p174_p0, %s837_s13), 1  ;;  %v200_v2 = vsel %vm198_vm1, %v185_v1, 0  ;;  %v658_v11 = vld [vmem:[%s918_s2] ss:$0 sm:$0xff] }
  0x1d   : > { %s683_s20 = sshll.u32 %s922_s13, 5  ;;  %702 = vmatpush3.bf16.msra.mxu0 %v200_v2  ;;  %708 = vmatpush3.bf16.msra.mxu1 %v200_v2 }
  0x1e   : > { %s871_s23 = scalar_lea.vmem %s916_s0, %s683_s20  ;;  %713 = vmatprep.subr.bf16.mxu0 %v809_v0  ;;  %719 = vmatprep.subr.bf16.mxu1 %v809_v0  ;;  %s903_s28 = scalar_lea.vmem %s919_s3, %s683_s20 }
  0x1f   : > { %v187_v3 = vld [vmem:[%s871_s23] sm:$0xf]  ;;  %v660_v4 = vld [vmem:[%s871_s23 + $0x4] sm:$0xf]  ;;  %v663_v5 = vld [vmem:[%s871_s23 + $0x8] sm:$0xf] }
  0x20   : > { %704 = vmatmul.mubr.msk.bf16.vlgmr.msra.gmra.mxu0 %vm194_vm2, %v187_v3  ;;  %710 = vmatmul.mubr.msk.bf16.vlgmr.msra.gmra.mxu1 %vm194_vm2, %v660_v4  ;;  %v666_v6 = vld [vmem:[%s871_s23 + $0xc] sm:$0xf]  ;;  %v669_v7 = vld [vmem:[%s871_s23 + $0x10] sm:$0xf]  ;;  %v672_v8 = vld [vmem:[%s871_s23 + $0x14] sm:$0xf] }
  0x21   : > { %714 = vmatpush3.bf16.msra.mxu0 %v200_v2  ;;  %720 = vmatpush3.bf16.msra.mxu1 %v200_v2  ;;  %v675_v9 = vld [vmem:[%s871_s23 + $0x18] sm:$0xf]  ;;  %v678_v10 = vld [vmem:[%s871_s23 + $0x1c] sm:$0xf] }
  0x22   : > { %715 = vmatprep.mubr.msk.bf16.mxu0 %vm810_vm0, %v809_v0  ;;  %721 = vmatprep.mubr.msk.bf16.mxu1 %vm810_vm0, %v809_v0 }
  0x23   : > { %725 = vmatprep.subr.bf16.mxu0 %v809_v0  ;;  %731 = vmatprep.subr.bf16.mxu1 %v809_v0 }
  0x28   : > { %716 = vmatmul.mubr.msk.bf16.vlgmr.msra.gmra.mxu0 %vm194_vm2, %v663_v5  ;;  %722 = vmatmul.mubr.msk.bf16.vlgmr.msra.gmra.mxu1 %vm194_vm2, %v666_v6 }
  0x29   : > { %726 = vmatpush3.bf16.msra.mxu0 %v200_v2  ;;  %732 = vmatpush3.bf16.msra.mxu1 %v200_v2 }
  0x2a   : > { %727 = vmatprep.mubr.msk.bf16.mxu0 %vm810_vm0, %v809_v0  ;;  %733 = vmatprep.mubr.msk.bf16.mxu1 %vm810_vm0, %v809_v0 }
  0x2b   : > { %737 = vmatprep.subr.bf16.mxu0 %v809_v0  ;;  %743 = vmatprep.subr.bf16.mxu1 %v809_v0 }
  0x30   : > { %728 = vmatmul.mubr.msk.bf16.vlgmr.msra.gmra.mxu0 %vm194_vm2, %v669_v7  ;;  %734 = vmatmul.mubr.msk.bf16.vlgmr.msra.gmra.mxu1 %vm194_vm2, %v672_v8 }
  0x31   : > { %738 = vmatpush3.bf16.msra.mxu0 %v200_v2  ;;  %744 = vmatpush3.bf16.msra.mxu1 %v200_v2 }
  0x32   : > { %739 = vmatprep.mubr.msk.bf16.mxu0 %vm810_vm0, %v809_v0  ;;  %745 = vmatprep.mubr.msk.bf16.mxu1 %vm810_vm0, %v809_v0 }
  0x38   : > { %740 = vmatmul.mubr.msk.bf16.vlgmr.msra.gmra.mxu0 %vm194_vm2, %v675_v9  ;;  %746 = vmatmul.mubr.msk.bf16.vlgmr.msra.gmra.mxu1 %vm194_vm2, %v678_v10 }
  0xe0   : > { %v236_v12 = vpop.f32.mrf.mxu0  ;;  %v283_v13 = vpop.f32.mrf.mxu1 }
  0xe1   : > { %v237_v14 = vadd.f32 %v658_v11, %v236_v12  ;;  %v284_v15 = vadd.f32 %v658_v11, %v283_v13 }
  0xe2   : > { %v705_v16 = vpop.f32.mrf.mxu0  ;;  %v711_v17 = vpop.f32.mrf.mxu1 }
  0xe3   : > { %v242_v18 = vpack.c.bf16 %v237_v14, %v237_v14  ;;  %v289_v19 = vpack.c.bf16 %v284_v15, %v284_v15 }
  0xe4   : > { %v239_v20 = vpop.f32.mrf.mxu0  ;;  %v286_v21 = vpop.f32.mrf.mxu1 }
  0xe5   : > { %243 = vst [vmem:[%s903_s28] sm:$0xf] %v242_v18  ;;  %662 = vst [vmem:[%s903_s28 + $0x4] sm:$0xf] %v289_v19 }
  0xe6   : > { %v706_v22 = vpop.f32.mrf.mxu0  ;;  %v712_v23 = vpop.f32.mrf.mxu1 }
  0xe8   : > { %v331_v24 = vpop.f32.mrf.mxu0  ;;  %v379_v25 = vpop.f32.mrf.mxu1 }
  0xe9   : > { %v332_v26 = vadd.f32 %v658_v11, %v331_v24  ;;  %v380_v27 = vadd.f32 %v658_v11, %v379_v25 }
  0xea   : > { %v717_v28 = vpop.f32.mrf.mxu0  ;;  %v723_v29 = vpop.f32.mrf.mxu1 }
  0xeb   : > { %v337_v30 = vpack.c.bf16 %v332_v26, %v332_v26  ;;  %v385_v31 = vpack.c.bf16 %v380_v27, %v380_v27 }
  0xec   : > { %v334_v32 = vpop.f32.mrf.mxu0  ;;  %v382_v33 = vpop.f32.mrf.mxu1 }
  0xed   : > { %665 = vst [vmem:[%s903_s28 + $0x8] sm:$0xf] %v337_v30  ;;  %668 = vst [vmem:[%s903_s28 + $0xc] sm:$0xf] %v385_v31 }
  0xee   : > { %v718_v34 = vpop.f32.mrf.mxu0  ;;  %v724_v35 = vpop.f32.mrf.mxu1 }
  0xf0   : > { %v427_v36 = vpop.f32.mrf.mxu0  ;;  %v475_v37 = vpop.f32.mrf.mxu1 }
  0xf1   : > { %v428_v38 = vadd.f32 %v658_v11, %v427_v36  ;;  %v476_v39 = vadd.f32 %v658_v11, %v475_v37 }
  0xf2   : > { %v729_v40 = vpop.f32.mrf.mxu0  ;;  %v735_v41 = vpop.f32.mrf.mxu1 }
  0xf3   : > { %v433_v42 = vpack.c.bf16 %v428_v38, %v428_v38  ;;  %v481_v43 = vpack.c.bf16 %v476_v39, %v476_v39 }
  0xf4   : > { %v430_v44 = vpop.f32.mrf.mxu0  ;;  %v478_v45 = vpop.f32.mrf.mxu1 }
  0xf5   : > { %671 = vst [vmem:[%s903_s28 + $0x10] sm:$0xf] %v433_v42  ;;  %674 = vst [vmem:[%s903_s28 + $0x14] sm:$0xf] %v481_v43 }
  0xf6   : > { %v730_v46 = vpop.f32.mrf.mxu0  ;;  %v736_v47 = vpop.f32.mrf.mxu1 }
  0xf8   : > { %v523_v48 = vpop.f32.mrf.mxu0  ;;  %v571_v49 = vpop.f32.mrf.mxu1 }
  0xf9   : > { %v524_v50 = vadd.f32 %v658_v11, %v523_v48  ;;  %v572_v51 = vadd.f32 %v658_v11, %v571_v49 }
  0xfa   : > { %v741_v52 = vpop.f32.mrf.mxu0  ;;  %v747_v53 = vpop.f32.mrf.mxu1 }
  0xfb   : > { %v529_v54 = vpack.c.bf16 %v524_v50, %v524_v50  ;;  %v577_v55 = vpack.c.bf16 %v572_v51, %v572_v51 }
  0xfc   : > { %v526_v56 = vpop.f32.mrf.mxu0  ;;  %v574_v57 = vpop.f32.mrf.mxu1 }
  0xfd   : > { %677 = vst [vmem:[%s903_s28 + $0x18] sm:$0xf] %v529_v54  ;;  %680 = vst [vmem:[%s903_s28 + $0x1c] sm:$0xf] %v577_v55 }
  0xfe   : > { %v742_v58 = vpop.f32.mrf.mxu0  ;;  %v748_v59 = vpop.f32.mrf.mxu1 }
  0xff PF: > { %s14_s12 = sadd.s32 1, %s806_s12  }
 0x100   : > { %p11_p1 = scmp.ge.s32.totalorder %s14_s12, 4  }
 0x102   :  { %13 = sbr.rel (!%p11_p1) target bundleno = 1 (0x1), region = 81 }
 0x107   :  { %601 = vsyncpa [#allocation3], 1 }
 0x108   :  { %603 = vsyncpa [#allocation3 + $0x1], 1 }

// kernel: up_forward.7
= control target key start
LH: loop header
LB: loop body
LE: loop exit
PB: predicated region body
PF: predicated region fallthrough
CT: control target
= control target key end

     0   :  { %s792_s18 = smov 0   ;;  %s794_s19 = smov 0   ;;  %s935_s0 = inlined_call_operand.vmem [shape: f32[2,10,10,128], index: 0, kind: input, shape index: {}]   ;;  %s936_s1 = inlined_call_operand.vmem [shape: f32[2,1,128], index: 1, kind: input, shape index: {}]   ;;  %s937_s2 = inlined_call_operand.vmem [shape: f32[2,1,128], index: 2, kind: input, shape index: {}]   ;;  %s938_s3 = inlined_call_operand.vmem [shape: f32[1,128], index: 3, kind: input, shape index: {}]   ;;  %s939_s4 = inlined_call_operand.vmem [shape: f32[1,128], index: 4, kind: input, shape index: {}]   ;;  %s940_s5 = inlined_call_operand.vmem [shape: bf16[2,10,10,128], index: 5, kind: output, shape index: {}]  }
   0x1   :  { %s796_s20 = smov 0  }
   0x2 LB: > { %s27_s21 = sadd.s32 1, %s756_s19  ;;  %p665_p0 = scmp.ge.s32.totalorder %s760_s20, 1  ;;  %s760_s20 = sphi %s796_s20, %s15_s20   ;;  %s756_s19 = sphi %s794_s19, %s942_s19   ;;  %s752_s18 = sphi %s792_s18, %s941_s18  }
   0x3   : > { %p29_p1 = scmp.ge.s32.totalorder %s27_s21, 2  ;;  %p238_p2 = scmp.lt.s32.totalorder %s760_s20, 3 }
   0x5   : > { %s944_s21 = smov (%p29_p1, %s27_s21), 0  ;;  %p239_p3 = pnand %p665_p0, %p238_p2 }
   0x6   : > { %p284_p4 = scmp.lt.s32.totalorder (!%p239_p3), %s752_s18, 1 }
   0x7   : > { %242 = sbr.rel (%p239_p3) target bundleno = 70 (0x46), region = 40 }
   0xc   : > { %v312_v0 = vld [vmem:[%s936_s1] sm:$0x1]  ;;  %v313_v1 = vld [vmem:[%s936_s1 + $0x1] sm:$0x1]  ;;  %vm314_vm0 = vcmask 1040384   ;;  %s946_s18 = smov (!%p284_p4, %s752_s18), 1  ;;  %v355_v16 = vlaneseq }
   0xd   : > { %v315_v2 = vsel %vm314_vm0, %v312_v0, 0.0  ;;  %v316_v3 = vsel %vm314_vm0, %v313_v1, 0.0  ;;  %v318_v4 = vld [vmem:[%s937_s2] sm:$0x1]  ;;  %v319_v5 = vld [vmem:[%s937_s2 + $0x1] sm:$0x1] }
   0xe   : > { %v317_v6 = vadd.f32 %v316_v3, %v315_v2  ;;  %v320_v7 = vsel %vm314_vm0, %v318_v4, 0.0  ;;  %v321_v8 = vsel %vm314_vm0, %v319_v5, 0.0  ;;  %s710_s30 = smul.u32 160, %s946_s18  ;;  %v356_v17 = vshrl.u32 %v355_v16, 7  ;;  %v330_v18 = vld [vmem:[%s938_s3] sm:$0x1] }
   0xf   : > { %v322_v9 = vadd.f32 %v321_v8, %v320_v7  ;;  %v332_v22 = vld [vmem:[%s939_s4] sm:$0x1]  ;;  %s711_s13 = smul.u32 80, %s946_s18 }
  0x10   : > { %v323_v10 = vmul.f32 0.005, %v317_v6  ;;  %s828_s8 = scalar_lea.vmem %s935_s0, %s710_s30  ;;  %v357_v19 = vsub.s32 0, %v356_v17 }
  0x11   : > { %v324_v11 = vmul.f32 0.005, %v322_v9  ;;  %v335_v23 = vld [vmem:[%s828_s8] sm:$0xff]  ;;  %v336_v24 = vld [vmem:[%s828_s8 + $0x8] sm:$0x3]  ;;  %v337_v25 = vld [vmem:[%s828_s8 + $0x10] sm:$0xff]  ;;  %s880_s16 = scalar_lea.vmem %s940_s5, %s711_s13 }
  0x12   : > { %v325_v12 = vmul.f32 %v323_v10, %v323_v10  ;;  %v338_v26 = vld [vmem:[%s828_s8 + $0x18] sm:$0x3]  ;;  %v339_v27 = vld [vmem:[%s828_s8 + $0x20] sm:$0xff]  ;;  %v340_v30 = vld [vmem:[%s828_s8 + $0x28] sm:$0x3] }
  0x13   : > { %v341_v31 = vld [vmem:[%s828_s8 + $0x30] sm:$0xff]  ;;  %v342_v32 = vld [vmem:[%s828_s8 + $0x38] sm:$0x3]  ;;  %v343_v33 = vld [vmem:[%s828_s8 + $0x40] sm:$0xff] }
  0x14   : > { %v326_v13 = vsub.f32 %v324_v11, %v325_v12  ;;  %v344_v34 = vld [vmem:[%s828_s8 + $0x48] sm:$0x3]  ;;  %v345_v35 = vld [vmem:[%s828_s8 + $0x50] sm:$0xff]  ;;  %v346_v40 = vld [vmem:[%s828_s8 + $0x58] sm:$0x3] }
  0x15   : > { %v347_v41 = vld [vmem:[%s828_s8 + $0x60] sm:$0xff]  ;;  %v348_v42 = vld [vmem:[%s828_s8 + $0x68] sm:$0x3]  ;;  %v349_v11 = vld [vmem:[%s828_s8 + $0x70] sm:$0xff] }
  0x16   : > { %v327_v14 = vmax.f32 %v326_v13, 0.0  ;;  %v350_v12 = vld [vmem:[%s828_s8 + $0x78] sm:$0x3] }
  0x18   : > { %v328_v15 = vadd.f32 1e-05, %v327_v14 }
  0x1a   : > { %736 = vrsqrt.f32 %v328_v15 }
  0x27   : > { %v737_v20 = vpop.eup %736 }
  0x28   : > { %v331_v21 = vmul.f32 %v737_v20, %v330_v18 }
  0x2a   : > { %v333_v28 = vmul.f32 %v331_v21, %v323_v10  ;;  %v841_v29 = vrot.slane %v331_v21, %v357_v19 }
  0x2c   : > { %v334_v36 = vsub.f32 %v332_v22, %v333_v28  ;;  %v359_v37 = vmul.f32 %v841_v29, %v335_v23  ;;  %v360_v38 = vmul.f32 %v841_v29, %v336_v24  ;;  %v361_v39 = vmul.f32 %v841_v29, %v337_v25 }
  0x2d   : > { %v362_v43 = vmul.f32 %v841_v29, %v338_v26  ;;  %v363_v44 = vmul.f32 %v841_v29, %v339_v27  ;;  %v364_v45 = vmul.f32 %v841_v29, %v340_v30  ;;  %v365_v46 = vmul.f32 %v841_v29, %v341_v31  ;;  %v351_v30 = vld [vmem:[%s828_s8 + $0x80] sm:$0xff]  ;;  %v353_v31 = vld [vmem:[%s828_s8 + $0x90] sm:$0xff] }
  0x2e   : > { %v859_v47 = vrot.slane %v334_v36, %v357_v19  ;;  %v366_v48 = vmul.f32 %v841_v29, %v342_v32  ;;  %v367_v49 = vmul.f32 %v841_v29, %v343_v33  ;;  %v368_v50 = vmul.f32 %v841_v29, %v344_v34  ;;  %v352_v36 = vld [vmem:[%s828_s8 + $0x88] sm:$0x3] }
  0x2f   : > { %v369_v51 = vmul.f32 %v841_v29, %v345_v35  ;;  %v370_v52 = vmul.f32 %v841_v29, %v346_v40  ;;  %v371_v53 = vmul.f32 %v841_v29, %v347_v41  ;;  %v372_v54 = vmul.f32 %v841_v29, %v348_v42 }
  0x30   : > { %v385_v55 = vadd.f32 %v859_v47, %v359_v37  ;;  %v386_v56 = vadd.f32 %v859_v47, %v360_v38  ;;  %v387_v57 = vadd.f32 %v859_v47, %v361_v39  ;;  %v388_v58 = vadd.f32 %v859_v47, %v362_v43  ;;  %v354_v37 = vld [vmem:[%s828_s8 + $0x98] sm:$0x3] }
  0x31   : > { %v389_v59 = vadd.f32 %v859_v47, %v363_v44  ;;  %v390_v60 = vadd.f32 %v859_v47, %v364_v45  ;;  %v391_v61 = vadd.f32 %v859_v47, %v365_v46  ;;  %v392_v62 = vadd.f32 %v859_v47, %v366_v48 }
  0x32   : > { %v405_v63 = vmax.f32 %v385_v55, 0.0  ;;  %v406_v0 = vmax.f32 %v386_v56, 0.0  ;;  %v407_v1 = vmax.f32 %v387_v57, 0.0  ;;  %v408_v2 = vmax.f32 %v388_v58, 0.0 }
  0x33   : > { %v409_v3 = vmax.f32 %v389_v59, 0.0  ;;  %v410_v4 = vmax.f32 %v390_v60, 0.0  ;;  %v411_v5 = vmax.f32 %v391_v61, 0.0  ;;  %v412_v6 = vmax.f32 %v392_v62, 0.0 }
  0x34   : > { %v690_v7 = vpack.c.bf16 %v405_v63, %v405_v63  ;;  %v691_v8 = vpack.c.bf16 %v406_v0, %v406_v0  ;;  %v692_v9 = vpack.c.bf16 %v407_v1, %v407_v1  ;;  %v693_v10 = vpack.c.bf16 %v408_v2, %v408_v2 }
  0x35   : > { %v694_v13 = vpack.c.bf16 %v409_v3, %v409_v3  ;;  %v695_v14 = vpack.c.bf16 %v410_v4, %v410_v4  ;;  %v696_v15 = vpack.c.bf16 %v411_v5, %v411_v5  ;;  %v697_v16 = vpack.c.bf16 %v412_v6, %v412_v6 }
  0x36   : > { %505 = vst [vmem:[%s880_s16] sm:$0xf] %v690_v7  ;;  %506 = vst [vmem:[%s880_s16 + $0x4] sm:$0x1] %v691_v8  ;;  %v393_v17 = vadd.f32 %v859_v47, %v367_v49  ;;  %v394_v18 = vadd.f32 %v859_v47, %v368_v50  ;;  %v395_v19 = vadd.f32 %v859_v47, %v369_v51 }
  0x37   : > { %507 = vst [vmem:[%s880_s16 + $0x8] sm:$0xf] %v692_v9  ;;  %508 = vst [vmem:[%s880_s16 + $0xc] sm:$0x1] %v693_v10  ;;  %v396_v20 = vadd.f32 %v859_v47, %v370_v52  ;;  %v397_v21 = vadd.f32 %v859_v47, %v371_v53  ;;  %v398_v22 = vadd.f32 %v859_v47, %v372_v54 }
  0x38   : > { %509 = vst [vmem:[%s880_s16 + $0x10] sm:$0xf] %v694_v13  ;;  %510 = vst [vmem:[%s880_s16 + $0x14] sm:$0x1] %v695_v14  ;;  %v373_v23 = vmul.f32 %v841_v29, %v349_v11  ;;  %v374_v24 = vmul.f32 %v841_v29, %v350_v12  ;;  %v413_v25 = vmax.f32 %v393_v17, 0.0  ;;  %v414_v26 = vmax.f32 %v394_v18, 0.0 }
  0x39   : > { %511 = vst [vmem:[%s880_s16 + $0x18] sm:$0xf] %v696_v15  ;;  %512 = vst [vmem:[%s880_s16 + $0x1c] sm:$0x1] %v697_v16  ;;  %v415_v27 = vmax.f32 %v395_v19, 0.0  ;;  %v416_v28 = vmax.f32 %v396_v20, 0.0  ;;  %v375_v46 = vmul.f32 %v841_v29, %v351_v30  ;;  %v376_v48 = vmul.f32 %v841_v29, %v352_v36 }
  0x3a   : > { %v417_v32 = vmax.f32 %v397_v21, 0.0  ;;  %v418_v33 = vmax.f32 %v398_v22, 0.0  ;;  %v399_v34 = vadd.f32 %v859_v47, %v373_v23  ;;  %v400_v35 = vadd.f32 %v859_v47, %v374_v24 }
  0x3b   : > { %v698_v38 = vpack.c.bf16 %v413_v25, %v413_v25  ;;  %v699_v39 = vpack.c.bf16 %v414_v26, %v414_v26  ;;  %v700_v40 = vpack.c.bf16 %v415_v27, %v415_v27  ;;  %v701_v41 = vpack.c.bf16 %v416_v28, %v416_v28 }
  0x3c   : > { %v702_v42 = vpack.c.bf16 %v417_v32, %v417_v32  ;;  %v703_v43 = vpack.c.bf16 %v418_v33, %v418_v33  ;;  %v419_v44 = vmax.f32 %v399_v34, 0.0  ;;  %v420_v45 = vmax.f32 %v400_v35, 0.0 }
  0x3d   : > { %513 = vst [vmem:[%s880_s16 + $0x20] sm:$0xf] %v698_v38  ;;  %514 = vst [vmem:[%s880_s16 + $0x24] sm:$0x1] %v699_v39  ;;  %v377_v49 = vmul.f32 %v841_v29, %v353_v31  ;;  %v378_v50 = vmul.f32 %v841_v29, %v354_v37  ;;  %v401_v53 = vadd.f32 %v859_v47, %v375_v46 }
  0x3e   : > { %515 = vst [vmem:[%s880_s16 + $0x28] sm:$0xf] %v700_v40  ;;  %516 = vst [vmem:[%s880_s16 + $0x2c] sm:$0x1] %v701_v41  ;;  %v704_v51 = vpack.c.bf16 %v419_v44, %v419_v44  ;;  %v705_v52 = vpack.c.bf16 %v420_v45, %v420_v45  ;;  %v402_v54 = vadd.f32 %v859_v47, %v376_v48 }
  0x3f   : > { %517 = vst [vmem:[%s880_s16 + $0x30] sm:$0xf] %v702_v42  ;;  %518 = vst [vmem:[%s880_s16 + $0x34] sm:$0x1] %v703_v43  ;;  %v403_v55 = vadd.f32 %v859_v47, %v377_v49  ;;  %v404_v56 = vadd.f32 %v859_v47, %v378_v50  ;;  %v421_v57 = vmax.f32 %v401_v53, 0.0 }
  0x40   : > { %519 = vst [vmem:[%s880_s16 + $0x38] sm:$0xf] %v704_v51  ;;  %520 = vst [vmem:[%s880_s16 + $0x3c] sm:$0x1] %v705_v52  ;;  %v422_v29 = vmax.f32 %v402_v54, 0.0 }
  0x41   : > { %v423_v58 = vmax.f32 %v403_v55, 0.0  ;;  %v424_v59 = vmax.f32 %v404_v56, 0.0  ;;  %v706_v60 = vpack.c.bf16 %v421_v57, %v421_v57 }
  0x42   : > { %v707_v61 = vpack.c.bf16 %v422_v29, %v422_v29 }
  0x43   : > { %v708_v62 = vpack.c.bf16 %v423_v58, %v423_v58  ;;  %v709_v63 = vpack.c.bf16 %v424_v59, %v424_v59  ;;  %521 = vst [vmem:[%s880_s16 + $0x40] sm:$0xf] %v706_v60 }
  0x44   : > { %522 = vst [vmem:[%s880_s16 + $0x44] sm:$0x1] %v707_v61 }
  0x45   : > { %523 = vst [vmem:[%s880_s16 + $0x48] sm:$0xf] %v708_v62  ;;  %524 = vst [vmem:[%s880_s16 + $0x4c] sm:$0x1] %v709_v63 }
  0x46 PF: > { %s15_s20 = sadd.s32 1, %s760_s20   ;;  %s941_s18 = smov %s756_s19 }
  0x47   : > { %p12_p5 = scmp.ge.s32.totalorder %s15_s20, 4   ;;  %s942_s19 = smov %s944_s21 }
  0x49   :  { %14 = sbr.rel (!%p12_p5) target bundleno = 2 (0x2), region = 82 }

// kernel: up_forward.9
= control target key start
LH: loop header
LB: loop body
LE: loop exit
PB: predicated region body
PF: predicated region fallthrough
CT: control target
= control target key end

     0   :  { %s594_s18 = smov 0   ;;  %s596_s19 = smov 0   ;;  %s649_s0 = inlined_call_operand.vmem [shape: f32[2,4,4,128], index: 0, kind: input, shape index: {}]   ;;  %s650_s1 = inlined_call_operand.vmem [shape: f32[2,1,128], index: 1, kind: input, shape index: {}]   ;;  %s651_s2 = inlined_call_operand.vmem [shape: f32[2,1,128], index: 2, kind: input, shape index: {}]   ;;  %s652_s3 = inlined_call_operand.vmem [shape: f32[1,128], index: 3, kind: input, shape index: {}]   ;;  %s653_s4 = inlined_call_operand.vmem [shape: f32[1,128], index: 4, kind: input, shape index: {}]   ;;  %s654_s5 = inlined_call_operand.vmem [shape: f32[2,4,4,128], index: 5, kind: output, shape index: {}]  }
   0x1   :  { %s598_s20 = smov 0  }
   0x2 LB: > { %s27_s21 = sadd.s32 1, %s558_s19  ;;  %p505_p0 = scmp.ge.s32.totalorder %s562_s20, 1  ;;  %s562_s20 = sphi %s598_s20, %s15_s20   ;;  %s558_s19 = sphi %s596_s19, %s656_s19   ;;  %s554_s18 = sphi %s594_s18, %s655_s18  }
   0x3   : > { %p29_p1 = scmp.ge.s32.totalorder %s27_s21, 2  ;;  %p238_p2 = scmp.lt.s32.totalorder %s562_s20, 3 }
   0x5   : > { %s658_s21 = smov (%p29_p1, %s27_s21), 0  ;;  %p239_p3 = pnand %p505_p0, %p238_p2 }
   0x6   : > { %p284_p4 = scmp.lt.s32.totalorder (!%p239_p3), %s554_s18, 1 }
   0x7   : > { %242 = sbr.rel (%p239_p3) target bundleno = 54 (0x36), region = 40 }
   0xc   : > { %v312_v0 = vld [vmem:[%s650_s1] sm:$0x1]  ;;  %v313_v1 = vld [vmem:[%s650_s1 + $0x1] sm:$0x1]  ;;  %vm314_vm0 = vcmask 1040384   ;;  %v339_v16 = vlaneseq  ;;  %s660_s18 = smov (!%p284_p4, %s554_s18), 1 }
   0xd   : > { %v315_v2 = vsel %vm314_vm0, %v312_v0, 0.0  ;;  %v316_v3 = vsel %vm314_vm0, %v313_v1, 0.0  ;;  %v318_v4 = vld [vmem:[%s651_s2] sm:$0x1]  ;;  %v319_v5 = vld [vmem:[%s651_s2 + $0x1] sm:$0x1] }
   0xe   : > { %v317_v6 = vadd.f32 %v316_v3, %v315_v2  ;;  %v320_v7 = vsel %vm314_vm0, %v318_v4, 0.0  ;;  %v321_v8 = vsel %vm314_vm0, %v319_v5, 0.0  ;;  %v340_v17 = vshrl.u32 %v339_v16, 7  ;;  %s512_s30 = sshll.u32 %s660_s18, 4  ;;  %v330_v18 = vld [vmem:[%s652_s3] sm:$0x1] }
   0xf   : > { %v322_v9 = vadd.f32 %v321_v8, %v320_v7  ;;  %s291_s10 = scalar_lea.vmem %s649_s0, %s512_s30  ;;  %v332_v22 = vld [vmem:[%s653_s4] sm:$0x1]  ;;  %s311_s15 = scalar_lea.vmem %s654_s5, %s512_s30 }
  0x10   : > { %v323_v10 = vmul.f32 0.03125, %v317_v6  ;;  %v341_v19 = vsub.s32 0, %v340_v17  ;;  %v335_v23 = vld [vmem:[%s291_s10] sm:$0xf]  ;;  %v336_v24 = vld [vmem:[%s291_s10 + $0x4] sm:$0xf] }
  0x11   : > { %v324_v11 = vmul.f32 0.03125, %v322_v9  ;;  %v337_v25 = vld [vmem:[%s291_s10 + $0x8] sm:$0xf]  ;;  %v338_v28 = vld [vmem:[%s291_s10 + $0xc] sm:$0xf] }
  0x12   : > { %v325_v12 = vmul.f32 %v323_v10, %v323_v10 }
  0x14   : > { %v326_v13 = vsub.f32 %v324_v11, %v325_v12 }
  0x16   : > { %v327_v14 = vmax.f32 %v326_v13, 0.0 }
  0x18   : > { %v328_v15 = vadd.f32 1e-05, %v327_v14 }
  0x1a   : > { %538 = vrsqrt.f32 %v328_v15 }
  0x27   : > { %v539_v20 = vpop.eup %538 }
  0x28   : > { %v331_v21 = vmul.f32 %v539_v20, %v330_v18 }
  0x2a   : > { %v333_v26 = vmul.f32 %v331_v21, %v323_v10  ;;  %v342_v27 = vrot.slane %v331_v21, %v341_v19 }
  0x2c   : > { %v334_v29 = vsub.f32 %v332_v22, %v333_v26  ;;  %v343_v30 = vmul.f32 %v342_v27, %v335_v23  ;;  %v344_v31 = vmul.f32 %v342_v27, %v336_v24  ;;  %v345_v32 = vmul.f32 %v342_v27, %v337_v25 }
  0x2d   : > { %v346_v33 = vmul.f32 %v342_v27, %v338_v28 }
  0x2e   : > { %v351_v34 = vrot.slane %v334_v29, %v341_v19 }
  0x30   : > { %v353_v35 = vadd.f32 %v351_v34, %v343_v30  ;;  %v354_v36 = vadd.f32 %v351_v34, %v344_v31  ;;  %v355_v37 = vadd.f32 %v351_v34, %v345_v32  ;;  %v356_v38 = vadd.f32 %v351_v34, %v346_v33 }
  0x32   : > { %v357_v39 = vmax.f32 %v353_v35, 0.0  ;;  %v358_v40 = vmax.f32 %v354_v36, 0.0  ;;  %v359_v41 = vmax.f32 %v355_v37, 0.0  ;;  %v360_v42 = vmax.f32 %v356_v38, 0.0 }
  0x34   : > { %361 = vst [vmem:[%s311_s15] sm:$0xf] %v357_v39  ;;  %362 = vst [vmem:[%s311_s15 + $0x4] sm:$0xf] %v358_v40 }
  0x35   : > { %363 = vst [vmem:[%s311_s15 + $0x8] sm:$0xf] %v359_v41  ;;  %364 = vst [vmem:[%s311_s15 + $0xc] sm:$0xf] %v360_v42 }
  0x36 PF: > { %s15_s20 = sadd.s32 1, %s562_s20   ;;  %s655_s18 = smov %s558_s19 }
  0x37   : > { %p12_p5 = scmp.ge.s32.totalorder %s15_s20, 4   ;;  %s656_s19 = smov %s658_s21 }
  0x39   :  { %14 = sbr.rel (!%p12_p5) target bundleno = 2 (0x2), region = 82 }

// kernel: up_forward.8
= control target key start
LH: loop header
LB: loop body
LE: loop exit
PB: predicated region body
PF: predicated region fallthrough
CT: control target
= control target key end

     0   :  { %10 = vsyncpa [#allocation4], 0  ;;  %s5695_s0 = inlined_call_operand.vmem [shape: bf16[2,12,12,128], index: 0, kind: input, shape index: {}]   ;;  %s5696_s1 = inlined_call_operand.hbm [shape: bf16[9,1152,128], index: 1, kind: input, shape index: {}]   ;;  %s5697_s2 = inlined_call_operand.vmem [shape: f32[2,4,4,128], index: 2, kind: output, shape index: {0}]   ;;  %s5698_s3 = inlined_call_operand.vmem [shape: f32[2,1,128], index: 3, kind: output, shape index: {1}]   ;;  %s5699_s4 = inlined_call_operand.vmem [shape: f32[2,1,128], index: 4, kind: output, shape index: {2}]  }
   0x1   :  { %12 = vsyncpa [#allocation4 + $0x1], 0  ;;  %s4483_s15 = smov 0   ;;  %s4485_s16 = smov 0  }
   0x2   :  { %s4487_s17 = smov 0   ;;  %s4489_s18 = smov 0  }
   0x3   :  { %s4491_s19 = smov 0   ;;  %s4493_s20 = smov 0  }
   0x4   :  { %s4495_s21 = smov 0   ;;  %s4497_s22 = smov 0  }
   0x5 LB: > { %s2913_s23 = sadd.s32 4294967295, %s4450_s22   ;;  %s30_s24 = sadd.s32 1, %s4442_s20  ;;  %s4450_s22 = sphi %s4497_s22, %s18_s22   ;;  %s4446_s21 = sphi %s4495_s21, %s5799_s21   ;;  %s4442_s20 = sphi %s4493_s20, %s5798_s20   ;;  %s4438_s19 = sphi %s4491_s19, %s5797_s19   ;;  %s4434_s18 = sphi %s4489_s18, %s5796_s18   ;;  %s4430_s17 = sphi %s4487_s17, %s5795_s17   ;;  %s4426_s16 = sphi %s4485_s16, %s5794_s16   ;;  %s4422_s15 = sphi %s4483_s15, %s5793_s15  }
   0x6   : > { %p31_p0 = scmp.ge.s32.totalorder %s30_s24, 9  ;;  %s37_s25 = sadd.s32 1, %s4446_s21 }
   0x7   : > { %s72_s26 = sadd.s32 1, %s4430_s17  ;;  %p79_p1 = scmp.ne.s32.totalorder %s4430_s17, %s4426_s16 }
   0x8   : > { %s5801_s24 = smov (%p31_p0, %s30_s24), 0  ;;  %s5803_s25 = smov (!%p31_p0, %s37_s25), %s4446_s21 }
   0x9   : > { %s67_s27 = ssub.s32 %s4442_s20, %s5801_s24  ;;  %p80_p2 = scmp.eq.s32.totalorder %s4450_s22, 0 }
   0xa   : > { %p39_p3 = scmp.ge.s32.totalorder %s5803_s25, 2  ;;  %p70_p4 = scmp.eq.s32.totalorder %s67_s27, 0 }
   0xb   : > { %p81_p5 = por %p80_p2, %p79_p1  ;;  %p85_p6 = scmp.ne.s32.totalorder %s4426_s16, %s4422_s15 }
   0xc   : > { %s5805_s25 = smov (%p39_p3, %s5803_s25), 0  ;;  %p86_p7 = scmp.eq.s32.totalorder %s2913_s23, 0 }
   0xd   : > { %s4537_s28 = scalar_select %p70_p4, %s4430_s17, %s72_s26  }
   0xe   : > { %p4114_p8 = scmp.lt.s32.totalorder %s4450_s22, 18  ;;  %s201_s29 = sand.u32 1, %s4430_s17  }
   0xf   : > { %p4541_p9 = por %p86_p7, %p85_p6  ;;  %s4104_s5 = smul.u32 576, %s201_s29 }
  0x10   : > { %p4545_p10 = pnand %p4114_p8, %p81_p5  ;;  %s4105_s7 = smul.u32 9216, %s4442_s20 }
  0x11   : > { %s205_s11 = scalar_lea.vmem [#allocation3], %s4104_s5  ;;  %s202_s13 = scalar_lea.sflag [#allocation4], %s201_s29 }
  0x12   : > { %s212_s10 = scalar_lea.hbm %s5696_s1, %s4105_s7  ;;  %s213_s12 = sshll.u32 %s205_s11, 4  ;;  %s214_s12 = int_to_ptr.vmem [resolvable:$true] %s213_s12 }
  0x13   : > { %p4358_p11 = pneg %p4545_p10  ;;  %s4369_s14 = scalar_lea.vmem %s214_s12, 9216 }
  0x14   : > { %p4370_p12 = scmp.ne.s32.totalorder %s214_s12, %s4369_s14  ;;  %s4452_s15 = smov [#allocation3]  }
  0x15   : > { %s4374_s23 = sshll.u32 %s4452_s15, 4  ;;  %s4375_s23 = int_to_ptr.vmem [resolvable:$false] %s4374_s23 }
  0x16   : > { %p4372_p13 = pnand %p4370_p12, %p4358_p11  ;;  %s4376_s26 = scalar_lea.vmem %s4375_s23, 18432 }
  0x17   : > { %p4377_p1 = scmp.lt.s32.totalorder %s214_s12, %s4375_s23  ;;  %p4378_p2 = scmp.lt.s32.totalorder %s4376_s26, %s4369_s14 }
  0x18   : > { %p4373_p0 = pneg %p4372_p13 }
  0x19   : > { %p4379_p3 = por %p4378_p2, %p4377_p1 }
  0x1b   : > { %p4380_p4 = pnand %p4379_p3, %p4373_p0 }
  0x1d   : > { %4383 = shalt.err (!%p4380_p4)
}
  0x1e   : > { %s4453_s27 = smov 64   ;;  %s4454_s29 = smov 4  }
  0x1f   : > { %4113 = dma.hbm_to_vmem [thread:$0]  (!%p4545_p10), %s212_s10, 9216, %s214_s12, %s202_s13, %s4453_s27, %s4453_s27, %s4454_s29  }
  0x20   : > { %p2918_p5 = scmp.ge.s32.totalorder %s4450_s22, 1  ;;  %p221_p6 = scmp.lt.s32.totalorder %s4450_s22, 19 }
  0x22   : > { %p222_p7 = pnand %p2918_p5, %p221_p6 }
  0x24   : > { %225 = sbr.rel (%p222_p7) target bundleno = 859 (0x35b), region = 28 }
  0x29   : > { %s227_s5 = sand.u32 1, %s4426_s16  }
  0x2a   : > { %s4106_s7 = smul.u32 576, %s227_s5  ;;  %s228_s8 = scalar_lea.sflag [#allocation4], %s227_s5 }
  0x2c   : > { %s4560_s9 = scalar_lea.vmem [#allocation3], %s4106_s7 }
  0x2d   : > { %4417 = dma.done.wait (%p4541_p9), %s228_s8, 9216  }
  0x2e   : > { %4419 = vsyncadd (%p4541_p9), %s228_s8, 4294958080  ;;  %p276_p8 = scmp.lt.s32.totalorder %s4438_s19, 1  ;;  %p2922_p9 = scmp.ne.s32.totalorder %s4434_s18, 0 }
  0x30   : > { %s5807_s19 = smov (!%p276_p8, %s4438_s19), 1  ;;  %305 = sbr.rel (%p2922_p9) target bundleno = 56 (0x38), region = 36 }
  0x31   : > { %s4107_s6 = smul.u32 96, %s5807_s19  ;;  %s3058_s10 = sshll.u32 %s5807_s19, 4 }
  0x32   : > { %s4575_s13 = scalar_lea.vmem %s5697_s2, %s3058_s10  ;;  %s294_s30 = scalar_lea.vmem %s5698_s3, %s5807_s19 }
  0x33   : > { %s4584_s27 = scalar_lea.vmem %s5695_s0, %s4107_s6  ;;  %s300_s7 = scalar_lea.vmem %s5699_s4, %s5807_s19 }
  0x35   : > { %v4455_v0 = vmov 0.0  }
  0x36   : > { %306 = vst [vmem:[#allocation2] sm:$0xf] %v4455_v0  ;;  %307 = vst [vmem:[#allocation2 + $0x4] sm:$0xf] %v4455_v0 }
  0x37   : > { %308 = vst [vmem:[#allocation2 + $0x8] sm:$0xf] %v4455_v0  ;;  %309 = vst [vmem:[#allocation2 + $0xc] sm:$0xf] %v4455_v0 }
  0x38 PF: > { %v4592_v1 = vld [vmem:[%s4560_s9 + $0x78] sm:$0xff]   ;;  %v4456_v2 = vmov 0.0   ;;  %v4601_v4 = vld [vmem:[%s4560_s9 + $0x70] sm:$0xff]   ;;  %vm4457_vm0 = vmmov 0   ;;  %v4615_v6 = vld [vmem:[%s4560_s9 + $0x68] sm:$0xff]   ;;  %s3059_s8 = sshll.u32 %s4434_s18, 3 }
  0x39   : > { %3384 = vmatprep.subr.bf16.mxu0 %v4456_v2  ;;  %3404 = vmatprep.subr.bf16.mxu1 %v4456_v2  ;;  %v4597_v3 = vld [vmem:[%s4560_s9 + $0x38] sm:$0xff]   ;;  %v4608_v5 = vld [vmem:[%s4560_s9 + $0x30] sm:$0xff]   ;;  %v4620_v7 = vld [vmem:[%s4560_s9 + $0x28] sm:$0xff]   ;;  %s4635_s6 = scalar_lea.vmem %s4584_s27, %s3059_s8  ;;  %p3055_p10 = scmp.ne.s32.totalorder %s4434_s18, 8 }
  0x3a   : > { %3385 = vmatpush3.bf16.msra.mxu0 %v4592_v1  ;;  %3400 = vmatprep.mubr.msk.bf16.mxu0 %vm4457_vm0, %v4456_v2  ;;  %v4625_v8 = vld [vmem:[%s4560_s9 + $0x60] sm:$0xff]   ;;  %v4639_v10 = vld [vmem:[%s4560_s9 + $0x58] sm:$0xff]   ;;  %v4200_v12 = vld [vmem:[%s4635_s6] ss:$0 sps:$4 sm:$0x77]  }
  0x3b   : > { %3405 = vmatpush3.bf16.msra.mxu1 %v4597_v3  ;;  %3386 = vmatprep.subr.bf16.mxu0 %v4456_v2  ;;  %v4631_v9 = vld [vmem:[%s4560_s9 + $0x20] sm:$0xff]   ;;  %v4644_v11 = vld [vmem:[%s4560_s9 + $0x18] sm:$0xff]   ;;  %v4650_v13 = vld [vmem:[%s4560_s9 + $0x50] sm:$0xff]   ;;  %v465_v15 = vshll.u32 %v4200_v12, 16  ;;  %v463_v18 = vshrl.u32 %v4200_v12, 16 }
  0x3c   : > { %3406 = vmatprep.subr.bf16.mxu1 %v4456_v2  ;;  %3420 = vmatprep.mubr.msk.bf16.mxu1 %vm4457_vm0, %v4456_v2  ;;  %v4655_v14 = vld [vmem:[%s4560_s9 + $0x10] sm:$0xff]   ;;  %v4660_v16 = vld [vmem:[%s4560_s9 + $0x48] sm:$0xff]   ;;  %v4670_v20 = vld [vmem:[%s4560_s9 + $0x40] sm:$0xff]  }
  0x3d   : > { %v4665_v17 = vld [vmem:[%s4560_s9 + $0x8] sm:$0xff]   ;;  %v467_v19 = vrot.slane %v465_v15, 1  ;;  %v4675_v21 = vld [vmem:[%s4560_s9] sm:$0xff]   ;;  %v4679_v23 = vld [vmem:[%s4560_s9 + $0xb8] sm:$0xff]  }
  0x3e   : > { %3387 = vmatpush3.bf16.msra.mxu0 %v4601_v4  ;;  %v457_v24 = vld [vmem:[%s4635_s6] sm:$0x3]  ;;  %v4686_v25 = vld [vmem:[%s4560_s9 + $0xf8] sm:$0xff]   ;;  %v4705_v28 = vld [vmem:[%s4560_s9 + $0xa8] sm:$0xff]  }
  0x3f   : > { %3407 = vmatpush3.bf16.msra.mxu1 %v4608_v5  ;;  %3388 = vmatprep.subr.bf16.mxu0 %v4456_v2  ;;  %v468_v22 = vor.u32 %v467_v19, %v463_v18  ;;  %v4691_v26 = vld [vmem:[%s4560_s9 + $0xb0] sm:$0xff]   ;;  %v4710_v29 = vld [vmem:[%s4560_s9 + $0xe8] sm:$0xff]   ;;  %v4715_v30 = vld [vmem:[%s4560_s9 + $0xa0] sm:$0xff]  }
  0x40   : > { %3408 = vmatprep.subr.bf16.mxu1 %v4456_v2  ;;  %v4696_v27 = vld [vmem:[%s4560_s9 + $0xf0] sm:$0xff]   ;;  %v4720_v31 = vld [vmem:[%s4560_s9 + $0xe0] sm:$0xff]   ;;  %v4725_v32 = vld [vmem:[%s4560_s9 + $0x98] sm:$0xff]  }
  0x41   : > { %v4730_v33 = vld [vmem:[%s4560_s9 + $0xd8] sm:$0xff]   ;;  %v4218_v34 = vld [vmem:[%s4635_s6] ss:$0 sps:$4 sm:$0xee]   ;;  %v4746_v39 = vld [vmem:[%s4560_s9 + $0x88] sm:$0xff]  }
  0x42   : > { %3389 = vmatpush3.bf16.msra.mxu0 %v4615_v6  ;;  %v4736_v35 = vld [vmem:[%s4560_s9 + $0x90] sm:$0xff]   ;;  %v746_v37 = vshrl.u32 %v4218_v34, 16  ;;  %v749_v38 = vshll.u32 %v4218_v34, 16  ;;  %v4751_v40 = vld [vmem:[%s4560_s9 + $0xc8] sm:$0xff]   ;;  %v4756_v42 = vld [vmem:[%s4560_s9 + $0x80] sm:$0xff]  }
  0x43   : > { %3409 = vmatpush3.bf16.msra.mxu1 %v4620_v7  ;;  %3390 = vmatprep.subr.bf16.mxu0 %v4456_v2  ;;  %v4741_v36 = vld [vmem:[%s4560_s9 + $0xd0] sm:$0xff]   ;;  %v4762_v45 = vld [vmem:[%s4560_s9 + $0xc0] sm:$0xff]   ;;  %v4767_v48 = vld [vmem:[%s4560_s9 + $0x138] sm:$0xff]  }
  0x44   : > { %3410 = vmatprep.subr.bf16.mxu1 %v4456_v2  ;;  %v4217_v41 = vld [vmem:[%s4635_s6] ss:$0 sps:$4 sm:$0x66]   ;;  %v748_v43 = vrot.slane %v746_v37, 1  ;;  %v751_v44 = vrot.slane %v749_v38, 2  ;;  %v4772_v49 = vld [vmem:[%s4560_s9 + $0x178] sm:$0xff]  }
  0x45   : > { %v650_v46 = vrot.slane %v4217_v41, 1  ;;  %v4777_v50 = vld [vmem:[%s4560_s9 + $0x130] sm:$0xff]   ;;  %v4791_v52 = vld [vmem:[%s4560_s9 + $0x128] sm:$0xff]   ;;  %v4801_v54 = vld [vmem:[%s4560_s9 + $0x120] sm:$0xff]  }
  0x46   : > { %3391 = vmatpush3.bf16.msra.mxu0 %v4625_v8  ;;  %v752_v47 = vor.u32 %v751_v44, %v748_v43  ;;  %v4782_v51 = vld [vmem:[%s4560_s9 + $0x170] sm:$0xff]   ;;  %v4796_v53 = vld [vmem:[%s4560_s9 + $0x168] sm:$0xff]   ;;  %v4804_v55 = vld [vmem:[%s4560_s9 + $0x160] sm:$0xff]  }
  0x47   : > { %3411 = vmatpush3.bf16.msra.mxu1 %v4631_v9  ;;  %3392 = vmatprep.subr.bf16.mxu0 %v4456_v2  ;;  %v4811_v56 = vld [vmem:[%s4560_s9 + $0x118] sm:$0xff]   ;;  %v938_v58 = vld [vmem:[%s4635_s6] sm:$0xc]  ;;  %v4820_v59 = vld [vmem:[%s4635_s6 + $0x4] sm:$0x1] }
  0x48   : > { %3412 = vmatprep.subr.bf16.mxu1 %v4456_v2  ;;  %v4816_v57 = vld [vmem:[%s4560_s9 + $0x158] sm:$0xff]   ;;  %v4824_v60 = vld [vmem:[%s4560_s9 + $0x110] sm:$0xff]   ;;  %v2969_v61 = vcombine.low %v938_v58, %v4820_v59  ;;  %v4836_v63 = vld [vmem:[%s4560_s9 + $0x108] sm:$0xff]  }
  0x49   : > { %v4831_v62 = vld [vmem:[%s4560_s9 + $0x150] sm:$0xff]   ;;  %v4841_v15 = vld [vmem:[%s4560_s9 + $0x148] sm:$0xff]   ;;  %v4847_v19 = vld [vmem:[%s4560_s9 + $0x100] sm:$0xff]  }
  0x4a   : > { %3393 = vmatpush3.bf16.msra.mxu0 %v4639_v10  ;;  %5739 = vst [vmem:[#allocation6_spill] sm:$0xff] %v4831_v62  ;;  %v946_v0 = vshrl.u32 %v2969_v61, 16  ;;  %v949_v12 = vshll.u32 %v2969_v61, 16  ;;  %5740 = vst [vmem:[#allocation7_spill] sm:$0xff] %v4841_v15  ;;  %v4852_v34 = vld [vmem:[%s4560_s9 + $0x140] sm:$0xff]   ;;  %v4857_v41 = vld [vmem:[%s4560_s9 + $0x1b8] sm:$0xff]  }
  0x4b   : > { %3413 = vmatpush3.bf16.msra.mxu1 %v4644_v11  ;;  %3394 = vmatprep.subr.bf16.mxu0 %v4456_v2  ;;  %v4235_v18 = vld [vmem:[%s4635_s6] ss:$0 sps:$4 sm:$0xcc]   ;;  %5741 = vst [vmem:[#allocation8_spill] sm:$0xff] %v4852_v34  ;;  %v4862_v43 = vld [vmem:[%s4560_s9 + $0x1f8] sm:$0xff]   ;;  %v4886_v58 = vld [vmem:[%s4560_s9 + $0x1e8] sm:$0xff]  }
  0x4c   : > { %3414 = vmatprep.subr.bf16.mxu1 %v4456_v2  ;;  %v847_v37 = vrot.slane %v4235_v18, 2  ;;  %5742 = vst [vmem:[#allocation9_spill] sm:$0xff] %v4862_v43  ;;  %v4867_v44 = vld [vmem:[%s4560_s9 + $0x1b0] sm:$0xff]   ;;  %5744 = vst [vmem:[#allocation11_spill] sm:$0xff] %v4886_v58  ;;  %v4891_v61 = vld [vmem:[%s4560_s9 + $0x1a0] sm:$0xff]  }
  0x4d   : > { %v4906_v18 = vld [vmem:[%s4560_s9 + $0x1d8] sm:$0xff]  }
  0x4e   : > { %3395 = vmatpush3.bf16.msra.mxu0 %v4650_v13  ;;  %5746 = vst [vmem:[#allocation13_spill] sm:$0xff] %v4906_v18 }
  0x4f   : > { %3415 = vmatpush3.bf16.msra.mxu1 %v4655_v14  ;;  %3396 = vmatprep.subr.bf16.mxu0 %v4456_v2 }
  0x50   : > { %3416 = vmatprep.subr.bf16.mxu1 %v4456_v2 }
  0x52   : > { %3397 = vmatpush3.bf16.msra.mxu0 %v4660_v16 }
  0x53   : > { %3417 = vmatpush3.bf16.msra.mxu1 %v4665_v17  ;;  %3398 = vmatprep.subr.bf16.mxu0 %v4456_v2 }
  0x54   : > { %3418 = vmatprep.subr.bf16.mxu1 %v4456_v2 }
  0x56   : > { %3399 = vmatpush3.bf16.msra.mxu0 %v4670_v20 }
  0x57   : > { %3419 = vmatpush3.bf16.msra.mxu1 %v4675_v21  ;;  %3424 = vmatprep.subr.bf16.mxu0 %v4456_v2 }
  0x58   : > { %3444 = vmatprep.subr.bf16.mxu1 %v4456_v2 }
  0x59   : > { %3401 = vmatmul.mubr.bf16.vlgmr.msra.gmra.mxu0 %v468_v22  ;;  %v948_v22 = vrot.slane %v946_v0, 2  ;;  %v4896_v0 = vld [vmem:[%s4560_s9 + $0x1e0] sm:$0xff]  }
  0x5a   : > { %3421 = vmatmul.mubr.bf16.vlgmr.msra.gmra.mxu1 %v457_v24  ;;  %3425 = vmatpush3.bf16.msra.mxu0 %v4679_v23  ;;  %v951_v24 = vrot.slane %v949_v12, 3  ;;  %5745 = vst [vmem:[#allocation12_spill] sm:$0xff] %v4896_v0  ;;  %v4901_v12 = vld [vmem:[%s4560_s9 + $0x198] sm:$0xff]  }
  0x5b   : > { %3445 = vmatpush3.bf16.msra.mxu1 %v4686_v25  ;;  %3426 = vmatprep.subr.bf16.mxu0 %v4456_v2 }
  0x5c   : > { %3446 = vmatprep.subr.bf16.mxu1 %v4456_v2  ;;  %3440 = vmatprep.mubr.msk.bf16.mxu0 %vm4457_vm0, %v4456_v2  ;;  %v952_v38 = vor.u32 %v951_v24, %v948_v22  ;;  %v1043_v22 = vld [vmem:[%s4635_s6] sm:$0x8]  ;;  %v4910_v24 = vld [vmem:[%s4635_s6 + $0x4] sm:$0x3] }
  0x5d   : > { %3460 = vmatprep.mubr.msk.bf16.mxu1 %vm4457_vm0, %v4456_v2 }
  0x5e   : > { %3427 = vmatpush3.bf16.msra.mxu0 %v4691_v26 }
  0x5f   : > { %3447 = vmatpush3.bf16.msra.mxu1 %v4696_v27  ;;  %3428 = vmatprep.subr.bf16.mxu0 %v4456_v2 }
  0x60   : > { %3448 = vmatprep.subr.bf16.mxu1 %v4456_v2 }
  0x62   : > { %3429 = vmatpush3.bf16.msra.mxu0 %v4705_v28 }
  0x63   : > { %3449 = vmatpush3.bf16.msra.mxu1 %v4710_v29  ;;  %3430 = vmatprep.subr.bf16.mxu0 %v4456_v2 }
  0x64   : > { %3450 = vmatprep.subr.bf16.mxu1 %v4456_v2 }
  0x66   : > { %3431 = vmatpush3.bf16.msra.mxu0 %v4715_v30 }
  0x67   : > { %3451 = vmatpush3.bf16.msra.mxu1 %v4720_v31  ;;  %3432 = vmatprep.subr.bf16.mxu0 %v4456_v2 }
  0x68   : > { %3452 = vmatprep.subr.bf16.mxu1 %v4456_v2 }
  0x6a   : > { %3433 = vmatpush3.bf16.msra.mxu0 %v4725_v32 }
  0x6b   : > { %3453 = vmatpush3.bf16.msra.mxu1 %v4730_v33  ;;  %3434 = vmatprep.subr.bf16.mxu0 %v4456_v2 }
  0x6c   : > { %3454 = vmatprep.subr.bf16.mxu1 %v4456_v2 }
  0x6e   : > { %3435 = vmatpush3.bf16.msra.mxu0 %v4736_v35 }
  0x6f   : > { %3455 = vmatpush3.bf16.msra.mxu1 %v4741_v36  ;;  %3436 = vmatprep.subr.bf16.mxu0 %v4456_v2 }
  0x70   : > { %3456 = vmatprep.subr.bf16.mxu1 %v4456_v2 }
  0x72   : > { %3437 = vmatpush3.bf16.msra.mxu0 %v4746_v39 }
  0x73   : > { %3457 = vmatpush3.bf16.msra.mxu1 %v4751_v40  ;;  %3438 = vmatprep.subr.bf16.mxu0 %v4456_v2 }
  0x74   : > { %3458 = vmatprep.subr.bf16.mxu1 %v4456_v2 }
  0x76   : > { %3439 = vmatpush3.bf16.msra.mxu0 %v4756_v42 }
  0x77   : > { %3459 = vmatpush3.bf16.msra.mxu1 %v4762_v45  ;;  %3464 = vmatprep.subr.bf16.mxu0 %v4456_v2 }
  0x78   : > { %3484 = vmatprep.subr.bf16.mxu1 %v4456_v2 }
  0x79   : > { %3441 = vmatmul.mubr.bf16.vlgmr.msra.gmra.mxu0 %v650_v46  ;;  %v4872_v46 = vld [vmem:[%s4560_s9 + $0x1f0] sm:$0xff]  }
  0x7a   : > { %3461 = vmatmul.mubr.bf16.vlgmr.msra.gmra.mxu1 %v752_v47  ;;  %3465 = vmatpush3.bf16.msra.mxu0 %v4767_v48  ;;  %5743 = vst [vmem:[#allocation10_spill] sm:$0xff] %v4872_v46  ;;  %v4881_v47 = vld [vmem:[%s4560_s9 + $0x1a8] sm:$0xff]  }
  0x7b   : > { %3485 = vmatpush3.bf16.msra.mxu1 %v4772_v49  ;;  %3466 = vmatprep.subr.bf16.mxu0 %v4456_v2 }
  0x7c   : > { %3486 = vmatprep.subr.bf16.mxu1 %v4456_v2  ;;  %3480 = vmatprep.mubr.msk.bf16.mxu0 %vm4457_vm0, %v4456_v2 }
  0x7d   : > { %3500 = vmatprep.mubr.msk.bf16.mxu1 %vm4457_vm0, %v4456_v2 }
  0x7e   : > { %3467 = vmatpush3.bf16.msra.mxu0 %v4777_v50 }
  0x7f   : > { %3487 = vmatpush3.bf16.msra.mxu1 %v4782_v51  ;;  %3468 = vmatprep.subr.bf16.mxu0 %v4456_v2 }
  0x80   : > { %3488 = vmatprep.subr.bf16.mxu1 %v4456_v2 }
  0x82   : > { %3469 = vmatpush3.bf16.msra.mxu0 %v4791_v52 }
  0x83   : > { %3489 = vmatpush3.bf16.msra.mxu1 %v4796_v53  ;;  %3470 = vmatprep.subr.bf16.mxu0 %v4456_v2 }
  0x84   : > { %3490 = vmatprep.subr.bf16.mxu1 %v4456_v2 }
  0x86   : > { %3471 = vmatpush3.bf16.msra.mxu0 %v4801_v54 }
  0x87   : > { %3491 = vmatpush3.bf16.msra.mxu1 %v4804_v55  ;;  %3472 = vmatprep.subr.bf16.mxu0 %v4456_v2 }
  0x88   : > { %3492 = vmatprep.subr.bf16.mxu1 %v4456_v2 }
  0x8a   : > { %3473 = vmatpush3.bf16.msra.mxu0 %v4811_v56 }
  0x8b   : > { %3493 = vmatpush3.bf16.msra.mxu1 %v4816_v57  ;;  %3474 = vmatprep.subr.bf16.mxu0 %v4456_v2 }
  0x8c   : > { %3494 = vmatprep.subr.bf16.mxu1 %v4456_v2 }
  0x8e   : > { %3475 = vmatpush3.bf16.msra.mxu0 %v4824_v60 }
  0x8f   : > { %3495 = vmatpush3.bf16.msra.mxu1 %v4831_v62  ;;  %3476 = vmatprep.subr.bf16.mxu0 %v4456_v2 }
  0x90   : > { %3496 = vmatprep.subr.bf16.mxu1 %v4456_v2 }
  0x92   : > { %3477 = vmatpush3.bf16.msra.mxu0 %v4836_v63 }
  0x93   : > { %3497 = vmatpush3.bf16.msra.mxu1 %v4841_v15  ;;  %3478 = vmatprep.subr.bf16.mxu0 %v4456_v2  ;;  %v4937_v15 = vld [vmem:[%s4560_s9 + $0x180] sm:$0xff]  }
  0x94   : > { %3498 = vmatprep.subr.bf16.mxu1 %v4456_v2 }
  0x96   : > { %3479 = vmatpush3.bf16.msra.mxu0 %v4847_v19 }
  0x97   : > { %3499 = vmatpush3.bf16.msra.mxu1 %v4852_v34  ;;  %3504 = vmatprep.subr.bf16.mxu0 %v4456_v2  ;;  %v4931_v34 = vld [vmem:[%s4560_s9 + $0x1c8] sm:$0xff]  }
  0x98   : > { %3524 = vmatprep.subr.bf16.mxu1 %v4456_v2 }
  0x99   : > { %3481 = vmatmul.mubr.bf16.vlgmr.msra.gmra.mxu0 %v847_v37  ;;  %v4915_v37 = vld [vmem:[%s4560_s9 + $0x190] sm:$0xff]  }
  0x9a   : > { %3501 = vmatmul.mubr.bf16.vlgmr.msra.gmra.mxu1 %v952_v38  ;;  %3505 = vmatpush3.bf16.msra.mxu0 %v4857_v41  ;;  %5747 = vst [vmem:[#allocation14_spill] sm:$0xff] %v4915_v37  ;;  %v2987_v38 = vcombine.low %v1043_v22, %v4910_v24 }
  0x9b   : > { %3525 = vmatpush3.bf16.msra.mxu1 %v4862_v43  ;;  %3506 = vmatprep.subr.bf16.mxu0 %v4456_v2 }
  0x9c   : > { %3526 = vmatprep.subr.bf16.mxu1 %v4456_v2  ;;  %3520 = vmatprep.mubr.msk.bf16.mxu0 %vm4457_vm0, %v4456_v2  ;;  %v1146_v43 = vshll.u32 %v2987_v38, 16 }
  0x9d   : > { %3540 = vmatprep.mubr.msk.bf16.mxu1 %vm4457_vm0, %v4456_v2 }
  0x9e   : > { %3507 = vmatpush3.bf16.msra.mxu0 %v4867_v44  ;;  %v1148_v62 = vrot.slane %v1146_v43, 4  ;;  %v4954_v43 = vld [vmem:[%s4560_s9 + $0x230] sm:$0xff]  }
  0x9f   : > { %3527 = vmatpush3.bf16.msra.mxu1 %v4872_v46  ;;  %3508 = vmatprep.subr.bf16.mxu0 %v4456_v2  ;;  %v1143_v46 = vshrl.u32 %v2987_v38, 16  ;;  %v4942_v38 = vld [vmem:[%s4560_s9 + $0x1c0] sm:$0xff]  }
  0xa0   : > { %3528 = vmatprep.subr.bf16.mxu1 %v4456_v2 }
  0xa2   : > { %3509 = vmatpush3.bf16.msra.mxu0 %v4881_v47 }
  0xa3   : > { %3529 = vmatpush3.bf16.msra.mxu1 %v4886_v58  ;;  %3510 = vmatprep.subr.bf16.mxu0 %v4456_v2  ;;  %v4926_v58 = vld [vmem:[%s4560_s9 + $0x188] sm:$0xff]  }
  0xa4   : > { %3530 = vmatprep.subr.bf16.mxu1 %v4456_v2 }
  0xa6   : > { %3511 = vmatpush3.bf16.msra.mxu0 %v4891_v61 }
  0xa7   : > { %3531 = vmatpush3.bf16.msra.mxu1 %v4896_v0  ;;  %3512 = vmatprep.subr.bf16.mxu0 %v4456_v2  ;;  %v4921_v0 = vld [vmem:[%s4560_s9 + $0x1d0] sm:$0xff]  }
  0xa8   : > { %3532 = vmatprep.subr.bf16.mxu1 %v4456_v2  ;;  %5748 = vst [vmem:[#allocation15_spill] sm:$0xff] %v4921_v0 }
  0xaa   : > { %3513 = vmatpush3.bf16.msra.mxu0 %v4901_v12 }
  0xab   : > { %3533 = vmatpush3.bf16.msra.mxu1 %v4906_v18  ;;  %3514 = vmatprep.subr.bf16.mxu0 %v4456_v2  ;;  %v2978_v18 = vcombine.low %v1043_v22, %v4820_v59  ;;  %v4947_v22 = vld [vmem:[%s4560_s9 + $0x238] sm:$0xff]  }
  0xac   : > { %3534 = vmatprep.subr.bf16.mxu1 %v4456_v2 }
  0xae   : > { %3515 = vmatpush3.bf16.msra.mxu0 %v4915_v37  ;;  %v1145_v37 = vrot.slane %v1143_v46, 3  ;;  %v4979_v46 = vld [vmem:[%s4560_s9 + $0x218] sm:$0xff]  }
  0xaf   : > { %3535 = vmatpush3.bf16.msra.mxu1 %v4921_v0  ;;  %3516 = vmatprep.subr.bf16.mxu0 %v4456_v2  ;;  %v1047_v0 = vrot.slane %v2978_v18, 3  ;;  %v5001_v18 = vld [vmem:[%s4560_s9 + $0x200] sm:$0xff]  }
  0xb0   : > { %3536 = vmatprep.subr.bf16.mxu1 %v4456_v2  ;;  %v1149_v59 = vor.u32 %v1148_v62, %v1145_v37  ;;  %v4965_v62 = vld [vmem:[%s4560_s9 + $0x228] sm:$0xff]  }
  0xb2   : > { %3517 = vmatpush3.bf16.msra.mxu0 %v4926_v58 }
  0xb3   : > { %3537 = vmatpush3.bf16.msra.mxu1 %v4931_v34  ;;  %3518 = vmatprep.subr.bf16.mxu0 %v4456_v2 }
  0xb4   : > { %3538 = vmatprep.subr.bf16.mxu1 %v4456_v2 }
  0xb6   : > { %3519 = vmatpush3.bf16.msra.mxu0 %v4937_v15 }
  0xb7   : > { %3539 = vmatpush3.bf16.msra.mxu1 %v4942_v38  ;;  %3544 = vmatprep.subr.bf16.mxu0 %v4456_v2 }
  0xb8   : > { %3564 = vmatprep.subr.bf16.mxu1 %v4456_v2 }
  0xb9   : > { %3521 = vmatmul.mubr.bf16.vlgmr.msra.gmra.mxu0 %v1047_v0  ;;  %v4994_v0 = vld [vmem:[%s4560_s9 + $0x208] sm:$0xff]  }
  0xba   : > { %3541 = vmatmul.mubr.bf16.vlgmr.msra.gmra.mxu1 %v1149_v59  ;;  %3545 = vmatpush3.bf16.msra.mxu0 %v4947_v22 }
  0xbb   : > { %3565 = vmatpush3.bf16.msra.mxu1 %v4592_v1  ;;  %3546 = vmatprep.subr.bf16.mxu0 %v4456_v2  ;;  %v4972_v1 = vld [vmem:[%s4560_s9 + $0x220] sm:$0xff]  }
  0xbc   : > { %3566 = vmatprep.subr.bf16.mxu1 %v4456_v2  ;;  %3560 = vmatprep.mubr.msk.bf16.mxu0 %vm4457_vm0, %v4456_v2 }
  0xbd   : > { %3580 = vmatprep.mubr.msk.bf16.mxu1 %vm4457_vm0, %v4456_v2 }
  0xbe   : > { %3547 = vmatpush3.bf16.msra.mxu0 %v4954_v43 }
  0xbf   : > { %3567 = vmatpush3.bf16.msra.mxu1 %v4601_v4  ;;  %3548 = vmatprep.subr.bf16.mxu0 %v4456_v2  ;;  %v4986_v4 = vld [vmem:[%s4560_s9 + $0x210] sm:$0xff]  }
  0xc0   : > { %3568 = vmatprep.subr.bf16.mxu1 %v4456_v2 }
  0xc2   : > { %3549 = vmatpush3.bf16.msra.mxu0 %v4965_v62 }
  0xc3   : > { %3569 = vmatpush3.bf16.msra.mxu1 %v4615_v6  ;;  %3550 = vmatprep.subr.bf16.mxu0 %v4456_v2  ;;  %v4263_v6 = vld [vmem:[%s4635_s6 + $0x8] ss:$0 sps:$4 sm:$0x77]  }
  0xc4   : > { %3570 = vmatprep.subr.bf16.mxu1 %v4456_v2 }
  0xc6   : > { %3551 = vmatpush3.bf16.msra.mxu0 %v4972_v1 }
  0xc7   : > { %3571 = vmatpush3.bf16.msra.mxu1 %v4625_v8  ;;  %3552 = vmatprep.subr.bf16.mxu0 %v4456_v2  ;;  %v1344_v8 = vshll.u32 %v4263_v6, 16 }
  0xc8   : > { %3572 = vmatprep.subr.bf16.mxu1 %v4456_v2 }
  0xc9   : > { %v1346_v37 = vrot.slane %v1344_v8, 1  ;;  %v5752_v8 = vld [vmem:[#allocation8_spill] sm:$0xff] }
  0xca   : > { %3553 = vmatpush3.bf16.msra.mxu0 %v4979_v46 }
  0xcb   : > { %3573 = vmatpush3.bf16.msra.mxu1 %v4639_v10  ;;  %3554 = vmatprep.subr.bf16.mxu0 %v4456_v2  ;;  %v1342_v10 = vshrl.u32 %v4263_v6, 16 }
  0xcc   : > { %3574 = vmatprep.subr.bf16.mxu1 %v4456_v2 }
  0xcd   : > { %v1347_v59 = vor.u32 %v1346_v37, %v1342_v10 }
  0xce   : > { %3555 = vmatpush3.bf16.msra.mxu0 %v4986_v4 }
  0xcf   : > { %3575 = vmatpush3.bf16.msra.mxu1 %v4650_v13  ;;  %3556 = vmatprep.subr.bf16.mxu0 %v4456_v2 }
  0xd0   : > { %3576 = vmatprep.subr.bf16.mxu1 %v4456_v2 }
  0xd2   : > { %3557 = vmatpush3.bf16.msra.mxu0 %v4994_v0 }
  0xd3   : > { %3577 = vmatpush3.bf16.msra.mxu1 %v4660_v16  ;;  %3558 = vmatprep.subr.bf16.mxu0 %v4456_v2 }
  0xd4   : > { %3578 = vmatprep.subr.bf16.mxu1 %v4456_v2 }
  0xd6   : > { %3559 = vmatpush3.bf16.msra.mxu0 %v5001_v18 }
  0xd7   : > { %3579 = vmatpush3.bf16.msra.mxu1 %v4670_v20  ;;  %3584 = vmatprep.subr.bf16.mxu0 %v4456_v2 }
  0xd8   : > { %3604 = vmatprep.subr.bf16.mxu1 %v4456_v2 }
  0xd9   : > { %3561 = vmatmul.mubr.bf16.vlgmr.msra.gmra.mxu0 %v4910_v24 }
  0xda   : > { %3581 = vmatmul.mubr.bf16.vlgmr.msra.gmra.mxu1 %v1347_v59  ;;  %3585 = vmatpush3.bf16.msra.mxu0 %v4597_v3  ;;  %v4264_v3 = vld [vmem:[%s4635_s6 + $0x8] ss:$0 sps:$4 sm:$0x66]  }
  0xdb   : > { %3605 = vmatpush3.bf16.msra.mxu1 %v4679_v23  ;;  %3586 = vmatprep.subr.bf16.mxu0 %v4456_v2 }
  0xdc   : > { %3606 = vmatprep.subr.bf16.mxu1 %v4456_v2  ;;  %3600 = vmatprep.mubr.msk.bf16.mxu0 %vm4457_vm0, %v4456_v2 }
  0xdd   : > { %3620 = vmatprep.mubr.msk.bf16.mxu1 %vm4457_vm0, %v4456_v2 }
  0xde   : > { %3587 = vmatpush3.bf16.msra.mxu0 %v4608_v5  ;;  %v3005_v5 = vld [vmem:[%s4635_s6 + $0x8] sm:$0x3] }
  0xdf   : > { %3607 = vmatpush3.bf16.msra.mxu1 %v4691_v26  ;;  %3588 = vmatprep.subr.bf16.mxu0 %v4456_v2 }
  0xe0   : > { %3608 = vmatprep.subr.bf16.mxu1 %v4456_v2 }
  0xe2   : > { %3589 = vmatpush3.bf16.msra.mxu0 %v4620_v7  ;;  %v1433_v7 = vrot.slane %v4264_v3, 1 }
  0xe3   : > { %3609 = vmatpush3.bf16.msra.mxu1 %v4705_v28  ;;  %3590 = vmatprep.subr.bf16.mxu0 %v4456_v2 }
  0xe4   : > { %3610 = vmatprep.subr.bf16.mxu1 %v4456_v2 }
  0xe6   : > { %3591 = vmatpush3.bf16.msra.mxu0 %v4631_v9  ;;  %v4265_v9 = vld [vmem:[%s4635_s6 + $0x8] ss:$0 sps:$4 sm:$0xee]  }
  0xe7   : > { %3611 = vmatpush3.bf16.msra.mxu1 %v4715_v30  ;;  %3592 = vmatprep.subr.bf16.mxu0 %v4456_v2  ;;  %v1484_v13 = vshll.u32 %v4265_v9, 16 }
  0xe8   : > { %3612 = vmatprep.subr.bf16.mxu1 %v4456_v2 }
  0xe9   : > { %v1486_v16 = vrot.slane %v1484_v13, 2 }
  0xea   : > { %3593 = vmatpush3.bf16.msra.mxu0 %v4644_v11  ;;  %v1481_v11 = vshrl.u32 %v4265_v9, 16 }
  0xeb   : > { %3613 = vmatpush3.bf16.msra.mxu1 %v4725_v32  ;;  %3594 = vmatprep.subr.bf16.mxu0 %v4456_v2 }
  0xec   : > { %3614 = vmatprep.subr.bf16.mxu1 %v4456_v2 }
  0xee   : > { %3595 = vmatpush3.bf16.msra.mxu0 %v4655_v14  ;;  %v1483_v14 = vrot.slane %v1481_v11, 1 }
  0xef   : > { %3615 = vmatpush3.bf16.msra.mxu1 %v4736_v35  ;;  %3596 = vmatprep.subr.bf16.mxu0 %v4456_v2  ;;  %v3015_v35 = vld [vmem:[%s4635_s6 + $0xc] sm:$0x1] }
  0xf0   : > { %3616 = vmatprep.subr.bf16.mxu1 %v4456_v2  ;;  %v1487_v20 = vor.u32 %v1486_v16, %v1483_v14  ;;  %v5754_v16 = vld [vmem:[#allocation10_spill] sm:$0xff] }
  0xf2   : > { %3597 = vmatpush3.bf16.msra.mxu0 %v4665_v17  ;;  %v4266_v17 = vld [vmem:[%s4635_s6 + $0x8] ss:$0 sps:$4 sm:$0xcc]  }
  0xf3   : > { %3617 = vmatpush3.bf16.msra.mxu1 %v4746_v39  ;;  %3598 = vmatprep.subr.bf16.mxu0 %v4456_v2 }
  0xf4   : > { %3618 = vmatprep.subr.bf16.mxu1 %v4456_v2 }
  0xf6   : > { %3599 = vmatpush3.bf16.msra.mxu0 %v4675_v21  ;;  %v1534_v21 = vrot.slane %v4266_v17, 2 }
  0xf7   : > { %3619 = vmatpush3.bf16.msra.mxu1 %v4756_v42  ;;  %3624 = vmatprep.subr.bf16.mxu0 %v4456_v2  ;;  %v5749_v42 = vld [vmem:[#allocation6_spill] sm:$0xff] }
  0xf8   : > { %3644 = vmatprep.subr.bf16.mxu1 %v4456_v2 }
  0xf9   : > { %3601 = vmatmul.mubr.bf16.vlgmr.msra.gmra.mxu0 %v3005_v5  ;;  %v5753_v5 = vld [vmem:[#allocation9_spill] sm:$0xff] }
  0xfa   : > { %3621 = vmatmul.mubr.bf16.vlgmr.msra.gmra.mxu1 %v1433_v7  ;;  %3625 = vmatpush3.bf16.msra.mxu0 %v4686_v25 }
  0xfb   : > { %3645 = vmatpush3.bf16.msra.mxu1 %v4767_v48  ;;  %3626 = vmatprep.subr.bf16.mxu0 %v4456_v2  ;;  %v3017_v48 = vld [vmem:[%s4635_s6 + $0x8] sm:$0x8] }
  0xfc   : > { %3646 = vmatprep.subr.bf16.mxu1 %v4456_v2  ;;  %3640 = vmatprep.mubr.msk.bf16.mxu0 %vm4457_vm0, %v4456_v2  ;;  %v3018_v24 = vcombine.low %v3017_v48, %v3015_v35 }
  0xfd   : > { %3660 = vmatprep.mubr.msk.bf16.mxu1 %vm4457_vm0, %v4456_v2 }
  0xfe   : > { %3627 = vmatpush3.bf16.msra.mxu0 %v4696_v27  ;;  %v1638_v10 = vrot.slane %v3018_v24, 3 }
  0xff   : > { %3647 = vmatpush3.bf16.msra.mxu1 %v4777_v50  ;;  %3628 = vmatprep.subr.bf16.mxu0 %v4456_v2 }
 0x100   : > { %3648 = vmatprep.subr.bf16.mxu1 %v4456_v2 }
 0x102   : > { %3629 = vmatpush3.bf16.msra.mxu0 %v4710_v29 }
 0x103   : > { %3649 = vmatpush3.bf16.msra.mxu1 %v4791_v52  ;;  %3630 = vmatprep.subr.bf16.mxu0 %v4456_v2 }
 0x104   : > { %3650 = vmatprep.subr.bf16.mxu1 %v4456_v2 }
 0x106   : > { %3631 = vmatpush3.bf16.msra.mxu0 %v4720_v31 }
 0x107   : > { %3651 = vmatpush3.bf16.msra.mxu1 %v4801_v54  ;;  %3632 = vmatprep.subr.bf16.mxu0 %v4456_v2 }
 0x108   : > { %3652 = vmatprep.subr.bf16.mxu1 %v4456_v2 }
 0x10a   : > { %3633 = vmatpush3.bf16.msra.mxu0 %v4730_v33  ;;  %v3014_v33 = vld [vmem:[%s4635_s6 + $0x8] sm:$0xc] }
 0x10b   : > { %3653 = vmatpush3.bf16.msra.mxu1 %v4811_v56  ;;  %3634 = vmatprep.subr.bf16.mxu0 %v4456_v2 }
 0x10c   : > { %3654 = vmatprep.subr.bf16.mxu1 %v4456_v2 }
 0x10e   : > { %3635 = vmatpush3.bf16.msra.mxu0 %v4741_v36  ;;  %v3016_v36 = vcombine.low %v3014_v33, %v3015_v35 }
 0x10f   : > { %3655 = vmatpush3.bf16.msra.mxu1 %v4824_v60  ;;  %3636 = vmatprep.subr.bf16.mxu0 %v4456_v2 }
 0x110   : > { %3656 = vmatprep.subr.bf16.mxu1 %v4456_v2  ;;  %v1585_v39 = vshrl.u32 %v3016_v36, 16 }
 0x112   : > { %3637 = vmatpush3.bf16.msra.mxu0 %v4751_v40  ;;  %v1588_v40 = vshll.u32 %v3016_v36, 16 }
 0x113   : > { %3657 = vmatpush3.bf16.msra.mxu1 %v4836_v63  ;;  %3638 = vmatprep.subr.bf16.mxu0 %v4456_v2 }
 0x114   : > { %3658 = vmatprep.subr.bf16.mxu1 %v4456_v2  ;;  %v1590_v50 = vrot.slane %v1588_v40, 3  ;;  %v5174_v40 = vld [vmem:[%s4560_s9 + $0x38] sm:$0xff]  }
 0x116   : > { %3639 = vmatpush3.bf16.msra.mxu0 %v4762_v45  ;;  %v5750_v45 = vld [vmem:[#allocation14_spill] sm:$0xff] }
 0x117   : > { %3659 = vmatpush3.bf16.msra.mxu1 %v4847_v19  ;;  %3664 = vmatprep.subr.bf16.mxu0 %v4456_v2 }
 0x118   : > { %3684 = vmatprep.subr.bf16.mxu1 %v4456_v2 }
 0x119   : > { %v552_v23 = vpop.f32.mrf.mxu0  ;;  %3641 = vmatmul.mubr.bf16.vlgmr.msra.gmra.mxu0 %v1487_v20 }
 0x11a   : > { %v640_v25 = vpop.f32.mrf.mxu1  ;;  %3661 = vmatmul.mubr.bf16.vlgmr.msra.gmra.mxu1 %v1534_v21  ;;  %3665 = vmatpush3.bf16.msra.mxu0 %v4772_v49  ;;  %v1587_v49 = vrot.slane %v1585_v39, 2  ;;  %v5755_v21 = vld [vmem:[#allocation11_spill] sm:$0xff]  ;;  %v5170_v39 = vld [vmem:[%s4560_s9 + $0x78] sm:$0xff]  }
 0x11b   : > { %v641_v26 = vadd.f32 %v640_v25, %v552_v23  ;;  %3685 = vmatpush3.bf16.msra.mxu1 %v4857_v41  ;;  %v3402_v27 = vpop.f32.mrf.mxu0  ;;  %3666 = vmatprep.subr.bf16.mxu0 %v4456_v2  ;;  %v3019_v23 = vld [vmem:[%s4635_s6 + $0xc] sm:$0x3]  ;;  %v5756_v25 = vld [vmem:[#allocation12_spill] sm:$0xff] }
 0x11c   : > { %v3422_v28 = vpop.f32.mrf.mxu1  ;;  %3686 = vmatprep.subr.bf16.mxu1 %v4456_v2  ;;  %3680 = vmatprep.mubr.msk.bf16.mxu0 %vm4457_vm0, %v4456_v2  ;;  %v1591_v6 = vor.u32 %v1590_v50, %v1587_v49  ;;  %v5757_v27 = vld [vmem:[#allocation13_spill] sm:$0xff] }
 0x11d   : > { %v555_v29 = vpop.f32.mrf.mxu0  ;;  %3700 = vmatprep.mubr.msk.bf16.mxu1 %vm4457_vm0, %v4456_v2 }
 0x11e   : > { %v643_v30 = vpop.f32.mrf.mxu1  ;;  %3667 = vmatpush3.bf16.msra.mxu0 %v4782_v51  ;;  %v5751_v51 = vld [vmem:[#allocation7_spill] sm:$0xff] }
 0x11f   : > { %3687 = vmatpush3.bf16.msra.mxu1 %v4867_v44  ;;  %v3403_v31 = vpop.f32.mrf.mxu0  ;;  %3668 = vmatprep.subr.bf16.mxu0 %v4456_v2  ;;  %v5758_v30 = vld [vmem:[#allocation15_spill] sm:$0xff] }
 0x120   : > { %v3423_v32 = vpop.f32.mrf.mxu1  ;;  %3688 = vmatprep.subr.bf16.mxu1 %v4456_v2 }
 0x122   : > { %3669 = vmatpush3.bf16.msra.mxu0 %v4796_v53 }
 0x123   : > { %3689 = vmatpush3.bf16.msra.mxu1 %v4881_v47  ;;  %3670 = vmatprep.subr.bf16.mxu0 %v4456_v2 }
 0x124   : > { %3690 = vmatprep.subr.bf16.mxu1 %v4456_v2 }
 0x126   : > { %3671 = vmatpush3.bf16.msra.mxu0 %v4804_v55 }
 0x127   : > { %3691 = vmatpush3.bf16.msra.mxu1 %v4891_v61  ;;  %3672 = vmatprep.subr.bf16.mxu0 %v4456_v2 }
 0x128   : > { %3692 = vmatprep.subr.bf16.mxu1 %v4456_v2 }
 0x12a   : > { %3673 = vmatpush3.bf16.msra.mxu0 %v4816_v57 }
 0x12b   : > { %3693 = vmatpush3.bf16.msra.mxu1 %v4901_v12  ;;  %3674 = vmatprep.subr.bf16.mxu0 %v4456_v2 }
 0x12c   : > { %3694 = vmatprep.subr.bf16.mxu1 %v4456_v2 }
 0x12e   : > { %3675 = vmatpush3.bf16.msra.mxu0 %v5749_v42 }
 0x12f   : > { %3695 = vmatpush3.bf16.msra.mxu1 %v5750_v45  ;;  %3676 = vmatprep.subr.bf16.mxu0 %v4456_v2 }
 0x130   : > { %3696 = vmatprep.subr.bf16.mxu1 %v4456_v2 }
 0x132   : > { %3677 = vmatpush3.bf16.msra.mxu0 %v5751_v51 }
 0x133   : > { %3697 = vmatpush3.bf16.msra.mxu1 %v4926_v58  ;;  %3678 = vmatprep.subr.bf16.mxu0 %v4456_v2 }
 0x134   : > { %3698 = vmatprep.subr.bf16.mxu1 %v4456_v2 }
 0x136   : > { %3679 = vmatpush3.bf16.msra.mxu0 %v5752_v8 }
 0x137   : > { %3699 = vmatpush3.bf16.msra.mxu1 %v4937_v15  ;;  %3704 = vmatprep.subr.bf16.mxu0 %v4456_v2 }
 0x138   : > { %3724 = vmatprep.subr.bf16.mxu1 %v4456_v2 }
 0x139   : > { %v734_v37 = vpop.f32.mrf.mxu0  ;;  %3681 = vmatmul.mubr.bf16.vlgmr.msra.gmra.mxu0 %v1591_v6  ;;  %v5184_v6 = vld [vmem:[%s4560_s9 + $0x70] sm:$0xff]  }
 0x13a   : > { %v740_v59 = vadd.f32 %v734_v37, %v641_v26  ;;  %v836_v3 = vpop.f32.mrf.mxu1  ;;  %3701 = vmatmul.mubr.bf16.vlgmr.msra.gmra.mxu1 %v1638_v10  ;;  %3705 = vmatpush3.bf16.msra.mxu0 %v5753_v5  ;;  %v3020_v26 = vcombine.low %v3017_v48, %v3019_v23  ;;  %v5188_v10 = vld [vmem:[%s4560_s9 + $0x30] sm:$0xff]  }
 0x13b   : > { %3725 = vmatpush3.bf16.msra.mxu1 %v4947_v22  ;;  %v3442_v7 = vpop.f32.mrf.mxu0  ;;  %3706 = vmatprep.subr.bf16.mxu0 %v4456_v2 }
 0x13c   : > { %v5129_v9 = vadd.f32 %v836_v3, %v740_v59  ;;  %v3462_v11 = vpop.f32.mrf.mxu1  ;;  %3726 = vmatprep.subr.bf16.mxu1 %v4456_v2  ;;  %3720 = vmatprep.mubr.msk.bf16.mxu0 %vm4457_vm0, %v4456_v2  ;;  %v1686_v28 = vshrl.u32 %v3020_v26, 16  ;;  %v1689_v29 = vshll.u32 %v3020_v26, 16  ;;  %v5194_v3 = vld [vmem:[%s4560_s9 + $0x68] sm:$0xff]   ;;  %v5225_v26 = vld [vmem:[%s4560_s9 + $0x50] sm:$0xff]  }
 0x13d   : > { %v737_v13 = vpop.f32.mrf.mxu0  ;;  %3740 = vmatprep.mubr.msk.bf16.mxu1 %vm4457_vm0, %v4456_v2  ;;  %v5198_v7 = vld [vmem:[%s4560_s9 + $0x28] sm:$0xff]   ;;  %v5204_v11 = vld [vmem:[%s4560_s9 + $0x60] sm:$0xff]  }
 0x13e   : > { %v839_v14 = vpop.f32.mrf.mxu1  ;;  %3707 = vmatpush3.bf16.msra.mxu0 %v5754_v16  ;;  %v1688_v31 = vrot.slane %v1686_v28, 3  ;;  %v1691_v32 = vrot.slane %v1689_v29, 4  ;;  %5759 = vst [vmem:[#allocation6_spill] sm:$0xff] %v5198_v7  ;;  %v5208_v13 = vld [vmem:[%s4560_s9 + $0x20] sm:$0xff]   ;;  %v5229_v28 = vld [vmem:[%s4560_s9 + $0x10] sm:$0xff]  }
 0x13f   : > { %3727 = vmatpush3.bf16.msra.mxu1 %v4954_v43  ;;  %v3443_v17 = vpop.f32.mrf.mxu0  ;;  %3708 = vmatprep.subr.bf16.mxu0 %v4456_v2  ;;  %5760 = vst [vmem:[#allocation14_spill] sm:$0xff] %v5208_v13  ;;  %v4270_v14 = vld [vmem:[%s4635_s6 + $0x10] ss:$0 sps:$4 sm:$0x77]   ;;  %5762 = vst [vmem:[#allocation8_spill] sm:$0xff] %v5229_v28 }
 0x140   : > { %v3463_v20 = vpop.f32.mrf.mxu1  ;;  %3728 = vmatprep.subr.bf16.mxu1 %v4456_v2  ;;  %v1692_v33 = vor.u32 %v1691_v32, %v1688_v31  ;;  %v5215_v17 = vld [vmem:[%s4560_s9 + $0x58] sm:$0xff]   ;;  %v1790_v29 = vshrl.u32 %v4270_v14, 16  ;;  %v5235_v32 = vld [vmem:[%s4560_s9 + $0x48] sm:$0xff]  }
 0x141   : > { %v5219_v20 = vld [vmem:[%s4560_s9 + $0x18] sm:$0xff]  }
 0x142   : > { %3709 = vmatpush3.bf16.msra.mxu0 %v5755_v21  ;;  %5761 = vst [vmem:[#allocation7_spill] sm:$0xff] %v5219_v20 }
 0x143   : > { %3729 = vmatpush3.bf16.msra.mxu1 %v4965_v62  ;;  %3710 = vmatprep.subr.bf16.mxu0 %v4456_v2 }
 0x144   : > { %3730 = vmatprep.subr.bf16.mxu1 %v4456_v2 }
 0x146   : > { %3711 = vmatpush3.bf16.msra.mxu0 %v5756_v25 }
 0x147   : > { %3731 = vmatpush3.bf16.msra.mxu1 %v4972_v1  ;;  %3712 = vmatprep.subr.bf16.mxu0 %v4456_v2 }
 0x148   : > { %3732 = vmatprep.subr.bf16.mxu1 %v4456_v2 }
 0x14a   : > { %3713 = vmatpush3.bf16.msra.mxu0 %v5757_v27 }
 0x14b   : > { %3733 = vmatpush3.bf16.msra.mxu1 %v4979_v46  ;;  %3714 = vmatprep.subr.bf16.mxu0 %v4456_v2 }
 0x14c   : > { %3734 = vmatprep.subr.bf16.mxu1 %v4456_v2 }
 0x14e   : > { %3715 = vmatpush3.bf16.msra.mxu0 %v5758_v30 }
 0x14f   : > { %3735 = vmatpush3.bf16.msra.mxu1 %v4986_v4  ;;  %3716 = vmatprep.subr.bf16.mxu0 %v4456_v2 }
 0x150   : > { %3736 = vmatprep.subr.bf16.mxu1 %v4456_v2 }
 0x152   : > { %3717 = vmatpush3.bf16.msra.mxu0 %v4931_v34 }
 0x153   : > { %3737 = vmatpush3.bf16.msra.mxu1 %v4994_v0  ;;  %3718 = vmatprep.subr.bf16.mxu0 %v4456_v2 }
 0x154   : > { %3738 = vmatprep.subr.bf16.mxu1 %v4456_v2 }
 0x156   : > { %3719 = vmatpush3.bf16.msra.mxu0 %v4942_v38 }
 0x157   : > { %3739 = vmatpush3.bf16.msra.mxu1 %v5001_v18  ;;  %3744 = vmatprep.subr.bf16.mxu0 %v4456_v2 }
 0x158   : > { %3764 = vmatprep.subr.bf16.mxu1 %v4456_v2 }
 0x159   : > { %v5165_v35 = vpop.f32.mrf.mxu0  ;;  %3721 = vmatmul.mubr.bf16.vlgmr.msra.gmra.mxu0 %v1692_v33  ;;  %v5239_v33 = vld [vmem:[%s4560_s9 + $0x8] sm:$0xff]  }
 0x15a   : > { %v5167_v36 = vpop.f32.mrf.mxu1  ;;  %3741 = vmatmul.mubr.bf16.vlgmr.msra.gmra.mxu1 %v3019_v23  ;;  %3745 = vmatpush3.bf16.msra.mxu0 %v5170_v39  ;;  %v1792_v23 = vshll.u32 %v4270_v14, 16  ;;  %5763 = vst [vmem:[#allocation9_spill] sm:$0xff] %v5239_v33  ;;  %v5258_v14 = vld [vmem:[%s4560_s9 + $0xb8] sm:$0xff]  }
 0x15b   : > { %3765 = vmatpush3.bf16.msra.mxu1 %v5174_v40  ;;  %v3482_v48 = vpop.f32.mrf.mxu0  ;;  %3746 = vmatprep.subr.bf16.mxu0 %v4456_v2 }
 0x15c   : > { %v3502_v49 = vpop.f32.mrf.mxu1  ;;  %3766 = vmatprep.subr.bf16.mxu1 %v4456_v2  ;;  %3760 = vmatprep.mubr.msk.bf16.mxu0 %vm4457_vm0, %v4456_v2  ;;  %v1794_v31 = vrot.slane %v1792_v23, 1  ;;  %v5262_v23 = vld [vmem:[%s4560_s9 + $0xf8] sm:$0xff]  }
 0x15d   : > { %v934_v50 = vpop.f32.mrf.mxu0  ;;  %3780 = vmatprep.mubr.msk.bf16.mxu1 %vm4457_vm0, %v4456_v2  ;;  %v5245_v49 = vld [vmem:[%s4560_s9 + $0x40] sm:$0xff]   ;;  %5765 = vst [vmem:[#allocation11_spill] sm:$0xff] %v5262_v23 }
 0x15e   : > { %v1039_v24 = vpop.f32.mrf.mxu1  ;;  %3747 = vmatpush3.bf16.msra.mxu0 %v5184_v6  ;;  %v1795_v48 = vor.u32 %v1794_v31, %v1790_v29  ;;  %v5249_v50 = vld [vmem:[%s4560_s9] sm:$0xff]  }
 0x15f   : > { %3767 = vmatpush3.bf16.msra.mxu1 %v5188_v10  ;;  %v3483_v37 = vpop.f32.mrf.mxu0  ;;  %3748 = vmatprep.subr.bf16.mxu0 %v4456_v2  ;;  %5764 = vst [vmem:[#allocation10_spill] sm:$0xff] %v5249_v50  ;;  %v3022_v24 = vld [vmem:[%s4635_s6 + $0x10] sm:$0x3] }
 0x160   : > { %v3503_v59 = vpop.f32.mrf.mxu1  ;;  %3768 = vmatprep.subr.bf16.mxu1 %v4456_v2 }
 0x162   : > { %3749 = vmatpush3.bf16.msra.mxu0 %v5194_v3 }
 0x163   : > { %3769 = vmatpush3.bf16.msra.mxu1 %v5198_v7  ;;  %3750 = vmatprep.subr.bf16.mxu0 %v4456_v2  ;;  %v5337_v7 = vld [vmem:[%s4560_s9 + $0x80] sm:$0xff]  }
 0x164   : > { %3770 = vmatprep.subr.bf16.mxu1 %v4456_v2 }
 0x166   : > { %3751 = vmatpush3.bf16.msra.mxu0 %v5204_v11 }
 0x167   : > { %3771 = vmatpush3.bf16.msra.mxu1 %v5208_v13  ;;  %3752 = vmatprep.subr.bf16.mxu0 %v4456_v2 }
 0x168   : > { %3772 = vmatprep.subr.bf16.mxu1 %v4456_v2 }
 0x16a   : > { %3753 = vmatpush3.bf16.msra.mxu0 %v5215_v17 }
 0x16b   : > { %3773 = vmatpush3.bf16.msra.mxu1 %v5219_v20  ;;  %3754 = vmatprep.subr.bf16.mxu0 %v4456_v2 }
 0x16c   : > { %3774 = vmatprep.subr.bf16.mxu1 %v4456_v2 }
 0x16e   : > { %3755 = vmatpush3.bf16.msra.mxu0 %v5225_v26 }
 0x16f   : > { %3775 = vmatpush3.bf16.msra.mxu1 %v5229_v28  ;;  %3756 = vmatprep.subr.bf16.mxu0 %v4456_v2  ;;  %v5315_v28 = vld [vmem:[%s4560_s9 + $0x90] sm:$0xff]  }
 0x170   : > { %3776 = vmatprep.subr.bf16.mxu1 %v4456_v2  ;;  %5773 = vst [vmem:[#allocation20_spill] sm:$0xff] %v5315_v28 }
 0x172   : > { %3757 = vmatpush3.bf16.msra.mxu0 %v5235_v32 }
 0x173   : > { %3777 = vmatpush3.bf16.msra.mxu1 %v5239_v33  ;;  %3758 = vmatprep.subr.bf16.mxu0 %v4456_v2  ;;  %v5307_v33 = vld [vmem:[%s4560_s9 + $0xd8] sm:$0xff]  }
 0x174   : > { %3778 = vmatprep.subr.bf16.mxu1 %v4456_v2  ;;  %5772 = vst [vmem:[#allocation19_spill] sm:$0xff] %v5307_v33 }
 0x176   : > { %3759 = vmatpush3.bf16.msra.mxu0 %v5245_v49 }
 0x177   : > { %3779 = vmatpush3.bf16.msra.mxu1 %v5249_v50  ;;  %3784 = vmatprep.subr.bf16.mxu0 %v4456_v2  ;;  %v5272_v50 = vld [vmem:[%s4560_s9 + $0xb0] sm:$0xff]  }
 0x178   : > { %3804 = vmatprep.subr.bf16.mxu1 %v4456_v2 }
 0x179   : > { %v1131_v37 = vpop.f32.mrf.mxu0  ;;  %3761 = vmatmul.mubr.bf16.vlgmr.msra.gmra.mxu0 %v1795_v48 }
 0x17a   : > { %v5255_v59 = vpop.f32.mrf.mxu1  ;;  %3781 = vmatmul.mubr.bf16.vlgmr.msra.gmra.mxu1 %v3022_v24  ;;  %3785 = vmatpush3.bf16.msra.mxu0 %v5258_v14 }
 0x17b   : > { %3805 = vmatpush3.bf16.msra.mxu1 %v5262_v23  ;;  %v3522_v29 = vpop.f32.mrf.mxu0  ;;  %3786 = vmatprep.subr.bf16.mxu0 %v4456_v2 }
 0x17c   : > { %v3542_v31 = vpop.f32.mrf.mxu1  ;;  %3806 = vmatprep.subr.bf16.mxu1 %v4456_v2  ;;  %3800 = vmatprep.mubr.msk.bf16.mxu0 %vm4457_vm0, %v4456_v2  ;;  %v5276_v29 = vld [vmem:[%s4560_s9 + $0xf0] sm:$0xff]  }
 0x17d   : > { %v1134_v48 = vpop.f32.mrf.mxu0  ;;  %3820 = vmatprep.mubr.msk.bf16.mxu1 %vm4457_vm0, %v4456_v2  ;;  %5766 = vst [vmem:[#allocation12_spill] sm:$0xff] %v5276_v29 }
 0x17e   : > { %v1236_v24 = vpop.f32.mrf.mxu1  ;;  %3787 = vmatpush3.bf16.msra.mxu0 %v5272_v50  ;;  %v5282_v48 = vld [vmem:[%s4560_s9 + $0xa8] sm:$0xff]  }
 0x17f   : > { %3807 = vmatpush3.bf16.msra.mxu1 %v5276_v29  ;;  %v3523_v31 = vpop.f32.mrf.mxu0  ;;  %3788 = vmatprep.subr.bf16.mxu0 %v4456_v2  ;;  %5767 = vst [vmem:[#allocation13_spill] sm:$0xff] %v5282_v48  ;;  %v5286_v24 = vld [vmem:[%s4560_s9 + $0xe8] sm:$0xff]   ;;  %v5302_v29 = vld [vmem:[%s4560_s9 + $0x98] sm:$0xff]  }
 0x180   : > { %v3543_v23 = vpop.f32.mrf.mxu1  ;;  %3808 = vmatprep.subr.bf16.mxu1 %v4456_v2  ;;  %5768 = vst [vmem:[#allocation15_spill] sm:$0xff] %v5286_v24  ;;  %v5292_v31 = vld [vmem:[%s4560_s9 + $0xa0] sm:$0xff]   ;;  %5771 = vst [vmem:[#allocation18_spill] sm:$0xff] %v5302_v29 }
 0x181   : > { %5769 = vst [vmem:[#allocation16_spill] sm:$0xff] %v5292_v31  ;;  %v5296_v23 = vld [vmem:[%s4560_s9 + $0xe0] sm:$0xff]  }
 0x182   : > { %3789 = vmatpush3.bf16.msra.mxu0 %v5282_v48  ;;  %5770 = vst [vmem:[#allocation17_spill] sm:$0xff] %v5296_v23 }
 0x183   : > { %3809 = vmatpush3.bf16.msra.mxu1 %v5286_v24  ;;  %3790 = vmatprep.subr.bf16.mxu0 %v4456_v2  ;;  %v4272_v24 = vld [vmem:[%s4635_s6 + $0x10] ss:$0 sps:$4 sm:$0xee]  }
 0x184   : > { %3810 = vmatprep.subr.bf16.mxu1 %v4456_v2  ;;  %v1929_v20 = vshrl.u32 %v4272_v24, 16 }
 0x186   : > { %3791 = vmatpush3.bf16.msra.mxu0 %v5292_v31  ;;  %v5319_v31 = vld [vmem:[%s4560_s9 + $0xd0] sm:$0xff]  }
 0x187   : > { %3811 = vmatpush3.bf16.msra.mxu1 %v5296_v23  ;;  %3792 = vmatprep.subr.bf16.mxu0 %v4456_v2  ;;  %v937_v23 = vadd.f32 %v5165_v35, %v5129_v9  ;;  %5774 = vst [vmem:[#allocation21_spill] sm:$0xff] %v5319_v31  ;;  %v5327_v9 = vld [vmem:[%s4560_s9 + $0x88] sm:$0xff]   ;;  %v1931_v35 = vrot.slane %v1929_v20, 1 }
 0x188   : > { %3812 = vmatprep.subr.bf16.mxu1 %v4456_v2 }
 0x189   : > { %v1042_v13 = vadd.f32 %v5167_v36, %v937_v23  ;;  %v5341_v23 = vld [vmem:[%s4560_s9 + $0xc0] sm:$0xff]  }
 0x18a   : > { %3793 = vmatpush3.bf16.msra.mxu0 %v5302_v29  ;;  %v1932_v29 = vshll.u32 %v4272_v24, 16  ;;  %v5331_v24 = vld [vmem:[%s4560_s9 + $0xc8] sm:$0xff]  }
 0x18b   : > { %3813 = vmatpush3.bf16.msra.mxu1 %v5307_v33  ;;  %3794 = vmatprep.subr.bf16.mxu0 %v4456_v2  ;;  %v4271_v33 = vld [vmem:[%s4635_s6 + $0x10] ss:$0 sps:$4 sm:$0x66]   ;;  %5775 = vst [vmem:[#allocation22_spill] sm:$0xff] %v5331_v24 }
 0x18c   : > { %3814 = vmatprep.subr.bf16.mxu1 %v4456_v2  ;;  %v1881_v48 = vrot.slane %v4271_v33, 1 }
 0x18e   : > { %3795 = vmatpush3.bf16.msra.mxu0 %v5315_v28  ;;  %v1934_v28 = vrot.slane %v1932_v29, 2 }
 0x18f   : > { %3815 = vmatpush3.bf16.msra.mxu1 %v5319_v31  ;;  %3796 = vmatprep.subr.bf16.mxu0 %v4456_v2  ;;  %v1137_v31 = vadd.f32 %v1131_v37, %v1042_v13  ;;  %v1329_v37 = vld [vmem:[#allocation2] sm:$0xf] }
 0x190   : > { %3816 = vmatprep.subr.bf16.mxu1 %v4456_v2  ;;  %v1935_v36 = vor.u32 %v1934_v28, %v1931_v35  ;;  %v5352_v28 = vld [vmem:[%s4560_s9 + $0x178] sm:$0xff]  }
 0x191   : > { %v1239_v20 = vadd.f32 %v5255_v59, %v1137_v31 }
 0x192   : > { %3797 = vmatpush3.bf16.msra.mxu0 %v5327_v9 }
 0x193   : > { %3817 = vmatpush3.bf16.msra.mxu1 %v5331_v24  ;;  %3798 = vmatprep.subr.bf16.mxu0 %v4456_v2  ;;  %v5348_v24 = vld [vmem:[%s4560_s9 + $0x138] sm:$0xff]  }
 0x194   : > { %3818 = vmatprep.subr.bf16.mxu1 %v4456_v2 }
 0x196   : > { %3799 = vmatpush3.bf16.msra.mxu0 %v5337_v7 }
 0x197   : > { %3819 = vmatpush3.bf16.msra.mxu1 %v5341_v23  ;;  %3824 = vmatprep.subr.bf16.mxu0 %v4456_v2 }
 0x198   : > { %3844 = vmatprep.subr.bf16.mxu1 %v4456_v2 }
 0x199   : > { %v1322_v13 = vpop.f32.mrf.mxu0  ;;  %3801 = vmatmul.mubr.bf16.vlgmr.msra.gmra.mxu0 %v1881_v48 }
 0x19a   : > { %v1328_v33 = vadd.f32 %v1322_v13, %v1239_v20  ;;  %v1383_v29 = vpop.f32.mrf.mxu1  ;;  %3821 = vmatmul.mubr.bf16.vlgmr.msra.gmra.mxu1 %v1935_v36  ;;  %3825 = vmatpush3.bf16.msra.mxu0 %v5348_v24  ;;  %v5362_v20 = vld [vmem:[%s4560_s9 + $0x130] sm:$0xff]  }
 0x19b   : > { %3845 = vmatpush3.bf16.msra.mxu1 %v5352_v28  ;;  %v3562_v35 = vpop.f32.mrf.mxu0  ;;  %3826 = vmatprep.subr.bf16.mxu0 %v4456_v2  ;;  %v5366_v13 = vld [vmem:[%s4560_s9 + $0x170] sm:$0xff]  }
 0x19c   : > { %v1330_v59 = vadd.f32 %v1329_v37, %v1328_v33  ;;  %v3582_v31 = vpop.f32.mrf.mxu1  ;;  %3846 = vmatprep.subr.bf16.mxu1 %v4456_v2  ;;  %3840 = vmatprep.mubr.msk.bf16.mxu0 %vm4457_vm0, %v4456_v2  ;;  %v3031_v35 = vld [vmem:[%s4635_s6 + $0x10] sm:$0xc] }
 0x19d   : > { %v1325_v48 = vpop.f32.mrf.mxu0  ;;  %3860 = vmatprep.mubr.msk.bf16.mxu1 %vm4457_vm0, %v4456_v2 }
 0x19e   : > { %1331 = vst [vmem:[#allocation2] sm:$0xf] %v1330_v59  ;;  %v1386_v36 = vpop.f32.mrf.mxu1  ;;  %3827 = vmatpush3.bf16.msra.mxu0 %v5362_v20  ;;  %v5380_v59 = vld [vmem:[%s4635_s6 + $0x14] sm:$0x1] }
 0x19f   : > { %3847 = vmatpush3.bf16.msra.mxu1 %v5366_v13  ;;  %v3563_v37 = vpop.f32.mrf.mxu0  ;;  %3828 = vmatprep.subr.bf16.mxu0 %v4456_v2 }
 0x1a0   : > { %v3583_v33 = vpop.f32.mrf.mxu1  ;;  %3848 = vmatprep.subr.bf16.mxu1 %v4456_v2 }
 0x1a2   : > { %3829 = vmatpush3.bf16.msra.mxu0 %v4791_v52  ;;  %v3033_v52 = vcombine.low %v3031_v35, %v5380_v59  ;;  %v5781_v35 = vld [vmem:[#allocation18_spill] sm:$0xff] }
 0x1a3   : > { %3849 = vmatpush3.bf16.msra.mxu1 %v4796_v53  ;;  %3830 = vmatprep.subr.bf16.mxu0 %v4456_v2 }
 0x1a4   : > { %3850 = vmatprep.subr.bf16.mxu1 %v4456_v2  ;;  %v2033_v53 = vshrl.u32 %v3033_v52, 16 }
 0x1a6   : > { %3831 = vmatpush3.bf16.msra.mxu0 %v4801_v54  ;;  %v2036_v54 = vshll.u32 %v3033_v52, 16  ;;  %v5782_v52 = vld [vmem:[#allocation8_spill] sm:$0xff] }
 0x1a7   : > { %3851 = vmatpush3.bf16.msra.mxu1 %v4804_v55  ;;  %3832 = vmatprep.subr.bf16.mxu0 %v4456_v2  ;;  %v4273_v55 = vld [vmem:[%s4635_s6 + $0x10] ss:$0 sps:$4 sm:$0xcc]  }
 0x1a8   : > { %3852 = vmatprep.subr.bf16.mxu1 %v4456_v2  ;;  %v2038_v31 = vrot.slane %v2036_v54, 3 }
 0x1aa   : > { %3833 = vmatpush3.bf16.msra.mxu0 %v4811_v56  ;;  %v2035_v56 = vrot.slane %v2033_v53, 2  ;;  %v5783_v53 = vld [vmem:[#allocation20_spill] sm:$0xff] }
 0x1ab   : > { %3853 = vmatpush3.bf16.msra.mxu1 %v4816_v57  ;;  %3834 = vmatprep.subr.bf16.mxu0 %v4456_v2  ;;  %v1982_v57 = vrot.slane %v4273_v55, 2  ;;  %v5784_v55 = vld [vmem:[#allocation9_spill] sm:$0xff] }
 0x1ac   : > { %3854 = vmatprep.subr.bf16.mxu1 %v4456_v2 }
 0x1ae   : > { %3835 = vmatpush3.bf16.msra.mxu0 %v4824_v60  ;;  %v2039_v60 = vor.u32 %v2038_v31, %v2035_v56  ;;  %v4278_v56 = vld [vmem:[%s4635_s6 + $0x18] ss:$0 sps:$4 sm:$0x66]  }
 0x1af   : > { %3855 = vmatpush3.bf16.msra.mxu1 %v5749_v42  ;;  %3836 = vmatprep.subr.bf16.mxu0 %v4456_v2 }
 0x1b0   : > { %3856 = vmatprep.subr.bf16.mxu1 %v4456_v2 }
 0x1b2   : > { %3837 = vmatpush3.bf16.msra.mxu0 %v4836_v63 }
 0x1b3   : > { %3857 = vmatpush3.bf16.msra.mxu1 %v5751_v51  ;;  %3838 = vmatprep.subr.bf16.mxu0 %v4456_v2 }
 0x1b4   : > { %3858 = vmatprep.subr.bf16.mxu1 %v4456_v2 }
 0x1b6   : > { %3839 = vmatpush3.bf16.msra.mxu0 %v4847_v19 }
 0x1b7   : > { %3859 = vmatpush3.bf16.msra.mxu1 %v5752_v8  ;;  %3864 = vmatprep.subr.bf16.mxu0 %v4456_v2 }
 0x1b8   : > { %3884 = vmatprep.subr.bf16.mxu1 %v4456_v2 }
 0x1b9   : > { %v1423_v42 = vpop.f32.mrf.mxu0  ;;  %3841 = vmatmul.mubr.bf16.vlgmr.msra.gmra.mxu0 %v1982_v57  ;;  %v5785_v57 = vld [vmem:[#allocation10_spill] sm:$0xff] }
 0x1ba   : > { %v1424_v63 = vadd.f32 %v1423_v42, %v1383_v29  ;;  %v1469_v48 = vpop.f32.mrf.mxu1  ;;  %3861 = vmatmul.mubr.bf16.vlgmr.msra.gmra.mxu1 %v2039_v60  ;;  %3865 = vmatpush3.bf16.msra.mxu0 %v4857_v41  ;;  %v3039_v60 = vld [vmem:[%s4635_s6 + $0x18] sm:$0x3]  ;;  %v2329_v42 = vrot.slane %v4278_v56, 1  ;;  %v3051_v56 = vld [vmem:[%s4635_s6 + $0x18] sm:$0x8] }
 0x1bb   : > { %3885 = vmatpush3.bf16.msra.mxu1 %v5753_v5  ;;  %v3602_v51 = vpop.f32.mrf.mxu0  ;;  %3866 = vmatprep.subr.bf16.mxu0 %v4456_v2 }
 0x1bc   : > { %v5404_v19 = vadd.f32 %v1469_v48, %v1424_v63  ;;  %v3622_v36 = vpop.f32.mrf.mxu1  ;;  %3886 = vmatprep.subr.bf16.mxu1 %v4456_v2  ;;  %3880 = vmatprep.mubr.msk.bf16.mxu0 %vm4457_vm0, %v4456_v2 }
 0x1bd   : > { %v1426_v8 = vpop.f32.mrf.mxu0  ;;  %3900 = vmatprep.mubr.msk.bf16.mxu1 %vm4457_vm0, %v4456_v2  ;;  %v1777_v36 = vld [vmem:[#allocation2 + $0x4] sm:$0xf] }
 0x1be   : > { %v1472_v41 = vpop.f32.mrf.mxu1  ;;  %3867 = vmatpush3.bf16.msra.mxu0 %v4867_v44  ;;  %v3034_v44 = vld [vmem:[%s4635_s6 + $0x10] sm:$0x8] }
 0x1bf   : > { %3887 = vmatpush3.bf16.msra.mxu1 %v5754_v16  ;;  %v3603_v5 = vpop.f32.mrf.mxu0  ;;  %3868 = vmatprep.subr.bf16.mxu0 %v4456_v2  ;;  %v5424_v16 = vld [vmem:[%s4635_s6 + $0x14] sm:$0x3] }
 0x1c0   : > { %v3623_v29 = vpop.f32.mrf.mxu1  ;;  %3888 = vmatprep.subr.bf16.mxu1 %v4456_v2 }
 0x1c2   : > { %3869 = vmatpush3.bf16.msra.mxu0 %v4881_v47  ;;  %v3037_v47 = vcombine.low %v3034_v44, %v5424_v16 }
 0x1c3   : > { %3889 = vmatpush3.bf16.msra.mxu1 %v5755_v21  ;;  %3870 = vmatprep.subr.bf16.mxu0 %v4456_v2 }
 0x1c4   : > { %3890 = vmatprep.subr.bf16.mxu1 %v4456_v2  ;;  %v2137_v21 = vshll.u32 %v3037_v47, 16 }
 0x1c6   : > { %3871 = vmatpush3.bf16.msra.mxu0 %v4891_v61  ;;  %v2134_v61 = vshrl.u32 %v3037_v47, 16 }
 0x1c7   : > { %3891 = vmatpush3.bf16.msra.mxu1 %v5756_v25  ;;  %3872 = vmatprep.subr.bf16.mxu0 %v4456_v2 }
 0x1c8   : > { %3892 = vmatprep.subr.bf16.mxu1 %v4456_v2  ;;  %v2136_v25 = vrot.slane %v2134_v61, 3  ;;  %v5788_v61 = vld [vmem:[#allocation15_spill] sm:$0xff] }
 0x1ca   : > { %3873 = vmatpush3.bf16.msra.mxu0 %v4901_v12  ;;  %v3035_v12 = vcombine.low %v3034_v44, %v5380_v59 }
 0x1cb   : > { %3893 = vmatpush3.bf16.msra.mxu1 %v5757_v27  ;;  %3874 = vmatprep.subr.bf16.mxu0 %v4456_v2  ;;  %v2139_v27 = vrot.slane %v2137_v21, 4  ;;  %v4320_v21 = vld [vmem:[%s4560_s9 + $0x128] sm:$0xff]  }
 0x1cc   : > { %3894 = vmatprep.subr.bf16.mxu1 %v4456_v2 }
 0x1ce   : > { %3875 = vmatpush3.bf16.msra.mxu0 %v5750_v45  ;;  %v2086_v45 = vrot.slane %v3035_v12, 3  ;;  %v5789_v12 = vld [vmem:[#allocation17_spill] sm:$0xff] }
 0x1cf   : > { %3895 = vmatpush3.bf16.msra.mxu1 %v5758_v30  ;;  %3876 = vmatprep.subr.bf16.mxu0 %v4456_v2  ;;  %v2140_v30 = vor.u32 %v2139_v27, %v2136_v25  ;;  %v4279_v25 = vld [vmem:[%s4635_s6 + $0x18] ss:$0 sps:$4 sm:$0xee]  }
 0x1d0   : > { %3896 = vmatprep.subr.bf16.mxu1 %v4456_v2  ;;  %v5790_v27 = vld [vmem:[#allocation19_spill] sm:$0xff] }
 0x1d2   : > { %3877 = vmatpush3.bf16.msra.mxu0 %v4926_v58 }
 0x1d3   : > { %3897 = vmatpush3.bf16.msra.mxu1 %v4931_v34  ;;  %3878 = vmatprep.subr.bf16.mxu0 %v4456_v2 }
 0x1d4   : > { %3898 = vmatprep.subr.bf16.mxu1 %v4456_v2 }
 0x1d6   : > { %3879 = vmatpush3.bf16.msra.mxu0 %v4937_v15 }
 0x1d7   : > { %3899 = vmatpush3.bf16.msra.mxu1 %v4942_v38  ;;  %3904 = vmatprep.subr.bf16.mxu0 %v4456_v2 }
 0x1d8   : > { %3924 = vmatprep.subr.bf16.mxu1 %v4456_v2 }
 0x1d9   : > { %v5445_v37 = vpop.f32.mrf.mxu0  ;;  %3881 = vmatmul.mubr.bf16.vlgmr.msra.gmra.mxu0 %v2086_v45  ;;  %v4322_v45 = vld [vmem:[%s4560_s9 + $0x118] sm:$0xff]  }
 0x1da   : > { %v5447_v58 = vpop.f32.mrf.mxu1  ;;  %3901 = vmatmul.mubr.bf16.vlgmr.msra.gmra.mxu1 %v2140_v30  ;;  %3905 = vmatpush3.bf16.msra.mxu0 %v4947_v22  ;;  %v1529_v59 = vadd.f32 %v5445_v37, %v5404_v19  ;;  %v5786_v19 = vld [vmem:[#allocation11_spill] sm:$0xff]  ;;  %v2377_v30 = vshrl.u32 %v4279_v25, 16  ;;  %v2380_v37 = vshll.u32 %v4279_v25, 16 }
 0x1db   : > { %3925 = vmatpush3.bf16.msra.mxu1 %v5170_v39  ;;  %v3642_v34 = vpop.f32.mrf.mxu0  ;;  %3906 = vmatprep.subr.bf16.mxu0 %v4456_v2  ;;  %v4344_v25 = vld [vmem:[%s4560_s9 + $0x1e8] sm:$0xff]  }
 0x1dc   : > { %v3662_v15 = vpop.f32.mrf.mxu1  ;;  %3926 = vmatprep.subr.bf16.mxu1 %v4456_v2  ;;  %3920 = vmatprep.mubr.msk.bf16.mxu0 %vm4457_vm0, %v4456_v2  ;;  %v1576_v54 = vadd.f32 %v5447_v58, %v1529_v59  ;;  %v5791_v58 = vld [vmem:[#allocation21_spill] sm:$0xff]  ;;  %v4323_v34 = vld [vmem:[%s4560_s9 + $0x110] sm:$0xff]  }
 0x1dd   : > { %v1526_v38 = vpop.f32.mrf.mxu0  ;;  %3940 = vmatprep.mubr.msk.bf16.mxu1 %vm4457_vm0, %v4456_v2  ;;  %v2379_v15 = vrot.slane %v2377_v30, 1  ;;  %v4333_v59 = vld [vmem:[%s4560_s9 + $0x198] sm:$0xff]   ;;  %v4346_v30 = vld [vmem:[%s4560_s9 + $0x1e0] sm:$0xff]  }
 0x1de   : > { %v1573_v33 = vpop.f32.mrf.mxu1  ;;  %3907 = vmatpush3.bf16.msra.mxu0 %v4954_v43  ;;  %v4277_v43 = vld [vmem:[%s4635_s6 + $0x18] ss:$0 sps:$4 sm:$0x77]   ;;  %v2382_v38 = vrot.slane %v2380_v37, 2  ;;  %v4347_v37 = vld [vmem:[%s4560_s9 + $0x220] sm:$0xff]  }
 0x1df   : > { %3927 = vmatpush3.bf16.msra.mxu1 %v5184_v6  ;;  %v3643_v22 = vpop.f32.mrf.mxu0  ;;  %3908 = vmatprep.subr.bf16.mxu0 %v4456_v2  ;;  %v5792_v33 = vld [vmem:[#allocation22_spill] sm:$0xff] }
 0x1e0   : > { %v3663_v39 = vpop.f32.mrf.mxu1  ;;  %3928 = vmatprep.subr.bf16.mxu1 %v4456_v2  ;;  %v4280_v22 = vld [vmem:[%s4635_s6 + $0x18] ss:$0 sps:$4 sm:$0xcc]  }
 0x1e1   : > { %v4324_v39 = vld [vmem:[%s4560_s9 + $0x108] sm:$0xff]  }
 0x1e2   : > { %3909 = vmatpush3.bf16.msra.mxu0 %v4965_v62  ;;  %v2240_v62 = vshll.u32 %v4277_v43, 16 }
 0x1e3   : > { %3929 = vmatpush3.bf16.msra.mxu1 %v5194_v3  ;;  %3910 = vmatprep.subr.bf16.mxu0 %v4456_v2 }
 0x1e4   : > { %3930 = vmatprep.subr.bf16.mxu1 %v4456_v2 }
 0x1e6   : > { %3911 = vmatpush3.bf16.msra.mxu0 %v4972_v1  ;;  %v2238_v1 = vshrl.u32 %v4277_v43, 16  ;;  %v2383_v43 = vor.u32 %v2382_v38, %v2379_v15  ;;  %v4349_v15 = vld [vmem:[%s4560_s9 + $0x218] sm:$0xff]  }
 0x1e7   : > { %3931 = vmatpush3.bf16.msra.mxu1 %v5204_v11  ;;  %3912 = vmatprep.subr.bf16.mxu0 %v4456_v2 }
 0x1e8   : > { %3932 = vmatprep.subr.bf16.mxu1 %v4456_v2 }
 0x1ea   : > { %3913 = vmatpush3.bf16.msra.mxu0 %v4979_v46  ;;  %v2242_v46 = vrot.slane %v2240_v62, 1  ;;  %v2430_v62 = vrot.slane %v4280_v22, 2  ;;  %v4350_v22 = vld [vmem:[%s4560_s9 + $0x1d0] sm:$0xff]  }
 0x1eb   : > { %3933 = vmatpush3.bf16.msra.mxu1 %v5215_v17  ;;  %3914 = vmatprep.subr.bf16.mxu0 %v4456_v2 }
 0x1ec   : > { %3934 = vmatprep.subr.bf16.mxu1 %v4456_v2 }
 0x1ee   : > { %3915 = vmatpush3.bf16.msra.mxu0 %v4986_v4  ;;  %v2243_v4 = vor.u32 %v2242_v46, %v2238_v1  ;;  %v4325_v1 = vld [vmem:[%s4560_s9 + $0x100] sm:$0xff]  }
 0x1ef   : > { %3935 = vmatpush3.bf16.msra.mxu1 %v5225_v26  ;;  %3916 = vmatprep.subr.bf16.mxu0 %v4456_v2 }
 0x1f0   : > { %3936 = vmatprep.subr.bf16.mxu1 %v4456_v2 }
 0x1f2   : > { %3917 = vmatpush3.bf16.msra.mxu0 %v4994_v0 }
 0x1f3   : > { %3937 = vmatpush3.bf16.msra.mxu1 %v5235_v32  ;;  %3918 = vmatprep.subr.bf16.mxu0 %v4456_v2  ;;  %v5776_v32 = vld [vmem:[#allocation6_spill] sm:$0xff] }
 0x1f4   : > { %3938 = vmatprep.subr.bf16.mxu1 %v4456_v2 }
 0x1f6   : > { %3919 = vmatpush3.bf16.msra.mxu0 %v5001_v18 }
 0x1f7   : > { %3939 = vmatpush3.bf16.msra.mxu1 %v5245_v49  ;;  %3944 = vmatprep.subr.bf16.mxu0 %v4456_v2  ;;  %v5777_v49 = vld [vmem:[#allocation13_spill] sm:$0xff] }
 0x1f8   : > { %3964 = vmatprep.subr.bf16.mxu1 %v4456_v2 }
 0x1f9   : > { %v1627_v6 = vpop.f32.mrf.mxu0  ;;  %3921 = vmatmul.mubr.bf16.vlgmr.msra.gmra.mxu0 %v5424_v16  ;;  %v5787_v16 = vld [vmem:[#allocation12_spill] sm:$0xff] }
 0x1fa   : > { %v1674_v0 = vpop.f32.mrf.mxu1  ;;  %3941 = vmatmul.mubr.bf16.vlgmr.msra.gmra.mxu1 %v2243_v4  ;;  %3945 = vmatpush3.bf16.msra.mxu0 %v5174_v40  ;;  %v1633_v31 = vadd.f32 %v1627_v6, %v1576_v54  ;;  %v4334_v54 = vld [vmem:[%s4560_s9 + $0x150] sm:$0xff]  }
 0x1fb   : > { %3965 = vmatpush3.bf16.msra.mxu1 %v5258_v14  ;;  %v3682_v3 = vpop.f32.mrf.mxu0  ;;  %3946 = vmatprep.subr.bf16.mxu0 %v4456_v2  ;;  %v5778_v14 = vld [vmem:[#allocation14_spill] sm:$0xff] }
 0x1fc   : > { %v3702_v18 = vpop.f32.mrf.mxu1  ;;  %3966 = vmatprep.subr.bf16.mxu1 %v4456_v2  ;;  %3960 = vmatprep.mubr.msk.bf16.mxu0 %vm4457_vm0, %v4456_v2  ;;  %v1680_v63 = vadd.f32 %v1674_v0, %v1633_v31  ;;  %v4326_v0 = vld [vmem:[%s4560_s9 + $0x1b8] sm:$0xff]  }
 0x1fd   : > { %v1630_v11 = vpop.f32.mrf.mxu0  ;;  %3980 = vmatprep.mubr.msk.bf16.mxu1 %vm4457_vm0, %v4456_v2 }
 0x1fe   : > { %v1677_v17 = vpop.f32.mrf.mxu1  ;;  %3947 = vmatpush3.bf16.msra.mxu0 %v5188_v10  ;;  %v5779_v10 = vld [vmem:[#allocation16_spill] sm:$0xff] }
 0x1ff   : > { %3967 = vmatpush3.bf16.msra.mxu1 %v5272_v50  ;;  %v3683_v40 = vpop.f32.mrf.mxu0  ;;  %3948 = vmatprep.subr.bf16.mxu0 %v4456_v2  ;;  %v5780_v50 = vld [vmem:[#allocation7_spill] sm:$0xff]  ;;  %v4327_v11 = vld [vmem:[%s4560_s9 + $0x1b0] sm:$0xff]  }
 0x200   : > { %v3703_v26 = vpop.f32.mrf.mxu1  ;;  %3968 = vmatprep.subr.bf16.mxu1 %v4456_v2 }
 0x201   : > { %v4328_v26 = vld [vmem:[%s4560_s9 + $0x168] sm:$0xff]  }
 0x202   : > { %3949 = vmatpush3.bf16.msra.mxu0 %v5776_v32  ;;  %v4329_v32 = vld [vmem:[%s4560_s9 + $0x1a8] sm:$0xff]  }
 0x203   : > { %3969 = vmatpush3.bf16.msra.mxu1 %v5777_v49  ;;  %3950 = vmatprep.subr.bf16.mxu0 %v4456_v2  ;;  %v3048_v49 = vld [vmem:[%s4635_s6 + $0x18] sm:$0xc] }
 0x204   : > { %3970 = vmatprep.subr.bf16.mxu1 %v4456_v2 }
 0x206   : > { %3951 = vmatpush3.bf16.msra.mxu0 %v5778_v14  ;;  %v3049_v14 = vld [vmem:[%s4635_s6 + $0x1c] sm:$0x1] }
 0x207   : > { %3971 = vmatpush3.bf16.msra.mxu1 %v5779_v10  ;;  %3952 = vmatprep.subr.bf16.mxu0 %v4456_v2  ;;  %v4331_v10 = vld [vmem:[%s4560_s9 + $0x1a0] sm:$0xff]  }
 0x208   : > { %3972 = vmatprep.subr.bf16.mxu1 %v4456_v2 }
 0x20a   : > { %3953 = vmatpush3.bf16.msra.mxu0 %v5780_v50  ;;  %v3050_v50 = vcombine.low %v3048_v49, %v3049_v14 }
 0x20b   : > { %3973 = vmatpush3.bf16.msra.mxu1 %v5781_v35  ;;  %3954 = vmatprep.subr.bf16.mxu0 %v4456_v2  ;;  %v4332_v35 = vld [vmem:[%s4560_s9 + $0x158] sm:$0xff]  }
 0x20c   : > { %3974 = vmatprep.subr.bf16.mxu1 %v4456_v2 }
 0x20e   : > { %3955 = vmatpush3.bf16.msra.mxu0 %v5782_v52  ;;  %v2481_v52 = vshrl.u32 %v3050_v50, 16 }
 0x20f   : > { %3975 = vmatpush3.bf16.msra.mxu1 %v5783_v53  ;;  %3956 = vmatprep.subr.bf16.mxu0 %v4456_v2  ;;  %v2484_v53 = vshll.u32 %v3050_v50, 16 }
 0x210   : > { %3976 = vmatprep.subr.bf16.mxu1 %v4456_v2  ;;  %v2483_v31 = vrot.slane %v2481_v52, 2 }
 0x212   : > { %3957 = vmatpush3.bf16.msra.mxu0 %v5784_v55  ;;  %v4335_v55 = vld [vmem:[%s4560_s9 + $0x190] sm:$0xff]  }
 0x213   : > { %3977 = vmatpush3.bf16.msra.mxu1 %v5327_v9  ;;  %3958 = vmatprep.subr.bf16.mxu0 %v4456_v2 }
 0x214   : > { %3978 = vmatprep.subr.bf16.mxu1 %v4456_v2 }
 0x216   : > { %3959 = vmatpush3.bf16.msra.mxu0 %v5785_v57  ;;  %v2486_v57 = vrot.slane %v2484_v53, 3 }
 0x217   : > { %3979 = vmatpush3.bf16.msra.mxu1 %v5337_v7  ;;  %3984 = vmatprep.subr.bf16.mxu0 %v4456_v2 }
 0x218   : > { %4004 = vmatprep.subr.bf16.mxu1 %v4456_v2 }
 0x219   : > { %v1728_v48 = vpop.f32.mrf.mxu0  ;;  %3961 = vmatmul.mubr.bf16.vlgmr.msra.gmra.mxu0 %v3039_v60  ;;  %v4336_v60 = vld [vmem:[%s4560_s9 + $0x148] sm:$0xff]  }
 0x21a   : > { %v1734_v51 = vadd.f32 %v1728_v48, %v1680_v63  ;;  %v1769_v9 = vpop.f32.mrf.mxu1  ;;  %3981 = vmatmul.mubr.bf16.vlgmr.msra.gmra.mxu1 %v2329_v42  ;;  %3985 = vmatpush3.bf16.msra.mxu0 %v5786_v19  ;;  %v3052_v42 = vcombine.low %v3051_v56, %v3049_v14  ;;  %v4337_v63 = vld [vmem:[%s4560_s9 + $0x188] sm:$0xff]   ;;  %v2487_v48 = vor.u32 %v2486_v57, %v2483_v31  ;;  %v4339_v19 = vld [vmem:[%s4560_s9 + $0x180] sm:$0xff]  }
 0x21b   : > { %4005 = vmatpush3.bf16.msra.mxu1 %v5348_v24  ;;  %v3722_v8 = vpop.f32.mrf.mxu0  ;;  %3986 = vmatprep.subr.bf16.mxu0 %v4456_v2 }
 0x21c   : > { %v1775_v41 = vadd.f32 %v1769_v9, %v1734_v51  ;;  %v3742_v7 = vpop.f32.mrf.mxu1  ;;  %4006 = vmatprep.subr.bf16.mxu1 %v4456_v2  ;;  %4000 = vmatprep.mubr.msk.bf16.mxu0 %vm4457_vm0, %v4456_v2  ;;  %v4338_v51 = vld [vmem:[%s4560_s9 + $0x140] sm:$0xff]   ;;  %v2534_v9 = vrot.slane %v3052_v42, 3 }
 0x21d   : > { %v1731_v5 = vpop.f32.mrf.mxu0  ;;  %4020 = vmatprep.mubr.msk.bf16.mxu1 %vm4457_vm0, %v4456_v2  ;;  %v4340_v7 = vld [vmem:[%s4560_s9 + $0x1f8] sm:$0xff]  }
 0x21e   : > { %v1778_v29 = vadd.f32 %v1777_v36, %v1775_v41  ;;  %v1772_v44 = vpop.f32.mrf.mxu1  ;;  %3987 = vmatpush3.bf16.msra.mxu0 %v5787_v16  ;;  %v4341_v5 = vld [vmem:[%s4560_s9 + $0x238] sm:$0xff]  }
 0x21f   : > { %4007 = vmatpush3.bf16.msra.mxu1 %v5362_v20  ;;  %v3723_v24 = vpop.f32.mrf.mxu0  ;;  %3988 = vmatprep.subr.bf16.mxu0 %v4456_v2  ;;  %v4321_v20 = vld [vmem:[%s4560_s9 + $0x120] sm:$0xff]  }
 0x220   : > { %1779 = vst [vmem:[#allocation2 + $0x4] sm:$0xf] %v1778_v29  ;;  %v3743_v47 = vpop.f32.mrf.mxu1  ;;  %4008 = vmatprep.subr.bf16.mxu1 %v4456_v2 }
 0x222   : > { %3989 = vmatpush3.bf16.msra.mxu0 %v5788_v61  ;;  %v4342_v61 = vld [vmem:[%s4560_s9 + $0x1f0] sm:$0xff]  }
 0x223   : > { %4009 = vmatpush3.bf16.msra.mxu1 %v4320_v21  ;;  %3990 = vmatprep.subr.bf16.mxu0 %v4456_v2  ;;  %v4343_v21 = vld [vmem:[%s4560_s9 + $0x230] sm:$0xff]  }
 0x224   : > { %4010 = vmatprep.subr.bf16.mxu1 %v4456_v2 }
 0x226   : > { %3991 = vmatpush3.bf16.msra.mxu0 %v5789_v12 }
 0x227   : > { %4011 = vmatpush3.bf16.msra.mxu1 %v4321_v20  ;;  %3992 = vmatprep.subr.bf16.mxu0 %v4456_v2 }
 0x228   : > { %4012 = vmatprep.subr.bf16.mxu1 %v4456_v2 }
 0x22a   : > { %3993 = vmatpush3.bf16.msra.mxu0 %v5790_v27  ;;  %v4345_v27 = vld [vmem:[%s4560_s9 + $0x228] sm:$0xff]  }
 0x22b   : > { %4013 = vmatpush3.bf16.msra.mxu1 %v4322_v45  ;;  %3994 = vmatprep.subr.bf16.mxu0 %v4456_v2  ;;  %v3053_v45 = vld [vmem:[%s4635_s6 + $0x1c] sm:$0x3] }
 0x22c   : > { %4014 = vmatprep.subr.bf16.mxu1 %v4456_v2 }
 0x22e   : > { %3995 = vmatpush3.bf16.msra.mxu0 %v5791_v58  ;;  %v3054_v58 = vcombine.low %v3051_v56, %v3053_v45  ;;  %v2225_v56 = vld [vmem:[#allocation2 + $0x8] sm:$0xf] }
 0x22f   : > { %4015 = vmatpush3.bf16.msra.mxu1 %v4323_v34  ;;  %3996 = vmatprep.subr.bf16.mxu0 %v4456_v2  ;;  %v4348_v34 = vld [vmem:[%s4560_s9 + $0x1d8] sm:$0xff]  }
 0x230   : > { %4016 = vmatprep.subr.bf16.mxu1 %v4456_v2  ;;  %v2582_v38 = vshrl.u32 %v3054_v58, 16 }
 0x232   : > { %3997 = vmatpush3.bf16.msra.mxu0 %v5792_v33  ;;  %v2585_v33 = vshll.u32 %v3054_v58, 16 }
 0x233   : > { %4017 = vmatpush3.bf16.msra.mxu1 %v4324_v39  ;;  %3998 = vmatprep.subr.bf16.mxu0 %v4456_v2  ;;  %v4351_v39 = vld [vmem:[%s4560_s9 + $0x210] sm:$0xff]  }
 0x234   : > { %4018 = vmatprep.subr.bf16.mxu1 %v4456_v2 }
 0x236   : > { %3999 = vmatpush3.bf16.msra.mxu0 %v5341_v23 }
 0x237   : > { %4019 = vmatpush3.bf16.msra.mxu1 %v4325_v1  ;;  %4024 = vmatprep.subr.bf16.mxu0 %v4456_v2  ;;  %v4352_v1 = vld [vmem:[%s4560_s9 + $0x1c8] sm:$0xff]  }
 0x238   : > { %4044 = vmatprep.subr.bf16.mxu1 %v4456_v2 }
 0x239   : > { %v1831_v46 = vpop.f32.mrf.mxu0  ;;  %4001 = vmatmul.mubr.bf16.vlgmr.msra.gmra.mxu0 %v2383_v43  ;;  %v2584_v43 = vrot.slane %v2582_v38, 3 }
 0x23a   : > { %v1871_v4 = vpop.f32.mrf.mxu1  ;;  %4021 = vmatmul.mubr.bf16.vlgmr.msra.gmra.mxu1 %v2430_v62  ;;  %4025 = vmatpush3.bf16.msra.mxu0 %v5352_v28  ;;  %v2587_v62 = vrot.slane %v2585_v33, 4 }
 0x23b   : > { %v5567_v6 = vadd.f32 %v1871_v4, %v1831_v46  ;;  %4045 = vmatpush3.bf16.msra.mxu1 %v4326_v0  ;;  %v3762_v23 = vpop.f32.mrf.mxu0  ;;  %4026 = vmatprep.subr.bf16.mxu0 %v4456_v2  ;;  %v4353_v46 = vld [vmem:[%s4560_s9 + $0x208] sm:$0xff]   ;;  %v4355_v0 = vld [vmem:[%s4560_s9 + $0x200] sm:$0xff]  }
 0x23c   : > { %v3782_v3 = vpop.f32.mrf.mxu1  ;;  %4046 = vmatprep.subr.bf16.mxu1 %v4456_v2  ;;  %4040 = vmatprep.mubr.msk.bf16.mxu0 %vm4457_vm0, %v4456_v2  ;;  %v2588_v4 = vor.u32 %v2587_v62, %v2584_v43 }
 0x23d   : > { %v1834_v18 = vpop.f32.mrf.mxu0  ;;  %4060 = vmatprep.mubr.msk.bf16.mxu1 %vm4457_vm0, %v4456_v2 }
 0x23e   : > { %v1874_v28 = vpop.f32.mrf.mxu1  ;;  %4027 = vmatpush3.bf16.msra.mxu0 %v5366_v13  ;;  %v4330_v13 = vld [vmem:[%s4560_s9 + $0x160] sm:$0xff]  }
 0x23f   : > { %4047 = vmatpush3.bf16.msra.mxu1 %v4327_v11  ;;  %v3763_v17 = vpop.f32.mrf.mxu0  ;;  %4028 = vmatprep.subr.bf16.mxu0 %v4456_v2 }
 0x240   : > { %v3783_v40 = vpop.f32.mrf.mxu1  ;;  %4048 = vmatprep.subr.bf16.mxu1 %v4456_v2 }
 0x242   : > { %4029 = vmatpush3.bf16.msra.mxu0 %v4328_v26 }
 0x243   : > { %4049 = vmatpush3.bf16.msra.mxu1 %v4329_v32  ;;  %4030 = vmatprep.subr.bf16.mxu0 %v4456_v2 }
 0x244   : > { %4050 = vmatprep.subr.bf16.mxu1 %v4456_v2 }
 0x246   : > { %4031 = vmatpush3.bf16.msra.mxu0 %v4330_v13 }
 0x247   : > { %4051 = vmatpush3.bf16.msra.mxu1 %v4331_v10  ;;  %4032 = vmatprep.subr.bf16.mxu0 %v4456_v2 }
 0x248   : > { %4052 = vmatprep.subr.bf16.mxu1 %v4456_v2 }
 0x24a   : > { %4033 = vmatpush3.bf16.msra.mxu0 %v4332_v35 }
 0x24b   : > { %4053 = vmatpush3.bf16.msra.mxu1 %v4333_v59  ;;  %4034 = vmatprep.subr.bf16.mxu0 %v4456_v2 }
 0x24c   : > { %4054 = vmatprep.subr.bf16.mxu1 %v4456_v2 }
 0x24e   : > { %4035 = vmatpush3.bf16.msra.mxu0 %v4334_v54 }
 0x24f   : > { %4055 = vmatpush3.bf16.msra.mxu1 %v4335_v55  ;;  %4036 = vmatprep.subr.bf16.mxu0 %v4456_v2 }
 0x250   : > { %4056 = vmatprep.subr.bf16.mxu1 %v4456_v2 }
 0x252   : > { %4037 = vmatpush3.bf16.msra.mxu0 %v4336_v60 }
 0x253   : > { %4057 = vmatpush3.bf16.msra.mxu1 %v4337_v63  ;;  %4038 = vmatprep.subr.bf16.mxu0 %v4456_v2 }
 0x254   : > { %4058 = vmatprep.subr.bf16.mxu1 %v4456_v2 }
 0x256   : > { %4039 = vmatpush3.bf16.msra.mxu0 %v4338_v51 }
 0x257   : > { %4059 = vmatpush3.bf16.msra.mxu1 %v4339_v19  ;;  %4064 = vmatprep.subr.bf16.mxu0 %v4456_v2 }
 0x258   : > { %4084 = vmatprep.subr.bf16.mxu1 %v4456_v2 }
 0x259   : > { %v1917_v36 = vpop.f32.mrf.mxu0  ;;  %4041 = vmatmul.mubr.bf16.vlgmr.msra.gmra.mxu0 %v2487_v48 }
 0x25a   : > { %v1923_v8 = vadd.f32 %v1917_v36, %v5567_v6  ;;  %v1971_v41 = vpop.f32.mrf.mxu1  ;;  %4061 = vmatmul.mubr.bf16.vlgmr.msra.gmra.mxu1 %v2534_v9  ;;  %4065 = vmatpush3.bf16.msra.mxu0 %v4340_v7  ;;  %v4354_v6 = vld [vmem:[%s4560_s9 + $0x1c0] sm:$0xff]  }
 0x25b   : > { %4085 = vmatpush3.bf16.msra.mxu1 %v4341_v5  ;;  %v3802_v29 = vpop.f32.mrf.mxu0  ;;  %4066 = vmatprep.subr.bf16.mxu0 %v4456_v2 }
 0x25c   : > { %v5611_v44 = vadd.f32 %v1971_v41, %v1923_v8  ;;  %v3822_v16 = vpop.f32.mrf.mxu1  ;;  %4086 = vmatprep.subr.bf16.mxu1 %v4456_v2  ;;  %4080 = vmatprep.mubr.msk.bf16.mxu0 %vm4457_vm0, %v4456_v2 }
 0x25d   : > { %v1920_v24 = vpop.f32.mrf.mxu0  ;;  %4100 = vmatprep.mubr.msk.bf16.mxu1 %vm4457_vm0, %v4456_v2 }
 0x25e   : > { %v1974_v47 = vpop.f32.mrf.mxu1  ;;  %4067 = vmatpush3.bf16.msra.mxu0 %v4342_v61 }
 0x25f   : > { %4087 = vmatpush3.bf16.msra.mxu1 %v4343_v21  ;;  %v3803_v12 = vpop.f32.mrf.mxu0  ;;  %4068 = vmatprep.subr.bf16.mxu0 %v4456_v2 }
 0x260   : > { %v3823_v20 = vpop.f32.mrf.mxu1  ;;  %4088 = vmatprep.subr.bf16.mxu1 %v4456_v2 }
 0x262   : > { %4069 = vmatpush3.bf16.msra.mxu0 %v4344_v25 }
 0x263   : > { %4089 = vmatpush3.bf16.msra.mxu1 %v4345_v27  ;;  %4070 = vmatprep.subr.bf16.mxu0 %v4456_v2 }
 0x264   : > { %4090 = vmatprep.subr.bf16.mxu1 %v4456_v2 }
 0x266   : > { %4071 = vmatpush3.bf16.msra.mxu0 %v4346_v30 }
 0x267   : > { %4091 = vmatpush3.bf16.msra.mxu1 %v4347_v37  ;;  %4072 = vmatprep.subr.bf16.mxu0 %v4456_v2 }
 0x268   : > { %4092 = vmatprep.subr.bf16.mxu1 %v4456_v2 }
 0x26a   : > { %4073 = vmatpush3.bf16.msra.mxu0 %v4348_v34 }
 0x26b   : > { %4093 = vmatpush3.bf16.msra.mxu1 %v4349_v15  ;;  %4074 = vmatprep.subr.bf16.mxu0 %v4456_v2 }
 0x26c   : > { %4094 = vmatprep.subr.bf16.mxu1 %v4456_v2 }
 0x26e   : > { %4075 = vmatpush3.bf16.msra.mxu0 %v4350_v22 }
 0x26f   : > { %4095 = vmatpush3.bf16.msra.mxu1 %v4351_v39  ;;  %4076 = vmatprep.subr.bf16.mxu0 %v4456_v2 }
 0x270   : > { %4096 = vmatprep.subr.bf16.mxu1 %v4456_v2 }
 0x272   : > { %4077 = vmatpush3.bf16.msra.mxu0 %v4352_v1 }
 0x273   : > { %4097 = vmatpush3.bf16.msra.mxu1 %v4353_v46  ;;  %4078 = vmatprep.subr.bf16.mxu0 %v4456_v2 }
 0x274   : > { %4098 = vmatprep.subr.bf16.mxu1 %v4456_v2 }
 0x276   : > { %4079 = vmatpush3.bf16.msra.mxu0 %v4354_v6 }
 0x277   : > { %4099 = vmatpush3.bf16.msra.mxu1 %v4355_v0 }
 0x279   : > { %v2018_v23 = vpop.f32.mrf.mxu0  ;;  %4081 = vmatmul.mubr.bf16.vlgmr.msra.gmra.mxu0 %v2588_v4 }
 0x27a   : > { %v2075_v3 = vpop.f32.mrf.mxu1  ;;  %4101 = vmatmul.mubr.bf16.vlgmr.msra.gmra.mxu1 %v3053_v45  ;;  %v2024_v59 = vadd.f32 %v2018_v23, %v5611_v44  ;;  %v2673_v23 = vld [vmem:[#allocation2 + $0xc] sm:$0xf] }
 0x27b   : > { %v3842_v18 = vpop.f32.mrf.mxu0 }
 0x27c   : > { %v3862_v28 = vpop.f32.mrf.mxu1  ;;  %v2081_v52 = vadd.f32 %v2075_v3, %v2024_v59 }
 0x27d   : > { %v2021_v11 = vpop.f32.mrf.mxu0 }
 0x27e   : > { %v2078_v17 = vpop.f32.mrf.mxu1 }
 0x27f   : > { %v3843_v40 = vpop.f32.mrf.mxu0 }
 0x280   : > { %v3863_v26 = vpop.f32.mrf.mxu1 }
 0x299   : > { %v2122_v32 = vpop.f32.mrf.mxu0 }
 0x29a   : > { %v2176_v13 = vpop.f32.mrf.mxu1  ;;  %v2128_v53 = vadd.f32 %v2122_v32, %v2081_v52 }
 0x29b   : > { %v3882_v49 = vpop.f32.mrf.mxu0 }
 0x29c   : > { %v3902_v14 = vpop.f32.mrf.mxu1  ;;  %v2182_v54 = vadd.f32 %v2176_v13, %v2128_v53 }
 0x29d   : > { %v2125_v2 = vpop.f32.mrf.mxu0 }
 0x29e   : > { %v2179_v10 = vpop.f32.mrf.mxu1 }
 0x29f   : > { %v3883_v50 = vpop.f32.mrf.mxu0 }
 0x2a0   : > { %v3903_v35 = vpop.f32.mrf.mxu1 }
 0x2b9   : > { %v2217_v55 = vpop.f32.mrf.mxu0 }
 0x2ba   : > { %v2223_v31 = vadd.f32 %v2217_v55, %v2182_v54  ;;  %v2279_v57 = vpop.f32.mrf.mxu1 }
 0x2bb   : > { %v3922_v60 = vpop.f32.mrf.mxu0 }
 0x2bc   : > { %v2226_v42 = vadd.f32 %v2225_v56, %v2223_v31  ;;  %v3942_v63 = vpop.f32.mrf.mxu1 }
 0x2bd   : > { %v2220_v48 = vpop.f32.mrf.mxu0 }
 0x2be   : > { %2227 = vst [vmem:[#allocation2 + $0x8] sm:$0xf] %v2226_v42  ;;  %v2282_v51 = vpop.f32.mrf.mxu1 }
 0x2bf   : > { %v3923_v9 = vpop.f32.mrf.mxu0 }
 0x2c0   : > { %v3943_v19 = vpop.f32.mrf.mxu1 }
 0x2d9   : > { %v2319_v36 = vpop.f32.mrf.mxu0 }
 0x2da   : > { %v2320_v8 = vadd.f32 %v2319_v36, %v2279_v57  ;;  %v2365_v41 = vpop.f32.mrf.mxu1 }
 0x2db   : > { %v3962_v7 = vpop.f32.mrf.mxu0 }
 0x2dc   : > { %v2371_v5 = vadd.f32 %v2365_v41, %v2320_v8  ;;  %v3982_v29 = vpop.f32.mrf.mxu1 }
 0x2dd   : > { %v2322_v44 = vpop.f32.mrf.mxu0 }
 0x2de   : > { %v2368_v16 = vpop.f32.mrf.mxu1 }
 0x2df   : > { %v3963_v24 = vpop.f32.mrf.mxu0 }
 0x2e0   : > { %v3983_v47 = vpop.f32.mrf.mxu1 }
 0x2f9   : > { %v2419_v61 = vpop.f32.mrf.mxu0 }
 0x2fa   : > { %v2466_v21 = vpop.f32.mrf.mxu1  ;;  %v2425_v43 = vadd.f32 %v2419_v61, %v2371_v5 }
 0x2fb   : > { %v4002_v12 = vpop.f32.mrf.mxu0 }
 0x2fc   : > { %v4022_v20 = vpop.f32.mrf.mxu1  ;;  %v2472_v62 = vadd.f32 %v2466_v21, %v2425_v43 }
 0x2fd   : > { %v2422_v25 = vpop.f32.mrf.mxu0 }
 0x2fe   : > { %v2469_v27 = vpop.f32.mrf.mxu1 }
 0x2ff   : > { %v4003_v45 = vpop.f32.mrf.mxu0 }
 0x300   : > { %v4023_v30 = vpop.f32.mrf.mxu1 }
 0x319   : > { %v2523_v37 = vpop.f32.mrf.mxu0 }
 0x31a   : > { %v2570_v58 = vpop.f32.mrf.mxu1  ;;  %v2529_v1 = vadd.f32 %v2523_v37, %v2472_v62 }
 0x31b   : > { %v4042_v34 = vpop.f32.mrf.mxu0 }
 0x31c   : > { %v4062_v15 = vpop.f32.mrf.mxu1  ;;  %v2576_v46 = vadd.f32 %v2570_v58, %v2529_v1 }
 0x31d   : > { %v2526_v38 = vpop.f32.mrf.mxu0 }
 0x31e   : > { %v2573_v33 = vpop.f32.mrf.mxu1 }
 0x31f   : > { %v4043_v22 = vpop.f32.mrf.mxu0 }
 0x320   : > { %v4063_v39 = vpop.f32.mrf.mxu1 }
 0x339   : > { %v2624_v4 = vpop.f32.mrf.mxu0 }
 0x33a   : > { %v2630_v6 = vadd.f32 %v2624_v4, %v2576_v46  ;;  %v2665_v0 = vpop.f32.mrf.mxu1 }
 0x33b   : > { %v4082_v3 = vpop.f32.mrf.mxu0 }
 0x33c   : > { %v2671_v18 = vadd.f32 %v2665_v0, %v2630_v6  ;;  %v4102_v28 = vpop.f32.mrf.mxu1  ;;  %2679 = sbr.rel (%p3055_p10) target bundleno = 859 (0x35b), region = 40 }
 0x33d   : > { %v2627_v11 = vpop.f32.mrf.mxu0 }
 0x33e   : > { %v2674_v17 = vadd.f32 %v2673_v23, %v2671_v18  ;;  %v2668_v40 = vpop.f32.mrf.mxu1 }
 0x33f   : > { %v4083_v26 = vpop.f32.mrf.mxu0 }
 0x340   : > { %2675 = vst [vmem:[#allocation2 + $0xc] sm:$0xf] %v2674_v17  ;;  %v4103_v32 = vpop.f32.mrf.mxu1 }
 0x341   : > { %v2680_v13 = vld [vmem:[#allocation2] sm:$0xf]  ;;  %vm2688_vm1 = vcmask 1043456   ;;  %v2681_v49 = vld [vmem:[#allocation2 + $0x4] sm:$0xf] }
 0x342   : > { %2684 = vst [vmem:[%s4575_s13] sm:$0xf] %v2680_v13  ;;  %v2689_v14 = vsel %vm2688_vm1, %v2680_v13, 0.0  ;;  %v2704_v2 = vmul.f32 %v2680_v13, %v2680_v13  ;;  %2685 = vst [vmem:[%s4575_s13 + $0x4] sm:$0xf] %v2681_v49  ;;  %v2690_v10 = vsel %vm2688_vm1, %v2681_v49, 0.0  ;;  %v2705_v50 = vmul.f32 %v2681_v49, %v2681_v49 }
 0x343   : > { %v2682_v35 = vld [vmem:[#allocation2 + $0x8] sm:$0xf]  ;;  %v2691_v52 = vadd.f32 %v2690_v10, %v2689_v14 }
 0x344   : > { %2686 = vst [vmem:[%s4575_s13 + $0x8] sm:$0xf] %v2682_v35  ;;  %v2692_v53 = vsel %vm2688_vm1, %v2682_v35, 0.0  ;;  %v2706_v54 = vmul.f32 %v2682_v35, %v2682_v35  ;;  %v2708_v55 = vsel %vm2688_vm1, %v2704_v2, 0.0  ;;  %v2709_v56 = vsel %vm2688_vm1, %v2705_v50, 0.0 }
 0x345   : > { %v2710_v60 = vadd.f32 %v2709_v56, %v2708_v55  ;;  %v2693_v42 = vadd.f32 %v2692_v53, %v2691_v52 }
 0x346   : > { %v2711_v63 = vsel %vm2688_vm1, %v2706_v54, 0.0 }
 0x347   : > { %v2683_v59 = vld [vmem:[#allocation2 + $0xc] sm:$0xf]  ;;  %v2712_v51 = vadd.f32 %v2711_v63, %v2710_v60 }
 0x348   : > { %2687 = vst [vmem:[%s4575_s13 + $0xc] sm:$0xf] %v2683_v59  ;;  %v2694_v31 = vsel %vm2688_vm1, %v2683_v59, 0.0  ;;  %v2707_v57 = vmul.f32 %v2683_v59, %v2683_v59 }
 0x349   : > { %v2695_v9 = vadd.f32 %v2694_v31, %v2693_v42 }
 0x34a   : > { %v2713_v48 = vsel %vm2688_vm1, %v2707_v57, 0.0 }
 0x34b   : > { %v2696_v19 = vsel %vm2688_vm1, %v2695_v9, 0.0  ;;  %v2714_v36 = vadd.f32 %v2713_v48, %v2712_v51 }
 0x34c   : > { %v2697_v8 = vrot.slane %v2696_v19, 4 }
 0x34d   : > { %v2715_v41 = vsel %vm2688_vm1, %v2714_v36, 0.0 }
 0x34e   : > { %v2698_v7 = vadd.f32 %v2697_v8, %v2696_v19  ;;  %v2716_v5 = vrot.slane %v2715_v41, 4 }
 0x350   : > { %v2699_v29 = vrot.slane %v2698_v7, 2  ;;  %v2717_v44 = vadd.f32 %v2716_v5, %v2715_v41 }
 0x352   : > { %v2700_v16 = vadd.f32 %v2699_v29, %v2698_v7  ;;  %v2718_v24 = vrot.slane %v2717_v44, 2 }
 0x354   : > { %v2701_v47 = vrot.slane %v2700_v16, 1  ;;  %v2719_v61 = vadd.f32 %v2718_v24, %v2717_v44 }
 0x356   : > { %v2702_v21 = vadd.f32 %v2701_v47, %v2700_v16  ;;  %v2720_v12 = vrot.slane %v2719_v61, 1 }
 0x358   : > { %2703 = vst [vmem:[%s294_s30] sm:$0x1] %v2702_v21  ;;  %v2721_v20 = vadd.f32 %v2720_v12, %v2719_v61 }
 0x35a   : > { %2722 = vst [vmem:[%s300_s7] sm:$0x1] %v2721_v20 }
 0x35b PF: > { %s18_s22 = sadd.s32 1, %s4450_s22   ;;  %s5793_s15 = smov %s4426_s16 }
 0x35c   : > { %p15_p11 = scmp.ge.s32.totalorder %s18_s22, 20   ;;  %s5794_s16 = smov %s4430_s17 }
 0x35d   : > { %s5795_s17 = smov %s4537_s28  ;;  %s5796_s18 = smov %s4442_s20 }
 0x35e   : > { %s5797_s19 = smov %s4446_s21  ;;  %s5798_s20 = smov %s5801_s24 }
 0x35f   : > { %s5799_s21 = smov %s5805_s25  ;;  %17 = sbr.rel (!%p15_p11) target bundleno = 5 (0x5), region = 110 }
 0x364   :  { %2786 = vsyncpa [#allocation4], 1 }
 0x365   :  { %2788 = vsyncpa [#allocation4 + $0x1], 1 }

// kernel: up_forward.6
= control target key start
LH: loop header
LB: loop body
LE: loop exit
PB: predicated region body
PF: predicated region fallthrough
CT: control target
= control target key end

     0   :  { %10 = vsyncpa [#allocation4], 0  ;;  %s8056_s0 = inlined_call_operand.vmem [shape: bf16[2,18,18,8], index: 0, kind: input, shape index: {}]   ;;  %s8057_s1 = inlined_call_operand.hbm [shape: bf16[9,72,128], index: 1, kind: input, shape index: {}]   ;;  %s8058_s2 = inlined_call_operand.vmem [shape: f32[2,10,10,128], index: 2, kind: output, shape index: {0}]   ;;  %s8059_s3 = inlined_call_operand.vmem [shape: f32[2,1,128], index: 3, kind: output, shape index: {1}]   ;;  %s8060_s4 = inlined_call_operand.vmem [shape: f32[2,1,128], index: 4, kind: output, shape index: {2}]  }
   0x1   :  { %12 = vsyncpa [#allocation4 + $0x1], 0  ;;  %s7071_s15 = smov 0   ;;  %s7073_s16 = smov 0  }
   0x2   :  { %s7075_s17 = smov 0   ;;  %s7077_s18 = smov 0  }
   0x3   :  { %s7079_s19 = smov 0   ;;  %s7081_s20 = smov 0  }
   0x4   :  { %s7083_s21 = smov 0   ;;  %s7085_s22 = smov 0  }
   0x5 LB: > { %s5740_s23 = sadd.s32 4294967295, %s7038_s22   ;;  %s30_s24 = sadd.s32 1, %s7030_s20  ;;  %s7038_s22 = sphi %s7085_s22, %s18_s22   ;;  %s7034_s21 = sphi %s7083_s21, %s8069_s21   ;;  %s7030_s20 = sphi %s7081_s20, %s8068_s20   ;;  %s7026_s19 = sphi %s7079_s19, %s8067_s19   ;;  %s7022_s18 = sphi %s7077_s18, %s8066_s18   ;;  %s7018_s17 = sphi %s7075_s17, %s8065_s17   ;;  %s7014_s16 = sphi %s7073_s16, %s8064_s16   ;;  %s7010_s15 = sphi %s7071_s15, %s8063_s15  }
   0x6   : > { %p31_p0 = scmp.ge.s32.totalorder %s30_s24, 9  ;;  %s37_s25 = sadd.s32 1, %s7034_s21 }
   0x7   : > { %s72_s26 = sadd.s32 1, %s7018_s17  ;;  %p79_p1 = scmp.ne.s32.totalorder %s7018_s17, %s7014_s16 }
   0x8   : > { %s8071_s24 = smov (%p31_p0, %s30_s24), 0  ;;  %s8073_s25 = smov (!%p31_p0, %s37_s25), %s7034_s21 }
   0x9   : > { %s67_s27 = ssub.s32 %s7030_s20, %s8071_s24  ;;  %p80_p2 = scmp.eq.s32.totalorder %s7038_s22, 0 }
   0xa   : > { %p39_p3 = scmp.ge.s32.totalorder %s8073_s25, 2  ;;  %p70_p4 = scmp.eq.s32.totalorder %s67_s27, 0 }
   0xb   : > { %p81_p5 = por %p80_p2, %p79_p1  ;;  %p85_p6 = scmp.ne.s32.totalorder %s7014_s16, %s7010_s15 }
   0xc   : > { %s8075_s25 = smov (%p39_p3, %s8073_s25), 0  ;;  %p86_p7 = scmp.eq.s32.totalorder %s5740_s23, 0 }
   0xd   : > { %s7125_s28 = scalar_select %p70_p4, %s7018_s17, %s72_s26  }
   0xe   : > { %p6774_p8 = scmp.lt.s32.totalorder %s7038_s22, 18  ;;  %s201_s29 = sand.u32 1, %s7018_s17  }
   0xf   : > { %p7129_p9 = por %p86_p7, %p85_p6  ;;  %s6763_s5 = smul.u32 36, %s201_s29 }
  0x10   : > { %p7133_p10 = pnand %p6774_p8, %p81_p5  ;;  %s6764_s7 = smul.u32 576, %s7030_s20 }
  0x11   : > { %s205_s11 = scalar_lea.vmem [#allocation3], %s6763_s5  ;;  %s202_s13 = scalar_lea.sflag [#allocation4], %s201_s29 }
  0x12   : > { %s212_s10 = scalar_lea.hbm %s8057_s1, %s6764_s7  ;;  %s213_s12 = sshll.u32 %s205_s11, 4  ;;  %s214_s12 = int_to_ptr.vmem [resolvable:$true] %s213_s12 }
  0x13   : > { %p6946_p11 = pneg %p7133_p10  ;;  %s6957_s14 = scalar_lea.vmem %s214_s12, 576 }
  0x14   : > { %p6958_p12 = scmp.ne.s32.totalorder %s214_s12, %s6957_s14  ;;  %s7040_s15 = smov [#allocation3]  }
  0x15   : > { %s6962_s23 = sshll.u32 %s7040_s15, 4  ;;  %s6963_s23 = int_to_ptr.vmem [resolvable:$false] %s6962_s23 }
  0x16   : > { %p6960_p13 = pnand %p6958_p12, %p6946_p11  ;;  %s6964_s26 = scalar_lea.vmem %s6963_s23, 1152 }
  0x17   : > { %p6965_p1 = scmp.lt.s32.totalorder %s214_s12, %s6963_s23  ;;  %p6966_p2 = scmp.lt.s32.totalorder %s6964_s26, %s6957_s14 }
  0x18   : > { %p6961_p0 = pneg %p6960_p13 }
  0x19   : > { %p6967_p3 = por %p6966_p2, %p6965_p1 }
  0x1b   : > { %p6968_p4 = pnand %p6967_p3, %p6961_p0 }
  0x1d   : > { %6971 = shalt.err (!%p6968_p4)
}
  0x1e   : > { %s7041_s27 = smov 64   ;;  %s7042_s29 = smov 4  }
  0x1f   : > { %6773 = dma.hbm_to_vmem [thread:$0]  (!%p7133_p10), %s212_s10, 576, %s214_s12, %s202_s13, %s7041_s27, %s7041_s27, %s7042_s29  }
  0x20   : > { %p5745_p5 = scmp.ge.s32.totalorder %s7038_s22, 1  ;;  %p221_p6 = scmp.lt.s32.totalorder %s7038_s22, 19 }
  0x22   : > { %p222_p7 = pnand %p5745_p5, %p221_p6 }
  0x23   : > { %s227_s5 = sand.u32 (!%p222_p7), 1, %s7014_s16  }
  0x24   : > { %225 = sbr.rel (%p222_p7) target bundleno = 671 (0x29f), region = 28  ;;  %s228_s8 = scalar_lea.sflag (!%p222_p7), [#allocation4], %s227_s5 }
  0x25   : > { %s6765_s7 = smul.u32 (!%p222_p7), 36, %s227_s5 }
  0x27   : > { %s7148_s9 = scalar_lea.vmem (!%p222_p7), [#allocation3], %s6765_s7 }
  0x29   : > { %7005 = dma.done.wait (%p7129_p9), %s228_s8, 576  }
  0x2a   : > { %7007 = vsyncadd (%p7129_p9), %s228_s8, 4294966720  ;;  %p276_p8 = scmp.lt.s32.totalorder %s7026_s19, 1  ;;  %p5748_p9 = scmp.ne.s32.totalorder %s7022_s18, 0 }
  0x2c   : > { %s8077_s19 = smov (!%p276_p8, %s7026_s19), 1  ;;  %305 = sbr.rel (%p5748_p9) target bundleno = 60 (0x3c), region = 36 }
  0x2d   : > { %s6766_s6 = smul.u32 216, %s8077_s19  ;;  %s294_s12 = scalar_lea.vmem %s8059_s3, %s8077_s19 }
  0x2e   : > { %s6767_s13 = smul.u32 160, %s8077_s19  ;;  %s300_s30 = scalar_lea.vmem %s8060_s4, %s8077_s19 }
  0x2f   : > { %s7171_s27 = scalar_lea.vmem %s8056_s0, %s6766_s6 }
  0x30   : > { %s7176_s7 = scalar_lea.vmem %s8058_s2, %s6767_s13 }
  0x31   : > { %v7043_v0 = vmov 0.0  }
  0x32   : > { %306 = vst [vmem:[#allocation2] sm:$0xff] %v7043_v0  ;;  %307 = vst [vmem:[#allocation2 + $0x38] sm:$0x3] %v7043_v0 }
  0x33   : > { %308 = vst [vmem:[#allocation2 + $0x50] sm:$0xff] %v7043_v0  ;;  %309 = vst [vmem:[#allocation2 + $0x18] sm:$0x3] %v7043_v0 }
  0x34   : > { %310 = vst [vmem:[#allocation2 + $0x30] sm:$0xff] %v7043_v0  ;;  %311 = vst [vmem:[#allocation2 + $0x68] sm:$0x3] %v7043_v0 }
  0x35   : > { %312 = vst [vmem:[#allocation2 + $0x78] sm:$0xff] %v7043_v0  ;;  %313 = vst [vmem:[#allocation2 + $0x80] sm:$0x3] %v7043_v0 }
  0x36   : > { %314 = vst [vmem:[#allocation2 + $0x8] sm:$0xff] %v7043_v0  ;;  %315 = vst [vmem:[#allocation2 + $0x88] sm:$0x3] %v7043_v0 }
  0x37   : > { %316 = vst [vmem:[#allocation2 + $0x28] sm:$0xff] %v7043_v0  ;;  %317 = vst [vmem:[#allocation2 + $0x40] sm:$0x3] %v7043_v0 }
  0x38   : > { %318 = vst [vmem:[#allocation2 + $0x58] sm:$0xff] %v7043_v0  ;;  %319 = vst [vmem:[#allocation2 + $0x10] sm:$0x3] %v7043_v0 }
  0x39   : > { %320 = vst [vmem:[#allocation2 + $0x98] sm:$0xff] %v7043_v0  ;;  %321 = vst [vmem:[#allocation2 + $0x60] sm:$0x3] %v7043_v0 }
  0x3a   : > { %322 = vst [vmem:[#allocation2 + $0x20] sm:$0xff] %v7043_v0  ;;  %323 = vst [vmem:[#allocation2 + $0x48] sm:$0x3] %v7043_v0 }
  0x3b   : > { %324 = vst [vmem:[#allocation2 + $0x70] sm:$0xff] %v7043_v0  ;;  %325 = vst [vmem:[#allocation2 + $0x90] sm:$0x3] %v7043_v0 }
  0x3c PF: > { %v326_v1 = vld [vmem:[%s7148_s9] sm:$0xf]  ;;  %vm357_vm0 = vcmask 1043456   ;;  %s6042_s8 = smul.u32 12, %s7022_s18  ;;  %v7044_v2 = vmov 0.0   ;;  %vm7045_vm1 = vmmov 0  }
  0x3d   : > { %6229 = vmatprep.subr.bf16.mxu1 %v7044_v2  ;;  %v7183_v3 = vsel %vm357_vm0, %v326_v1, 0  ;;  %6223 = vmatprep.subr.bf16.mxu0 %v7044_v2  ;;  %v327_v4 = vld [vmem:[%s7148_s9 + $0x4] sm:$0xf]  ;;  %vm353_vm2 = vcmask 64512   ;;  %v329_v6 = vld [vmem:[%s7148_s9 + $0xc] sm:$0xf] }
  0x3e   : > { %6230 = vmatpush3.bf16.msra.mxu1 %v7183_v3  ;;  %6231 = vmatprep.mubr.msk.bf16.mxu1 %vm7045_vm1, %v7044_v2  ;;  %v7191_v5 = vsel %vm357_vm0, %v327_v4, 0  ;;  %s7194_s6 = scalar_lea.vmem %s7171_s27, %s6042_s8  ;;  %v7210_v14 = vsel %vm357_vm0, %v329_v6, 0  ;;  %v328_v21 = vld [vmem:[%s7148_s9 + $0x8] sm:$0xf]  ;;  %v331_v28 = vld [vmem:[%s7148_s9 + $0x14] sm:$0xf] }
  0x3f   : > { %6224 = vmatpush3.bf16.msra.mxu0 %v7191_v5  ;;  %v338_v7 = vld [vmem:[%s7194_s6] sm:$0xf]  ;;  %v339_v8 = vld [vmem:[%s7194_s6 + $0x4] sm:$0x1]  ;;  %6225 = vmatprep.mubr.msk.bf16.mxu0 %vm7045_vm1, %v7044_v2  ;;  %v7233_v31 = vsel %vm357_vm0, %v328_v21, 0  ;;  %v7238_v37 = vsel %vm357_vm0, %v331_v28, 0 }
  0x40   : > { %v340_v9 = vld [vmem:[%s7194_s6 + $0x4] sm:$0x3]  ;;  %v5752_v11 = vcombine.low %v338_v7, %v339_v8  ;;  %v452_v12 = vld [vmem:[%s7194_s6] sm:$0xe]  ;;  %6235 = vmatprep.subr.bf16.mxu0 %v7044_v2  ;;  %6241 = vmatprep.subr.bf16.mxu1 %v7044_v2  ;;  %v7241_v38 = vld [vmem:[%s7194_s6 + $0x8] sm:$0x1] }
  0x41   : > { %v5750_v10 = vcombine.low %v338_v7, %v340_v9  ;;  %v7205_v13 = vld [vmem:[%s7194_s6 + $0x4] sm:$0x7]  ;;  %v7214_v16 = vld [vmem:[%s7194_s6] sm:$0xc]  ;;  %v5754_v36 = vcombine.low %v452_v12, %v340_v9  ;;  %v330_v41 = vld [vmem:[%s7148_s9 + $0x10] sm:$0xf]  ;;  %v5765_v42 = vcombine.low %v7241_v38, %v7241_v38 }
  0x42   : > { %v5756_v15 = vcombine.low %v452_v12, %v7205_v13  ;;  %v7217_v17 = vld [vmem:[%s7194_s6 + $0x4] sm:$0xf]  ;;  %6232 = vmatmul.mubr.msk.bf16.vlgmr.msra.gmra.mxu1 %vm353_vm2, %v5752_v11  ;;  %v736_v25 = vld [vmem:[%s7194_s6] sm:$0x8]  ;;  %v7257_v47 = vsel %vm357_vm0, %v330_v41, 0  ;;  %v5758_v54 = vcombine.low %v7214_v16, %v7205_v13  ;;  %p6039_p10 = scmp.ne.s32.totalorder %s7022_s18, 8 }
  0x43   : > { %v347_v18 = vshrl.u32 %v5750_v10, 16  ;;  %v349_v19 = vshll.u32 %v5750_v10, 16  ;;  %v5760_v20 = vcombine.low %v7214_v16, %v7217_v17  ;;  %6242 = vmatpush3.bf16.msra.mxu1 %v7210_v14  ;;  %6243 = vmatprep.mubr.msk.bf16.mxu1 %vm7045_vm1, %v7044_v2  ;;  %v7230_v29 = vld [vmem:[%s7194_s6 + $0x4] sm:$0xf]  ;;  %v456_v45 = vrot.slane %v5754_v36, 1 }
  0x44   : > { %v511_v22 = vshrl.u32 %v5756_v15, 16  ;;  %v514_v23 = vshll.u32 %v5756_v15, 16  ;;  %6253 = vmatprep.subr.bf16.mxu1 %v7044_v2  ;;  %v5764_v35 = vcombine.low %v736_v25, %v7230_v29  ;;  %v333_v46 = vld [vmem:[%s7148_s9 + $0x1c] sm:$0xf]  ;;  %v7260_v49 = vld [vmem:[%s7194_s6 + $0xc] sm:$0xf]  ;;  %v5767_v13 = vcombine.low %v7230_v29, %v7241_v38 }
  0x45   : > { %v351_v24 = vrot.slane %v349_v19, 1  ;;  %v626_v32 = vshrl.u32 %v5760_v20, 16  ;;  %v629_v33 = vshll.u32 %v5760_v20, 16  ;;  %v757_v52 = vshll.u32 %v5765_v42, 16  ;;  %v5771_v53 = vld [vmem:[%s7194_s6 + $0x10] sm:$0x3] }
  0x46   : > { %v513_v26 = vrot.slane %v511_v22, 1  ;;  %v516_v27 = vrot.slane %v514_v23, 2  ;;  %v749_v43 = vshrl.u32 %v5764_v35, 16  ;;  %v752_v44 = vshll.u32 %v5764_v35, 16  ;;  %v332_v57 = vld [vmem:[%s7148_s9 + $0x18] sm:$0xf] }
  0x47   : > { %v352_v30 = vor.u32 %v351_v24, %v347_v18  ;;  %v628_v39 = vrot.slane %v626_v32, 2  ;;  %v631_v40 = vrot.slane %v629_v33, 3  ;;  %v7267_v55 = vsel %vm357_vm0, %v333_v46, 0  ;;  %v682_v61 = vld [vmem:[%s7194_s6] sm:$0x8] }
  0x48   : > { %v517_v34 = vor.u32 %v516_v27, %v513_v26  ;;  %v751_v50 = vrot.slane %v749_v43, 3  ;;  %v754_v51 = vrot.slane %v752_v44, 4  ;;  %v5772_v56 = vcombine.low %v7260_v49, %v5771_v53  ;;  %v334_v7 = vld [vmem:[%s7148_s9 + $0x20] sm:$0xf]  ;;  %v5776_v11 = vld [vmem:[%s7194_s6 + $0xc] sm:$0xe] }
  0x49   : > { %6226 = vmatmul.mubr.msk.bf16.vlgmr.msra.gmra.mxu0 %vm353_vm2, %v352_v30  ;;  %v632_v48 = vor.u32 %v631_v40, %v628_v39  ;;  %v759_v59 = vrot.slane %v757_v52, 4  ;;  %v571_v60 = vrot.slane %v5758_v54, 2  ;;  %vm747_vm3 = vsmask.f32 4352  ;;  %v5779_v15 = vld [vmem:[%s7194_s6 + $0x10] sm:$0x7] }
  0x4a   : > { %6236 = vmatpush3.bf16.msra.mxu0 %v7233_v31  ;;  %6237 = vmatprep.mubr.msk.bf16.mxu0 %vm7045_vm1, %v7044_v2  ;;  %v755_v58 = vor.u32 %v754_v51, %v751_v50  ;;  %v7282_v62 = vsel %vm357_vm0, %v332_v57, 0  ;;  %v881_v63 = vshll.u32 %v5772_v56, 16  ;;  %v5762_v1 = vcombine.low %v682_v61, %v7217_v17  ;;  %v5782_v17 = vld [vmem:[%s7194_s6 + $0xc] sm:$0xc]  ;;  %v5770_v19 = vld [vmem:[%s7194_s6 + $0x10] sm:$0x1] }
  0x4b   : > { %6244 = vmatmul.mubr.msk.bf16.vlgmr.msra.gmra.mxu1 %vm353_vm2, %v517_v34  ;;  %6247 = vmatprep.subr.bf16.mxu0 %v7044_v2  ;;  %v879_v4 = vshrl.u32 %v5772_v56, 16  ;;  %v7298_v9 = vsel %vm357_vm0, %v334_v7, 0  ;;  %v5777_v12 = vcombine.low %v5776_v11, %v5771_v53  ;;  %v5780_v18 = vcombine.low %v5776_v11, %v5779_v15  ;;  %v5785_v24 = vld [vmem:[%s7194_s6 + $0x10] sm:$0xf]  ;;  %v5788_v26 = vld [vmem:[%s7194_s6 + $0xc] sm:$0x8] }
  0x4c   : > { %6254 = vmatpush3.bf16.msra.mxu1 %v7238_v37  ;;  %6255 = vmatprep.mubr.msk.bf16.mxu1 %vm7045_vm1, %v7044_v2  ;;  %v760_v0 = vsel %vm747_vm3, %v755_v58, %v759_v59  ;;  %v883_v6 = vrot.slane %v881_v63, 1  ;;  %v686_v8 = vrot.slane %v5762_v1, 3  ;;  %v5783_v20 = vcombine.low %v5782_v17, %v5779_v15  ;;  %v5791_v32 = vld [vmem:[%s7194_s6 + $0xc] sm:$0x8]  ;;  %v5792_v33 = vld [vmem:[%s7194_s6 + $0x10] sm:$0xf] }
  0x4d   : > { %6265 = vmatprep.subr.bf16.mxu1 %v7044_v2  ;;  %v980_v16 = vrot.slane %v5777_v12, 1  ;;  %v5774_v21 = vcombine.low %v7260_v49, %v5770_v19  ;;  %v1032_v22 = vshrl.u32 %v5780_v18, 16  ;;  %v1035_v23 = vshll.u32 %v5780_v18, 16  ;;  %v5793_v40 = vld [vmem:[%s7194_s6 + $0x14] sm:$0x1] }
  0x4e   : > { %v884_v10 = vor.u32 %v883_v6, %v879_v4  ;;  %v1089_v25 = vrot.slane %v5783_v20, 2  ;;  %v5786_v29 = vcombine.low %v5782_v17, %v5785_v24  ;;  %v5789_v30 = vcombine.low %v5788_v26, %v5785_v24  ;;  %v5801_v52 = vld [vmem:[%s7194_s6 + $0x1c] sm:$0x3]  ;;  %v5806_v54 = vld [vmem:[%s7194_s6 + $0x18] sm:$0xe] }
  0x4f   : > { %v1034_v27 = vrot.slane %v1032_v22, 1  ;;  %v1037_v28 = vrot.slane %v1035_v23, 2  ;;  %v5794_v38 = vcombine.low %v5791_v32, %v5792_v33  ;;  %v5795_v43 = vcombine.low %v5793_v40, %v5793_v40  ;;  %v7356_v56 = vld [vmem:[%s7194_s6 + $0x1c] sm:$0x7]  ;;  %v5812_v7 = vld [vmem:[%s7194_s6 + $0x18] sm:$0xc] }
  0x50   : > { %v1141_v35 = vshrl.u32 %v5786_v29, 16  ;;  %v1144_v36 = vshll.u32 %v5786_v29, 16  ;;  %v1198_v39 = vrot.slane %v5789_v30, 3  ;;  %v5797_v53 = vcombine.low %v5792_v33, %v5793_v40  ;;  %v5800_v61 = vld [vmem:[%s7194_s6 + $0x1c] sm:$0x1] }
  0x51   : > { %6238 = vmatmul.mubr.msk.bf16.vlgmr.msra.gmra.mxu0 %vm353_vm2, %v456_v45  ;;  %v1038_v34 = vor.u32 %v1037_v28, %v1034_v27  ;;  %v1257_v44 = vshrl.u32 %v5794_v38, 16  ;;  %v1260_v45 = vshll.u32 %v5794_v38, 16  ;;  %v1265_v51 = vshll.u32 %v5795_v43, 16  ;;  %v5821_v17 = vld [vmem:[%s7194_s6 + $0x18] sm:$0x8] }
  0x52   : > { %6248 = vmatpush3.bf16.msra.mxu0 %v7257_v47  ;;  %6249 = vmatprep.mubr.msk.bf16.mxu0 %vm7045_vm1, %v7044_v2  ;;  %v1143_v41 = vrot.slane %v1141_v35, 2  ;;  %v1146_v42 = vrot.slane %v1144_v36, 3  ;;  %v7388_v18 = vld [vmem:[%s7194_s6 + $0x1c] sm:$0xf]  ;;  %v5807_v23 = vcombine.low %v5806_v54, %v5801_v52  ;;  %v7393_v24 = vld [vmem:[%s7194_s6 + $0x20] sm:$0x1] }
  0x53   : > { %6256 = vmatmul.mubr.msk.bf16.vlgmr.msra.gmra.mxu1 %vm353_vm2, %v632_v48  ;;  %6259 = vmatprep.subr.bf16.mxu0 %v7044_v2  ;;  %v5799_v48 = vld [vmem:[%s7194_s6 + $0x18] sm:$0xf]  ;;  %v1259_v49 = vrot.slane %v1257_v44, 3  ;;  %v1262_v50 = vrot.slane %v1260_v45, 4  ;;  %v1267_v59 = vrot.slane %v1265_v51, 4  ;;  %v5824_v22 = vcombine.low %v5821_v17, %v7388_v18 }
  0x54   : > { %6266 = vmatpush3.bf16.msra.mxu1 %v7267_v55  ;;  %6267 = vmatprep.mubr.msk.bf16.mxu1 %vm7045_vm1, %v7044_v2  ;;  %v1147_v46 = vor.u32 %v1146_v42, %v1143_v41  ;;  %v5802_v57 = vcombine.low %v5799_v48, %v5801_v52  ;;  %v5804_v1 = vcombine.low %v5799_v48, %v5800_v61  ;;  %v1483_v30 = vrot.slane %v5807_v23, 1  ;;  %v7407_v33 = vld [vmem:[%s7194_s6 + $0x24] sm:$0xf]  ;;  %v5831_v38 = vld [vmem:[%s7194_s6 + $0x28] sm:$0x3] }
  0x55   : > { %6277 = vmatprep.subr.bf16.mxu1 %v7044_v2  ;;  %v1263_v58 = vor.u32 %v1262_v50, %v1259_v49  ;;  %v5825_v27 = vcombine.low %v7393_v24, %v7393_v24  ;;  %v1760_v28 = vshrl.u32 %v5824_v22, 16  ;;  %v1763_v29 = vshll.u32 %v5824_v22, 16  ;;  %v5818_v44 = vld [vmem:[%s7194_s6 + $0x18] sm:$0x8]  ;;  %v5830_v61 = vld [vmem:[%s7194_s6 + $0x28] sm:$0x1] }
  0x56   : > { %v1384_v63 = vshll.u32 %v5802_v57, 16  ;;  %v5832_v40 = vcombine.low %v7407_v33, %v5831_v38  ;;  %v5853_v22 = vld [vmem:[%s7194_s6 + $0x2c] sm:$0x1] }
  0x57   : > { %v1765_v35 = vrot.slane %v1763_v29, 4  ;;  %v1768_v36 = vshll.u32 %v5825_v27, 16  ;;  %v5859_v29 = vld [vmem:[%s7194_s6 + $0x30] sm:$0xf] }
  0x58   : > { %v1386_v11 = vrot.slane %v1384_v63, 1  ;;  %v1887_v45 = vshll.u32 %v5832_v40, 16  ;;  %v1885_v49 = vshrl.u32 %v5832_v40, 16 }
  0x59   : > { %6250 = vmatmul.mubr.msk.bf16.vlgmr.msra.gmra.mxu0 %vm353_vm2, %v571_v60  ;;  %v5810_v60 = vcombine.low %v5806_v54, %v7356_v56  ;;  %v1770_v42 = vrot.slane %v1768_v36, 4  ;;  %v5866_v36 = vld [vmem:[%s7194_s6 + $0x30] sm:$0xe] }
  0x5a   : > { %6260 = vmatpush3.bf16.msra.mxu0 %v7282_v62  ;;  %6261 = vmatprep.mubr.msk.bf16.mxu0 %vm7045_vm1, %v7044_v2  ;;  %v1889_v50 = vrot.slane %v1887_v45, 1 }
  0x5b   : > { %6268 = vmatmul.mubr.msk.bf16.vlgmr.msra.gmra.mxu1 %vm353_vm2, %v760_v0  ;;  %6271 = vmatprep.subr.bf16.mxu0 %v7044_v2  ;;  %v1268_v0 = vsel %vm747_vm3, %v1263_v58, %v1267_v59  ;;  %v1535_v4 = vshrl.u32 %v5810_v60, 16  ;;  %v1538_v6 = vshll.u32 %v5810_v60, 16  ;;  %v5842_v59 = vld [vmem:[%s7194_s6 + $0x24] sm:$0xc] }
  0x5c   : > { %6278 = vmatpush3.bf16.msra.mxu1 %v7191_v5  ;;  %6279 = vmatprep.mubr.msk.bf16.mxu1 %vm7045_vm1, %v7044_v2  ;;  %v1890_v52 = vor.u32 %v1889_v50, %v1885_v49  ;;  %v5872_v50 = vld [vmem:[%s7194_s6 + $0x30] sm:$0xc] }
  0x5d   : > { %6289 = vmatprep.subr.bf16.mxu1 %v7044_v2  ;;  %v1537_v12 = vrot.slane %v1535_v4, 1 }
  0x61   : > { %6262 = vmatmul.mubr.msk.bf16.vlgmr.msra.gmra.mxu0 %vm353_vm2, %v686_v8  ;;  %v7373_v8 = vld [vmem:[%s7194_s6 + $0x1c] sm:$0xf] }
  0x62   : > { %6272 = vmatpush3.bf16.msra.mxu0 %v7298_v9  ;;  %6273 = vmatprep.mubr.msk.bf16.mxu0 %vm7045_vm1, %v7044_v2  ;;  %v5816_v15 = vcombine.low %v5812_v7, %v7373_v8  ;;  %v5819_v48 = vcombine.low %v5818_v44, %v7373_v8  ;;  %v5848_v8 = vld [vmem:[%s7194_s6 + $0x24] sm:$0x8] }
  0x63   : > { %6280 = vmatmul.mubr.msk.bf16.vlgmr.msra.gmra.mxu1 %vm353_vm2, %v884_v10  ;;  %6283 = vmatprep.subr.bf16.mxu0 %v7044_v2  ;;  %v1382_v10 = vshrl.u32 %v5802_v57, 16  ;;  %v5839_v57 = vld [vmem:[%s7194_s6 + $0x28] sm:$0x7] }
  0x64   : > { %6290 = vmatpush3.bf16.msra.mxu1 %v7233_v31  ;;  %6291 = vmatprep.mubr.msk.bf16.mxu1 %vm7045_vm1, %v7044_v2  ;;  %v1644_v20 = vshrl.u32 %v5816_v15, 16  ;;  %v1701_v51 = vrot.slane %v5819_v48, 3  ;;  %v5843_v63 = vcombine.low %v5842_v59, %v5839_v57 }
  0x65   : > { %6301 = vmatprep.subr.bf16.mxu1 %v7044_v2 }
  0x69   : > { %6274 = vmatmul.mubr.msk.bf16.vlgmr.msra.gmra.mxu0 %vm353_vm2, %v5767_v13  ;;  %v1540_v13 = vrot.slane %v1538_v6, 2  ;;  %v5845_v6 = vld [vmem:[%s7194_s6 + $0x28] sm:$0xf] }
  0x6a   : > { %6284 = vmatpush3.bf16.msra.mxu0 %v7183_v3  ;;  %6285 = vmatprep.mubr.msk.bf16.mxu0 %vm7045_vm1, %v7044_v2 }
  0x6b   : > { %6292 = vmatmul.mubr.msk.bf16.vlgmr.msra.gmra.mxu1 %vm353_vm2, %v980_v16  ;;  %6295 = vmatprep.subr.bf16.mxu0 %v7044_v2  ;;  %v1387_v16 = vor.u32 %v1386_v11, %v1382_v10  ;;  %v1541_v19 = vor.u32 %v1540_v13, %v1537_v12  ;;  %v5846_v12 = vcombine.low %v5842_v59, %v5845_v6  ;;  %v5881_v59 = vld [vmem:[%s7194_s6 + $0x30] sm:$0x8] }
  0x6c   : > { %6302 = vmatpush3.bf16.msra.mxu1 %v7257_v47  ;;  %6303 = vmatprep.mubr.msk.bf16.mxu1 %vm7045_vm1, %v7044_v2  ;;  %v5849_v13 = vcombine.low %v5848_v8, %v5845_v6  ;;  %v7528_v6 = vld [vmem:[%s7194_s6 + $0x38] sm:$0x1] }
  0x6d   : > { %6313 = vmatprep.subr.bf16.mxu1 %v7044_v2 }
  0x71   : > { %6286 = vmatmul.mubr.msk.bf16.vlgmr.msra.gmra.mxu0 %vm353_vm2, %v5774_v21  ;;  %v1647_v21 = vshll.u32 %v5816_v15, 16  ;;  %v5851_v15 = vld [vmem:[%s7194_s6 + $0x24] sm:$0x8] }
  0x72   : > { %6296 = vmatpush3.bf16.msra.mxu0 %v7210_v14  ;;  %6297 = vmatprep.mubr.msk.bf16.mxu0 %vm7045_vm1, %v7044_v2 }
  0x73   : > { %6304 = vmatmul.mubr.msk.bf16.vlgmr.msra.gmra.mxu1 %vm353_vm2, %v1089_v25  ;;  %6307 = vmatprep.subr.bf16.mxu0 %v7044_v2  ;;  %v1646_v25 = vrot.slane %v1644_v20, 2  ;;  %v1649_v26 = vrot.slane %v1647_v21, 3  ;;  %v2204_v21 = vrot.slane %v5849_v13, 3 }
  0x74   : > { %6314 = vmatpush3.bf16.msra.mxu1 %v7282_v62  ;;  %6315 = vmatprep.mubr.msk.bf16.mxu1 %vm7045_vm1, %v7044_v2 }
  0x75   : > { %6325 = vmatprep.subr.bf16.mxu1 %v7044_v2  ;;  %v1650_v32 = vor.u32 %v1649_v26, %v1646_v25  ;;  %v5855_v25 = vcombine.low %v5853_v22, %v5853_v22 }
  0x79   : > { %6298 = vmatmul.mubr.msk.bf16.vlgmr.msra.gmra.mxu0 %vm353_vm2, %v1038_v34  ;;  %v1762_v34 = vrot.slane %v1760_v28, 3 }
  0x7a   : > { %6308 = vmatpush3.bf16.msra.mxu0 %v7238_v37  ;;  %6309 = vmatprep.mubr.msk.bf16.mxu0 %vm7045_vm1, %v7044_v2 }
  0x7b   : > { %6316 = vmatmul.mubr.msk.bf16.vlgmr.msra.gmra.mxu1 %vm353_vm2, %v1198_v39  ;;  %6319 = vmatprep.subr.bf16.mxu0 %v7044_v2  ;;  %v5813_v39 = vcombine.low %v5812_v7, %v7356_v56  ;;  %v1766_v41 = vor.u32 %v1765_v35, %v1762_v34  ;;  %v5827_v56 = vcombine.low %v7388_v18, %v7393_v24  ;;  %v2095_v7 = vrot.slane %v5843_v63, 2  ;;  %v5861_v34 = vld [vmem:[%s7194_s6 + $0x34] sm:$0x3] }
  0x7c   : > { %6326 = vmatpush3.bf16.msra.mxu1 %v7298_v9  ;;  %6327 = vmatprep.mubr.msk.bf16.mxu1 %vm7045_vm1, %v7044_v2  ;;  %v2147_v18 = vshrl.u32 %v5846_v12, 16 }
  0x7d   : > { %6337 = vmatprep.subr.bf16.mxu1 %v7044_v2  ;;  %v1592_v43 = vrot.slane %v5813_v39, 2  ;;  %v5862_v39 = vcombine.low %v5859_v29, %v5861_v34 }
  0x7e   : > { %v2149_v23 = vrot.slane %v2147_v18, 2 }
  0x7f   : > { %v2390_v44 = vshll.u32 %v5862_v39, 16 }
  0x81   : > { %6310 = vmatmul.mubr.msk.bf16.vlgmr.msra.gmra.mxu0 %vm353_vm2, %v1147_v46  ;;  %v1771_v46 = vsel %vm747_vm3, %v1766_v41, %v1770_v42 }
  0x82   : > { %6320 = vmatpush3.bf16.msra.mxu0 %v7267_v55  ;;  %6321 = vmatprep.mubr.msk.bf16.mxu0 %vm7045_vm1, %v7044_v2 }
  0x83   : > { %6328 = vmatmul.mubr.msk.bf16.vlgmr.msra.gmra.mxu1 %vm353_vm2, %v5797_v53  ;;  %6331 = vmatprep.subr.bf16.mxu0 %v7044_v2  ;;  %v5836_v53 = vld [vmem:[%s7194_s6 + $0x24] sm:$0xe] }
  0x84   : > { %6338 = vmatpush3.bf16.msra.mxu1 %v7183_v3  ;;  %6339 = vmatprep.mubr.msk.bf16.mxu1 %vm7045_vm1, %v7044_v2  ;;  %v5837_v54 = vcombine.low %v5836_v53, %v5831_v38  ;;  %v5840_v60 = vcombine.low %v5836_v53, %v5839_v57  ;;  %v7491_v38 = vld [vmem:[%s7194_s6 + $0x34] sm:$0x7]  ;;  %v2392_v53 = vrot.slane %v2390_v44, 1 }
  0x85   : > { %6349 = vmatprep.subr.bf16.mxu1 %v7044_v2  ;;  %v5870_v42 = vcombine.low %v5866_v36, %v7491_v38 }
  0x86   : > { %v1986_v58 = vrot.slane %v5837_v54, 1  ;;  %v2041_v4 = vshll.u32 %v5840_v60, 16 }
  0x87   : > { %v2541_v48 = vshrl.u32 %v5870_v42, 16  ;;  %v2544_v49 = vshll.u32 %v5870_v42, 16 }
  0x88   : > { %v2043_v11 = vrot.slane %v2041_v4, 2  ;;  %v5867_v4 = vcombine.low %v5866_v36, %v5861_v34 }
  0x89   : > { %6322 = vmatmul.mubr.msk.bf16.vlgmr.msra.gmra.mxu0 %vm353_vm2, %v1268_v0  ;;  %v5834_v0 = vcombine.low %v7407_v33, %v5830_v61  ;;  %v2271_v33 = vshll.u32 %v5855_v25, 16  ;;  %v2543_v54 = vrot.slane %v2541_v48, 1 }
  0x8a   : > { %6332 = vmatpush3.bf16.msra.mxu0 %v7191_v5  ;;  %6333 = vmatprep.mubr.msk.bf16.mxu0 %vm7045_vm1, %v7044_v2  ;;  %v2489_v13 = vrot.slane %v5867_v4, 1 }
  0x8b   : > { %6340 = vmatmul.mubr.msk.bf16.vlgmr.msra.gmra.mxu1 %vm353_vm2, %v5804_v1  ;;  %6343 = vmatprep.subr.bf16.mxu0 %v7044_v2  ;;  %v2038_v1 = vshrl.u32 %v5840_v60, 16  ;;  %v2273_v41 = vrot.slane %v2271_v33, 4  ;;  %v7523_v60 = vld [vmem:[%s7194_s6 + $0x34] sm:$0xf] }
  0x8c   : > { %6350 = vmatpush3.bf16.msra.mxu1 %v7210_v14  ;;  %6351 = vmatprep.mubr.msk.bf16.mxu1 %vm7045_vm1, %v7044_v2 }
  0x8d   : > { %6361 = vmatprep.subr.bf16.mxu1 %v7044_v2  ;;  %v2040_v10 = vrot.slane %v2038_v1, 1  ;;  %v5884_v1 = vcombine.low %v5881_v59, %v7523_v60 }
  0x8f   : > { %v2044_v17 = vor.u32 %v2043_v11, %v2040_v10  ;;  %v5885_v10 = vcombine.low %v7528_v6, %v7528_v6  ;;  %v2766_v11 = vshrl.u32 %v5884_v1, 16 }
  0x91   : > { %6334 = vmatmul.mubr.msk.bf16.vlgmr.msra.gmra.mxu0 %vm353_vm2, %v1387_v16  ;;  %v5852_v16 = vld [vmem:[%s7194_s6 + $0x28] sm:$0xf] }
  0x92   : > { %6344 = vmatpush3.bf16.msra.mxu0 %v7233_v31  ;;  %6345 = vmatprep.mubr.msk.bf16.mxu0 %vm7045_vm1, %v7044_v2  ;;  %v5854_v20 = vcombine.low %v5851_v15, %v5852_v16  ;;  %v5857_v35 = vcombine.low %v5852_v16, %v5853_v22  ;;  %v7542_v16 = vld [vmem:[%s7194_s6 + $0x3c] sm:$0xf] }
  0x93   : > { %6352 = vmatmul.mubr.msk.bf16.vlgmr.msra.gmra.mxu1 %vm353_vm2, %v1541_v19  ;;  %6355 = vmatprep.subr.bf16.mxu0 %v7044_v2  ;;  %v2150_v19 = vshll.u32 %v5846_v12, 16  ;;  %v2769_v12 = vshll.u32 %v5884_v1, 16 }
  0x94   : > { %6362 = vmatpush3.bf16.msra.mxu1 %v7238_v37  ;;  %6363 = vmatprep.mubr.msk.bf16.mxu1 %vm7045_vm1, %v7044_v2  ;;  %v2263_v26 = vshrl.u32 %v5854_v20, 16  ;;  %v2266_v27 = vshll.u32 %v5854_v20, 16  ;;  %v5891_v20 = vld [vmem:[%s7194_s6 + $0x40] sm:$0x3] }
  0x95   : > { %6373 = vmatprep.subr.bf16.mxu1 %v7044_v2  ;;  %v2152_v24 = vrot.slane %v2150_v19, 3  ;;  %v2771_v18 = vrot.slane %v2769_v12, 4  ;;  %v2774_v19 = vshll.u32 %v5885_v10, 16  ;;  %v5892_v22 = vcombine.low %v7542_v16, %v5891_v20 }
  0x97   : > { %v2153_v28 = vor.u32 %v2152_v24, %v2149_v23  ;;  %v2776_v24 = vrot.slane %v2774_v19, 4 }
  0x99   : > { %6346 = vmatmul.mubr.msk.bf16.vlgmr.msra.gmra.mxu0 %vm353_vm2, %v1483_v30  ;;  %v2265_v30 = vrot.slane %v2263_v26, 3  ;;  %v5878_v26 = vld [vmem:[%s7194_s6 + $0x30] sm:$0x8] }
  0x9a   : > { %6356 = vmatpush3.bf16.msra.mxu0 %v7257_v47  ;;  %6357 = vmatprep.mubr.msk.bf16.mxu0 %vm7045_vm1, %v7044_v2 }
  0x9b   : > { %6364 = vmatmul.mubr.msk.bf16.vlgmr.msra.gmra.mxu1 %vm353_vm2, %v1650_v32  ;;  %6367 = vmatprep.subr.bf16.mxu0 %v7044_v2  ;;  %v2268_v32 = vrot.slane %v2266_v27, 4  ;;  %v2893_v27 = vshll.u32 %v5892_v22, 16 }
  0x9c   : > { %6374 = vmatpush3.bf16.msra.mxu1 %v7267_v55  ;;  %6375 = vmatprep.mubr.msk.bf16.mxu1 %vm7045_vm1, %v7044_v2 }
  0x9d   : > { %6385 = vmatprep.subr.bf16.mxu1 %v7044_v2  ;;  %v2269_v40 = vor.u32 %v2268_v32, %v2265_v30  ;;  %v2891_v30 = vshrl.u32 %v5892_v22, 16  ;;  %v2895_v32 = vrot.slane %v2893_v27, 1 }
  0x9f   : > { %v2274_v45 = vsel %vm747_vm3, %v2269_v40, %v2273_v41  ;;  %v2896_v34 = vor.u32 %v2895_v32, %v2891_v30  ;;  %v5902_v41 = vld [vmem:[%s7194_s6 + $0x3c] sm:$0xc]  ;;  %v7635_v30 = vld [vmem:[%s7194_s6 + $0x48] sm:$0xe]  ;;  %v7638_v32 = vld [vmem:[%s7194_s6 + $0x4c] sm:$0x7] }
  0xa1   : > { %6358 = vmatmul.mubr.msk.bf16.vlgmr.msra.gmra.mxu0 %vm353_vm2, %v1592_v43  ;;  %v5860_v43 = vld [vmem:[%s7194_s6 + $0x34] sm:$0x1] }
  0xa2   : > { %6368 = vmatpush3.bf16.msra.mxu0 %v7282_v62  ;;  %6369 = vmatprep.mubr.msk.bf16.mxu0 %vm7045_vm1, %v7044_v2 }
  0xa3   : > { %6376 = vmatmul.mubr.msk.bf16.vlgmr.msra.gmra.mxu1 %vm353_vm2, %v1771_v46  ;;  %6379 = vmatprep.subr.bf16.mxu0 %v7044_v2  ;;  %v5864_v46 = vcombine.low %v5859_v29, %v5860_v43  ;;  %v5890_v43 = vld [vmem:[%s7194_s6 + $0x40] sm:$0x1] }
  0xa4   : > { %6386 = vmatpush3.bf16.msra.mxu1 %v7191_v5  ;;  %6387 = vmatprep.mubr.msk.bf16.mxu1 %vm7045_vm1, %v7044_v2 }
  0xa5   : > { %6397 = vmatprep.subr.bf16.mxu1 %v7044_v2 }
  0xa9   : > { %6370 = vmatmul.mubr.msk.bf16.vlgmr.msra.gmra.mxu0 %vm353_vm2, %v1701_v51  ;;  %v7508_v51 = vld [vmem:[%s7194_s6 + $0x34] sm:$0xf] }
  0xaa   : > { %6380 = vmatpush3.bf16.msra.mxu0 %v7298_v9  ;;  %6381 = vmatprep.mubr.msk.bf16.mxu0 %vm7045_vm1, %v7044_v2  ;;  %v5876_v57 = vcombine.low %v5872_v50, %v7508_v51  ;;  %v5879_v29 = vcombine.low %v5878_v26, %v7508_v51  ;;  %v5908_v51 = vld [vmem:[%s7194_s6 + $0x3c] sm:$0x8]  ;;  %v7630_v26 = vld [vmem:[%s7194_s6 + $0x4c] sm:$0x3] }
  0xab   : > { %6388 = vmatmul.mubr.msk.bf16.vlgmr.msra.gmra.mxu1 %vm353_vm2, %v1890_v52  ;;  %6391 = vmatprep.subr.bf16.mxu0 %v7044_v2  ;;  %v2388_v52 = vshrl.u32 %v5862_v39, 16  ;;  %v5899_v39 = vld [vmem:[%s7194_s6 + $0x40] sm:$0x7] }
  0xac   : > { %6398 = vmatpush3.bf16.msra.mxu1 %v7233_v31  ;;  %6399 = vmatprep.mubr.msk.bf16.mxu1 %vm7045_vm1, %v7044_v2  ;;  %v2650_v63 = vshrl.u32 %v5876_v57, 16  ;;  %v2707_v33 = vrot.slane %v5879_v29, 3  ;;  %v5903_v44 = vcombine.low %v5902_v41, %v5899_v39 }
  0xad   : > { %6409 = vmatprep.subr.bf16.mxu1 %v7044_v2 }
  0xb1   : > { %6382 = vmatmul.mubr.msk.bf16.vlgmr.msra.gmra.mxu0 %vm353_vm2, %v5827_v56  ;;  %v2546_v56 = vrot.slane %v2544_v49, 2  ;;  %v5905_v49 = vld [vmem:[%s7194_s6 + $0x40] sm:$0xf] }
  0xb2   : > { %6392 = vmatpush3.bf16.msra.mxu0 %v7183_v3  ;;  %6393 = vmatprep.mubr.msk.bf16.mxu0 %vm7045_vm1, %v7044_v2  ;;  %v5909_v59 = vcombine.low %v5908_v51, %v5905_v49 }
  0xb3   : > { %6400 = vmatmul.mubr.msk.bf16.vlgmr.msra.gmra.mxu1 %vm353_vm2, %v1986_v58  ;;  %6403 = vmatprep.subr.bf16.mxu0 %v7044_v2  ;;  %v2393_v58 = vor.u32 %v2392_v53, %v2388_v52  ;;  %v2547_v61 = vor.u32 %v2546_v56, %v2543_v54  ;;  %v5906_v54 = vcombine.low %v5902_v41, %v5905_v49  ;;  %v5911_v56 = vld [vmem:[%s7194_s6 + $0x3c] sm:$0x8] }
  0xb4   : > { %6410 = vmatpush3.bf16.msra.mxu1 %v7257_v47  ;;  %6411 = vmatprep.mubr.msk.bf16.mxu1 %vm7045_vm1, %v7044_v2  ;;  %v5930_v41 = vcombine.low %v7635_v30, %v7638_v32 }
  0xb5   : > { %6421 = vmatprep.subr.bf16.mxu1 %v7044_v2 }
  0xb9   : > { %6394 = vmatmul.mubr.msk.bf16.vlgmr.msra.gmra.mxu0 %vm353_vm2, %v5834_v0  ;;  %v2653_v0 = vshll.u32 %v5876_v57, 16  ;;  %v5912_v57 = vld [vmem:[%s7194_s6 + $0x40] sm:$0xf] }
  0xba   : > { %6404 = vmatpush3.bf16.msra.mxu0 %v7210_v14  ;;  %6405 = vmatprep.mubr.msk.bf16.mxu0 %vm7045_vm1, %v7044_v2  ;;  %v5914_v1 = vcombine.low %v5911_v56, %v5912_v57  ;;  %v7659_v56 = vld [vmem:[%s7194_s6 + $0x48] sm:$0xc] }
  0xbb   : > { %6412 = vmatmul.mubr.msk.bf16.vlgmr.msra.gmra.mxu1 %vm353_vm2, %v2095_v7  ;;  %6415 = vmatprep.subr.bf16.mxu0 %v7044_v2  ;;  %v2652_v7 = vrot.slane %v2650_v63, 2  ;;  %v2655_v8 = vrot.slane %v2653_v0, 3  ;;  %v3153_v63 = vshrl.u32 %v5906_v54, 16  ;;  %v3156_v0 = vshll.u32 %v5906_v54, 16 }
  0xbc   : > { %6422 = vmatpush3.bf16.msra.mxu1 %v7282_v62  ;;  %6423 = vmatprep.mubr.msk.bf16.mxu1 %vm7045_vm1, %v7044_v2 }
  0xbd   : > { %6433 = vmatprep.subr.bf16.mxu1 %v7044_v2  ;;  %v2656_v15 = vor.u32 %v2655_v8, %v2652_v7  ;;  %v5913_v7 = vld [vmem:[%s7194_s6 + $0x44] sm:$0x1]  ;;  %v3158_v12 = vrot.slane %v3156_v0, 3 }
  0xbe   : > { %v5917_v29 = vcombine.low %v5912_v57, %v5913_v7  ;;  %v7662_v57 = vld [vmem:[%s7194_s6 + $0x4c] sm:$0xf] }
  0xc1   : > { %6406 = vmatmul.mubr.msk.bf16.vlgmr.msra.gmra.mxu0 %vm353_vm2, %v2044_v17  ;;  %v2768_v17 = vrot.slane %v2766_v11, 3  ;;  %v3155_v11 = vrot.slane %v3153_v63, 2 }
  0xc2   : > { %6416 = vmatpush3.bf16.msra.mxu0 %v7238_v37  ;;  %6417 = vmatprep.mubr.msk.bf16.mxu0 %vm7045_vm1, %v7044_v2 }
  0xc3   : > { %6424 = vmatmul.mubr.msk.bf16.vlgmr.msra.gmra.mxu1 %vm353_vm2, %v2204_v21  ;;  %6427 = vmatprep.subr.bf16.mxu0 %v7044_v2  ;;  %v5873_v21 = vcombine.low %v5872_v50, %v7491_v38  ;;  %v2772_v23 = vor.u32 %v2771_v18, %v2768_v17  ;;  %v5887_v38 = vcombine.low %v7523_v60, %v7528_v6  ;;  %v3101_v50 = vrot.slane %v5903_v44, 2 }
  0xc4   : > { %6434 = vmatpush3.bf16.msra.mxu1 %v7298_v9  ;;  %6435 = vmatprep.mubr.msk.bf16.mxu1 %vm7045_vm1, %v7044_v2  ;;  %v3210_v6 = vrot.slane %v5909_v59, 3 }
  0xc5   : > { %6445 = vmatprep.subr.bf16.mxu1 %v7044_v2  ;;  %v2598_v25 = vrot.slane %v5873_v21, 2  ;;  %v3159_v21 = vor.u32 %v3158_v12, %v3155_v11  ;;  %v7679_v12 = vld [vmem:[%s7194_s6 + $0x4c] sm:$0xf] }
  0xc9   : > { %6418 = vmatmul.mubr.msk.bf16.vlgmr.msra.gmra.mxu0 %vm353_vm2, %v2153_v28  ;;  %v2777_v28 = vsel %vm747_vm3, %v2772_v23, %v2776_v24 }
  0xca   : > { %6428 = vmatpush3.bf16.msra.mxu0 %v7267_v55  ;;  %6429 = vmatprep.mubr.msk.bf16.mxu0 %vm7045_vm1, %v7044_v2 }
  0xcb   : > { %6436 = vmatmul.mubr.msk.bf16.vlgmr.msra.gmra.mxu1 %vm353_vm2, %v5857_v35  ;;  %6439 = vmatprep.subr.bf16.mxu0 %v7044_v2  ;;  %v5896_v35 = vld [vmem:[%s7194_s6 + $0x3c] sm:$0xe] }
  0xcc   : > { %6446 = vmatpush3.bf16.msra.mxu1 %v7183_v3  ;;  %6447 = vmatprep.mubr.msk.bf16.mxu1 %vm7045_vm1, %v7044_v2  ;;  %v5897_v36 = vcombine.low %v5896_v35, %v5891_v20  ;;  %v5900_v42 = vcombine.low %v5896_v35, %v5899_v39 }
  0xcd   : > { %6457 = vmatprep.subr.bf16.mxu1 %v7044_v2 }
  0xce   : > { %v2992_v40 = vrot.slane %v5897_v36, 1  ;;  %v3047_v48 = vshll.u32 %v5900_v42, 16 }
  0xd0   : > { %v3049_v53 = vrot.slane %v3047_v48, 2 }
  0xd1   : > { %6430 = vmatmul.mubr.msk.bf16.vlgmr.msra.gmra.mxu0 %vm353_vm2, %v2274_v45  ;;  %v5894_v45 = vcombine.low %v7542_v16, %v5890_v43  ;;  %v3272_v16 = vshll.u32 %v5914_v1, 16 }
  0xd2   : > { %6440 = vmatpush3.bf16.msra.mxu0 %v7191_v5  ;;  %6441 = vmatprep.mubr.msk.bf16.mxu0 %vm7045_vm1, %v7044_v2 }
  0xd3   : > { %6448 = vmatmul.mubr.msk.bf16.vlgmr.msra.gmra.mxu1 %vm353_vm2, %v5864_v46  ;;  %6451 = vmatprep.subr.bf16.mxu0 %v7044_v2  ;;  %v3044_v46 = vshrl.u32 %v5900_v42, 16  ;;  %v3274_v23 = vrot.slane %v3272_v16, 4  ;;  %v5920_v42 = vld [vmem:[%s7194_s6 + $0x4c] sm:$0x1] }
  0xd4   : > { %6458 = vmatpush3.bf16.msra.mxu1 %v7210_v14  ;;  %6459 = vmatprep.mubr.msk.bf16.mxu1 %vm7045_vm1, %v7044_v2 }
  0xd5   : > { %6469 = vmatprep.subr.bf16.mxu1 %v7044_v2  ;;  %v3046_v52 = vrot.slane %v3044_v46, 1 }
  0xd9   : > { %6442 = vmatmul.mubr.msk.bf16.vlgmr.msra.gmra.mxu0 %vm353_vm2, %v2393_v58 }
  0xda   : > { %6452 = vmatpush3.bf16.msra.mxu0 %v7233_v31  ;;  %6453 = vmatprep.mubr.msk.bf16.mxu0 %vm7045_vm1, %v7044_v2 }
  0xdb   : > { %6460 = vmatmul.mubr.msk.bf16.vlgmr.msra.gmra.mxu1 %vm353_vm2, %v2547_v61  ;;  %6463 = vmatprep.subr.bf16.mxu0 %v7044_v2  ;;  %v3050_v61 = vor.u32 %v3049_v53, %v3046_v52  ;;  %v3547_v52 = vshrl.u32 %v5930_v41, 16  ;;  %v3550_v53 = vshll.u32 %v5930_v41, 16 }
  0xdc   : > { %6470 = vmatpush3.bf16.msra.mxu1 %v7238_v37  ;;  %6471 = vmatprep.mubr.msk.bf16.mxu1 %vm7045_vm1, %v7044_v2 }
  0xdd   : > { %6481 = vmatprep.subr.bf16.mxu1 %v7044_v2 }
  0xe1   : > { %6454 = vmatmul.mubr.msk.bf16.vlgmr.msra.gmra.mxu0 %vm353_vm2, %v2489_v13  ;;  %v3269_v13 = vshrl.u32 %v5914_v1, 16 }
  0xe2   : > { %6464 = vmatpush3.bf16.msra.mxu0 %v7257_v47  ;;  %6465 = vmatprep.mubr.msk.bf16.mxu0 %vm7045_vm1, %v7044_v2 }
  0xe3   : > { %6472 = vmatmul.mubr.msk.bf16.vlgmr.msra.gmra.mxu1 %vm353_vm2, %v2656_v15  ;;  %6475 = vmatprep.subr.bf16.mxu0 %v7044_v2  ;;  %v5915_v15 = vcombine.low %v5913_v7, %v5913_v7  ;;  %v3271_v22 = vrot.slane %v3269_v13, 3  ;;  %v3552_v7 = vrot.slane %v3550_v53, 2 }
  0xe4   : > { %6482 = vmatpush3.bf16.msra.mxu1 %v7267_v55  ;;  %6483 = vmatprep.mubr.msk.bf16.mxu1 %vm7045_vm1, %v7044_v2 }
  0xe5   : > { %6493 = vmatprep.subr.bf16.mxu1 %v7044_v2  ;;  %v3277_v24 = vshll.u32 %v5915_v15, 16  ;;  %v3275_v36 = vor.u32 %v3274_v23, %v3271_v22 }
  0xe9   : > { %6466 = vmatmul.mubr.msk.bf16.vlgmr.msra.gmra.mxu0 %vm353_vm2, %v2598_v25  ;;  %v5919_v25 = vld [vmem:[%s7194_s6 + $0x48] sm:$0xf] }
  0xea   : > { %6476 = vmatpush3.bf16.msra.mxu0 %v7282_v62  ;;  %6477 = vmatprep.mubr.msk.bf16.mxu0 %vm7045_vm1, %v7044_v2  ;;  %v5922_v35 = vcombine.low %v5919_v25, %v7630_v26  ;;  %v5924_v51 = vcombine.low %v5919_v25, %v5920_v42  ;;  %v5927_v25 = vcombine.low %v7635_v30, %v7630_v26 }
  0xeb   : > { %6484 = vmatmul.mubr.msk.bf16.vlgmr.msra.gmra.mxu1 %vm353_vm2, %v2777_v28  ;;  %6487 = vmatprep.subr.bf16.mxu0 %v7044_v2 }
  0xec   : > { %6494 = vmatpush3.bf16.msra.mxu1 %v7191_v5  ;;  %6495 = vmatprep.mubr.msk.bf16.mxu1 %vm7045_vm1, %v7044_v2  ;;  %v3495_v42 = vrot.slane %v5927_v25, 1 }
  0xed   : > { %6505 = vmatprep.subr.bf16.mxu1 %v7044_v2 }
  0xf1   : > { %6478 = vmatmul.mubr.msk.bf16.vlgmr.msra.gmra.mxu0 %vm353_vm2, %v2707_v33 }
  0xf2   : > { %6488 = vmatpush3.bf16.msra.mxu0 %v7298_v9  ;;  %6489 = vmatprep.mubr.msk.bf16.mxu0 %vm7045_vm1, %v7044_v2 }
  0xf3   : > { %6496 = vmatmul.mubr.msk.bf16.vlgmr.msra.gmra.mxu1 %vm353_vm2, %v2896_v34  ;;  %6499 = vmatprep.subr.bf16.mxu0 %v7044_v2 }
  0xf4   : > { %6506 = vmatpush3.bf16.msra.mxu1 %v7233_v31  ;;  %6507 = vmatprep.mubr.msk.bf16.mxu1 %vm7045_vm1, %v7044_v2 }
  0xf5   : > { %6517 = vmatprep.subr.bf16.mxu1 %v7044_v2 }
  0xf9   : > { %6490 = vmatmul.mubr.msk.bf16.vlgmr.msra.gmra.mxu0 %vm353_vm2, %v5887_v38  ;;  %v3279_v38 = vrot.slane %v3277_v24, 4 }
  0xfa   : > { %6500 = vmatpush3.bf16.msra.mxu0 %v7183_v3  ;;  %6501 = vmatprep.mubr.msk.bf16.mxu0 %vm7045_vm1, %v7044_v2 }
  0xfb   : > { %6508 = vmatmul.mubr.msk.bf16.vlgmr.msra.gmra.mxu1 %vm353_vm2, %v2992_v40  ;;  %6511 = vmatprep.subr.bf16.mxu0 %v7044_v2  ;;  %v3280_v48 = vsel %vm747_vm3, %v3275_v36, %v3279_v38 }
  0xfc   : > { %6518 = vmatpush3.bf16.msra.mxu1 %v7257_v47  ;;  %6519 = vmatprep.mubr.msk.bf16.mxu1 %vm7045_vm1, %v7044_v2 }
  0xfd   : > { %6529 = vmatprep.subr.bf16.mxu1 %v7044_v2 }
 0x101   : > { %6502 = vmatmul.mubr.msk.bf16.vlgmr.msra.gmra.mxu0 %vm353_vm2, %v5894_v45  ;;  %v3396_v45 = vshll.u32 %v5922_v35, 16 }
 0x102   : > { %6512 = vmatpush3.bf16.msra.mxu0 %v7210_v14  ;;  %6513 = vmatprep.mubr.msk.bf16.mxu0 %vm7045_vm1, %v7044_v2  ;;  %v7605_v58 = vpop.f32.mrf.mxu1 }
 0x103   : > { %6520 = vmatmul.mubr.msk.bf16.vlgmr.msra.gmra.mxu1 %vm353_vm2, %v3101_v50  ;;  %6523 = vmatprep.subr.bf16.mxu0 %v7044_v2 }
 0x104   : > { %6530 = vmatpush3.bf16.msra.mxu1 %v7282_v62  ;;  %6531 = vmatprep.mubr.msk.bf16.mxu1 %vm7045_vm1, %v7044_v2  ;;  %v6233_v60 = vpop.f32.mrf.mxu1 }
 0x105   : > { %6541 = vmatprep.subr.bf16.mxu1 %v7044_v2 }
 0x106   : > { %v7613_v4 = vpop.f32.mrf.mxu1 }
 0x108   : > { %v6234_v10 = vpop.f32.mrf.mxu1 }
 0x109   : > { %v395_v8 = vpop.f32.mrf.mxu0  ;;  %6514 = vmatmul.mubr.msk.bf16.vlgmr.msra.gmra.mxu0 %vm353_vm2, %v3050_v61  ;;  %v3394_v61 = vshrl.u32 %v5922_v35, 16 }
 0x10a   : > { %6524 = vmatpush3.bf16.msra.mxu0 %v7238_v37  ;;  %6525 = vmatprep.mubr.msk.bf16.mxu0 %vm7045_vm1, %v7044_v2  ;;  %v446_v46 = vadd.f32 %v7605_v58, %v395_v8  ;;  %v3398_v58 = vrot.slane %v3396_v45, 1  ;;  %v5936_v8 = vcombine.low %v7659_v56, %v7662_v57 }
 0x10b   : > { %v6227_v17 = vpop.f32.mrf.mxu0  ;;  %v7620_v18 = vpop.f32.mrf.mxu1  ;;  %6532 = vmatmul.mubr.msk.bf16.vlgmr.msra.gmra.mxu1 %vm353_vm2, %v3210_v6  ;;  %6535 = vmatprep.subr.bf16.mxu0 %v7044_v2  ;;  %v3549_v6 = vrot.slane %v3547_v52, 1 }
 0x10c   : > { %6542 = vmatpush3.bf16.msra.mxu1 %v7298_v9  ;;  %6543 = vmatprep.mubr.msk.bf16.mxu1 %vm7045_vm1, %v7044_v2  ;;  %v3399_v16 = vor.u32 %v3398_v58, %v3394_v61  ;;  %v3656_v22 = vshrl.u32 %v5936_v8, 16  ;;  %v7710_v61 = vld [vmem:[%s7194_s6 + $0x58] sm:$0x3] }
 0x10d   : > { %v398_v19 = vpop.f32.mrf.mxu0  ;;  %v6245_v20 = vpop.f32.mrf.mxu1  ;;  %6553 = vmatprep.subr.bf16.mxu1 %v7044_v2 }
 0x10e   : > { %v449_v63 = vadd.f32 %v7613_v4, %v398_v19  ;;  %v5941_v4 = vld [vmem:[%s7194_s6 + $0x48] sm:$0x8]  ;;  %v3658_v26 = vrot.slane %v3656_v22, 2 }
 0x10f   : > { %v6228_v27 = vpop.f32.mrf.mxu0  ;;  %v7632_v28 = vpop.f32.mrf.mxu1  ;;  %v5944_v23 = vcombine.low %v5941_v4, %v7679_v12 }
 0x111   : > { %v497_v33 = vpop.f32.mrf.mxu0  ;;  %6526 = vmatmul.mubr.msk.bf16.vlgmr.msra.gmra.mxu0 %vm353_vm2, %v3159_v21  ;;  %v6246_v34 = vpop.f32.mrf.mxu1  ;;  %v3553_v21 = vor.u32 %v3552_v7, %v3549_v6  ;;  %v3772_v30 = vshrl.u32 %v5944_v23, 16  ;;  %v3775_v41 = vshll.u32 %v5944_v23, 16 }
 0x112   : > { %6536 = vmatpush3.bf16.msra.mxu0 %v7267_v55  ;;  %6537 = vmatprep.mubr.msk.bf16.mxu0 %vm7045_vm1, %v7044_v2  ;;  %v504_v54 = vadd.f32 %v497_v33, %v446_v46  ;;  %v7688_v33 = vld [vmem:[%s7194_s6 + $0x50] sm:$0x1] }
 0x113   : > { %v6239_v39 = vpop.f32.mrf.mxu0  ;;  %v673_v40 = vpop.f32.mrf.mxu1  ;;  %6544 = vmatmul.mubr.msk.bf16.vlgmr.msra.gmra.mxu1 %vm353_vm2, %v5917_v29  ;;  %6547 = vmatprep.subr.bf16.mxu0 %v7044_v2 }
 0x114   : > { %6554 = vmatpush3.bf16.msra.mxu1 %v7183_v3  ;;  %6555 = vmatprep.mubr.msk.bf16.mxu1 %vm7045_vm1, %v7044_v2  ;;  %v565_v11 = vadd.f32 %v7620_v18, %v504_v54  ;;  %v3659_v18 = vshll.u32 %v5936_v8, 16  ;;  %v3777_v54 = vrot.slane %v3775_v41, 4 }
 0x115   : > { %v500_v43 = vpop.f32.mrf.mxu0  ;;  %v6257_v44 = vpop.f32.mrf.mxu1  ;;  %6565 = vmatprep.subr.bf16.mxu1 %v7044_v2 }
 0x116   : > { %v505_v10 = vadd.f32 %v500_v43, %v449_v63  ;;  %v860_v63 = vld [vmem:[#allocation2] sm:$0xff] }
 0x117   : > { %v6240_v49 = vpop.f32.mrf.mxu0  ;;  %v7656_v50 = vpop.f32.mrf.mxu1 }
 0x118   : > { %v566_v24 = vadd.f32 %v7632_v28, %v505_v10  ;;  %v3661_v28 = vrot.slane %v3659_v18, 3 }
 0x119   : > { %v612_v59 = vpop.f32.mrf.mxu0  ;;  %6538 = vmatmul.mubr.msk.bf16.vlgmr.msra.gmra.mxu0 %vm353_vm2, %v3280_v48  ;;  %v6258_v60 = vpop.f32.mrf.mxu1 }
 0x11a   : > { %6548 = vmatpush3.bf16.msra.mxu0 %v7191_v5  ;;  %6549 = vmatprep.mubr.msk.bf16.mxu0 %vm7045_vm1, %v7044_v2  ;;  %v619_v17 = vadd.f32 %v612_v59, %v565_v11  ;;  %v3662_v49 = vor.u32 %v3661_v28, %v3658_v26  ;;  %v7707_v60 = vld [vmem:[%s7194_s6 + $0x54] sm:$0xf] }
 0x11b   : > { %v6251_v0 = vpop.f32.mrf.mxu0  ;;  %v801_v1 = vpop.f32.mrf.mxu1  ;;  %6556 = vmatmul.mubr.msk.bf16.vlgmr.msra.gmra.mxu1 %vm353_vm2, %v5924_v51  ;;  %6559 = vmatprep.subr.bf16.mxu0 %v7044_v2  ;;  %v3774_v51 = vrot.slane %v3772_v30, 3  ;;  %v5952_v8 = vcombine.low %v7707_v60, %v7710_v61 }
 0x11c   : > { %6566 = vmatpush3.bf16.msra.mxu1 %v7210_v14  ;;  %6567 = vmatprep.mubr.msk.bf16.mxu1 %vm7045_vm1, %v7044_v2  ;;  %v680_v35 = vadd.f32 %v673_v40, %v619_v17  ;;  %v5945_v40 = vcombine.low %v7688_v33, %v7688_v33 }
 0x11d   : > { %v615_v13 = vpop.f32.mrf.mxu0  ;;  %v6269_v15 = vpop.f32.mrf.mxu1  ;;  %6577 = vmatprep.subr.bf16.mxu1 %v7044_v2  ;;  %v3899_v18 = vshll.u32 %v5952_v8, 16 }
 0x11e   : > { %v620_v34 = vadd.f32 %v615_v13, %v566_v24  ;;  %v3780_v59 = vshll.u32 %v5945_v40, 16  ;;  %v861_v13 = vld [vmem:[#allocation2 + $0x38] sm:$0x3] }
 0x11f   : > { %v6252_v19 = vpop.f32.mrf.mxu0  ;;  %v804_v20 = vpop.f32.mrf.mxu1 }
 0x120   : > { %v681_v45 = vadd.f32 %v7656_v50, %v620_v34  ;;  %v5933_v50 = vcombine.low %v7659_v56, %v7638_v32  ;;  %v3778_v32 = vor.u32 %v3777_v54, %v3774_v51  ;;  %v3782_v56 = vrot.slane %v3780_v59, 4  ;;  %v5938_v19 = vld [vmem:[%s7194_s6 + $0x48] sm:$0x8] }
 0x121   : > { %v727_v27 = vpop.f32.mrf.mxu0  ;;  %6550 = vmatmul.mubr.msk.bf16.vlgmr.msra.gmra.mxu0 %vm353_vm2, %v3399_v16  ;;  %v6270_v29 = vpop.f32.mrf.mxu1 }
 0x122   : > { %6560 = vmatpush3.bf16.msra.mxu0 %v7233_v31  ;;  %6561 = vmatprep.mubr.msk.bf16.mxu0 %vm7045_vm1, %v7044_v2  ;;  %v734_v39 = vadd.f32 %v727_v27, %v680_v35  ;;  %v3604_v16 = vrot.slane %v5933_v50, 2  ;;  %v3783_v23 = vsel %vm747_vm3, %v3778_v32, %v3782_v56  ;;  %v5939_v27 = vcombine.low %v5938_v19, %v7662_v57  ;;  %v5962_v50 = vld [vmem:[%s7194_s6 + $0x54] sm:$0xc] }
 0x123   : > { %v6263_v36 = vpop.f32.mrf.mxu0  ;;  %v7693_v38 = vpop.f32.mrf.mxu1  ;;  %6568 = vmatmul.mubr.msk.bf16.vlgmr.msra.gmra.mxu1 %vm353_vm2, %v3553_v21  ;;  %6571 = vmatprep.subr.bf16.mxu0 %v7044_v2  ;;  %v3897_v35 = vshrl.u32 %v5952_v8, 16 }
 0x124   : > { %6578 = vmatpush3.bf16.msra.mxu1 %v7238_v37  ;;  %6579 = vmatprep.mubr.msk.bf16.mxu1 %vm7045_vm1, %v7044_v2  ;;  %v808_v53 = vadd.f32 %v801_v1, %v734_v39  ;;  %v3901_v36 = vrot.slane %v3899_v18, 1  ;;  %v3713_v28 = vrot.slane %v5939_v27, 3 }
 0x125   : > { %v730_v43 = vpop.f32.mrf.mxu0  ;;  %v6281_v44 = vpop.f32.mrf.mxu1  ;;  %6589 = vmatprep.subr.bf16.mxu1 %v7044_v2 }
 0x126   : > { %v735_v52 = vadd.f32 %v730_v43, %v681_v45  ;;  %v3902_v40 = vor.u32 %v3901_v36, %v3897_v35 }
 0x127   : > { %v6264_v46 = vpop.f32.mrf.mxu0  ;;  %v7704_v48 = vpop.f32.mrf.mxu1 }
 0x128   : > { %v809_v11 = vadd.f32 %v804_v20, %v735_v52  ;;  %v5947_v52 = vcombine.low %v7679_v12, %v7688_v33  ;;  %v5950_v12 = vld [vmem:[%s7194_s6 + $0x58] sm:$0x1] }
 0x129   : > { %v851_v58 = vpop.f32.mrf.mxu0  ;;  %6562 = vmatmul.mubr.msk.bf16.vlgmr.msra.gmra.mxu0 %vm353_vm2, %v3495_v42  ;;  %v6282_v0 = vpop.f32.mrf.mxu1  ;;  %v5956_v42 = vld [vmem:[%s7194_s6 + $0x54] sm:$0xe] }
 0x12a   : > { %v858_v6 = vadd.f32 %v851_v58, %v808_v53  ;;  %6572 = vmatpush3.bf16.msra.mxu0 %v7257_v47  ;;  %6573 = vmatprep.mubr.msk.bf16.mxu0 %vm7045_vm1, %v7044_v2  ;;  %v5959_v58 = vld [vmem:[%s7194_s6 + $0x58] sm:$0x7] }
 0x12b   : > { %v6275_v1 = vpop.f32.mrf.mxu0  ;;  %v1018_v7 = vpop.f32.mrf.mxu1  ;;  %6580 = vmatmul.mubr.msk.bf16.vlgmr.msra.gmra.mxu1 %vm353_vm2, %v3662_v49  ;;  %6583 = vmatprep.subr.bf16.mxu0 %v7044_v2  ;;  %v5963_v32 = vcombine.low %v5962_v50, %v5959_v58 }
 0x12c   : > { %v862_v10 = vadd.f32 %v860_v63, %v858_v6  ;;  %6590 = vmatpush3.bf16.msra.mxu1 %v7267_v55  ;;  %6591 = vmatprep.mubr.msk.bf16.mxu1 %vm7045_vm1, %v7044_v2 }
 0x12d   : > { %v854_v4 = vpop.f32.mrf.mxu0  ;;  %v6293_v15 = vpop.f32.mrf.mxu1  ;;  %6601 = vmatprep.subr.bf16.mxu1 %v7044_v2 }
 0x12e   : > { %864 = vst [vmem:[#allocation2] sm:$0xff] %v862_v10  ;;  %v859_v17 = vadd.f32 %v854_v4, %v809_v11  ;;  %v5954_v15 = vcombine.low %v7707_v60, %v5950_v12 }
 0x12f   : > { %v6276_v21 = vpop.f32.mrf.mxu0  ;;  %v1021_v22 = vpop.f32.mrf.mxu1 }
 0x130   : > { %v863_v20 = vadd.f32 %v861_v13, %v859_v17  ;;  %v5965_v21 = vld [vmem:[%s7194_s6 + $0x58] sm:$0xf] }
 0x131   : > { %v969_v24 = vpop.f32.mrf.mxu0  ;;  %6574 = vmatmul.mubr.msk.bf16.vlgmr.msra.gmra.mxu0 %vm353_vm2, %v3604_v16  ;;  %v6294_v25 = vpop.f32.mrf.mxu1  ;;  %v5966_v35 = vcombine.low %v5962_v50, %v5965_v21 }
 0x132   : > { %865 = vst [vmem:[#allocation2 + $0x38] sm:$0x3] %v863_v20  ;;  %6584 = vmatpush3.bf16.msra.mxu0 %v7282_v62  ;;  %6585 = vmatprep.mubr.msk.bf16.mxu0 %vm7045_vm1, %v7044_v2  ;;  %v970_v41 = vadd.f32 %v969_v24, %v7693_v38  ;;  %v5957_v38 = vcombine.low %v5956_v42, %v7710_v61  ;;  %v4107_v20 = vrot.slane %v5963_v32, 2  ;;  %v5968_v25 = vld [vmem:[%s7194_s6 + $0x54] sm:$0x8] }
 0x133   : > { %v6287_v29 = vpop.f32.mrf.mxu0  ;;  %v1127_v34 = vpop.f32.mrf.mxu1  ;;  %6592 = vmatmul.mubr.msk.bf16.vlgmr.msra.gmra.mxu1 %vm353_vm2, %v3783_v23  ;;  %6595 = vmatprep.subr.bf16.mxu0 %v7044_v2 }
 0x134   : > { %6602 = vmatpush3.bf16.msra.mxu1 %v7191_v5  ;;  %6603 = vmatprep.mubr.msk.bf16.mxu1 %vm7045_vm1, %v7044_v2  ;;  %v1025_v51 = vadd.f32 %v1018_v7, %v970_v41  ;;  %v3998_v0 = vrot.slane %v5957_v38, 1  ;;  %v5960_v7 = vcombine.low %v5956_v42, %v5959_v58  ;;  %v4162_v38 = vshll.u32 %v5966_v35, 16 }
 0x135   : > { %v972_v57 = vpop.f32.mrf.mxu0  ;;  %v6305_v26 = vpop.f32.mrf.mxu1  ;;  %6613 = vmatprep.subr.bf16.mxu1 %v7044_v2 }
 0x136   : > { %v973_v49 = vadd.f32 %v972_v57, %v7704_v48  ;;  %v4050_v16 = vshrl.u32 %v5960_v7, 16  ;;  %v4053_v17 = vshll.u32 %v5960_v7, 16  ;;  %v7776_v57 = vld [vmem:[%s7194_s6 + $0x58] sm:$0xf]  ;;  %v5971_v26 = vld [vmem:[%s7194_s6 + $0x54] sm:$0x8] }
 0x137   : > { %v6288_v30 = vpop.f32.mrf.mxu0  ;;  %v1130_v39 = vpop.f32.mrf.mxu1 }
 0x138   : > { %v1026_v48 = vadd.f32 %v1021_v22, %v973_v49  ;;  %v4055_v60 = vrot.slane %v4053_v17, 2  ;;  %v5974_v49 = vcombine.low %v5971_v26, %v7776_v57  ;;  %v7805_v17 = vld [vmem:[%s7194_s6 + $0x64] sm:$0x3] }
 0x139   : > { %v1076_v43 = vpop.f32.mrf.mxu0  ;;  %6586 = vmatmul.mubr.msk.bf16.vlgmr.msra.gmra.mxu0 %vm353_vm2, %v3713_v28  ;;  %v6306_v44 = vpop.f32.mrf.mxu1  ;;  %v1363_v28 = vld [vmem:[#allocation2 + $0x50] sm:$0xff] }
 0x13a   : > { %6596 = vmatpush3.bf16.msra.mxu0 %v7298_v9  ;;  %6597 = vmatprep.mubr.msk.bf16.mxu0 %vm7045_vm1, %v7044_v2  ;;  %v1083_v59 = vadd.f32 %v1076_v43, %v1025_v51 }
 0x13b   : > { %v6299_v45 = vpop.f32.mrf.mxu0  ;;  %v1236_v46 = vpop.f32.mrf.mxu1  ;;  %6604 = vmatmul.mubr.msk.bf16.vlgmr.msra.gmra.mxu1 %vm353_vm2, %v3902_v40  ;;  %6607 = vmatprep.subr.bf16.mxu0 %v7044_v2  ;;  %v5969_v40 = vcombine.low %v5968_v25, %v5965_v21 }
 0x13c   : > { %6614 = vmatpush3.bf16.msra.mxu1 %v7233_v31  ;;  %6615 = vmatprep.mubr.msk.bf16.mxu1 %vm7045_vm1, %v7044_v2  ;;  %v1134_v10 = vadd.f32 %v1127_v34, %v1083_v59  ;;  %v4052_v34 = vrot.slane %v4050_v16, 1  ;;  %v5979_v16 = vld [vmem:[%s7194_s6 + $0x60] sm:$0xf] }
 0x13d   : > { %v1079_v53 = vpop.f32.mrf.mxu0  ;;  %v6317_v54 = vpop.f32.mrf.mxu1  ;;  %6625 = vmatprep.subr.bf16.mxu1 %v7044_v2  ;;  %v4216_v58 = vrot.slane %v5969_v40, 3  ;;  %v5982_v25 = vcombine.low %v5979_v16, %v7805_v17 }
 0x13e   : > { %v1084_v8 = vadd.f32 %v1079_v53, %v1026_v48  ;;  %v4056_v45 = vor.u32 %v4055_v60, %v4052_v34  ;;  %v1364_v53 = vld [vmem:[#allocation2 + $0x18] sm:$0x3] }
 0x13f   : > { %v6300_v63 = vpop.f32.mrf.mxu0  ;;  %v1239_v61 = vpop.f32.mrf.mxu1 }
 0x140   : > { %v1135_v19 = vadd.f32 %v1130_v39, %v1084_v8  ;;  %v5973_v63 = vld [vmem:[%s7194_s6 + $0x5c] sm:$0x1] }
 0x141   : > { %v1185_v6 = vpop.f32.mrf.mxu0  ;;  %6598 = vmatmul.mubr.msk.bf16.vlgmr.msra.gmra.mxu0 %vm353_vm2, %v5947_v52  ;;  %v6318_v1 = vpop.f32.mrf.mxu1  ;;  %v5975_v8 = vcombine.low %v5973_v63, %v5973_v63 }
 0x142   : > { %6608 = vmatpush3.bf16.msra.mxu0 %v7183_v3  ;;  %6609 = vmatprep.mubr.msk.bf16.mxu0 %vm7045_vm1, %v7044_v2  ;;  %v1192_v56 = vadd.f32 %v1185_v6, %v1134_v10  ;;  %v4164_v6 = vrot.slane %v4162_v38, 3  ;;  %v4275_v1 = vshrl.u32 %v5974_v49, 16  ;;  %v4278_v10 = vshll.u32 %v5974_v49, 16  ;;  %v7835_v38 = vld [vmem:[%s7194_s6 + $0x60] sm:$0xc] }
 0x143   : > { %v6311_v33 = vpop.f32.mrf.mxu0  ;;  %v1353_v11 = vpop.f32.mrf.mxu1  ;;  %6616 = vmatmul.mubr.msk.bf16.vlgmr.msra.gmra.mxu1 %vm353_vm2, %v3998_v0  ;;  %6619 = vmatprep.subr.bf16.mxu0 %v7044_v2  ;;  %v7838_v49 = vld [vmem:[%s7194_s6 + $0x64] sm:$0xf] }
 0x144   : > { %6626 = vmatpush3.bf16.msra.mxu1 %v7257_v47  ;;  %6627 = vmatprep.mubr.msk.bf16.mxu1 %vm7045_vm1, %v7044_v2  ;;  %v1243_v24 = vadd.f32 %v1236_v46, %v1192_v56  ;;  %v4159_v46 = vshrl.u32 %v5966_v35, 16 }
 0x145   : > { %v1188_v4 = vpop.f32.mrf.mxu0  ;;  %v6329_v13 = vpop.f32.mrf.mxu1  ;;  %6637 = vmatprep.subr.bf16.mxu1 %v7044_v2 }
 0x146   : > { %v1193_v23 = vadd.f32 %v1188_v4, %v1135_v19  ;;  %v4161_v50 = vrot.slane %v4159_v46, 2  ;;  %v4277_v4 = vrot.slane %v4275_v1, 3  ;;  %v4280_v13 = vrot.slane %v4278_v10, 4  ;;  %v7855_v1 = vld [vmem:[%s7194_s6 + $0x64] sm:$0xf] }
 0x147   : > { %v6312_v22 = vpop.f32.mrf.mxu0  ;;  %v1356_v18 = vpop.f32.mrf.mxu1 }
 0x148   : > { %v1244_v42 = vadd.f32 %v1239_v61, %v1193_v23  ;;  %v4165_v56 = vor.u32 %v4164_v6, %v4161_v50  ;;  %v5977_v22 = vcombine.low %v7776_v57, %v5973_v63 }
 0x149   : > { %v1306_v27 = vpop.f32.mrf.mxu0  ;;  %6610 = vmatmul.mubr.msk.bf16.vlgmr.msra.gmra.mxu0 %vm353_vm2, %v5954_v15  ;;  %v6330_v29 = vpop.f32.mrf.mxu1  ;;  %v4283_v15 = vshll.u32 %v5975_v8, 16 }
 0x14a   : > { %v1313_v36 = vadd.f32 %v1306_v27, %v1243_v24  ;;  %6620 = vmatpush3.bf16.msra.mxu0 %v7210_v14  ;;  %6621 = vmatprep.mubr.msk.bf16.mxu0 %vm7045_vm1, %v7044_v2  ;;  %v4281_v27 = vor.u32 %v4280_v13, %v4277_v4 }
 0x14b   : > { %v6323_v30 = vpop.f32.mrf.mxu0  ;;  %v7779_v39 = vpop.f32.mrf.mxu1  ;;  %6628 = vmatmul.mubr.msk.bf16.vlgmr.msra.gmra.mxu1 %vm353_vm2, %v4107_v20  ;;  %6631 = vmatprep.subr.bf16.mxu0 %v7044_v2  ;;  %v7814_v20 = vld [vmem:[%s7194_s6 + $0x64] sm:$0x7]  ;;  %v4285_v29 = vrot.slane %v4283_v15, 4 }
 0x14c   : > { %v1360_v41 = vadd.f32 %v1353_v11, %v1313_v36  ;;  %6638 = vmatpush3.bf16.msra.mxu1 %v7282_v62  ;;  %6639 = vmatprep.mubr.msk.bf16.mxu1 %vm7045_vm1, %v7044_v2  ;;  %v5980_v36 = vld [vmem:[%s7194_s6 + $0x64] sm:$0x1] }
 0x14d   : > { %v1309_v43 = vpop.f32.mrf.mxu0  ;;  %v6341_v44 = vpop.f32.mrf.mxu1  ;;  %6649 = vmatprep.subr.bf16.mxu1 %v7044_v2  ;;  %v4286_v40 = vsel %vm747_vm3, %v4281_v27, %v4285_v29 }
 0x14e   : > { %v1365_v51 = vadd.f32 %v1363_v28, %v1360_v41  ;;  %v1314_v52 = vadd.f32 %v1309_v43, %v1244_v42  ;;  %v4402_v28 = vshll.u32 %v5982_v25, 16  ;;  %v5984_v43 = vcombine.low %v5979_v16, %v5980_v36 }
 0x14f   : > { %v6324_v54 = vpop.f32.mrf.mxu0  ;;  %v7788_v59 = vpop.f32.mrf.mxu1 }
 0x150   : > { %1367 = vst [vmem:[#allocation2 + $0x50] sm:$0xff] %v1365_v51  ;;  %v1361_v61 = vadd.f32 %v1356_v18, %v1314_v52  ;;  %v7811_v18 = vld [vmem:[%s7194_s6 + $0x60] sm:$0xe] }
 0x151   : > { %v1425_v0 = vpop.f32.mrf.mxu0  ;;  %6622 = vmatmul.mubr.msk.bf16.vlgmr.msra.gmra.mxu0 %vm353_vm2, %v4056_v45  ;;  %v6342_v48 = vpop.f32.mrf.mxu1  ;;  %v5990_v35 = vcombine.low %v7811_v18, %v7814_v20 }
 0x152   : > { %v1366_v7 = vadd.f32 %v1364_v53, %v1361_v61  ;;  %6632 = vmatpush3.bf16.msra.mxu0 %v7238_v37  ;;  %6633 = vmatprep.mubr.msk.bf16.mxu0 %vm7045_vm1, %v7044_v2  ;;  %v1473_v30 = vadd.f32 %v7779_v39, %v1425_v0  ;;  %v4400_v53 = vshrl.u32 %v5982_v25, 16  ;;  %v4404_v39 = vrot.slane %v4402_v28, 1 }
 0x153   : > { %v6335_v12 = vpop.f32.mrf.mxu0  ;;  %v7795_v33 = vpop.f32.mrf.mxu1  ;;  %6640 = vmatmul.mubr.msk.bf16.vlgmr.msra.gmra.mxu1 %vm353_vm2, %v4216_v58  ;;  %6643 = vmatprep.subr.bf16.mxu0 %v7044_v2  ;;  %v4553_v44 = vshrl.u32 %v5990_v35, 16  ;;  %v4556_v45 = vshll.u32 %v5990_v35, 16  ;;  %v5996_v48 = vcombine.low %v7835_v38, %v7838_v49 }
 0x154   : > { %1368 = vst [vmem:[#allocation2 + $0x18] sm:$0x3] %v1366_v7  ;;  %6650 = vmatpush3.bf16.msra.mxu1 %v7298_v9  ;;  %6651 = vmatprep.mubr.msk.bf16.mxu1 %vm7045_vm1, %v7044_v2  ;;  %v4405_v10 = vor.u32 %v4404_v39, %v4400_v53  ;;  %v7886_v53 = vld [vmem:[%s7194_s6 + $0x70] sm:$0x3] }
 0x155   : > { %v1428_v11 = vpop.f32.mrf.mxu0  ;;  %v6353_v32 = vpop.f32.mrf.mxu1  ;;  %6661 = vmatprep.subr.bf16.mxu1 %v7044_v2  ;;  %v4555_v61 = vrot.slane %v4553_v44, 1  ;;  %v4558_v0 = vrot.slane %v4556_v45, 2  ;;  %v4662_v4 = vshrl.u32 %v5996_v48, 16 }
 0x156   : > { %v1476_v54 = vadd.f32 %v7788_v59, %v1428_v11  ;;  %v6001_v59 = vld [vmem:[%s7194_s6 + $0x60] sm:$0x8] }
 0x157   : > { %v6336_v19 = vpop.f32.mrf.mxu0  ;;  %v7807_v21 = vpop.f32.mrf.mxu1  ;;  %v6004_v13 = vcombine.low %v6001_v59, %v7855_v1 }
 0x159   : > { %v1521_v23 = vpop.f32.mrf.mxu0  ;;  %6634 = vmatmul.mubr.msk.bf16.vlgmr.msra.gmra.mxu0 %vm353_vm2, %v4165_v56  ;;  %v6354_v24 = vpop.f32.mrf.mxu1  ;;  %v4559_v56 = vor.u32 %v4558_v0, %v4555_v61  ;;  %v4778_v35 = vshrl.u32 %v6004_v13, 16 }
 0x15a   : > { %6644 = vmatpush3.bf16.msra.mxu0 %v7267_v55  ;;  %6645 = vmatprep.mubr.msk.bf16.mxu0 %vm7045_vm1, %v7044_v2  ;;  %v1528_v46 = vadd.f32 %v1521_v23, %v1473_v30  ;;  %v7864_v23 = vld [vmem:[%s7194_s6 + $0x68] sm:$0x1] }
 0x15b   : > { %v6347_v34 = vpop.f32.mrf.mxu0  ;;  %v1688_v60 = vpop.f32.mrf.mxu1  ;;  %6652 = vmatmul.mubr.msk.bf16.vlgmr.msra.gmra.mxu1 %vm353_vm2, %v5977_v22  ;;  %6655 = vmatprep.subr.bf16.mxu0 %v7044_v2  ;;  %v5987_v22 = vcombine.low %v7811_v18, %v7805_v17  ;;  %v6005_v18 = vcombine.low %v7864_v23, %v7864_v23 }
 0x15c   : > { %6662 = vmatpush3.bf16.msra.mxu1 %v7183_v3  ;;  %6663 = vmatprep.mubr.msk.bf16.mxu1 %vm7045_vm1, %v7044_v2  ;;  %v1586_v6 = vadd.f32 %v7795_v33, %v1528_v46  ;;  %v4665_v33 = vshll.u32 %v5996_v48, 16 }
 0x15d   : > { %v1524_v57 = vpop.f32.mrf.mxu0  ;;  %v6365_v26 = vpop.f32.mrf.mxu1  ;;  %6673 = vmatprep.subr.bf16.mxu1 %v7044_v2 }
 0x15e   : > { %v1529_v50 = vadd.f32 %v1524_v57, %v1476_v54  ;;  %v4667_v34 = vrot.slane %v4665_v33, 3  ;;  %v4501_v26 = vrot.slane %v5987_v22, 1  ;;  %v1866_v54 = vld [vmem:[#allocation2 + $0x30] sm:$0xff] }
 0x15f   : > { %v6348_v41 = vpop.f32.mrf.mxu0  ;;  %v7832_v42 = vpop.f32.mrf.mxu1 }
 0x160   : > { %v1587_v15 = vadd.f32 %v7807_v21, %v1529_v50  ;;  %v4664_v21 = vrot.slane %v4662_v4, 2 }
 0x161   : > { %v1630_v51 = vpop.f32.mrf.mxu0  ;;  %6646 = vmatmul.mubr.msk.bf16.vlgmr.msra.gmra.mxu0 %vm353_vm2, %v4286_v40  ;;  %v6366_v52 = vpop.f32.mrf.mxu1 }
 0x162   : > { %6656 = vmatpush3.bf16.msra.mxu0 %v7191_v5  ;;  %6657 = vmatprep.mubr.msk.bf16.mxu0 %vm7045_vm1, %v7044_v2  ;;  %v1637_v12 = vadd.f32 %v1630_v51, %v1586_v6  ;;  %v4668_v41 = vor.u32 %v4667_v34, %v4664_v21  ;;  %v4786_v51 = vshll.u32 %v6005_v18, 16  ;;  %v7883_v52 = vld [vmem:[%s7194_s6 + $0x6c] sm:$0xf] }
 0x163   : > { %v6359_v58 = vpop.f32.mrf.mxu0  ;;  %v1809_v63 = vpop.f32.mrf.mxu1  ;;  %6664 = vmatmul.mubr.msk.bf16.vlgmr.msra.gmra.mxu1 %vm353_vm2, %v5984_v43  ;;  %6667 = vmatprep.subr.bf16.mxu0 %v7044_v2  ;;  %v4780_v43 = vrot.slane %v4778_v35, 3  ;;  %v6012_v48 = vcombine.low %v7883_v52, %v7886_v53 }
 0x164   : > { %6674 = vmatpush3.bf16.msra.mxu1 %v7210_v14  ;;  %6675 = vmatprep.mubr.msk.bf16.mxu1 %vm7045_vm1, %v7044_v2  ;;  %v1695_v25 = vadd.f32 %v1688_v60, %v1637_v12  ;;  %v4781_v60 = vshll.u32 %v6004_v13, 16 }
 0x165   : > { %v1633_v7 = vpop.f32.mrf.mxu0  ;;  %v6377_v8 = vpop.f32.mrf.mxu1  ;;  %6685 = vmatprep.subr.bf16.mxu1 %v7044_v2  ;;  %v4905_v33 = vshll.u32 %v6012_v48, 16 }
 0x166   : > { %v1638_v24 = vadd.f32 %v1633_v7, %v1587_v15  ;;  %v4783_v46 = vrot.slane %v4781_v60, 4  ;;  %v1867_v7 = vld [vmem:[#allocation2 + $0x68] sm:$0x3] }
 0x167   : > { %v6360_v11 = vpop.f32.mrf.mxu0  ;;  %v1812_v32 = vpop.f32.mrf.mxu1 }
 0x168   : > { %v1696_v28 = vadd.f32 %v7832_v42, %v1638_v24  ;;  %v5993_v42 = vcombine.low %v7835_v38, %v7814_v20  ;;  %v4784_v20 = vor.u32 %v4783_v46, %v4780_v43  ;;  %v4788_v38 = vrot.slane %v4786_v51, 4  ;;  %v5998_v11 = vld [vmem:[%s7194_s6 + $0x60] sm:$0x8]  ;;  %v6019_v51 = vld [vmem:[%s7194_s6 + $0x70] sm:$0x7] }
 0x169   : > { %v1739_v16 = vpop.f32.mrf.mxu0  ;;  %6658 = vmatmul.mubr.msk.bf16.vlgmr.msra.gmra.mxu0 %vm353_vm2, %v4405_v10  ;;  %v6378_v19 = vpop.f32.mrf.mxu1  ;;  %v6007_v43 = vcombine.low %v7855_v1, %v7864_v23  ;;  %v6010_v1 = vld [vmem:[%s7194_s6 + $0x70] sm:$0x1] }
 0x16a   : > { %6668 = vmatpush3.bf16.msra.mxu0 %v7233_v31  ;;  %6669 = vmatprep.mubr.msk.bf16.mxu0 %vm7045_vm1, %v7044_v2  ;;  %v1746_v17 = vadd.f32 %v1739_v16, %v1695_v25  ;;  %v4610_v10 = vrot.slane %v5993_v42, 2  ;;  %v4789_v13 = vsel %vm747_vm3, %v4784_v20, %v4788_v38  ;;  %v5999_v19 = vcombine.low %v5998_v11, %v7838_v49 }
 0x16b   : > { %v6371_v27 = vpop.f32.mrf.mxu0  ;;  %v7869_v29 = vpop.f32.mrf.mxu1  ;;  %6676 = vmatmul.mubr.msk.bf16.vlgmr.msra.gmra.mxu1 %vm353_vm2, %v4559_v56  ;;  %6679 = vmatprep.subr.bf16.mxu0 %v7044_v2  ;;  %v4903_v25 = vshrl.u32 %v6012_v48, 16  ;;  %v6014_v38 = vcombine.low %v7883_v52, %v6010_v1 }
 0x16c   : > { %6686 = vmatpush3.bf16.msra.mxu1 %v7238_v37  ;;  %6687 = vmatprep.mubr.msk.bf16.mxu1 %vm7045_vm1, %v7044_v2  ;;  %v1816_v45 = vadd.f32 %v1809_v63, %v1746_v17  ;;  %v4907_v27 = vrot.slane %v4905_v33, 1  ;;  %v4719_v34 = vrot.slane %v5999_v19, 3 }
 0x16d   : > { %v1742_v36 = vpop.f32.mrf.mxu0  ;;  %v6389_v57 = vpop.f32.mrf.mxu1  ;;  %6697 = vmatprep.subr.bf16.mxu1 %v7044_v2 }
 0x16e   : > { %v1747_v44 = vadd.f32 %v1742_v36, %v1696_v28  ;;  %v4908_v18 = vor.u32 %v4907_v27, %v4903_v25  ;;  %v6016_v36 = vld [vmem:[%s7194_s6 + $0x6c] sm:$0xe] }
 0x16f   : > { %v6372_v30 = vpop.f32.mrf.mxu0  ;;  %v7880_v40 = vpop.f32.mrf.mxu1 }
 0x170   : > { %v1817_v6 = vadd.f32 %v1812_v32, %v1747_v44 }
 0x171   : > { %v1856_v39 = vpop.f32.mrf.mxu0  ;;  %6670 = vmatmul.mubr.msk.bf16.vlgmr.msra.gmra.mxu0 %vm353_vm2, %v4501_v26  ;;  %v6390_v58 = vpop.f32.mrf.mxu1 }
 0x172   : > { %v1863_v61 = vadd.f32 %v1856_v39, %v1816_v45  ;;  %6680 = vmatpush3.bf16.msra.mxu0 %v7257_v47  ;;  %6681 = vmatprep.mubr.msk.bf16.mxu0 %vm7045_vm1, %v7044_v2  ;;  %v6022_v58 = vld [vmem:[%s7194_s6 + $0x6c] sm:$0xc] }
 0x173   : > { %v6383_v63 = vpop.f32.mrf.mxu0  ;;  %v2024_v0 = vpop.f32.mrf.mxu1  ;;  %6688 = vmatmul.mubr.msk.bf16.vlgmr.msra.gmra.mxu1 %vm353_vm2, %v4668_v41  ;;  %6691 = vmatprep.subr.bf16.mxu0 %v7044_v2 }
 0x174   : > { %v1868_v50 = vadd.f32 %v1866_v54, %v1863_v61  ;;  %6698 = vmatpush3.bf16.msra.mxu1 %v7267_v55  ;;  %6699 = vmatprep.mubr.msk.bf16.mxu1 %vm7045_vm1, %v7044_v2  ;;  %v6020_v61 = vcombine.low %v6016_v36, %v6019_v51 }
 0x175   : > { %v1859_v59 = vpop.f32.mrf.mxu0  ;;  %v6401_v8 = vpop.f32.mrf.mxu1  ;;  %6709 = vmatprep.subr.bf16.mxu1 %v7044_v2 }
 0x176   : > { %1870 = vst [vmem:[#allocation2 + $0x30] sm:$0xff] %v1868_v50  ;;  %v1864_v12 = vadd.f32 %v1859_v59, %v1817_v6  ;;  %v6023_v50 = vcombine.low %v6022_v58, %v6019_v51  ;;  %v5056_v59 = vshrl.u32 %v6020_v61, 16 }
 0x177   : > { %v6384_v56 = vpop.f32.mrf.mxu0  ;;  %v2027_v4 = vpop.f32.mrf.mxu1 }
 0x178   : > { %v1869_v32 = vadd.f32 %v1867_v7, %v1864_v12  ;;  %v5059_v7 = vshll.u32 %v6020_v61, 16  ;;  %v5113_v56 = vrot.slane %v6023_v50, 2 }
 0x179   : > { %v1975_v15 = vpop.f32.mrf.mxu0  ;;  %6682 = vmatmul.mubr.msk.bf16.vlgmr.msra.gmra.mxu0 %vm353_vm2, %v4610_v10  ;;  %v6402_v16 = vpop.f32.mrf.mxu1  ;;  %v6025_v10 = vld [vmem:[%s7194_s6 + $0x70] sm:$0xf] }
 0x17a   : > { %1871 = vst [vmem:[#allocation2 + $0x68] sm:$0x3] %v1869_v32  ;;  %6692 = vmatpush3.bf16.msra.mxu0 %v7282_v62  ;;  %6693 = vmatprep.mubr.msk.bf16.mxu0 %vm7045_vm1, %v7044_v2  ;;  %v1976_v60 = vadd.f32 %v1975_v15, %v7869_v29  ;;  %v6017_v29 = vcombine.low %v6016_v36, %v7886_v53  ;;  %v6028_v32 = vld [vmem:[%s7194_s6 + $0x6c] sm:$0x8]  ;;  %v5058_v15 = vrot.slane %v5056_v59, 1  ;;  %v5061_v52 = vrot.slane %v5059_v7, 2 }
 0x17b   : > { %v6395_v22 = vpop.f32.mrf.mxu0  ;;  %v2133_v24 = vpop.f32.mrf.mxu1  ;;  %6700 = vmatmul.mubr.msk.bf16.vlgmr.msra.gmra.mxu1 %vm353_vm2, %v4789_v13  ;;  %6703 = vmatprep.subr.bf16.mxu0 %v7044_v2  ;;  %v6026_v16 = vcombine.low %v6022_v58, %v6025_v10  ;;  %v6029_v27 = vcombine.low %v6028_v32, %v6025_v10 }
 0x17c   : > { %6710 = vmatpush3.bf16.msra.mxu1 %v7191_v5  ;;  %6711 = vmatprep.mubr.msk.bf16.mxu1 %vm7045_vm1, %v7044_v2  ;;  %v2031_v41 = vadd.f32 %v2024_v0, %v1976_v60  ;;  %v5004_v54 = vrot.slane %v6017_v29, 1  ;;  %v2369_v22 = vld [vmem:[#allocation2 + $0x78] sm:$0xff] }
 0x17d   : > { %v1978_v49 = vpop.f32.mrf.mxu0  ;;  %v6413_v21 = vpop.f32.mrf.mxu1  ;;  %6721 = vmatprep.subr.bf16.mxu1 %v7044_v2  ;;  %v5165_v60 = vshrl.u32 %v6026_v16, 16  ;;  %v5168_v36 = vshll.u32 %v6026_v16, 16 }
 0x17e   : > { %v1979_v30 = vadd.f32 %v1978_v49, %v7880_v40  ;;  %v6032_v49 = vld [vmem:[%s7194_s6 + $0x70] sm:$0xf]  ;;  %v6031_v21 = vld [vmem:[%s7194_s6 + $0x6c] sm:$0x8] }
 0x17f   : > { %v6396_v35 = vpop.f32.mrf.mxu0  ;;  %v2136_v17 = vpop.f32.mrf.mxu1  ;;  %v5170_v51 = vrot.slane %v5168_v36, 3 }
 0x180   : > { %v2032_v40 = vadd.f32 %v2027_v4, %v1979_v30 }
 0x181   : > { %v2082_v57 = vpop.f32.mrf.mxu0  ;;  %6694 = vmatmul.mubr.msk.bf16.vlgmr.msra.gmra.mxu0 %vm353_vm2, %v4719_v34  ;;  %v6414_v26 = vpop.f32.mrf.mxu1 }
 0x182   : > { %6704 = vmatpush3.bf16.msra.mxu0 %v7298_v9  ;;  %6705 = vmatprep.mubr.msk.bf16.mxu0 %vm7045_vm1, %v7044_v2  ;;  %v2089_v46 = vadd.f32 %v2082_v57, %v2031_v41  ;;  %v5222_v41 = vrot.slane %v6029_v27, 3 }
 0x183   : > { %v6407_v5 = vpop.f32.mrf.mxu0  ;;  %v2242_v28 = vpop.f32.mrf.mxu1  ;;  %6712 = vmatmul.mubr.msk.bf16.vlgmr.msra.gmra.mxu1 %vm353_vm2, %v4908_v18  ;;  %6715 = vmatprep.subr.bf16.mxu0 %v7044_v2  ;;  %v5062_v18 = vor.u32 %v5061_v52, %v5058_v15 }
 0x184   : > { %6722 = vmatpush3.bf16.msra.mxu1 %v7233_v31  ;;  %6723 = vmatprep.mubr.msk.bf16.mxu1 %vm7045_vm1, %v7044_v2  ;;  %v2140_v0 = vadd.f32 %v2133_v24, %v2089_v46  ;;  %v6034_v5 = vcombine.low %v6031_v21, %v6032_v49  ;;  %v5167_v46 = vrot.slane %v5165_v60, 2 }
 0x185   : > { %v2085_v44 = vpop.f32.mrf.mxu0  ;;  %v6425_v45 = vpop.f32.mrf.mxu1  ;;  %6733 = vmatprep.subr.bf16.mxu1 %v7044_v2 }
 0x186   : > { %v2090_v63 = vadd.f32 %v2085_v44, %v2032_v40  ;;  %v5284_v40 = vshll.u32 %v6034_v5, 16  ;;  %v5171_v61 = vor.u32 %v5170_v51, %v5167_v46 }
 0x187   : > { %v6408_v39 = vpop.f32.mrf.mxu0  ;;  %v2245_v53 = vpop.f32.mrf.mxu1 }
 0x188   : > { %v2141_v8 = vadd.f32 %v2136_v17, %v2090_v63 }
 0x189   : > { %v2191_v42 = vpop.f32.mrf.mxu0  ;;  %6706 = vmatmul.mubr.msk.bf16.vlgmr.msra.gmra.mxu0 %vm353_vm2, %v6007_v43  ;;  %v6426_v31 = vpop.f32.mrf.mxu1  ;;  %v6033_v43 = vld [vmem:[%s7194_s6 + $0x74] sm:$0x1] }
 0x18a   : > { %6716 = vmatpush3.bf16.msra.mxu0 %v7183_v3  ;;  %6717 = vmatprep.mubr.msk.bf16.mxu0 %vm7045_vm1, %v7044_v2  ;;  %v2198_v6 = vadd.f32 %v2191_v42, %v2140_v0  ;;  %v5286_v0 = vrot.slane %v5284_v40, 4  ;;  %v6037_v50 = vcombine.low %v6032_v49, %v6033_v43 }
 0x18b   : > { %v6419_v23 = vpop.f32.mrf.mxu0  ;;  %v2359_v48 = vpop.f32.mrf.mxu1  ;;  %6724 = vmatmul.mubr.msk.bf16.vlgmr.msra.gmra.mxu1 %vm353_vm2, %v5004_v54  ;;  %6727 = vmatprep.subr.bf16.mxu0 %v7044_v2  ;;  %v5281_v54 = vshrl.u32 %v6034_v5, 16 }
 0x18c   : > { %6734 = vmatpush3.bf16.msra.mxu1 %v7257_v47  ;;  %6735 = vmatprep.mubr.msk.bf16.mxu1 %vm7045_vm1, %v7044_v2  ;;  %v2249_v33 = vadd.f32 %v2242_v28, %v2198_v6  ;;  %v2370_v28 = vld [vmem:[#allocation2 + $0x80] sm:$0x3] }
 0x18d   : > { %v2194_v3 = vpop.f32.mrf.mxu0  ;;  %v6437_v20 = vpop.f32.mrf.mxu1  ;;  %6745 = vmatprep.subr.bf16.mxu1 %v7044_v2  ;;  %v5283_v63 = vrot.slane %v5281_v54, 3 }
 0x18e   : > { %v2199_v4 = vadd.f32 %v2194_v3, %v2141_v8 }
 0x18f   : > { %v6420_v12 = vpop.f32.mrf.mxu0  ;;  %v2362_v11 = vpop.f32.mrf.mxu1 }
 0x190   : > { %v2250_v35 = vadd.f32 %v2245_v53, %v2199_v4  ;;  %v6035_v53 = vcombine.low %v6033_v43, %v6033_v43 }
 0x191   : > { %v2312_v47 = vpop.f32.mrf.mxu0  ;;  %6718 = vmatmul.mubr.msk.bf16.vlgmr.msra.gmra.mxu0 %vm353_vm2, %v6014_v38  ;;  %v6438_v13 = vpop.f32.mrf.mxu1 }
 0x192   : > { %v2319_v19 = vadd.f32 %v2312_v47, %v2249_v33  ;;  %6728 = vmatpush3.bf16.msra.mxu0 %v7210_v14  ;;  %6729 = vmatprep.mubr.msk.bf16.mxu0 %vm7045_vm1, %v7044_v2  ;;  %v5289_v1 = vshll.u32 %v6035_v53, 16 }
 0x193   : > { %v6431_v24 = vpop.f32.mrf.mxu0  ;;  %v7951_v25 = vpop.f32.mrf.mxu1  ;;  %6736 = vmatmul.mubr.msk.bf16.vlgmr.msra.gmra.mxu1 %vm353_vm2, %v5113_v56  ;;  %6739 = vmatprep.subr.bf16.mxu0 %v7044_v2 }
 0x194   : > { %v2366_v34 = vadd.f32 %v2359_v48, %v2319_v19  ;;  %6746 = vmatpush3.bf16.msra.mxu1 %v7282_v62  ;;  %6747 = vmatprep.mubr.msk.bf16.mxu1 %vm7045_vm1, %v7044_v2  ;;  %v5291_v20 = vrot.slane %v5289_v1, 4 }
 0x195   : > { %v2315_v14 = vpop.f32.mrf.mxu0  ;;  %v6449_v17 = vpop.f32.mrf.mxu1  ;;  %6757 = vmatprep.subr.bf16.mxu1 %v7044_v2 }
 0x196   : > { %v2371_v57 = vadd.f32 %v2369_v22, %v2366_v34  ;;  %v2320_v26 = vadd.f32 %v2315_v14, %v2250_v35 }
 0x197   : > { %v6432_v29 = vpop.f32.mrf.mxu0  ;;  %v2481_v30 = vpop.f32.mrf.mxu1 }
 0x198   : > { %2373 = vst [vmem:[#allocation2 + $0x78] sm:$0xff] %v2371_v57  ;;  %v2367_v62 = vadd.f32 %v2362_v11, %v2320_v26 }
 0x199   : > { %v2431_v44 = vpop.f32.mrf.mxu0  ;;  %6730 = vmatmul.mubr.msk.bf16.vlgmr.msra.gmra.mxu0 %vm353_vm2, %v5062_v18  ;;  %v6450_v45 = vpop.f32.mrf.mxu1 }
 0x19a   : > { %v2372_v39 = vadd.f32 %v2370_v28, %v2367_v62  ;;  %6740 = vmatpush3.bf16.msra.mxu0 %v7238_v37  ;;  %6741 = vmatprep.mubr.msk.bf16.mxu0 %vm7045_vm1, %v7044_v2  ;;  %v2479_v10 = vadd.f32 %v7951_v25, %v2431_v44 }
 0x19b   : > { %v6443_v58 = vpop.f32.mrf.mxu0  ;;  %v2585_v42 = vpop.f32.mrf.mxu1  ;;  %6748 = vmatmul.mubr.msk.bf16.vlgmr.msra.gmra.mxu1 %vm353_vm2, %v5222_v41  ;;  %6751 = vmatprep.subr.bf16.mxu0 %v7044_v2 }
 0x19c   : > { %2374 = vst [vmem:[#allocation2 + $0x80] sm:$0x3] %v2372_v39  ;;  %6758 = vmatpush3.bf16.msra.mxu1 %v7298_v9  ;;  %6759 = vmatprep.mubr.msk.bf16.mxu1 %vm7045_vm1, %v7044_v2  ;;  %v5287_v9 = vor.u32 %v5286_v0, %v5283_v63  ;;  %v2873_v39 = vld [vmem:[#allocation2 + $0x88] sm:$0x3] }
 0x19d   : > { %v2434_v31 = vpop.f32.mrf.mxu0  ;;  %v6461_v37 = vpop.f32.mrf.mxu1 }
 0x19e   : > { %v5292_v12 = vsel %vm747_vm3, %v5287_v9, %v5291_v20 }
 0x19f   : > { %v6444_v23 = vpop.f32.mrf.mxu0  ;;  %v2588_v48 = vpop.f32.mrf.mxu1 }
 0x1a1   : > { %v2527_v6 = vpop.f32.mrf.mxu0  ;;  %6742 = vmatmul.mubr.msk.bf16.vlgmr.msra.gmra.mxu0 %vm353_vm2, %v5171_v61  ;;  %v6462_v3 = vpop.f32.mrf.mxu1 }
 0x1a2   : > { %6752 = vmatpush3.bf16.msra.mxu0 %v7267_v55  ;;  %6753 = vmatprep.mubr.msk.bf16.mxu0 %vm7045_vm1, %v7044_v2  ;;  %v2534_v4 = vadd.f32 %v2527_v6, %v2479_v10  ;;  %v2482_v2 = vadd.f32 %v2481_v30, %v2434_v31  ;;  %v2872_v30 = vld [vmem:[#allocation2 + $0x8] sm:$0xff] }
 0x1a3   : > { %v6455_v38 = vpop.f32.mrf.mxu0  ;;  %v2694_v59 = vpop.f32.mrf.mxu1  ;;  %6760 = vmatmul.mubr.msk.bf16.vlgmr.msra.gmra.mxu1 %vm353_vm2, %v6037_v50 }
 0x1a4   : > { %v2592_v15 = vadd.f32 %v2585_v42, %v2534_v4 }
 0x1a5   : > { %v2530_v7 = vpop.f32.mrf.mxu0  ;;  %v6473_v8 = vpop.f32.mrf.mxu1 }
 0x1a6   : > { %v2535_v13 = vadd.f32 %v2530_v7, %v2482_v2 }
 0x1a7   : > { %v6456_v11 = vpop.f32.mrf.mxu0  ;;  %v2697_v56 = vpop.f32.mrf.mxu1 }
 0x1a8   : > { %v2593_v25 = vadd.f32 %v2588_v48, %v2535_v13 }
 0x1a9   : > { %v2636_v33 = vpop.f32.mrf.mxu0  ;;  %6754 = vmatmul.mubr.msk.bf16.vlgmr.msra.gmra.mxu0 %vm353_vm2, %v5292_v12  ;;  %v6474_v55 = vpop.f32.mrf.mxu1 }
 0x1aa   : > { %v2643_v19 = vadd.f32 %v2636_v33, %v2592_v15 }
 0x1ab   : > { %v6467_v32 = vpop.f32.mrf.mxu0  ;;  %v2815_v47 = vpop.f32.mrf.mxu1 }
 0x1ac   : > { %v2701_v34 = vadd.f32 %v2694_v59, %v2643_v19 }
 0x1ad   : > { %v2639_v52 = vpop.f32.mrf.mxu0  ;;  %v6485_v16 = vpop.f32.mrf.mxu1 }
 0x1ae   : > { %v2644_v21 = vadd.f32 %v2639_v52, %v2593_v25 }
 0x1af   : > { %v6468_v22 = vpop.f32.mrf.mxu0  ;;  %v2818_v24 = vpop.f32.mrf.mxu1 }
 0x1b0   : > { %v2702_v36 = vadd.f32 %v2697_v56, %v2644_v21 }
 0x1b1   : > { %v2745_v27 = vpop.f32.mrf.mxu0  ;;  %v6486_v49 = vpop.f32.mrf.mxu1 }
 0x1b2   : > { %v2752_v17 = vadd.f32 %v2745_v27, %v2701_v34  ;;  %v3375_v34 = vld [vmem:[#allocation2 + $0x28] sm:$0xff] }
 0x1b3   : > { %v6479_v35 = vpop.f32.mrf.mxu0  ;;  %v2934_v14 = vpop.f32.mrf.mxu1 }
 0x1b4   : > { %v2822_v28 = vadd.f32 %v2815_v47, %v2752_v17 }
 0x1b5   : > { %v2748_v18 = vpop.f32.mrf.mxu0  ;;  %v6497_v60 = vpop.f32.mrf.mxu1 }
 0x1b6   : > { %v2753_v5 = vadd.f32 %v2748_v18, %v2702_v36 }
 0x1b7   : > { %v6480_v57 = vpop.f32.mrf.mxu0  ;;  %v2937_v26 = vpop.f32.mrf.mxu1 }
 0x1b8   : > { %v2823_v46 = vadd.f32 %v2818_v24, %v2753_v5  ;;  %v3376_v5 = vld [vmem:[#allocation2 + $0x40] sm:$0x3] }
 0x1b9   : > { %v2862_v29 = vpop.f32.mrf.mxu0  ;;  %v6498_v41 = vpop.f32.mrf.mxu1 }
 0x1ba   : > { %v2869_v43 = vadd.f32 %v2862_v29, %v2822_v28 }
 0x1bb   : > { %v6491_v62 = vpop.f32.mrf.mxu0  ;;  %v3030_v44 = vpop.f32.mrf.mxu1 }
 0x1bc   : > { %v2874_v45 = vadd.f32 %v2872_v30, %v2869_v43 }
 0x1bd   : > { %v2865_v51 = vpop.f32.mrf.mxu0  ;;  %v6509_v53 = vpop.f32.mrf.mxu1 }
 0x1be   : > { %2876 = vst [vmem:[#allocation2 + $0x8] sm:$0xff] %v2874_v45  ;;  %v2870_v54 = vadd.f32 %v2865_v51, %v2823_v46 }
 0x1bf   : > { %v6492_v40 = vpop.f32.mrf.mxu0  ;;  %v3033_v58 = vpop.f32.mrf.mxu1 }
 0x1c0   : > { %v2875_v42 = vadd.f32 %v2873_v39, %v2870_v54 }
 0x1c1   : > { %v2981_v31 = vpop.f32.mrf.mxu0  ;;  %v6510_v37 = vpop.f32.mrf.mxu1 }
 0x1c2   : > { %2877 = vst [vmem:[#allocation2 + $0x88] sm:$0x3] %v2875_v42  ;;  %v2982_v50 = vadd.f32 %v2981_v31, %v2934_v14 }
 0x1c3   : > { %v6503_v61 = vpop.f32.mrf.mxu0  ;;  %v3139_v63 = vpop.f32.mrf.mxu1 }
 0x1c4   : > { %v3037_v59 = vadd.f32 %v3030_v44, %v2982_v50 }
 0x1c5   : > { %v2984_v0 = vpop.f32.mrf.mxu0  ;;  %v6521_v1 = vpop.f32.mrf.mxu1 }
 0x1c6   : > { %v2985_v38 = vadd.f32 %v2984_v0, %v2937_v26 }
 0x1c7   : > { %v6504_v23 = vpop.f32.mrf.mxu0  ;;  %v3142_v48 = vpop.f32.mrf.mxu1 }
 0x1c8   : > { %v3038_v56 = vadd.f32 %v3033_v58, %v2985_v38 }
 0x1c9   : > { %v3088_v6 = vpop.f32.mrf.mxu0  ;;  %v6522_v3 = vpop.f32.mrf.mxu1 }
 0x1ca   : > { %v3095_v10 = vadd.f32 %v3088_v6, %v3037_v59 }
 0x1cb   : > { %v6515_v9 = vpop.f32.mrf.mxu0  ;;  %v3248_v20 = vpop.f32.mrf.mxu1 }
 0x1cc   : > { %v3146_v2 = vadd.f32 %v3139_v63, %v3095_v10 }
 0x1cd   : > { %v3091_v7 = vpop.f32.mrf.mxu0  ;;  %v6533_v8 = vpop.f32.mrf.mxu1 }
 0x1ce   : > { %v3096_v55 = vadd.f32 %v3091_v7, %v3038_v56 }
 0x1cf   : > { %v6516_v12 = vpop.f32.mrf.mxu0  ;;  %v3251_v11 = vpop.f32.mrf.mxu1 }
 0x1d0   : > { %v3147_v16 = vadd.f32 %v3142_v48, %v3096_v55 }
 0x1d1   : > { %v3197_v4 = vpop.f32.mrf.mxu0  ;;  %v6534_v33 = vpop.f32.mrf.mxu1 }
 0x1d2   : > { %v3204_v13 = vadd.f32 %v3197_v4, %v3146_v2 }
 0x1d3   : > { %v6527_v32 = vpop.f32.mrf.mxu0  ;;  %v3365_v47 = vpop.f32.mrf.mxu1 }
 0x1d4   : > { %v3255_v25 = vadd.f32 %v3248_v20, %v3204_v13 }
 0x1d5   : > { %v3200_v15 = vpop.f32.mrf.mxu0  ;;  %v6545_v52 = vpop.f32.mrf.mxu1 }
 0x1d6   : > { %v3205_v24 = vadd.f32 %v3200_v15, %v3147_v16 }
 0x1d7   : > { %v6528_v19 = vpop.f32.mrf.mxu0  ;;  %v3368_v22 = vpop.f32.mrf.mxu1 }
 0x1d8   : > { %v3256_v18 = vadd.f32 %v3251_v11, %v3205_v24 }
 0x1d9   : > { %v3318_v27 = vpop.f32.mrf.mxu0  ;;  %v6546_v49 = vpop.f32.mrf.mxu1 }
 0x1da   : > { %v3325_v21 = vadd.f32 %v3318_v27, %v3255_v25  ;;  %v3878_v25 = vld [vmem:[#allocation2 + $0x58] sm:$0xff] }
 0x1db   : > { %v6539_v35 = vpop.f32.mrf.mxu0  ;;  %v3484_v14 = vpop.f32.mrf.mxu1 }
 0x1dc   : > { %v3372_v17 = vadd.f32 %v3365_v47, %v3325_v21 }
 0x1dd   : > { %v3321_v60 = vpop.f32.mrf.mxu0  ;;  %v6557_v36 = vpop.f32.mrf.mxu1 }
 0x1de   : > { %v3377_v57 = vadd.f32 %v3375_v34, %v3372_v17  ;;  %v3326_v26 = vadd.f32 %v3321_v60, %v3256_v18  ;;  %v3879_v18 = vld [vmem:[#allocation2 + $0x10] sm:$0x3] }
 0x1df   : > { %v6540_v28 = vpop.f32.mrf.mxu0  ;;  %v3487_v29 = vpop.f32.mrf.mxu1 }
 0x1e0   : > { %3379 = vst [vmem:[#allocation2 + $0x28] sm:$0xff] %v3377_v57  ;;  %v3373_v30 = vadd.f32 %v3368_v22, %v3326_v26 }
 0x1e1   : > { %v3437_v41 = vpop.f32.mrf.mxu0  ;;  %v6558_v43 = vpop.f32.mrf.mxu1 }
 0x1e2   : > { %v3378_v62 = vadd.f32 %v3376_v5, %v3373_v30  ;;  %v3485_v61 = vadd.f32 %v3484_v14, %v3437_v41 }
 0x1e3   : > { %v6551_v44 = vpop.f32.mrf.mxu0  ;;  %v3591_v45 = vpop.f32.mrf.mxu1 }
 0x1e4   : > { %3380 = vst [vmem:[#allocation2 + $0x40] sm:$0x3] %v3378_v62 }
 0x1e5   : > { %v3440_v46 = vpop.f32.mrf.mxu0  ;;  %v6569_v51 = vpop.f32.mrf.mxu1 }
 0x1e6   : > { %v3488_v50 = vadd.f32 %v3487_v29, %v3440_v46 }
 0x1e7   : > { %v6552_v39 = vpop.f32.mrf.mxu0  ;;  %v3594_v53 = vpop.f32.mrf.mxu1 }
 0x1e9   : > { %v3533_v54 = vpop.f32.mrf.mxu0  ;;  %v6570_v40 = vpop.f32.mrf.mxu1 }
 0x1ea   : > { %v3540_v1 = vadd.f32 %v3533_v54, %v3485_v61 }
 0x1eb   : > { %v6563_v58 = vpop.f32.mrf.mxu0  ;;  %v3700_v42 = vpop.f32.mrf.mxu1 }
 0x1ec   : > { %v3598_v20 = vadd.f32 %v3591_v45, %v3540_v1 }
 0x1ed   : > { %v3536_v31 = vpop.f32.mrf.mxu0  ;;  %v6581_v37 = vpop.f32.mrf.mxu1 }
 0x1ee   : > { %v3541_v9 = vadd.f32 %v3536_v31, %v3488_v50 }
 0x1ef   : > { %v6564_v63 = vpop.f32.mrf.mxu0  ;;  %v3703_v0 = vpop.f32.mrf.mxu1 }
 0x1f0   : > { %v3599_v12 = vadd.f32 %v3594_v53, %v3541_v9 }
 0x1f1   : > { %v3642_v23 = vpop.f32.mrf.mxu0  ;;  %v6582_v48 = vpop.f32.mrf.mxu1 }
 0x1f2   : > { %v3649_v7 = vadd.f32 %v3642_v23, %v3598_v20 }
 0x1f3   : > { %v6575_v6 = vpop.f32.mrf.mxu0  ;;  %v3821_v3 = vpop.f32.mrf.mxu1 }
 0x1f4   : > { %v3707_v33 = vadd.f32 %v3700_v42, %v3649_v7 }
 0x1f5   : > { %v3645_v38 = vpop.f32.mrf.mxu0  ;;  %v6593_v59 = vpop.f32.mrf.mxu1 }
 0x1f6   : > { %v3650_v4 = vadd.f32 %v3645_v38, %v3599_v12 }
 0x1f7   : > { %v6576_v8 = vpop.f32.mrf.mxu0  ;;  %v3824_v10 = vpop.f32.mrf.mxu1 }
 0x1f8   : > { %v3708_v15 = vadd.f32 %v3703_v0, %v3650_v4 }
 0x1f9   : > { %v3751_v11 = vpop.f32.mrf.mxu0  ;;  %v6594_v56 = vpop.f32.mrf.mxu1 }
 0x1fa   : > { %v3758_v32 = vadd.f32 %v3751_v11, %v3707_v33  ;;  %v4381_v33 = vld [vmem:[#allocation2 + $0x98] sm:$0xff] }
 0x1fb   : > { %v6587_v55 = vpop.f32.mrf.mxu0  ;;  %v3940_v2 = vpop.f32.mrf.mxu1 }
 0x1fc   : > { %v3828_v22 = vadd.f32 %v3821_v3, %v3758_v32 }
 0x1fd   : > { %v3754_v47 = vpop.f32.mrf.mxu0  ;;  %v6605_v13 = vpop.f32.mrf.mxu1 }
 0x1fe   : > { %v3759_v19 = vadd.f32 %v3754_v47, %v3708_v15 }
 0x1ff   : > { %v6588_v52 = vpop.f32.mrf.mxu0  ;;  %v3943_v16 = vpop.f32.mrf.mxu1 }
 0x200   : > { %v3829_v14 = vadd.f32 %v3824_v10, %v3759_v19  ;;  %v4382_v19 = vld [vmem:[#allocation2 + $0x60] sm:$0x3] }
 0x201   : > { %v3868_v24 = vpop.f32.mrf.mxu0  ;;  %v6606_v27 = vpop.f32.mrf.mxu1 }
 0x202   : > { %v3875_v49 = vadd.f32 %v3868_v24, %v3828_v22 }
 0x203   : > { %v6599_v21 = vpop.f32.mrf.mxu0  ;;  %v4036_v34 = vpop.f32.mrf.mxu1 }
 0x204   : > { %v3880_v35 = vadd.f32 %v3878_v25, %v3875_v49 }
 0x205   : > { %v3871_v17 = vpop.f32.mrf.mxu0  ;;  %v6617_v60 = vpop.f32.mrf.mxu1 }
 0x206   : > { %3882 = vst [vmem:[#allocation2 + $0x58] sm:$0xff] %v3880_v35  ;;  %v3876_v36 = vadd.f32 %v3871_v17, %v3829_v14 }
 0x207   : > { %v6600_v57 = vpop.f32.mrf.mxu0  ;;  %v4039_v26 = vpop.f32.mrf.mxu1 }
 0x208   : > { %v3881_v5 = vadd.f32 %v3879_v18, %v3876_v36 }
 0x209   : > { %v3987_v28 = vpop.f32.mrf.mxu0  ;;  %v6618_v29 = vpop.f32.mrf.mxu1 }
 0x20a   : > { %3883 = vst [vmem:[#allocation2 + $0x10] sm:$0x3] %v3881_v5  ;;  %v3988_v46 = vadd.f32 %v3987_v28, %v3940_v2 }
 0x20b   : > { %v6611_v30 = vpop.f32.mrf.mxu0  ;;  %v4145_v41 = vpop.f32.mrf.mxu1 }
 0x20c   : > { %v4043_v58 = vadd.f32 %v4036_v34, %v3988_v46 }
 0x20d   : > { %v3990_v43 = vpop.f32.mrf.mxu0  ;;  %v6629_v62 = vpop.f32.mrf.mxu1 }
 0x20e   : > { %v3991_v40 = vadd.f32 %v3990_v43, %v3943_v16 }
 0x20f   : > { %v6612_v44 = vpop.f32.mrf.mxu0  ;;  %v4148_v45 = vpop.f32.mrf.mxu1 }
 0x210   : > { %v4044_v0 = vadd.f32 %v4039_v26, %v3991_v40 }
 0x211   : > { %v4094_v51 = vpop.f32.mrf.mxu0  ;;  %v6630_v39 = vpop.f32.mrf.mxu1 }
 0x212   : > { %v4101_v37 = vadd.f32 %v4094_v51, %v4043_v58 }
 0x213   : > { %v6623_v53 = vpop.f32.mrf.mxu0  ;;  %v4254_v54 = vpop.f32.mrf.mxu1 }
 0x214   : > { %v4152_v50 = vadd.f32 %v4145_v41, %v4101_v37 }
 0x215   : > { %v4097_v42 = vpop.f32.mrf.mxu0  ;;  %v6641_v31 = vpop.f32.mrf.mxu1 }
 0x216   : > { %v4102_v48 = vadd.f32 %v4097_v42, %v4044_v0 }
 0x217   : > { %v6624_v61 = vpop.f32.mrf.mxu0  ;;  %v4257_v63 = vpop.f32.mrf.mxu1 }
 0x218   : > { %v4153_v59 = vadd.f32 %v4148_v45, %v4102_v48 }
 0x219   : > { %v4203_v1 = vpop.f32.mrf.mxu0  ;;  %v6642_v23 = vpop.f32.mrf.mxu1 }
 0x21a   : > { %v4210_v9 = vadd.f32 %v4203_v1, %v4152_v50 }
 0x21b   : > { %v6635_v6 = vpop.f32.mrf.mxu0  ;;  %v4371_v3 = vpop.f32.mrf.mxu1 }
 0x21c   : > { %v4261_v12 = vadd.f32 %v4254_v54, %v4210_v9 }
 0x21d   : > { %v4206_v20 = vpop.f32.mrf.mxu0  ;;  %v6653_v38 = vpop.f32.mrf.mxu1 }
 0x21e   : > { %v4211_v10 = vadd.f32 %v4206_v20, %v4153_v59 }
 0x21f   : > { %v6636_v7 = vpop.f32.mrf.mxu0  ;;  %v4374_v8 = vpop.f32.mrf.mxu1 }
 0x220   : > { %v4262_v47 = vadd.f32 %v4257_v63, %v4211_v10 }
 0x221   : > { %v4324_v11 = vpop.f32.mrf.mxu0  ;;  %v6654_v56 = vpop.f32.mrf.mxu1 }
 0x222   : > { %v4331_v4 = vadd.f32 %v4324_v11, %v4261_v12  ;;  %v4884_v12 = vld [vmem:[#allocation2 + $0x20] sm:$0xff] }
 0x223   : > { %v6647_v55 = vpop.f32.mrf.mxu0  ;;  %v4490_v2 = vpop.f32.mrf.mxu1 }
 0x224   : > { %v4378_v32 = vadd.f32 %v4371_v3, %v4331_v4 }
 0x225   : > { %v4327_v13 = vpop.f32.mrf.mxu0  ;;  %v6665_v15 = vpop.f32.mrf.mxu1 }
 0x226   : > { %v4383_v52 = vadd.f32 %v4381_v33, %v4378_v32  ;;  %v4332_v16 = vadd.f32 %v4327_v13, %v4262_v47  ;;  %v4885_v47 = vld [vmem:[#allocation2 + $0x48] sm:$0x3] }
 0x227   : > { %v6648_v22 = vpop.f32.mrf.mxu0  ;;  %v4493_v24 = vpop.f32.mrf.mxu1 }
 0x228   : > { %4385 = vst [vmem:[#allocation2 + $0x98] sm:$0xff] %v4383_v52  ;;  %v4379_v25 = vadd.f32 %v4374_v8, %v4332_v16 }
 0x229   : > { %v4443_v27 = vpop.f32.mrf.mxu0  ;;  %v6666_v49 = vpop.f32.mrf.mxu1 }
 0x22a   : > { %v4384_v21 = vadd.f32 %v4382_v19, %v4379_v25  ;;  %v4491_v30 = vadd.f32 %v4490_v2, %v4443_v27 }
 0x22b   : > { %v6659_v34 = vpop.f32.mrf.mxu0  ;;  %v4597_v35 = vpop.f32.mrf.mxu1 }
 0x22c   : > { %4386 = vst [vmem:[#allocation2 + $0x60] sm:$0x3] %v4384_v21 }
 0x22d   : > { %v4446_v14 = vpop.f32.mrf.mxu0  ;;  %v6677_v17 = vpop.f32.mrf.mxu1 }
 0x22e   : > { %v4494_v46 = vadd.f32 %v4493_v24, %v4446_v14 }
 0x22f   : > { %v6660_v18 = vpop.f32.mrf.mxu0  ;;  %v4600_v60 = vpop.f32.mrf.mxu1 }
 0x231   : > { %v4539_v36 = vpop.f32.mrf.mxu0  ;;  %v6678_v57 = vpop.f32.mrf.mxu1 }
 0x232   : > { %v4546_v62 = vadd.f32 %v4539_v36, %v4491_v30 }
 0x233   : > { %v6671_v26 = vpop.f32.mrf.mxu0  ;;  %v4706_v5 = vpop.f32.mrf.mxu1 }
 0x234   : > { %v4604_v54 = vadd.f32 %v4597_v35, %v4546_v62 }
 0x235   : > { %v4542_v28 = vpop.f32.mrf.mxu0  ;;  %v6689_v29 = vpop.f32.mrf.mxu1 }
 0x236   : > { %v4547_v53 = vadd.f32 %v4542_v28, %v4494_v46 }
 0x237   : > { %v6672_v41 = vpop.f32.mrf.mxu0  ;;  %v4709_v43 = vpop.f32.mrf.mxu1 }
 0x238   : > { %v4605_v61 = vadd.f32 %v4600_v60, %v4547_v53 }
 0x239   : > { %v4648_v44 = vpop.f32.mrf.mxu0  ;;  %v6690_v45 = vpop.f32.mrf.mxu1 }
 0x23a   : > { %v4655_v42 = vadd.f32 %v4648_v44, %v4604_v54 }
 0x23b   : > { %v6683_v51 = vpop.f32.mrf.mxu0  ;;  %v4827_v39 = vpop.f32.mrf.mxu1 }
 0x23c   : > { %v4713_v23 = vadd.f32 %v4706_v5, %v4655_v42 }
 0x23d   : > { %v4651_v40 = vpop.f32.mrf.mxu0  ;;  %v6701_v58 = vpop.f32.mrf.mxu1 }
 0x23e   : > { %v4656_v1 = vadd.f32 %v4651_v40, %v4605_v61 }
 0x23f   : > { %v6684_v31 = vpop.f32.mrf.mxu0  ;;  %v4830_v37 = vpop.f32.mrf.mxu1 }
 0x240   : > { %v4714_v20 = vadd.f32 %v4709_v43, %v4656_v1 }
 0x241   : > { %v4757_v63 = vpop.f32.mrf.mxu0  ;;  %v6702_v0 = vpop.f32.mrf.mxu1 }
 0x242   : > { %v4764_v6 = vadd.f32 %v4757_v63, %v4713_v23  ;;  %v5387_v23 = vld [vmem:[#allocation2 + $0x70] sm:$0xff] }
 0x243   : > { %v6695_v48 = vpop.f32.mrf.mxu0  ;;  %v4946_v50 = vpop.f32.mrf.mxu1 }
 0x244   : > { %v4834_v8 = vadd.f32 %v4827_v39, %v4764_v6 }
 0x245   : > { %v4760_v3 = vpop.f32.mrf.mxu0  ;;  %v6713_v9 = vpop.f32.mrf.mxu1 }
 0x246   : > { %v4765_v7 = vadd.f32 %v4760_v3, %v4714_v20 }
 0x247   : > { %v6696_v38 = vpop.f32.mrf.mxu0  ;;  %v4949_v59 = vpop.f32.mrf.mxu1 }
 0x248   : > { %v4835_v2 = vadd.f32 %v4830_v37, %v4765_v7  ;;  %v5388_v38 = vld [vmem:[#allocation2 + $0x90] sm:$0x3] }
 0x249   : > { %v4874_v10 = vpop.f32.mrf.mxu0  ;;  %v6714_v11 = vpop.f32.mrf.mxu1 }
 0x24a   : > { %v4881_v56 = vadd.f32 %v4874_v10, %v4834_v8 }
 0x24b   : > { %v6707_v4 = vpop.f32.mrf.mxu0  ;;  %v5042_v33 = vpop.f32.mrf.mxu1 }
 0x24c   : > { %v4886_v55 = vadd.f32 %v4884_v12, %v4881_v56 }
 0x24d   : > { %v4877_v32 = vpop.f32.mrf.mxu0  ;;  %v6725_v13 = vpop.f32.mrf.mxu1 }
 0x24e   : > { %4888 = vst [vmem:[#allocation2 + $0x20] sm:$0xff] %v4886_v55  ;;  %v4882_v15 = vadd.f32 %v4877_v32, %v4835_v2 }
 0x24f   : > { %v6708_v52 = vpop.f32.mrf.mxu0  ;;  %v5045_v16 = vpop.f32.mrf.mxu1 }
 0x250   : > { %v4887_v19 = vadd.f32 %v4885_v47, %v4882_v15 }
 0x251   : > { %v4993_v22 = vpop.f32.mrf.mxu0  ;;  %v6726_v24 = vpop.f32.mrf.mxu1 }
 0x252   : > { %4889 = vst [vmem:[#allocation2 + $0x48] sm:$0x3] %v4887_v19  ;;  %v4994_v14 = vadd.f32 %v4993_v22, %v4946_v50 }
 0x253   : > { %v6719_v25 = vpop.f32.mrf.mxu0  ;;  %v5151_v27 = vpop.f32.mrf.mxu1 }
 0x254   : > { %v5049_v26 = vadd.f32 %v5042_v33, %v4994_v14 }
 0x255   : > { %v4996_v49 = vpop.f32.mrf.mxu0  ;;  %v6737_v21 = vpop.f32.mrf.mxu1 }
 0x256   : > { %v4997_v57 = vadd.f32 %v4996_v49, %v4949_v59 }
 0x257   : > { %v6720_v34 = vpop.f32.mrf.mxu0  ;;  %v5154_v35 = vpop.f32.mrf.mxu1 }
 0x258   : > { %v5050_v43 = vadd.f32 %v5045_v16, %v4997_v57 }
 0x259   : > { %v5100_v17 = vpop.f32.mrf.mxu0  ;;  %v6738_v18 = vpop.f32.mrf.mxu1 }
 0x25a   : > { %v5107_v29 = vadd.f32 %v5100_v17, %v5049_v26 }
 0x25b   : > { %v6731_v60 = vpop.f32.mrf.mxu0  ;;  %v5260_v36 = vpop.f32.mrf.mxu1 }
 0x25c   : > { %v5158_v46 = vadd.f32 %v5151_v27, %v5107_v29 }
 0x25d   : > { %v5103_v5 = vpop.f32.mrf.mxu0  ;;  %v6749_v28 = vpop.f32.mrf.mxu1 }
 0x25e   : > { %v5108_v45 = vadd.f32 %v5103_v5, %v5050_v43 }
 0x25f   : > { %v6732_v30 = vpop.f32.mrf.mxu0  ;;  %v5263_v41 = vpop.f32.mrf.mxu1 }
 0x260   : > { %v5159_v58 = vadd.f32 %v5154_v35, %v5108_v45 }
 0x261   : > { %v5209_v62 = vpop.f32.mrf.mxu0  ;;  %v6750_v44 = vpop.f32.mrf.mxu1 }
 0x262   : > { %v5216_v53 = vadd.f32 %v5209_v62, %v5158_v46 }
 0x263   : > { %v6743_v51 = vpop.f32.mrf.mxu0  ;;  %v5377_v39 = vpop.f32.mrf.mxu1 }
 0x264   : > { %v5267_v61 = vadd.f32 %v5260_v36, %v5216_v53 }
 0x265   : > { %v5212_v54 = vpop.f32.mrf.mxu0  ;;  %v6761_v40 = vpop.f32.mrf.mxu1 }
 0x266   : > { %v5217_v37 = vadd.f32 %v5212_v54, %v5159_v58 }
 0x267   : > { %v6744_v42 = vpop.f32.mrf.mxu0  ;;  %v5380_v31 = vpop.f32.mrf.mxu1 }
 0x268   : > { %v5268_v6 = vadd.f32 %v5263_v41, %v5217_v37 }
 0x269   : > { %v5330_v63 = vpop.f32.mrf.mxu0  ;;  %v6762_v0 = vpop.f32.mrf.mxu1 }
 0x26a   : > { %v5337_v1 = vadd.f32 %v5330_v63, %v5267_v61 }
 0x26b   : > { %v6755_v48 = vpop.f32.mrf.mxu0 }
 0x26c   : > { %v5384_v50 = vadd.f32 %v5377_v39, %v5337_v1 }
 0x26d   : > { %v5333_v3 = vpop.f32.mrf.mxu0 }
 0x26e   : > { %v5389_v9 = vadd.f32 %v5387_v23, %v5384_v50  ;;  %v5338_v20 = vadd.f32 %v5333_v3, %v5268_v6 }
 0x26f   : > { %v6756_v59 = vpop.f32.mrf.mxu0 }
 0x270   : > { %5391 = vst [vmem:[#allocation2 + $0x70] sm:$0xff] %v5389_v9  ;;  %v5385_v7 = vadd.f32 %v5380_v31, %v5338_v20  ;;  %5396 = sbr.rel (%p6039_p10) target bundleno = 671 (0x29f), region = 40 }
 0x272   : > { %v5390_v8 = vadd.f32 %v5388_v38, %v5385_v7 }
 0x274   : > { %5392 = vst [vmem:[#allocation2 + $0x90] sm:$0x3] %v5390_v8 }
 0x275   : > { %v5397_v10 = vld [vmem:[#allocation2] sm:$0xff]  ;;  %v5398_v12 = vld [vmem:[#allocation2 + $0x38] sm:$0x3]  ;;  %vm5446_vm4 = vcmask 1041408   ;;  %v5399_v11 = vld [vmem:[#allocation2 + $0x50] sm:$0xff] }
 0x276   : > { %5417 = vst [vmem:[%s7176_s7] sm:$0xff] %v5397_v10  ;;  %v5475_v56 = vmul.f32 %v5397_v10, %v5397_v10  ;;  %5418 = vst [vmem:[%s7176_s7 + $0x8] sm:$0x3] %v5398_v12  ;;  %v5447_v4 = vsel %vm5446_vm4, %v5398_v12, 0.0  ;;  %v5476_v33 = vmul.f32 %v5398_v12, %v5398_v12  ;;  %v5437_v55 = vadd.f32 %v5399_v11, %v5397_v10  ;;  %v5400_v2 = vld [vmem:[#allocation2 + $0x18] sm:$0x3]  ;;  %v5401_v32 = vld [vmem:[#allocation2 + $0x30] sm:$0xff] }
 0x277   : > { %5419 = vst [vmem:[%s7176_s7 + $0x10] sm:$0xff] %v5399_v11  ;;  %v5402_v47 = vld [vmem:[#allocation2 + $0x68] sm:$0x3]  ;;  %v5477_v13 = vmul.f32 %v5399_v11, %v5399_v11  ;;  %5420 = vst [vmem:[%s7176_s7 + $0x18] sm:$0x3] %v5400_v2  ;;  %v5448_v15 = vsel %vm5446_vm4, %v5400_v2, 0.0  ;;  %v5478_v52 = vmul.f32 %v5400_v2, %v5400_v2  ;;  %v5479_v16 = vmul.f32 %v5401_v32, %v5401_v32 }
 0x278   : > { %5421 = vst [vmem:[%s7176_s7 + $0x20] sm:$0xff] %v5401_v32  ;;  %5422 = vst [vmem:[%s7176_s7 + $0x28] sm:$0x3] %v5402_v47  ;;  %v5403_v19 = vld [vmem:[#allocation2 + $0x78] sm:$0xff]  ;;  %v5404_v22 = vld [vmem:[#allocation2 + $0x80] sm:$0x3]  ;;  %v5449_v27 = vadd.f32 %v5448_v15, %v5447_v4  ;;  %v5438_v49 = vadd.f32 %v5437_v55, %v5401_v32  ;;  %v5480_v60 = vmul.f32 %v5402_v47, %v5402_v47 }
 0x279   : > { %v5405_v24 = vld [vmem:[#allocation2 + $0x8] sm:$0xff]  ;;  %v5504_v25 = vsel %vm5446_vm4, %v5476_v33, 0.0  ;;  %v5450_v21 = vsel %vm5446_vm4, %v5402_v47, 0.0  ;;  %5423 = vst [vmem:[%s7176_s7 + $0x30] sm:$0xff] %v5403_v19  ;;  %5424 = vst [vmem:[%s7176_s7 + $0x38] sm:$0x3] %v5404_v22  ;;  %v5495_v17 = vadd.f32 %v5477_v13, %v5475_v56  ;;  %v5481_v36 = vmul.f32 %v5403_v19, %v5403_v19 }
 0x27a   : > { %5425 = vst [vmem:[%s7176_s7 + $0x40] sm:$0xff] %v5405_v24  ;;  %v5406_v34 = vld [vmem:[#allocation2 + $0x88] sm:$0x3]  ;;  %v5409_v14 = vld [vmem:[#allocation2 + $0x58] sm:$0xff]  ;;  %v5505_v18 = vsel %vm5446_vm4, %v5478_v52, 0.0  ;;  %v5451_v29 = vadd.f32 %v5450_v21, %v5449_v27  ;;  %v5439_v30 = vadd.f32 %v5438_v49, %v5403_v19  ;;  %v5452_v41 = vsel %vm5446_vm4, %v5404_v22, 0.0 }
 0x27b   : > { %v5407_v35 = vld [vmem:[#allocation2 + $0x28] sm:$0xff]  ;;  %5426 = vst [vmem:[%s7176_s7 + $0x48] sm:$0x3] %v5406_v34  ;;  %v5408_v57 = vld [vmem:[#allocation2 + $0x40] sm:$0x3]  ;;  %5429 = vst [vmem:[%s7176_s7 + $0x60] sm:$0xff] %v5409_v14  ;;  %v5506_v28 = vadd.f32 %v5505_v18, %v5504_v25  ;;  %v5496_v45 = vadd.f32 %v5495_v17, %v5479_v16  ;;  %v5482_v51 = vmul.f32 %v5404_v22, %v5404_v22 }
 0x27c   : > { %5427 = vst [vmem:[%s7176_s7 + $0x50] sm:$0xff] %v5407_v35  ;;  %v5410_v26 = vld [vmem:[#allocation2 + $0x10] sm:$0x3]  ;;  %v5411_v5 = vld [vmem:[#allocation2 + $0x98] sm:$0xff]  ;;  %5428 = vst [vmem:[%s7176_s7 + $0x58] sm:$0x3] %v5408_v57  ;;  %v5483_v39 = vmul.f32 %v5405_v24, %v5405_v24  ;;  %v5453_v58 = vadd.f32 %v5452_v41, %v5451_v29  ;;  %v5440_v42 = vadd.f32 %v5439_v30, %v5405_v24 }
 0x27d   : > { %5430 = vst [vmem:[%s7176_s7 + $0x68] sm:$0x3] %v5410_v26  ;;  %5431 = vst [vmem:[%s7176_s7 + $0x70] sm:$0xff] %v5411_v5  ;;  %v5412_v43 = vld [vmem:[#allocation2 + $0x60] sm:$0x3]  ;;  %v5507_v46 = vsel %vm5446_vm4, %v5480_v60, 0.0  ;;  %v5497_v37 = vadd.f32 %v5496_v45, %v5481_v36  ;;  %v5484_v63 = vmul.f32 %v5406_v34, %v5406_v34  ;;  %v5485_v0 = vmul.f32 %v5407_v35, %v5407_v35 }
 0x27e   : > { %v5413_v62 = vld [vmem:[#allocation2 + $0x20] sm:$0xff]  ;;  %v5414_v44 = vld [vmem:[#allocation2 + $0x48] sm:$0x3]  ;;  %5432 = vst [vmem:[%s7176_s7 + $0x78] sm:$0x3] %v5412_v43  ;;  %v5415_v53 = vld [vmem:[#allocation2 + $0x70] sm:$0xff]  ;;  %v5508_v40 = vadd.f32 %v5507_v46, %v5506_v28  ;;  %v5441_v48 = vadd.f32 %v5440_v42, %v5407_v35  ;;  %v5486_v9 = vmul.f32 %v5408_v57, %v5408_v57  ;;  %v5487_v20 = vmul.f32 %v5409_v14, %v5409_v14 }
 0x27f   : > { %5433 = vst [vmem:[%s7176_s7 + $0x80] sm:$0xff] %v5413_v62  ;;  %5434 = vst [vmem:[%s7176_s7 + $0x88] sm:$0x3] %v5414_v44  ;;  %v5416_v54 = vld [vmem:[#allocation2 + $0x90] sm:$0x3]  ;;  %v5454_v31 = vsel %vm5446_vm4, %v5406_v34, 0.0  ;;  %v5498_v6 = vadd.f32 %v5497_v37, %v5483_v39  ;;  %v5488_v11 = vmul.f32 %v5410_v26, %v5410_v26  ;;  %v5489_v56 = vmul.f32 %v5411_v5, %v5411_v5 }
 0x280   : > { %5435 = vst [vmem:[%s7176_s7 + $0x90] sm:$0xff] %v5415_v53  ;;  %5436 = vst [vmem:[%s7176_s7 + $0x98] sm:$0x3] %v5416_v54  ;;  %v5509_v61 = vsel %vm5446_vm4, %v5482_v51, 0.0  ;;  %v5455_v23 = vadd.f32 %v5454_v31, %v5453_v58  ;;  %v5456_v50 = vsel %vm5446_vm4, %v5408_v57, 0.0  ;;  %v5511_v3 = vsel %vm5446_vm4, %v5484_v63, 0.0 }
 0x281   : > { %v5510_v1 = vadd.f32 %v5509_v61, %v5508_v40  ;;  %v5442_v7 = vadd.f32 %v5441_v48, %v5409_v14  ;;  %v5458_v8 = vsel %vm5446_vm4, %v5410_v26, 0.0  ;;  %v5499_v10 = vadd.f32 %v5498_v6, %v5485_v0 }
 0x282   : > { %v5457_v59 = vadd.f32 %v5456_v50, %v5455_v23  ;;  %v5513_v12 = vsel %vm5446_vm4, %v5486_v9, 0.0  ;;  %v5460_v2 = vsel %vm5446_vm4, %v5412_v43, 0.0  ;;  %v5515_v47 = vsel %vm5446_vm4, %v5488_v11, 0.0 }
 0x283   : > { %v5512_v38 = vadd.f32 %v5511_v3, %v5510_v1  ;;  %v5443_v55 = vadd.f32 %v5442_v7, %v5411_v5  ;;  %v5500_v32 = vadd.f32 %v5499_v10, %v5487_v20  ;;  %v5490_v13 = vmul.f32 %v5412_v43, %v5412_v43 }
 0x284   : > { %v5459_v33 = vadd.f32 %v5458_v8, %v5457_v59  ;;  %v5491_v15 = vmul.f32 %v5413_v62, %v5413_v62  ;;  %v5462_v22 = vsel %vm5446_vm4, %v5414_v44, 0.0  ;;  %v5492_v27 = vmul.f32 %v5414_v44, %v5414_v44 }
 0x285   : > { %v5514_v4 = vadd.f32 %v5513_v12, %v5512_v38  ;;  %v5444_v19 = vadd.f32 %v5443_v55, %v5413_v62  ;;  %v5501_v24 = vadd.f32 %v5500_v32, %v5489_v56  ;;  %v5517_v25 = vsel %vm5446_vm4, %v5490_v13, 0.0 }
 0x286   : > { %v5461_v16 = vadd.f32 %v5460_v2, %v5459_v33  ;;  %v5493_v49 = vmul.f32 %v5415_v53, %v5415_v53  ;;  %v5464_v35 = vsel %vm5446_vm4, %v5416_v54, 0.0  ;;  %v5519_v17 = vsel %vm5446_vm4, %v5492_v27, 0.0 }
 0x287   : > { %v5516_v52 = vadd.f32 %v5515_v47, %v5514_v4  ;;  %v5502_v14 = vadd.f32 %v5501_v24, %v5491_v15  ;;  %v5445_v18 = vadd.f32 %v5444_v19, %v5415_v53  ;;  %v5494_v60 = vmul.f32 %v5416_v54, %v5416_v54 }
 0x288   : > { %v5463_v34 = vadd.f32 %v5462_v22, %v5461_v16 }
 0x289   : > { %v5518_v21 = vadd.f32 %v5517_v25, %v5516_v52  ;;  %v5503_v26 = vadd.f32 %v5502_v14, %v5493_v49  ;;  %v5521_v5 = vsel %vm5446_vm4, %v5494_v60, 0.0 }
 0x28a   : > { %v5465_v57 = vadd.f32 %v5464_v35, %v5463_v34 }
 0x28b   : > { %v5520_v36 = vadd.f32 %v5519_v17, %v5518_v21 }
 0x28c   : > { %v5466_v29 = vsel %vm5446_vm4, %v5465_v57, 0.0 }
 0x28d   : > { %v5522_v28 = vadd.f32 %v5521_v5, %v5520_v36  ;;  %v5467_v30 = vadd.f32 %v5466_v29, %v5445_v18 }
 0x28f   : > { %v5523_v41 = vsel %vm5446_vm4, %v5522_v28, 0.0  ;;  %v5468_v43 = vrot.slane %v5467_v30, 4 }
 0x290   : > { %v5524_v62 = vadd.f32 %v5523_v41, %v5503_v26 }
 0x291   : > { %v5469_v44 = vadd.f32 %v5468_v43, %v5467_v30 }
 0x292   : > { %v5525_v45 = vrot.slane %v5524_v62, 4 }
 0x293   : > { %v5470_v46 = vrot.slane %v5469_v44, 2 }
 0x294   : > { %v5526_v51 = vadd.f32 %v5525_v45, %v5524_v62 }
 0x295   : > { %v5471_v39 = vadd.f32 %v5470_v46, %v5469_v44 }
 0x296   : > { %v5527_v53 = vrot.slane %v5526_v51, 2 }
 0x297   : > { %v5472_v54 = vrot.slane %v5471_v39, 1 }
 0x298   : > { %v5528_v40 = vadd.f32 %v5527_v53, %v5526_v51 }
 0x299   : > { %v5473_v58 = vadd.f32 %v5472_v54, %v5471_v39 }
 0x29a   : > { %v5529_v42 = vrot.slane %v5528_v40, 1 }
 0x29b   : > { %5474 = vst [vmem:[%s294_s12] sm:$0x1] %v5473_v58 }
 0x29c   : > { %v5530_v31 = vadd.f32 %v5529_v42, %v5528_v40 }
 0x29e   : > { %5531 = vst [vmem:[%s300_s30] sm:$0x1] %v5530_v31 }
 0x29f PF: > { %s18_s22 = sadd.s32 1, %s7038_s22   ;;  %s8063_s15 = smov %s7014_s16 }
 0x2a0   : > { %p15_p11 = scmp.ge.s32.totalorder %s18_s22, 20   ;;  %s8064_s16 = smov %s7018_s17 }
 0x2a1   : > { %s8065_s17 = smov %s7125_s28  ;;  %s8066_s18 = smov %s7030_s20 }
 0x2a2   : > { %s8067_s19 = smov %s7034_s21  ;;  %s8068_s20 = smov %s8071_s24 }
 0x2a3   : > { %s8069_s21 = smov %s8075_s25  ;;  %17 = sbr.rel (!%p15_p11) target bundleno = 5 (0x5), region = 122 }
 0x2a8   :  { %5595 = vsyncpa [#allocation4], 1 }
 0x2a9   :  { %5597 = vsyncpa [#allocation4 + $0x1], 1 }

</bundles_post_ra>
